<compile_context>
chip_gen: v7x
topology: tpu7x:2x2x1
jax: 0.10.0
libtpu: 0.0.40
codegen_flags: <defaults>
</compile_context>

<pallas_src>
import math

import jax
import jax.numpy as jnp
from jax.experimental import pallas as pl
from jax.experimental.pallas import tpu as pltpu

# ----------------------------- model config ---------------------------------
EMBED_DIM = 32
NHEAD = 4
HEAD_DIM = EMBED_DIM // NHEAD
FF_DIM = 64
NUM_LAYERS = 2          # encoder layers == decoder layers (required for packing)
L = NUM_LAYERS
BATCH = 2
SEQ = 8                 # S_src == S_tgt (required by the torch mask broadcasting)
NEG_INF = -1000000000.0
LN_EPS = 1e-5


# --------------------------- in-kernel helpers -------------------------------
def _add_ln(x, r, gamma, beta):
    """LayerNorm(x + r) over last dim. x, r: (N, E); gamma/beta: (1, E)."""
    y = x + r
    mu = jnp.mean(y, axis=-1, keepdims=True)
    var = jnp.mean(jnp.square(y - mu), axis=-1, keepdims=True)
    return (y - mu) * jax.lax.rsqrt(var + LN_EPS) * gamma + beta


def _ffn(x, w1, b1, w2, b2):
    """relu(x @ W1 + b1) @ W2 + b2. x: (N, E)."""
    h = jnp.maximum(jnp.dot(x, w1, preferred_element_type=jnp.float32) + b1, 0.0)
    return jnp.dot(h, w2, preferred_element_type=jnp.float32) + b2


def _mha(x_q, x_kv, bias, wqkv, bqkv, wo, bo, *, self_attn):
    """Multi-head attention on flattened activations.

    x_q: (B*Sq, E), x_kv: (B*Skv, E); bias: (B, Sq, Skv) additive (0 / -1e9).
    wqkv: (E, 3E) = [Wq*scale | Wk | Wv], bqkv: (1, 3E); wo: (E, E); bo: (1, E).
    The 1/sqrt(head_dim) attention scale is pre-folded into the Q columns.
    """
    E = EMBED_DIM
    if self_attn:
        # single fused QKV matmul
        qkv = jnp.dot(x_q, wqkv, preferred_element_type=jnp.float32) + bqkv
        q = qkv[:, :E]
        k = qkv[:, E:2 * E]
        v = qkv[:, 2 * E:]
    else:
        # Q from the query stream, fused K|V from the memory stream
        q = jnp.dot(x_q, wqkv[:, :E], preferred_element_type=jnp.float32) + bqkv[:, :E]
        kv = jnp.dot(x_kv, wqkv[:, E:], preferred_element_type=jnp.float32) + bqkv[:, E:]
        k = kv[:, :E]
        v = kv[:, E:]

    # (16, 32) -> (2, 8, 32): only splits the sublane axis, layout-free.
    q3 = q.reshape(BATCH, -1, E)
    k3 = k.reshape(BATCH, -1, E)
    v3 = v.reshape(BATCH, -1, E)

    out = None
    for h in range(NHEAD):
        lo, hi = h * HEAD_DIM, (h + 1) * HEAD_DIM
        s = jnp.einsum("bqd,bkd->bqk", q3[:, :, lo:hi], k3[:, :, lo:hi],
                       preferred_element_type=jnp.float32) + bias
        s = s - jnp.max(s, axis=-1, keepdims=True)      # stable softmax
        p = jnp.exp(s)
        # exact reciprocal (approx=True would move to EUP but loosens the 1e-4 check)
        p = p * pl.reciprocal(jnp.sum(p, axis=-1, keepdims=True))
        oh = jnp.einsum("bqk,bkd->bqd", p, v3[:, :, lo:hi],
                        preferred_element_type=jnp.float32)          # (B, Sq, hd)
        # fold the head directly into the output projection (no lane concat)
        contrib = jnp.dot(oh.reshape(-1, HEAD_DIM), wo[lo:hi, :],
                          preferred_element_type=jnp.float32)        # (N, E)
        out = contrib if out is None else out + contrib
    return out + bo


# ------------------------------ fused kernel ---------------------------------
# Packed weight layouts (leading axis = kind*L + layer):
#   wqkv / bqkv / wo / bo : kinds = [enc self | dec self | dec cross]   -> 3L
#   ln_g / ln_b           : kinds = [enc n1 | dec n1 | dec n2 | dec n3] -> 4L
#   w1 / b1 / w2 / b2     : kinds = [enc ffn | dec ffn]                 -> 2L
def transformer_kernel(src_ref, tgt_ref, src_bias_ref, tgt_bias_ref,
                       wqkv_ref, bqkv_ref, wo_ref, bo_ref,
                       g_ref, b_ref, w1_ref, b1_ref, w2_ref, b2_ref,
                       out_ref):
    src_bias = src_bias_ref[...]          # (B, S, S) additive
    tgt_bias = tgt_bias_ref[...]

    # ----------------------------- encoder ------------------------------
    x = src_ref[...]                      # (B*S, E)
    for l in range(L):
        sa = _mha(x, x, src_bias, wqkv_ref[l], bqkv_ref[l],
                  wo_ref[l], bo_ref[l], self_attn=True)
        x = _add_ln(x, sa, g_ref[l], b_ref[l])
        ff = _ffn(x, w1_ref[l], b1_ref[l], w2_ref[l], b2_ref[l])
        x = _add_ln(x, ff, g_ref[l], b_ref[l])        # torch module applies norm1 twice
    mem = x

    # ----------------------------- decoder ------------------------------
    y = tgt_ref[...]                      # (B*S, E)
    for l in range(L):
        sa = _mha(y, y, tgt_bias, wqkv_ref[L + l], bqkv_ref[L + l],
                  wo_ref[L + l], bo_ref[L + l], self_attn=True)
        y = _add_ln(y, sa, g_ref[L + l], b_ref[L + l])           # norm1
        ca = _mha(y, mem, src_bias, wqkv_ref[2 * L + l], bqkv_ref[2 * L + l],
                  wo_ref[2 * L + l], bo_ref[2 * L + l], self_attn=False)
        y = _add_ln(y, ca, g_ref[2 * L + l], b_ref[2 * L + l])   # norm2
        ff = _ffn(y, w1_ref[L + l], b1_ref[L + l], w2_ref[L + l], b2_ref[L + l])
        y = _add_ln(y, ff, g_ref[3 * L + l], b_ref[3 * L + l])   # norm3

    out_ref[...] = y


def transformer_pallas(packed_params, src, tgt, src_bias, tgt_bias):
    B, S, E = src.shape
    args = [src.reshape(B * S, E), tgt.reshape(B * S, E), src_bias, tgt_bias]
    args += list(packed_params)
    vmem = pl.BlockSpec(memory_space=pltpu.MemorySpace.VMEM)
    out = pl.pallas_call(
        transformer_kernel,
        out_shape=jax.ShapeDtypeStruct((B * S, E), jnp.float32),
        in_specs=[vmem] * len(args),
        out_specs=vmem,
    )(*args)
    return out.reshape(B, S, E)


# ------------------------------ parameter init ------------------------------
def init_linear(key, fan_in, fan_out):
    k1, k2 = jax.random.split(key)
    bound = 1.0 / math.sqrt(fan_in)
    w = jax.random.uniform(k1, (fan_in, fan_out), jnp.float32, -bound, bound)
    b = jax.random.uniform(k2, (1, fan_out), jnp.float32, -bound, bound)
    return w, b


def init_mha(key, embed_dim):
    ks = jax.random.split(key, 4)
    p = {}
    for name, k in zip(("q", "k", "v", "o"), ks):
        w, b = init_linear(k, embed_dim, embed_dim)
        p[f"w{name}"] = w
        p[f"b{name}"] = b
    return p


def init_ln(embed_dim):
    return {"gamma": jnp.ones((1, embed_dim), jnp.float32),
            "beta": jnp.zeros((1, embed_dim), jnp.float32)}


def init_encoder_layer(key, embed_dim, ff_dim):
    k1, k2, k3 = jax.random.split(key, 3)
    w1, b1 = init_linear(k2, embed_dim, ff_dim)
    w2, b2 = init_linear(k3, ff_dim, embed_dim)
    return {
        "self_attn": init_mha(k1, embed_dim),
        "norm1": init_ln(embed_dim),
        "norm2": init_ln(embed_dim),   # created but unused (mirrors the torch quirk)
        "ff": {"w1": w1, "b1": b1, "w2": w2, "b2": b2},
    }


def init_decoder_layer(key, embed_dim, ff_dim):
    k1, k2, k3, k4 = jax.random.split(key, 4)
    w1, b1 = init_linear(k3, embed_dim, ff_dim)
    w2, b2 = init_linear(k4, ff_dim, embed_dim)
    return {
        "self_attn": init_mha(k1, embed_dim),
        "cross_attn": init_mha(k2, embed_dim),
        "norm1": init_ln(embed_dim),
        "norm2": init_ln(embed_dim),
        "norm3": init_ln(embed_dim),
        "ff": {"w1": w1, "b1": b1, "w2": w2, "b2": b2},
    }


def init_transformer(key):
    keys = jax.random.split(key, 2 * L)
    enc = [init_encoder_layer(keys[i], EMBED_DIM, FF_DIM) for i in range(L)]
    dec = [init_decoder_layer(keys[L + i], EMBED_DIM, FF_DIM) for i in range(L)]
    return {"encoder": enc, "decoder": dec}


def pack_transformer_params(params):
    """Fuse QKV, fold the attention scale into Q, and pack by shape group.

    Packing order along the leading axis is kind-major, layer-minor and must
    match the static indexing used inside `transformer_kernel`.
    """
    enc, dec = params["encoder"], params["decoder"]
    scale = 1.0 / math.sqrt(HEAD_DIM)

    def wqkv(p):
        return jnp.concatenate([p["wq"] * scale, p["wk"], p["wv"]], axis=1)  # (E, 3E)

    def bqkv(p):
        return jnp.concatenate([p["bq"] * scale, p["bk"], p["bv"]], axis=1)  # (1, 3E)

    attn_sets = ([l["self_attn"] for l in enc]
                 + [l["self_attn"] for l in dec]
                 + [l["cross_attn"] for l in dec])
    norm_sets = ([l["norm1"] for l in enc]
                 + [l["norm1"] for l in dec]
                 + [l["norm2"] for l in dec]
                 + [l["norm3"] for l in dec])
    ff_sets = [l["ff"] for l in enc] + [l["ff"] for l in dec]

    packed = [
        jnp.stack([wqkv(p) for p in attn_sets]),       # (3L, E, 3E)
        jnp.stack([bqkv(p) for p in attn_sets]),       # (3L, 1, 3E)
        jnp.stack([p["wo"] for p in attn_sets]),       # (3L, E, E)
        jnp.stack([p["bo"] for p in attn_sets]),       # (3L, 1, E)
        jnp.stack([p["gamma"] for p in norm_sets]),    # (4L, 1, E)
        jnp.stack([p["beta"] for p in norm_sets]),     # (4L, 1, E)
        jnp.stack([p["w1"] for p in ff_sets]),         # (2L, E, F)
        jnp.stack([p["b1"] for p in ff_sets]),         # (2L, 1, F)
        jnp.stack([p["w2"] for p in ff_sets]),         # (2L, F, E)
        jnp.stack([p["b2"] for p in ff_sets]),         # (2L, 1, E)
    ]
    return packed


# ------------------------------ pure-JAX reference ---------------------------
def mha_ref(x_q, x_kv, mask, p, nhead):
    B, Sq, E = x_q.shape
    hd = E // nhead
    q = x_q @ p["wq"] + p["bq"][0]
    k = x_kv @ p["wk"] + p["bk"][0]
    v = x_kv @ p["wv"] + p["bv"][0]
    qh = q.reshape(B, Sq, nhead, hd).transpose(0, 2, 1, 3)
    kh = k.reshape(B, -1, nhead, hd).transpose(0, 2, 1, 3)
    vh = v.reshape(B, -1, nhead, hd).transpose(0, 2, 1, 3)
    s = qh @ kh.transpose(0, 1, 3, 2) / math.sqrt(hd)
    s = jnp.where(mask[:, None], NEG_INF, s)
    a = jax.nn.softmax(s, axis=-1)
    o = (a @ vh).transpose(0, 2, 1, 3).reshape(B, Sq, E)
    return o @ p["wo"] + p["bo"][0]


def add_ln_ref(x, r, p):
    y = x + r
    mu = jnp.mean(y, axis=-1, keepdims=True)
    var = jnp.mean((y - mu) ** 2, axis=-1, keepdims=True)
    return (y - mu) / jnp.sqrt(var + LN_EPS) * p["gamma"][0] + p["beta"][0]


def ffn_ref(x, p):
    return jnp.maximum(x @ p["w1"] + p["b1"][0], 0.0) @ p["w2"] + p["b2"][0]


def transformer_ref(params, src, tgt, src_mask, tgt_mask, mem_mask):
    mem = src
    for p in params["encoder"]:
        mem = add_ln_ref(mem, mha_ref(mem, mem, src_mask, p["self_attn"], NHEAD), p["norm1"])
        mem = add_ln_ref(mem, ffn_ref(mem, p["ff"]), p["norm1"])
    out = tgt
    for p in params["decoder"]:
        out = add_ln_ref(out, mha_ref(out, out, tgt_mask, p["self_attn"], NHEAD), p["norm1"])
        out = add_ln_ref(out, mha_ref(out, mem, mem_mask, p["cross_attn"], NHEAD), p["norm2"])
        out = add_ln_ref(out, ffn_ref(out, p["ff"]), p["norm3"])
    return out


# ------------------------------------ main -----------------------------------
if __name__ == "__main__":
    key = jax.random.PRNGKey(0)
    k_params, k_src, k_tgt = jax.random.split(key, 3)

    params = init_transformer(k_params)
    packed = pack_transformer_params(params)

    src = jax.random.normal(k_src, (BATCH, SEQ, EMBED_DIM), jnp.float32)
    tgt = jax.random.normal(k_tgt, (BATCH, SEQ, EMBED_DIM), jnp.float32)

    # src padding mask: batch 0 full length, batch 1 keeps first 5 tokens.
    lengths = jnp.array([SEQ, 5])
    key_pad = jnp.arange(SEQ)[None, :] >= lengths[:, None]           # (B, S), True = masked
    src_mask = jnp.broadcast_to(key_pad[:, None, :], (BATCH, SEQ, SEQ))
    # tgt causal mask (triu, diagonal=1), as in generate_square_subsequent_mask.
    causal = jnp.triu(jnp.ones((SEQ, SEQ), jnp.bool_), k=1)
    tgt_mask = jnp.broadcast_to(causal[None], (BATCH, SEQ, SEQ))

    # Precomputed additive attention biases (masked -> -1e9, else 0).
    src_bias = jnp.where(src_mask, NEG_INF, 0.0).astype(jnp.float32)
    tgt_bias = jnp.where(tgt_mask, NEG_INF, 0.0).astype(jnp.float32)

    # TODO(synk): dropout (p=0.1) is treated as inference-mode identity.
    out = transformer_pallas(packed, src, tgt, src_bias, tgt_bias)
    out = jax.block_until_ready(out)

    ref = transformer_ref(params, src, tgt, src_mask, tgt_mask, src_mask)
    ref = jax.block_until_ready(ref)

    assert out.shape == (BATCH, SEQ, EMBED_DIM)
    max_err = float(jnp.max(jnp.abs(out - ref)))
    assert max_err < 1e-4, f"mismatch vs reference: {max_err}"

    print("KERNEL_OK")
</pallas_src>

<mosaic_0001>
module attributes {stable_mosaic.version = 11 : i64} {
  func.func @transformer_kernel(%arg0: memref<16x32xf32, #tpu.memory_space<vmem>>, %arg1: memref<16x32xf32, #tpu.memory_space<vmem>>, %arg2: memref<2x8x8xf32, #tpu.memory_space<vmem>>, %arg3: memref<2x8x8xf32, #tpu.memory_space<vmem>>, %arg4: memref<6x32x96xf32, #tpu.memory_space<vmem>>, %arg5: memref<6x1x96xf32, #tpu.memory_space<vmem>>, %arg6: memref<6x32x32xf32, #tpu.memory_space<vmem>>, %arg7: memref<6x1x32xf32, #tpu.memory_space<vmem>>, %arg8: memref<8x1x32xf32, #tpu.memory_space<vmem>>, %arg9: memref<8x1x32xf32, #tpu.memory_space<vmem>>, %arg10: memref<4x32x64xf32, #tpu.memory_space<vmem>>, %arg11: memref<4x1x64xf32, #tpu.memory_space<vmem>>, %arg12: memref<4x64x32xf32, #tpu.memory_space<vmem>>, %arg13: memref<4x1x32xf32, #tpu.memory_space<vmem>>, %arg14: memref<16x32xf32, #tpu.memory_space<vmem>>) attributes {dimension_semantics = [], scalar_prefetch = 0 : i64, scratch_operands = 0 : i64, tpu.core_type = #tpu.core_type<tc>} {
    %c0 = arith.constant 0 : index
    %c0_0 = arith.constant 0 : index
    %c0_1 = arith.constant 0 : index
    %0 = vector.load %arg2[%c0, %c0_0, %c0_1] : memref<2x8x8xf32, #tpu.memory_space<vmem>>, vector<2x8x8xf32>
    %c0_2 = arith.constant 0 : index
    %c0_3 = arith.constant 0 : index
    %c0_4 = arith.constant 0 : index
    %1 = vector.load %arg3[%c0_2, %c0_3, %c0_4] : memref<2x8x8xf32, #tpu.memory_space<vmem>>, vector<2x8x8xf32>
    %c0_5 = arith.constant 0 : index
    %c0_6 = arith.constant 0 : index
    %2 = vector.load %arg0[%c0_5, %c0_6] : memref<16x32xf32, #tpu.memory_space<vmem>>, vector<16x32xf32>
    %c0_7 = arith.constant 0 : index
    %c0_8 = arith.constant 0 : index
    %c0_9 = arith.constant 0 : index
    %3 = vector.load %arg4[%c0_7, %c0_8, %c0_9] : memref<6x32x96xf32, #tpu.memory_space<vmem>>, vector<1x32x96xf32>
    %4 = vector.shape_cast %3 : vector<1x32x96xf32> to vector<32x96xf32>
    %c0_10 = arith.constant 0 : index
    %c0_11 = arith.constant 0 : index
    %c0_12 = arith.constant 0 : index
    %5 = vector.load %arg5[%c0_10, %c0_11, %c0_12] : memref<6x1x96xf32, #tpu.memory_space<vmem>>, vector<1x1x96xf32>
    %6 = vector.shape_cast %5 : vector<1x1x96xf32> to vector<1x96xf32>
    %c0_13 = arith.constant 0 : index
    %c0_14 = arith.constant 0 : index
    %c0_15 = arith.constant 0 : index
    %7 = vector.load %arg6[%c0_13, %c0_14, %c0_15] : memref<6x32x32xf32, #tpu.memory_space<vmem>>, vector<1x32x32xf32>
    %8 = vector.shape_cast %7 : vector<1x32x32xf32> to vector<32x32xf32>
    %c0_16 = arith.constant 0 : index
    %c0_17 = arith.constant 0 : index
    %c0_18 = arith.constant 0 : index
    %9 = vector.load %arg7[%c0_16, %c0_17, %c0_18] : memref<6x1x32xf32, #tpu.memory_space<vmem>>, vector<1x1x32xf32>
    %10 = vector.shape_cast %9 : vector<1x1x32xf32> to vector<1x32xf32>
    %cst = arith.constant dense<0.000000e+00> : vector<16x96xf32>
    %11 = tpu.matmul %2, %4, %cst {dimension_numbers = #tpu.dot_dimension_numbers<[1], [0], [0], [1], [0, 0, 1, 1], [], []>} : vector<16x32xf32>, vector<32x96xf32>, vector<16x96xf32> -> vector<16x96xf32>
    %12 = vector.broadcast %6 : vector<1x96xf32> to vector<16x96xf32>
    %13 = arith.addf %11, %12 : vector<16x96xf32>
    %14 = vector.extract_strided_slice %13 {offsets = [0, 0], sizes = [16, 32], strides = [1, 1]} : vector<16x96xf32> to vector<16x32xf32>
    %15 = vector.extract_strided_slice %13 {offsets = [0, 32], sizes = [16, 32], strides = [1, 1]} : vector<16x96xf32> to vector<16x32xf32>
    %16 = vector.extract_strided_slice %13 {offsets = [0, 64], sizes = [16, 32], strides = [1, 1]} : vector<16x96xf32> to vector<16x32xf32>
    %17 = vector.shape_cast %14 : vector<16x32xf32> to vector<2x8x32xf32>
    %18 = vector.shape_cast %15 : vector<16x32xf32> to vector<2x8x32xf32>
    %19 = vector.shape_cast %16 : vector<16x32xf32> to vector<2x8x32xf32>
    %20 = vector.extract_strided_slice %17 {offsets = [0, 0, 0], sizes = [2, 8, 8], strides = [1, 1, 1]} : vector<2x8x32xf32> to vector<2x8x8xf32>
    %21 = vector.extract_strided_slice %18 {offsets = [0, 0, 0], sizes = [2, 8, 8], strides = [1, 1, 1]} : vector<2x8x32xf32> to vector<2x8x8xf32>
    "tpu.trace_start"() <{level = 10 : i32, message = "bqd,bkd->bqk"}> : () -> ()
    %cst_19 = arith.constant dense<0.000000e+00> : vector<2x8x8xf32>
    %22 = tpu.matmul %20, %21, %cst_19 {dimension_numbers = #tpu.dot_dimension_numbers<[2], [2], [1], [1], [0, 0, 0, 1, 1, 1], [0], [0]>} : vector<2x8x8xf32>, vector<2x8x8xf32>, vector<2x8x8xf32> -> vector<2x8x8xf32>
    "tpu.trace_stop"() : () -> ()
    %23 = arith.addf %22, %0 : vector<2x8x8xf32>
    %cst_20 = arith.constant dense<0xFF800000> : vector<2x8xf32>
    %24 = vector.multi_reduction <maximumf>, %23, %cst_20 [2] : vector<2x8x8xf32> to vector<2x8xf32>
    %25 = vector.shape_cast %24 : vector<2x8xf32> to vector<2x8x1xf32>
    %26 = vector.broadcast %25 : vector<2x8x1xf32> to vector<2x8x8xf32>
    %27 = arith.subf %23, %26 : vector<2x8x8xf32>
    %28 = math.exp %27 : vector<2x8x8xf32>
    %cst_21 = arith.constant dense<0.000000e+00> : vector<2x8xf32>
    %29 = vector.multi_reduction <add>, %28, %cst_21 [2] : vector<2x8x8xf32> to vector<2x8xf32>
    %30 = vector.shape_cast %29 : vector<2x8xf32> to vector<2x8x1xf32>
    %31 = tpu.reciprocal %30 : vector<2x8x1xf32> -> vector<2x8x1xf32>
    %32 = vector.broadcast %31 : vector<2x8x1xf32> to vector<2x8x8xf32>
    %33 = arith.mulf %28, %32 : vector<2x8x8xf32>
    %34 = vector.extract_strided_slice %19 {offsets = [0, 0, 0], sizes = [2, 8, 8], strides = [1, 1, 1]} : vector<2x8x32xf32> to vector<2x8x8xf32>
    "tpu.trace_start"() <{level = 10 : i32, message = "bqk,bkd->bqd"}> : () -> ()
    %cst_22 = arith.constant dense<0.000000e+00> : vector<2x8x8xf32>
    %35 = tpu.matmul %33, %34, %cst_22 {dimension_numbers = #tpu.dot_dimension_numbers<[2], [1], [1], [2], [0, 0, 0, 1, 1, 2], [0], [0]>} : vector<2x8x8xf32>, vector<2x8x8xf32>, vector<2x8x8xf32> -> vector<2x8x8xf32>
    "tpu.trace_stop"() : () -> ()
    %36 = vector.shape_cast %35 : vector<2x8x8xf32> to vector<16x8xf32>
    %37 = vector.extract_strided_slice %8 {offsets = [0, 0], sizes = [8, 32], strides = [1, 1]} : vector<32x32xf32> to vector<8x32xf32>
    %cst_23 = arith.constant dense<0.000000e+00> : vector<16x32xf32>
    %38 = tpu.matmul %36, %37, %cst_23 {dimension_numbers = #tpu.dot_dimension_numbers<[1], [0], [0], [1], [0, 0, 1, 1], [], []>} : vector<16x8xf32>, vector<8x32xf32>, vector<16x32xf32> -> vector<16x32xf32>
    %39 = vector.extract_strided_slice %17 {offsets = [0, 0, 8], sizes = [2, 8, 8], strides = [1, 1, 1]} : vector<2x8x32xf32> to vector<2x8x8xf32>
    %40 = vector.extract_strided_slice %18 {offsets = [0, 0, 8], sizes = [2, 8, 8], strides = [1, 1, 1]} : vector<2x8x32xf32> to vector<2x8x8xf32>
    "tpu.trace_start"() <{level = 10 : i32, message = "bqd,bkd->bqk"}> : () -> ()
    %cst_24 = arith.constant dense<0.000000e+00> : vector<2x8x8xf32>
    %41 = tpu.matmul %39, %40, %cst_24 {dimension_numbers = #tpu.dot_dimension_numbers<[2], [2], [1], [1], [0, 0, 0, 1, 1, 1], [0], [0]>} : vector<2x8x8xf32>, vector<2x8x8xf32>, vector<2x8x8xf32> -> vector<2x8x8xf32>
    "tpu.trace_stop"() : () -> ()
    %42 = arith.addf %41, %0 : vector<2x8x8xf32>
    %cst_25 = arith.constant dense<0xFF800000> : vector<2x8xf32>
    %43 = vector.multi_reduction <maximumf>, %42, %cst_25 [2] : vector<2x8x8xf32> to vector<2x8xf32>
    %44 = vector.shape_cast %43 : vector<2x8xf32> to vector<2x8x1xf32>
    %45 = vector.broadcast %44 : vector<2x8x1xf32> to vector<2x8x8xf32>
    %46 = arith.subf %42, %45 : vector<2x8x8xf32>
    %47 = math.exp %46 : vector<2x8x8xf32>
    %cst_26 = arith.constant dense<0.000000e+00> : vector<2x8xf32>
    %48 = vector.multi_reduction <add>, %47, %cst_26 [2] : vector<2x8x8xf32> to vector<2x8xf32>
    %49 = vector.shape_cast %48 : vector<2x8xf32> to vector<2x8x1xf32>
    %50 = tpu.reciprocal %49 : vector<2x8x1xf32> -> vector<2x8x1xf32>
    %51 = vector.broadcast %50 : vector<2x8x1xf32> to vector<2x8x8xf32>
    %52 = arith.mulf %47, %51 : vector<2x8x8xf32>
    %53 = vector.extract_strided_slice %19 {offsets = [0, 0, 8], sizes = [2, 8, 8], strides = [1, 1, 1]} : vector<2x8x32xf32> to vector<2x8x8xf32>
    "tpu.trace_start"() <{level = 10 : i32, message = "bqk,bkd->bqd"}> : () -> ()
    %cst_27 = arith.constant dense<0.000000e+00> : vector<2x8x8xf32>
    %54 = tpu.matmul %52, %53, %cst_27 {dimension_numbers = #tpu.dot_dimension_numbers<[2], [1], [1], [2], [0, 0, 0, 1, 1, 2], [0], [0]>} : vector<2x8x8xf32>, vector<2x8x8xf32>, vector<2x8x8xf32> -> vector<2x8x8xf32>
    "tpu.trace_stop"() : () -> ()
    %55 = vector.shape_cast %54 : vector<2x8x8xf32> to vector<16x8xf32>
    %56 = vector.extract_strided_slice %8 {offsets = [8, 0], sizes = [8, 32], strides = [1, 1]} : vector<32x32xf32> to vector<8x32xf32>
    %cst_28 = arith.constant dense<0.000000e+00> : vector<16x32xf32>
    %57 = tpu.matmul %55, %56, %cst_28 {dimension_numbers = #tpu.dot_dimension_numbers<[1], [0], [0], [1], [0, 0, 1, 1], [], []>} : vector<16x8xf32>, vector<8x32xf32>, vector<16x32xf32> -> vector<16x32xf32>
    %58 = arith.addf %38, %57 : vector<16x32xf32>
    %59 = vector.extract_strided_slice %17 {offsets = [0, 0, 16], sizes = [2, 8, 8], strides = [1, 1, 1]} : vector<2x8x32xf32> to vector<2x8x8xf32>
    %60 = vector.extract_strided_slice %18 {offsets = [0, 0, 16], sizes = [2, 8, 8], strides = [1, 1, 1]} : vector<2x8x32xf32> to vector<2x8x8xf32>
    "tpu.trace_start"() <{level = 10 : i32, message = "bqd,bkd->bqk"}> : () -> ()
    %cst_29 = arith.constant dense<0.000000e+00> : vector<2x8x8xf32>
    %61 = tpu.matmul %59, %60, %cst_29 {dimension_numbers = #tpu.dot_dimension_numbers<[2], [2], [1], [1], [0, 0, 0, 1, 1, 1], [0], [0]>} : vector<2x8x8xf32>, vector<2x8x8xf32>, vector<2x8x8xf32> -> vector<2x8x8xf32>
    "tpu.trace_stop"() : () -> ()
    %62 = arith.addf %61, %0 : vector<2x8x8xf32>
    %cst_30 = arith.constant dense<0xFF800000> : vector<2x8xf32>
    %63 = vector.multi_reduction <maximumf>, %62, %cst_30 [2] : vector<2x8x8xf32> to vector<2x8xf32>
    %64 = vector.shape_cast %63 : vector<2x8xf32> to vector<2x8x1xf32>
    %65 = vector.broadcast %64 : vector<2x8x1xf32> to vector<2x8x8xf32>
    %66 = arith.subf %62, %65 : vector<2x8x8xf32>
    %67 = math.exp %66 : vector<2x8x8xf32>
    %cst_31 = arith.constant dense<0.000000e+00> : vector<2x8xf32>
    %68 = vector.multi_reduction <add>, %67, %cst_31 [2] : vector<2x8x8xf32> to vector<2x8xf32>
    %69 = vector.shape_cast %68 : vector<2x8xf32> to vector<2x8x1xf32>
    %70 = tpu.reciprocal %69 : vector<2x8x1xf32> -> vector<2x8x1xf32>
    %71 = vector.broadcast %70 : vector<2x8x1xf32> to vector<2x8x8xf32>
    %72 = arith.mulf %67, %71 : vector<2x8x8xf32>
    %73 = vector.extract_strided_slice %19 {offsets = [0, 0, 16], sizes = [2, 8, 8], strides = [1, 1, 1]} : vector<2x8x32xf32> to vector<2x8x8xf32>
    "tpu.trace_start"() <{level = 10 : i32, message = "bqk,bkd->bqd"}> : () -> ()
    %cst_32 = arith.constant dense<0.000000e+00> : vector<2x8x8xf32>
    %74 = tpu.matmul %72, %73, %cst_32 {dimension_numbers = #tpu.dot_dimension_numbers<[2], [1], [1], [2], [0, 0, 0, 1, 1, 2], [0], [0]>} : vector<2x8x8xf32>, vector<2x8x8xf32>, vector<2x8x8xf32> -> vector<2x8x8xf32>
    "tpu.trace_stop"() : () -> ()
    %75 = vector.shape_cast %74 : vector<2x8x8xf32> to vector<16x8xf32>
    %76 = vector.extract_strided_slice %8 {offsets = [16, 0], sizes = [8, 32], strides = [1, 1]} : vector<32x32xf32> to vector<8x32xf32>
    %cst_33 = arith.constant dense<0.000000e+00> : vector<16x32xf32>
    %77 = tpu.matmul %75, %76, %cst_33 {dimension_numbers = #tpu.dot_dimension_numbers<[1], [0], [0], [1], [0, 0, 1, 1], [], []>} : vector<16x8xf32>, vector<8x32xf32>, vector<16x32xf32> -> vector<16x32xf32>
    %78 = arith.addf %58, %77 : vector<16x32xf32>
    %79 = vector.extract_strided_slice %17 {offsets = [0, 0, 24], sizes = [2, 8, 8], strides = [1, 1, 1]} : vector<2x8x32xf32> to vector<2x8x8xf32>
    %80 = vector.extract_strided_slice %18 {offsets = [0, 0, 24], sizes = [2, 8, 8], strides = [1, 1, 1]} : vector<2x8x32xf32> to vector<2x8x8xf32>
    "tpu.trace_start"() <{level = 10 : i32, message = "bqd,bkd->bqk"}> : () -> ()
    %cst_34 = arith.constant dense<0.000000e+00> : vector<2x8x8xf32>
    %81 = tpu.matmul %79, %80, %cst_34 {dimension_numbers = #tpu.dot_dimension_numbers<[2], [2], [1], [1], [0, 0, 0, 1, 1, 1], [0], [0]>} : vector<2x8x8xf32>, vector<2x8x8xf32>, vector<2x8x8xf32> -> vector<2x8x8xf32>
    "tpu.trace_stop"() : () -> ()
    %82 = arith.addf %81, %0 : vector<2x8x8xf32>
    %cst_35 = arith.constant dense<0xFF800000> : vector<2x8xf32>
    %83 = vector.multi_reduction <maximumf>, %82, %cst_35 [2] : vector<2x8x8xf32> to vector<2x8xf32>
    %84 = vector.shape_cast %83 : vector<2x8xf32> to vector<2x8x1xf32>
    %85 = vector.broadcast %84 : vector<2x8x1xf32> to vector<2x8x8xf32>
    %86 = arith.subf %82, %85 : vector<2x8x8xf32>
    %87 = math.exp %86 : vector<2x8x8xf32>
    %cst_36 = arith.constant dense<0.000000e+00> : vector<2x8xf32>
    %88 = vector.multi_reduction <add>, %87, %cst_36 [2] : vector<2x8x8xf32> to vector<2x8xf32>
    %89 = vector.shape_cast %88 : vector<2x8xf32> to vector<2x8x1xf32>
    %90 = tpu.reciprocal %89 : vector<2x8x1xf32> -> vector<2x8x1xf32>
    %91 = vector.broadcast %90 : vector<2x8x1xf32> to vector<2x8x8xf32>
    %92 = arith.mulf %87, %91 : vector<2x8x8xf32>
    %93 = vector.extract_strided_slice %19 {offsets = [0, 0, 24], sizes = [2, 8, 8], strides = [1, 1, 1]} : vector<2x8x32xf32> to vector<2x8x8xf32>
    "tpu.trace_start"() <{level = 10 : i32, message = "bqk,bkd->bqd"}> : () -> ()
    %cst_37 = arith.constant dense<0.000000e+00> : vector<2x8x8xf32>
    %94 = tpu.matmul %92, %93, %cst_37 {dimension_numbers = #tpu.dot_dimension_numbers<[2], [1], [1], [2], [0, 0, 0, 1, 1, 2], [0], [0]>} : vector<2x8x8xf32>, vector<2x8x8xf32>, vector<2x8x8xf32> -> vector<2x8x8xf32>
    "tpu.trace_stop"() : () -> ()
    %95 = vector.shape_cast %94 : vector<2x8x8xf32> to vector<16x8xf32>
    %96 = vector.extract_strided_slice %8 {offsets = [24, 0], sizes = [8, 32], strides = [1, 1]} : vector<32x32xf32> to vector<8x32xf32>
    %cst_38 = arith.constant dense<0.000000e+00> : vector<16x32xf32>
    %97 = tpu.matmul %95, %96, %cst_38 {dimension_numbers = #tpu.dot_dimension_numbers<[1], [0], [0], [1], [0, 0, 1, 1], [], []>} : vector<16x8xf32>, vector<8x32xf32>, vector<16x32xf32> -> vector<16x32xf32>
    %98 = arith.addf %78, %97 : vector<16x32xf32>
    %99 = vector.broadcast %10 : vector<1x32xf32> to vector<16x32xf32>
    %100 = arith.addf %98, %99 : vector<16x32xf32>
    %c0_39 = arith.constant 0 : index
    %c0_40 = arith.constant 0 : index
    %c0_41 = arith.constant 0 : index
    %101 = vector.load %arg8[%c0_39, %c0_40, %c0_41] : memref<8x1x32xf32, #tpu.memory_space<vmem>>, vector<1x1x32xf32>
    %102 = vector.shape_cast %101 : vector<1x1x32xf32> to vector<1x32xf32>
    %c0_42 = arith.constant 0 : index
    %c0_43 = arith.constant 0 : index
    %c0_44 = arith.constant 0 : index
    %103 = vector.load %arg9[%c0_42, %c0_43, %c0_44] : memref<8x1x32xf32, #tpu.memory_space<vmem>>, vector<1x1x32xf32>
    %104 = vector.shape_cast %103 : vector<1x1x32xf32> to vector<1x32xf32>
    %105 = arith.addf %2, %100 : vector<16x32xf32>
    %cst_45 = arith.constant dense<0.000000e+00> : vector<16xf32>
    %106 = vector.multi_reduction <add>, %105, %cst_45 [1] : vector<16x32xf32> to vector<16xf32>
    %107 = vector.shape_cast %106 : vector<16xf32> to vector<16x1xf32>
    %cst_46 = arith.constant 3.200000e+01 : f32
    %108 = vector.broadcast %cst_46 : f32 to vector<16x1xf32>
    %109 = arith.divf %107, %108 : vector<16x1xf32>
    %110 = vector.broadcast %109 : vector<16x1xf32> to vector<16x32xf32>
    %111 = arith.subf %105, %110 : vector<16x32xf32>
    %112 = arith.mulf %111, %111 : vector<16x32xf32>
    %cst_47 = arith.constant dense<0.000000e+00> : vector<16xf32>
    %113 = vector.multi_reduction <add>, %112, %cst_47 [1] : vector<16x32xf32> to vector<16xf32>
    %114 = vector.shape_cast %113 : vector<16xf32> to vector<16x1xf32>
    %cst_48 = arith.constant 3.200000e+01 : f32
    %115 = vector.broadcast %cst_48 : f32 to vector<16x1xf32>
    %116 = arith.divf %114, %115 : vector<16x1xf32>
    %117 = vector.broadcast %109 : vector<16x1xf32> to vector<16x32xf32>
    %118 = arith.subf %105, %117 : vector<16x32xf32>
    %cst_49 = arith.constant 9.99999974E-6 : f32
    %119 = vector.broadcast %cst_49 : f32 to vector<16x1xf32>
    %120 = arith.addf %116, %119 : vector<16x1xf32>
    %121 = math.rsqrt %120 : vector<16x1xf32>
    %122 = vector.broadcast %121 : vector<16x1xf32> to vector<16x32xf32>
    %123 = arith.mulf %118, %122 : vector<16x32xf32>
    %124 = vector.broadcast %102 : vector<1x32xf32> to vector<16x32xf32>
    %125 = arith.mulf %123, %124 : vector<16x32xf32>
    %126 = vector.broadcast %104 : vector<1x32xf32> to vector<16x32xf32>
    %127 = arith.addf %125, %126 : vector<16x32xf32>
    %c0_50 = arith.constant 0 : index
    %c0_51 = arith.constant 0 : index
    %c0_52 = arith.constant 0 : index
    %128 = vector.load %arg10[%c0_50, %c0_51, %c0_52] : memref<4x32x64xf32, #tpu.memory_space<vmem>>, vector<1x32x64xf32>
    %129 = vector.shape_cast %128 : vector<1x32x64xf32> to vector<32x64xf32>
    %c0_53 = arith.constant 0 : index
    %c0_54 = arith.constant 0 : index
    %c0_55 = arith.constant 0 : index
    %130 = vector.load %arg11[%c0_53, %c0_54, %c0_55] : memref<4x1x64xf32, #tpu.memory_space<vmem>>, vector<1x1x64xf32>
    %131 = vector.shape_cast %130 : vector<1x1x64xf32> to vector<1x64xf32>
    %c0_56 = arith.constant 0 : index
    %c0_57 = arith.constant 0 : index
    %c0_58 = arith.constant 0 : index
    %132 = vector.load %arg12[%c0_56, %c0_57, %c0_58] : memref<4x64x32xf32, #tpu.memory_space<vmem>>, vector<1x64x32xf32>
    %133 = vector.shape_cast %132 : vector<1x64x32xf32> to vector<64x32xf32>
    %c0_59 = arith.constant 0 : index
    %c0_60 = arith.constant 0 : index
    %c0_61 = arith.constant 0 : index
    %134 = vector.load %arg13[%c0_59, %c0_60, %c0_61] : memref<4x1x32xf32, #tpu.memory_space<vmem>>, vector<1x1x32xf32>
    %135 = vector.shape_cast %134 : vector<1x1x32xf32> to vector<1x32xf32>
    %cst_62 = arith.constant dense<0.000000e+00> : vector<16x64xf32>
    %136 = tpu.matmul %127, %129, %cst_62 {dimension_numbers = #tpu.dot_dimension_numbers<[1], [0], [0], [1], [0, 0, 1, 1], [], []>} : vector<16x32xf32>, vector<32x64xf32>, vector<16x64xf32> -> vector<16x64xf32>
    %137 = vector.broadcast %131 : vector<1x64xf32> to vector<16x64xf32>
    %138 = arith.addf %136, %137 : vector<16x64xf32>
    %cst_63 = arith.constant 0.000000e+00 : f32
    %139 = vector.broadcast %cst_63 : f32 to vector<16x64xf32>
    %140 = arith.maximumf %138, %139 : vector<16x64xf32>
    %cst_64 = arith.constant dense<0.000000e+00> : vector<16x32xf32>
    %141 = tpu.matmul %140, %133, %cst_64 {dimension_numbers = #tpu.dot_dimension_numbers<[1], [0], [0], [1], [0, 0, 1, 1], [], []>} : vector<16x64xf32>, vector<64x32xf32>, vector<16x32xf32> -> vector<16x32xf32>
    %142 = vector.broadcast %135 : vector<1x32xf32> to vector<16x32xf32>
    %143 = arith.addf %141, %142 : vector<16x32xf32>
    %c0_65 = arith.constant 0 : index
    %c0_66 = arith.constant 0 : index
    %c0_67 = arith.constant 0 : index
    %144 = vector.load %arg8[%c0_65, %c0_66, %c0_67] : memref<8x1x32xf32, #tpu.memory_space<vmem>>, vector<1x1x32xf32>
    %145 = vector.shape_cast %144 : vector<1x1x32xf32> to vector<1x32xf32>
    %c0_68 = arith.constant 0 : index
    %c0_69 = arith.constant 0 : index
    %c0_70 = arith.constant 0 : index
    %146 = vector.load %arg9[%c0_68, %c0_69, %c0_70] : memref<8x1x32xf32, #tpu.memory_space<vmem>>, vector<1x1x32xf32>
    %147 = vector.shape_cast %146 : vector<1x1x32xf32> to vector<1x32xf32>
    %148 = arith.addf %127, %143 : vector<16x32xf32>
    %cst_71 = arith.constant dense<0.000000e+00> : vector<16xf32>
    %149 = vector.multi_reduction <add>, %148, %cst_71 [1] : vector<16x32xf32> to vector<16xf32>
    %150 = vector.shape_cast %149 : vector<16xf32> to vector<16x1xf32>
    %cst_72 = arith.constant 3.200000e+01 : f32
    %151 = vector.broadcast %cst_72 : f32 to vector<16x1xf32>
    %152 = arith.divf %150, %151 : vector<16x1xf32>
    %153 = vector.broadcast %152 : vector<16x1xf32> to vector<16x32xf32>
    %154 = arith.subf %148, %153 : vector<16x32xf32>
    %155 = arith.mulf %154, %154 : vector<16x32xf32>
    %cst_73 = arith.constant dense<0.000000e+00> : vector<16xf32>
    %156 = vector.multi_reduction <add>, %155, %cst_73 [1] : vector<16x32xf32> to vector<16xf32>
    %157 = vector.shape_cast %156 : vector<16xf32> to vector<16x1xf32>
    %cst_74 = arith.constant 3.200000e+01 : f32
    %158 = vector.broadcast %cst_74 : f32 to vector<16x1xf32>
    %159 = arith.divf %157, %158 : vector<16x1xf32>
    %160 = vector.broadcast %152 : vector<16x1xf32> to vector<16x32xf32>
    %161 = arith.subf %148, %160 : vector<16x32xf32>
    %cst_75 = arith.constant 9.99999974E-6 : f32
    %162 = vector.broadcast %cst_75 : f32 to vector<16x1xf32>
    %163 = arith.addf %159, %162 : vector<16x1xf32>
    %164 = math.rsqrt %163 : vector<16x1xf32>
    %165 = vector.broadcast %164 : vector<16x1xf32> to vector<16x32xf32>
    %166 = arith.mulf %161, %165 : vector<16x32xf32>
    %167 = vector.broadcast %145 : vector<1x32xf32> to vector<16x32xf32>
    %168 = arith.mulf %166, %167 : vector<16x32xf32>
    %169 = vector.broadcast %147 : vector<1x32xf32> to vector<16x32xf32>
    %170 = arith.addf %168, %169 : vector<16x32xf32>
    %c1 = arith.constant 1 : index
    %c0_76 = arith.constant 0 : index
    %c0_77 = arith.constant 0 : index
    %171 = vector.load %arg4[%c1, %c0_76, %c0_77] : memref<6x32x96xf32, #tpu.memory_space<vmem>>, vector<1x32x96xf32>
    %172 = vector.shape_cast %171 : vector<1x32x96xf32> to vector<32x96xf32>
    %c1_78 = arith.constant 1 : index
    %c0_79 = arith.constant 0 : index
    %c0_80 = arith.constant 0 : index
    %173 = vector.load %arg5[%c1_78, %c0_79, %c0_80] : memref<6x1x96xf32, #tpu.memory_space<vmem>>, vector<1x1x96xf32>
    %174 = vector.shape_cast %173 : vector<1x1x96xf32> to vector<1x96xf32>
    %c1_81 = arith.constant 1 : index
    %c0_82 = arith.constant 0 : index
    %c0_83 = arith.constant 0 : index
    %175 = vector.load %arg6[%c1_81, %c0_82, %c0_83] : memref<6x32x32xf32, #tpu.memory_space<vmem>>, vector<1x32x32xf32>
    %176 = vector.shape_cast %175 : vector<1x32x32xf32> to vector<32x32xf32>
    %c1_84 = arith.constant 1 : index
    %c0_85 = arith.constant 0 : index
    %c0_86 = arith.constant 0 : index
    %177 = vector.load %arg7[%c1_84, %c0_85, %c0_86] : memref<6x1x32xf32, #tpu.memory_space<vmem>>, vector<1x1x32xf32>
    %178 = vector.shape_cast %177 : vector<1x1x32xf32> to vector<1x32xf32>
    %cst_87 = arith.constant dense<0.000000e+00> : vector<16x96xf32>
    %179 = tpu.matmul %170, %172, %cst_87 {dimension_numbers = #tpu.dot_dimension_numbers<[1], [0], [0], [1], [0, 0, 1, 1], [], []>} : vector<16x32xf32>, vector<32x96xf32>, vector<16x96xf32> -> vector<16x96xf32>
    %180 = vector.broadcast %174 : vector<1x96xf32> to vector<16x96xf32>
    %181 = arith.addf %179, %180 : vector<16x96xf32>
    %182 = vector.extract_strided_slice %181 {offsets = [0, 0], sizes = [16, 32], strides = [1, 1]} : vector<16x96xf32> to vector<16x32xf32>
    %183 = vector.extract_strided_slice %181 {offsets = [0, 32], sizes = [16, 32], strides = [1, 1]} : vector<16x96xf32> to vector<16x32xf32>
    %184 = vector.extract_strided_slice %181 {offsets = [0, 64], sizes = [16, 32], strides = [1, 1]} : vector<16x96xf32> to vector<16x32xf32>
    %185 = vector.shape_cast %182 : vector<16x32xf32> to vector<2x8x32xf32>
    %186 = vector.shape_cast %183 : vector<16x32xf32> to vector<2x8x32xf32>
    %187 = vector.shape_cast %184 : vector<16x32xf32> to vector<2x8x32xf32>
    %188 = vector.extract_strided_slice %185 {offsets = [0, 0, 0], sizes = [2, 8, 8], strides = [1, 1, 1]} : vector<2x8x32xf32> to vector<2x8x8xf32>
    %189 = vector.extract_strided_slice %186 {offsets = [0, 0, 0], sizes = [2, 8, 8], strides = [1, 1, 1]} : vector<2x8x32xf32> to vector<2x8x8xf32>
    "tpu.trace_start"() <{level = 10 : i32, message = "bqd,bkd->bqk"}> : () -> ()
    %cst_88 = arith.constant dense<0.000000e+00> : vector<2x8x8xf32>
    %190 = tpu.matmul %188, %189, %cst_88 {dimension_numbers = #tpu.dot_dimension_numbers<[2], [2], [1], [1], [0, 0, 0, 1, 1, 1], [0], [0]>} : vector<2x8x8xf32>, vector<2x8x8xf32>, vector<2x8x8xf32> -> vector<2x8x8xf32>
    "tpu.trace_stop"() : () -> ()
    %191 = arith.addf %190, %0 : vector<2x8x8xf32>
    %cst_89 = arith.constant dense<0xFF800000> : vector<2x8xf32>
    %192 = vector.multi_reduction <maximumf>, %191, %cst_89 [2] : vector<2x8x8xf32> to vector<2x8xf32>
    %193 = vector.shape_cast %192 : vector<2x8xf32> to vector<2x8x1xf32>
    %194 = vector.broadcast %193 : vector<2x8x1xf32> to vector<2x8x8xf32>
    %195 = arith.subf %191, %194 : vector<2x8x8xf32>
    %196 = math.exp %195 : vector<2x8x8xf32>
    %cst_90 = arith.constant dense<0.000000e+00> : vector<2x8xf32>
    %197 = vector.multi_reduction <add>, %196, %cst_90 [2] : vector<2x8x8xf32> to vector<2x8xf32>
    %198 = vector.shape_cast %197 : vector<2x8xf32> to vector<2x8x1xf32>
    %199 = tpu.reciprocal %198 : vector<2x8x1xf32> -> vector<2x8x1xf32>
    %200 = vector.broadcast %199 : vector<2x8x1xf32> to vector<2x8x8xf32>
    %201 = arith.mulf %196, %200 : vector<2x8x8xf32>
    %202 = vector.extract_strided_slice %187 {offsets = [0, 0, 0], sizes = [2, 8, 8], strides = [1, 1, 1]} : vector<2x8x32xf32> to vector<2x8x8xf32>
    "tpu.trace_start"() <{level = 10 : i32, message = "bqk,bkd->bqd"}> : () -> ()
    %cst_91 = arith.constant dense<0.000000e+00> : vector<2x8x8xf32>
    %203 = tpu.matmul %201, %202, %cst_91 {dimension_numbers = #tpu.dot_dimension_numbers<[2], [1], [1], [2], [0, 0, 0, 1, 1, 2], [0], [0]>} : vector<2x8x8xf32>, vector<2x8x8xf32>, vector<2x8x8xf32> -> vector<2x8x8xf32>
    "tpu.trace_stop"() : () -> ()
    %204 = vector.shape_cast %203 : vector<2x8x8xf32> to vector<16x8xf32>
    %205 = vector.extract_strided_slice %176 {offsets = [0, 0], sizes = [8, 32], strides = [1, 1]} : vector<32x32xf32> to vector<8x32xf32>
    %cst_92 = arith.constant dense<0.000000e+00> : vector<16x32xf32>
    %206 = tpu.matmul %204, %205, %cst_92 {dimension_numbers = #tpu.dot_dimension_numbers<[1], [0], [0], [1], [0, 0, 1, 1], [], []>} : vector<16x8xf32>, vector<8x32xf32>, vector<16x32xf32> -> vector<16x32xf32>
    %207 = vector.extract_strided_slice %185 {offsets = [0, 0, 8], sizes = [2, 8, 8], strides = [1, 1, 1]} : vector<2x8x32xf32> to vector<2x8x8xf32>
    %208 = vector.extract_strided_slice %186 {offsets = [0, 0, 8], sizes = [2, 8, 8], strides = [1, 1, 1]} : vector<2x8x32xf32> to vector<2x8x8xf32>
    "tpu.trace_start"() <{level = 10 : i32, message = "bqd,bkd->bqk"}> : () -> ()
    %cst_93 = arith.constant dense<0.000000e+00> : vector<2x8x8xf32>
    %209 = tpu.matmul %207, %208, %cst_93 {dimension_numbers = #tpu.dot_dimension_numbers<[2], [2], [1], [1], [0, 0, 0, 1, 1, 1], [0], [0]>} : vector<2x8x8xf32>, vector<2x8x8xf32>, vector<2x8x8xf32> -> vector<2x8x8xf32>
    "tpu.trace_stop"() : () -> ()
    %210 = arith.addf %209, %0 : vector<2x8x8xf32>
    %cst_94 = arith.constant dense<0xFF800000> : vector<2x8xf32>
    %211 = vector.multi_reduction <maximumf>, %210, %cst_94 [2] : vector<2x8x8xf32> to vector<2x8xf32>
    %212 = vector.shape_cast %211 : vector<2x8xf32> to vector<2x8x1xf32>
    %213 = vector.broadcast %212 : vector<2x8x1xf32> to vector<2x8x8xf32>
    %214 = arith.subf %210, %213 : vector<2x8x8xf32>
    %215 = math.exp %214 : vector<2x8x8xf32>
    %cst_95 = arith.constant dense<0.000000e+00> : vector<2x8xf32>
    %216 = vector.multi_reduction <add>, %215, %cst_95 [2] : vector<2x8x8xf32> to vector<2x8xf32>
    %217 = vector.shape_cast %216 : vector<2x8xf32> to vector<2x8x1xf32>
    %218 = tpu.reciprocal %217 : vector<2x8x1xf32> -> vector<2x8x1xf32>
    %219 = vector.broadcast %218 : vector<2x8x1xf32> to vector<2x8x8xf32>
    %220 = arith.mulf %215, %219 : vector<2x8x8xf32>
    %221 = vector.extract_strided_slice %187 {offsets = [0, 0, 8], sizes = [2, 8, 8], strides = [1, 1, 1]} : vector<2x8x32xf32> to vector<2x8x8xf32>
    "tpu.trace_start"() <{level = 10 : i32, message = "bqk,bkd->bqd"}> : () -> ()
    %cst_96 = arith.constant dense<0.000000e+00> : vector<2x8x8xf32>
    %222 = tpu.matmul %220, %221, %cst_96 {dimension_numbers = #tpu.dot_dimension_numbers<[2], [1], [1], [2], [0, 0, 0, 1, 1, 2], [0], [0]>} : vector<2x8x8xf32>, vector<2x8x8xf32>, vector<2x8x8xf32> -> vector<2x8x8xf32>
    "tpu.trace_stop"() : () -> ()
    %223 = vector.shape_cast %222 : vector<2x8x8xf32> to vector<16x8xf32>
    %224 = vector.extract_strided_slice %176 {offsets = [8, 0], sizes = [8, 32], strides = [1, 1]} : vector<32x32xf32> to vector<8x32xf32>
    %cst_97 = arith.constant dense<0.000000e+00> : vector<16x32xf32>
    %225 = tpu.matmul %223, %224, %cst_97 {dimension_numbers = #tpu.dot_dimension_numbers<[1], [0], [0], [1], [0, 0, 1, 1], [], []>} : vector<16x8xf32>, vector<8x32xf32>, vector<16x32xf32> -> vector<16x32xf32>
    %226 = arith.addf %206, %225 : vector<16x32xf32>
    %227 = vector.extract_strided_slice %185 {offsets = [0, 0, 16], sizes = [2, 8, 8], strides = [1, 1, 1]} : vector<2x8x32xf32> to vector<2x8x8xf32>
    %228 = vector.extract_strided_slice %186 {offsets = [0, 0, 16], sizes = [2, 8, 8], strides = [1, 1, 1]} : vector<2x8x32xf32> to vector<2x8x8xf32>
    "tpu.trace_start"() <{level = 10 : i32, message = "bqd,bkd->bqk"}> : () -> ()
    %cst_98 = arith.constant dense<0.000000e+00> : vector<2x8x8xf32>
    %229 = tpu.matmul %227, %228, %cst_98 {dimension_numbers = #tpu.dot_dimension_numbers<[2], [2], [1], [1], [0, 0, 0, 1, 1, 1], [0], [0]>} : vector<2x8x8xf32>, vector<2x8x8xf32>, vector<2x8x8xf32> -> vector<2x8x8xf32>
    "tpu.trace_stop"() : () -> ()
    %230 = arith.addf %229, %0 : vector<2x8x8xf32>
    %cst_99 = arith.constant dense<0xFF800000> : vector<2x8xf32>
    %231 = vector.multi_reduction <maximumf>, %230, %cst_99 [2] : vector<2x8x8xf32> to vector<2x8xf32>
    %232 = vector.shape_cast %231 : vector<2x8xf32> to vector<2x8x1xf32>
    %233 = vector.broadcast %232 : vector<2x8x1xf32> to vector<2x8x8xf32>
    %234 = arith.subf %230, %233 : vector<2x8x8xf32>
    %235 = math.exp %234 : vector<2x8x8xf32>
    %cst_100 = arith.constant dense<0.000000e+00> : vector<2x8xf32>
    %236 = vector.multi_reduction <add>, %235, %cst_100 [2] : vector<2x8x8xf32> to vector<2x8xf32>
    %237 = vector.shape_cast %236 : vector<2x8xf32> to vector<2x8x1xf32>
    %238 = tpu.reciprocal %237 : vector<2x8x1xf32> -> vector<2x8x1xf32>
    %239 = vector.broadcast %238 : vector<2x8x1xf32> to vector<2x8x8xf32>
    %240 = arith.mulf %235, %239 : vector<2x8x8xf32>
    %241 = vector.extract_strided_slice %187 {offsets = [0, 0, 16], sizes = [2, 8, 8], strides = [1, 1, 1]} : vector<2x8x32xf32> to vector<2x8x8xf32>
    "tpu.trace_start"() <{level = 10 : i32, message = "bqk,bkd->bqd"}> : () -> ()
    %cst_101 = arith.constant dense<0.000000e+00> : vector<2x8x8xf32>
    %242 = tpu.matmul %240, %241, %cst_101 {dimension_numbers = #tpu.dot_dimension_numbers<[2], [1], [1], [2], [0, 0, 0, 1, 1, 2], [0], [0]>} : vector<2x8x8xf32>, vector<2x8x8xf32>, vector<2x8x8xf32> -> vector<2x8x8xf32>
    "tpu.trace_stop"() : () -> ()
    %243 = vector.shape_cast %242 : vector<2x8x8xf32> to vector<16x8xf32>
    %244 = vector.extract_strided_slice %176 {offsets = [16, 0], sizes = [8, 32], strides = [1, 1]} : vector<32x32xf32> to vector<8x32xf32>
    %cst_102 = arith.constant dense<0.000000e+00> : vector<16x32xf32>
    %245 = tpu.matmul %243, %244, %cst_102 {dimension_numbers = #tpu.dot_dimension_numbers<[1], [0], [0], [1], [0, 0, 1, 1], [], []>} : vector<16x8xf32>, vector<8x32xf32>, vector<16x32xf32> -> vector<16x32xf32>
    %246 = arith.addf %226, %245 : vector<16x32xf32>
    %247 = vector.extract_strided_slice %185 {offsets = [0, 0, 24], sizes = [2, 8, 8], strides = [1, 1, 1]} : vector<2x8x32xf32> to vector<2x8x8xf32>
    %248 = vector.extract_strided_slice %186 {offsets = [0, 0, 24], sizes = [2, 8, 8], strides = [1, 1, 1]} : vector<2x8x32xf32> to vector<2x8x8xf32>
    "tpu.trace_start"() <{level = 10 : i32, message = "bqd,bkd->bqk"}> : () -> ()
    %cst_103 = arith.constant dense<0.000000e+00> : vector<2x8x8xf32>
    %249 = tpu.matmul %247, %248, %cst_103 {dimension_numbers = #tpu.dot_dimension_numbers<[2], [2], [1], [1], [0, 0, 0, 1, 1, 1], [0], [0]>} : vector<2x8x8xf32>, vector<2x8x8xf32>, vector<2x8x8xf32> -> vector<2x8x8xf32>
    "tpu.trace_stop"() : () -> ()
    %250 = arith.addf %249, %0 : vector<2x8x8xf32>
    %cst_104 = arith.constant dense<0xFF800000> : vector<2x8xf32>
    %251 = vector.multi_reduction <maximumf>, %250, %cst_104 [2] : vector<2x8x8xf32> to vector<2x8xf32>
    %252 = vector.shape_cast %251 : vector<2x8xf32> to vector<2x8x1xf32>
    %253 = vector.broadcast %252 : vector<2x8x1xf32> to vector<2x8x8xf32>
    %254 = arith.subf %250, %253 : vector<2x8x8xf32>
    %255 = math.exp %254 : vector<2x8x8xf32>
    %cst_105 = arith.constant dense<0.000000e+00> : vector<2x8xf32>
    %256 = vector.multi_reduction <add>, %255, %cst_105 [2] : vector<2x8x8xf32> to vector<2x8xf32>
    %257 = vector.shape_cast %256 : vector<2x8xf32> to vector<2x8x1xf32>
    %258 = tpu.reciprocal %257 : vector<2x8x1xf32> -> vector<2x8x1xf32>
    %259 = vector.broadcast %258 : vector<2x8x1xf32> to vector<2x8x8xf32>
    %260 = arith.mulf %255, %259 : vector<2x8x8xf32>
    %261 = vector.extract_strided_slice %187 {offsets = [0, 0, 24], sizes = [2, 8, 8], strides = [1, 1, 1]} : vector<2x8x32xf32> to vector<2x8x8xf32>
    "tpu.trace_start"() <{level = 10 : i32, message = "bqk,bkd->bqd"}> : () -> ()
    %cst_106 = arith.constant dense<0.000000e+00> : vector<2x8x8xf32>
    %262 = tpu.matmul %260, %261, %cst_106 {dimension_numbers = #tpu.dot_dimension_numbers<[2], [1], [1], [2], [0, 0, 0, 1, 1, 2], [0], [0]>} : vector<2x8x8xf32>, vector<2x8x8xf32>, vector<2x8x8xf32> -> vector<2x8x8xf32>
    "tpu.trace_stop"() : () -> ()
    %263 = vector.shape_cast %262 : vector<2x8x8xf32> to vector<16x8xf32>
    %264 = vector.extract_strided_slice %176 {offsets = [24, 0], sizes = [8, 32], strides = [1, 1]} : vector<32x32xf32> to vector<8x32xf32>
    %cst_107 = arith.constant dense<0.000000e+00> : vector<16x32xf32>
    %265 = tpu.matmul %263, %264, %cst_107 {dimension_numbers = #tpu.dot_dimension_numbers<[1], [0], [0], [1], [0, 0, 1, 1], [], []>} : vector<16x8xf32>, vector<8x32xf32>, vector<16x32xf32> -> vector<16x32xf32>
    %266 = arith.addf %246, %265 : vector<16x32xf32>
    %267 = vector.broadcast %178 : vector<1x32xf32> to vector<16x32xf32>
    %268 = arith.addf %266, %267 : vector<16x32xf32>
    %c1_108 = arith.constant 1 : index
    %c0_109 = arith.constant 0 : index
    %c0_110 = arith.constant 0 : index
    %269 = vector.load %arg8[%c1_108, %c0_109, %c0_110] : memref<8x1x32xf32, #tpu.memory_space<vmem>>, vector<1x1x32xf32>
    %270 = vector.shape_cast %269 : vector<1x1x32xf32> to vector<1x32xf32>
    %c1_111 = arith.constant 1 : index
    %c0_112 = arith.constant 0 : index
    %c0_113 = arith.constant 0 : index
    %271 = vector.load %arg9[%c1_111, %c0_112, %c0_113] : memref<8x1x32xf32, #tpu.memory_space<vmem>>, vector<1x1x32xf32>
    %272 = vector.shape_cast %271 : vector<1x1x32xf32> to vector<1x32xf32>
    %273 = arith.addf %170, %268 : vector<16x32xf32>
    %cst_114 = arith.constant dense<0.000000e+00> : vector<16xf32>
    %274 = vector.multi_reduction <add>, %273, %cst_114 [1] : vector<16x32xf32> to vector<16xf32>
    %275 = vector.shape_cast %274 : vector<16xf32> to vector<16x1xf32>
    %cst_115 = arith.constant 3.200000e+01 : f32
    %276 = vector.broadcast %cst_115 : f32 to vector<16x1xf32>
    %277 = arith.divf %275, %276 : vector<16x1xf32>
    %278 = vector.broadcast %277 : vector<16x1xf32> to vector<16x32xf32>
    %279 = arith.subf %273, %278 : vector<16x32xf32>
    %280 = arith.mulf %279, %279 : vector<16x32xf32>
    %cst_116 = arith.constant dense<0.000000e+00> : vector<16xf32>
    %281 = vector.multi_reduction <add>, %280, %cst_116 [1] : vector<16x32xf32> to vector<16xf32>
    %282 = vector.shape_cast %281 : vector<16xf32> to vector<16x1xf32>
    %cst_117 = arith.constant 3.200000e+01 : f32
    %283 = vector.broadcast %cst_117 : f32 to vector<16x1xf32>
    %284 = arith.divf %282, %283 : vector<16x1xf32>
    %285 = vector.broadcast %277 : vector<16x1xf32> to vector<16x32xf32>
    %286 = arith.subf %273, %285 : vector<16x32xf32>
    %cst_118 = arith.constant 9.99999974E-6 : f32
    %287 = vector.broadcast %cst_118 : f32 to vector<16x1xf32>
    %288 = arith.addf %284, %287 : vector<16x1xf32>
    %289 = math.rsqrt %288 : vector<16x1xf32>
    %290 = vector.broadcast %289 : vector<16x1xf32> to vector<16x32xf32>
    %291 = arith.mulf %286, %290 : vector<16x32xf32>
    %292 = vector.broadcast %270 : vector<1x32xf32> to vector<16x32xf32>
    %293 = arith.mulf %291, %292 : vector<16x32xf32>
    %294 = vector.broadcast %272 : vector<1x32xf32> to vector<16x32xf32>
    %295 = arith.addf %293, %294 : vector<16x32xf32>
    %c1_119 = arith.constant 1 : index
    %c0_120 = arith.constant 0 : index
    %c0_121 = arith.constant 0 : index
    %296 = vector.load %arg10[%c1_119, %c0_120, %c0_121] : memref<4x32x64xf32, #tpu.memory_space<vmem>>, vector<1x32x64xf32>
    %297 = vector.shape_cast %296 : vector<1x32x64xf32> to vector<32x64xf32>
    %c1_122 = arith.constant 1 : index
    %c0_123 = arith.constant 0 : index
    %c0_124 = arith.constant 0 : index
    %298 = vector.load %arg11[%c1_122, %c0_123, %c0_124] : memref<4x1x64xf32, #tpu.memory_space<vmem>>, vector<1x1x64xf32>
    %299 = vector.shape_cast %298 : vector<1x1x64xf32> to vector<1x64xf32>
    %c1_125 = arith.constant 1 : index
    %c0_126 = arith.constant 0 : index
    %c0_127 = arith.constant 0 : index
    %300 = vector.load %arg12[%c1_125, %c0_126, %c0_127] : memref<4x64x32xf32, #tpu.memory_space<vmem>>, vector<1x64x32xf32>
    %301 = vector.shape_cast %300 : vector<1x64x32xf32> to vector<64x32xf32>
    %c1_128 = arith.constant 1 : index
    %c0_129 = arith.constant 0 : index
    %c0_130 = arith.constant 0 : index
    %302 = vector.load %arg13[%c1_128, %c0_129, %c0_130] : memref<4x1x32xf32, #tpu.memory_space<vmem>>, vector<1x1x32xf32>
    %303 = vector.shape_cast %302 : vector<1x1x32xf32> to vector<1x32xf32>
    %cst_131 = arith.constant dense<0.000000e+00> : vector<16x64xf32>
    %304 = tpu.matmul %295, %297, %cst_131 {dimension_numbers = #tpu.dot_dimension_numbers<[1], [0], [0], [1], [0, 0, 1, 1], [], []>} : vector<16x32xf32>, vector<32x64xf32>, vector<16x64xf32> -> vector<16x64xf32>
    %305 = vector.broadcast %299 : vector<1x64xf32> to vector<16x64xf32>
    %306 = arith.addf %304, %305 : vector<16x64xf32>
    %cst_132 = arith.constant 0.000000e+00 : f32
    %307 = vector.broadcast %cst_132 : f32 to vector<16x64xf32>
    %308 = arith.maximumf %306, %307 : vector<16x64xf32>
    %cst_133 = arith.constant dense<0.000000e+00> : vector<16x32xf32>
    %309 = tpu.matmul %308, %301, %cst_133 {dimension_numbers = #tpu.dot_dimension_numbers<[1], [0], [0], [1], [0, 0, 1, 1], [], []>} : vector<16x64xf32>, vector<64x32xf32>, vector<16x32xf32> -> vector<16x32xf32>
    %310 = vector.broadcast %303 : vector<1x32xf32> to vector<16x32xf32>
    %311 = arith.addf %309, %310 : vector<16x32xf32>
    %c1_134 = arith.constant 1 : index
    %c0_135 = arith.constant 0 : index
    %c0_136 = arith.constant 0 : index
    %312 = vector.load %arg8[%c1_134, %c0_135, %c0_136] : memref<8x1x32xf32, #tpu.memory_space<vmem>>, vector<1x1x32xf32>
    %313 = vector.shape_cast %312 : vector<1x1x32xf32> to vector<1x32xf32>
    %c1_137 = arith.constant 1 : index
    %c0_138 = arith.constant 0 : index
    %c0_139 = arith.constant 0 : index
    %314 = vector.load %arg9[%c1_137, %c0_138, %c0_139] : memref<8x1x32xf32, #tpu.memory_space<vmem>>, vector<1x1x32xf32>
    %315 = vector.shape_cast %314 : vector<1x1x32xf32> to vector<1x32xf32>
    %316 = arith.addf %295, %311 : vector<16x32xf32>
    %cst_140 = arith.constant dense<0.000000e+00> : vector<16xf32>
    %317 = vector.multi_reduction <add>, %316, %cst_140 [1] : vector<16x32xf32> to vector<16xf32>
    %318 = vector.shape_cast %317 : vector<16xf32> to vector<16x1xf32>
    %cst_141 = arith.constant 3.200000e+01 : f32
    %319 = vector.broadcast %cst_141 : f32 to vector<16x1xf32>
    %320 = arith.divf %318, %319 : vector<16x1xf32>
    %321 = vector.broadcast %320 : vector<16x1xf32> to vector<16x32xf32>
    %322 = arith.subf %316, %321 : vector<16x32xf32>
    %323 = arith.mulf %322, %322 : vector<16x32xf32>
    %cst_142 = arith.constant dense<0.000000e+00> : vector<16xf32>
    %324 = vector.multi_reduction <add>, %323, %cst_142 [1] : vector<16x32xf32> to vector<16xf32>
    %325 = vector.shape_cast %324 : vector<16xf32> to vector<16x1xf32>
    %cst_143 = arith.constant 3.200000e+01 : f32
    %326 = vector.broadcast %cst_143 : f32 to vector<16x1xf32>
    %327 = arith.divf %325, %326 : vector<16x1xf32>
    %328 = vector.broadcast %320 : vector<16x1xf32> to vector<16x32xf32>
    %329 = arith.subf %316, %328 : vector<16x32xf32>
    %cst_144 = arith.constant 9.99999974E-6 : f32
    %330 = vector.broadcast %cst_144 : f32 to vector<16x1xf32>
    %331 = arith.addf %327, %330 : vector<16x1xf32>
    %332 = math.rsqrt %331 : vector<16x1xf32>
    %333 = vector.broadcast %332 : vector<16x1xf32> to vector<16x32xf32>
    %334 = arith.mulf %329, %333 : vector<16x32xf32>
    %335 = vector.broadcast %313 : vector<1x32xf32> to vector<16x32xf32>
    %336 = arith.mulf %334, %335 : vector<16x32xf32>
    %337 = vector.broadcast %315 : vector<1x32xf32> to vector<16x32xf32>
    %338 = arith.addf %336, %337 : vector<16x32xf32>
    %c0_145 = arith.constant 0 : index
    %c0_146 = arith.constant 0 : index
    %339 = vector.load %arg1[%c0_145, %c0_146] : memref<16x32xf32, #tpu.memory_space<vmem>>, vector<16x32xf32>
    %c2 = arith.constant 2 : index
    %c0_147 = arith.constant 0 : index
    %c0_148 = arith.constant 0 : index
    %340 = vector.load %arg4[%c2, %c0_147, %c0_148] : memref<6x32x96xf32, #tpu.memory_space<vmem>>, vector<1x32x96xf32>
    %341 = vector.shape_cast %340 : vector<1x32x96xf32> to vector<32x96xf32>
    %c2_149 = arith.constant 2 : index
    %c0_150 = arith.constant 0 : index
    %c0_151 = arith.constant 0 : index
    %342 = vector.load %arg5[%c2_149, %c0_150, %c0_151] : memref<6x1x96xf32, #tpu.memory_space<vmem>>, vector<1x1x96xf32>
    %343 = vector.shape_cast %342 : vector<1x1x96xf32> to vector<1x96xf32>
    %c2_152 = arith.constant 2 : index
    %c0_153 = arith.constant 0 : index
    %c0_154 = arith.constant 0 : index
    %344 = vector.load %arg6[%c2_152, %c0_153, %c0_154] : memref<6x32x32xf32, #tpu.memory_space<vmem>>, vector<1x32x32xf32>
    %345 = vector.shape_cast %344 : vector<1x32x32xf32> to vector<32x32xf32>
    %c2_155 = arith.constant 2 : index
    %c0_156 = arith.constant 0 : index
    %c0_157 = arith.constant 0 : index
    %346 = vector.load %arg7[%c2_155, %c0_156, %c0_157] : memref<6x1x32xf32, #tpu.memory_space<vmem>>, vector<1x1x32xf32>
    %347 = vector.shape_cast %346 : vector<1x1x32xf32> to vector<1x32xf32>
    %cst_158 = arith.constant dense<0.000000e+00> : vector<16x96xf32>
    %348 = tpu.matmul %339, %341, %cst_158 {dimension_numbers = #tpu.dot_dimension_numbers<[1], [0], [0], [1], [0, 0, 1, 1], [], []>} : vector<16x32xf32>, vector<32x96xf32>, vector<16x96xf32> -> vector<16x96xf32>
    %349 = vector.broadcast %343 : vector<1x96xf32> to vector<16x96xf32>
    %350 = arith.addf %348, %349 : vector<16x96xf32>
    %351 = vector.extract_strided_slice %350 {offsets = [0, 0], sizes = [16, 32], strides = [1, 1]} : vector<16x96xf32> to vector<16x32xf32>
    %352 = vector.extract_strided_slice %350 {offsets = [0, 32], sizes = [16, 32], strides = [1, 1]} : vector<16x96xf32> to vector<16x32xf32>
    %353 = vector.extract_strided_slice %350 {offsets = [0, 64], sizes = [16, 32], strides = [1, 1]} : vector<16x96xf32> to vector<16x32xf32>
    %354 = vector.shape_cast %351 : vector<16x32xf32> to vector<2x8x32xf32>
    %355 = vector.shape_cast %352 : vector<16x32xf32> to vector<2x8x32xf32>
    %356 = vector.shape_cast %353 : vector<16x32xf32> to vector<2x8x32xf32>
    %357 = vector.extract_strided_slice %354 {offsets = [0, 0, 0], sizes = [2, 8, 8], strides = [1, 1, 1]} : vector<2x8x32xf32> to vector<2x8x8xf32>
    %358 = vector.extract_strided_slice %355 {offsets = [0, 0, 0], sizes = [2, 8, 8], strides = [1, 1, 1]} : vector<2x8x32xf32> to vector<2x8x8xf32>
    "tpu.trace_start"() <{level = 10 : i32, message = "bqd,bkd->bqk"}> : () -> ()
    %cst_159 = arith.constant dense<0.000000e+00> : vector<2x8x8xf32>
    %359 = tpu.matmul %357, %358, %cst_159 {dimension_numbers = #tpu.dot_dimension_numbers<[2], [2], [1], [1], [0, 0, 0, 1, 1, 1], [0], [0]>} : vector<2x8x8xf32>, vector<2x8x8xf32>, vector<2x8x8xf32> -> vector<2x8x8xf32>
    "tpu.trace_stop"() : () -> ()
    %360 = arith.addf %359, %1 : vector<2x8x8xf32>
    %cst_160 = arith.constant dense<0xFF800000> : vector<2x8xf32>
    %361 = vector.multi_reduction <maximumf>, %360, %cst_160 [2] : vector<2x8x8xf32> to vector<2x8xf32>
    %362 = vector.shape_cast %361 : vector<2x8xf32> to vector<2x8x1xf32>
    %363 = vector.broadcast %362 : vector<2x8x1xf32> to vector<2x8x8xf32>
    %364 = arith.subf %360, %363 : vector<2x8x8xf32>
    %365 = math.exp %364 : vector<2x8x8xf32>
    %cst_161 = arith.constant dense<0.000000e+00> : vector<2x8xf32>
    %366 = vector.multi_reduction <add>, %365, %cst_161 [2] : vector<2x8x8xf32> to vector<2x8xf32>
    %367 = vector.shape_cast %366 : vector<2x8xf32> to vector<2x8x1xf32>
    %368 = tpu.reciprocal %367 : vector<2x8x1xf32> -> vector<2x8x1xf32>
    %369 = vector.broadcast %368 : vector<2x8x1xf32> to vector<2x8x8xf32>
    %370 = arith.mulf %365, %369 : vector<2x8x8xf32>
    %371 = vector.extract_strided_slice %356 {offsets = [0, 0, 0], sizes = [2, 8, 8], strides = [1, 1, 1]} : vector<2x8x32xf32> to vector<2x8x8xf32>
    "tpu.trace_start"() <{level = 10 : i32, message = "bqk,bkd->bqd"}> : () -> ()
    %cst_162 = arith.constant dense<0.000000e+00> : vector<2x8x8xf32>
    %372 = tpu.matmul %370, %371, %cst_162 {dimension_numbers = #tpu.dot_dimension_numbers<[2], [1], [1], [2], [0, 0, 0, 1, 1, 2], [0], [0]>} : vector<2x8x8xf32>, vector<2x8x8xf32>, vector<2x8x8xf32> -> vector<2x8x8xf32>
    "tpu.trace_stop"() : () -> ()
    %373 = vector.shape_cast %372 : vector<2x8x8xf32> to vector<16x8xf32>
    %374 = vector.extract_strided_slice %345 {offsets = [0, 0], sizes = [8, 32], strides = [1, 1]} : vector<32x32xf32> to vector<8x32xf32>
    %cst_163 = arith.constant dense<0.000000e+00> : vector<16x32xf32>
    %375 = tpu.matmul %373, %374, %cst_163 {dimension_numbers = #tpu.dot_dimension_numbers<[1], [0], [0], [1], [0, 0, 1, 1], [], []>} : vector<16x8xf32>, vector<8x32xf32>, vector<16x32xf32> -> vector<16x32xf32>
    %376 = vector.extract_strided_slice %354 {offsets = [0, 0, 8], sizes = [2, 8, 8], strides = [1, 1, 1]} : vector<2x8x32xf32> to vector<2x8x8xf32>
    %377 = vector.extract_strided_slice %355 {offsets = [0, 0, 8], sizes = [2, 8, 8], strides = [1, 1, 1]} : vector<2x8x32xf32> to vector<2x8x8xf32>
    "tpu.trace_start"() <{level = 10 : i32, message = "bqd,bkd->bqk"}> : () -> ()
    %cst_164 = arith.constant dense<0.000000e+00> : vector<2x8x8xf32>
    %378 = tpu.matmul %376, %377, %cst_164 {dimension_numbers = #tpu.dot_dimension_numbers<[2], [2], [1], [1], [0, 0, 0, 1, 1, 1], [0], [0]>} : vector<2x8x8xf32>, vector<2x8x8xf32>, vector<2x8x8xf32> -> vector<2x8x8xf32>
    "tpu.trace_stop"() : () -> ()
    %379 = arith.addf %378, %1 : vector<2x8x8xf32>
    %cst_165 = arith.constant dense<0xFF800000> : vector<2x8xf32>
    %380 = vector.multi_reduction <maximumf>, %379, %cst_165 [2] : vector<2x8x8xf32> to vector<2x8xf32>
    %381 = vector.shape_cast %380 : vector<2x8xf32> to vector<2x8x1xf32>
    %382 = vector.broadcast %381 : vector<2x8x1xf32> to vector<2x8x8xf32>
    %383 = arith.subf %379, %382 : vector<2x8x8xf32>
    %384 = math.exp %383 : vector<2x8x8xf32>
    %cst_166 = arith.constant dense<0.000000e+00> : vector<2x8xf32>
    %385 = vector.multi_reduction <add>, %384, %cst_166 [2] : vector<2x8x8xf32> to vector<2x8xf32>
    %386 = vector.shape_cast %385 : vector<2x8xf32> to vector<2x8x1xf32>
    %387 = tpu.reciprocal %386 : vector<2x8x1xf32> -> vector<2x8x1xf32>
    %388 = vector.broadcast %387 : vector<2x8x1xf32> to vector<2x8x8xf32>
    %389 = arith.mulf %384, %388 : vector<2x8x8xf32>
    %390 = vector.extract_strided_slice %356 {offsets = [0, 0, 8], sizes = [2, 8, 8], strides = [1, 1, 1]} : vector<2x8x32xf32> to vector<2x8x8xf32>
    "tpu.trace_start"() <{level = 10 : i32, message = "bqk,bkd->bqd"}> : () -> ()
    %cst_167 = arith.constant dense<0.000000e+00> : vector<2x8x8xf32>
    %391 = tpu.matmul %389, %390, %cst_167 {dimension_numbers = #tpu.dot_dimension_numbers<[2], [1], [1], [2], [0, 0, 0, 1, 1, 2], [0], [0]>} : vector<2x8x8xf32>, vector<2x8x8xf32>, vector<2x8x8xf32> -> vector<2x8x8xf32>
    "tpu.trace_stop"() : () -> ()
    %392 = vector.shape_cast %391 : vector<2x8x8xf32> to vector<16x8xf32>
    %393 = vector.extract_strided_slice %345 {offsets = [8, 0], sizes = [8, 32], strides = [1, 1]} : vector<32x32xf32> to vector<8x32xf32>
    %cst_168 = arith.constant dense<0.000000e+00> : vector<16x32xf32>
    %394 = tpu.matmul %392, %393, %cst_168 {dimension_numbers = #tpu.dot_dimension_numbers<[1], [0], [0], [1], [0, 0, 1, 1], [], []>} : vector<16x8xf32>, vector<8x32xf32>, vector<16x32xf32> -> vector<16x32xf32>
    %395 = arith.addf %375, %394 : vector<16x32xf32>
    %396 = vector.extract_strided_slice %354 {offsets = [0, 0, 16], sizes = [2, 8, 8], strides = [1, 1, 1]} : vector<2x8x32xf32> to vector<2x8x8xf32>
    %397 = vector.extract_strided_slice %355 {offsets = [0, 0, 16], sizes = [2, 8, 8], strides = [1, 1, 1]} : vector<2x8x32xf32> to vector<2x8x8xf32>
    "tpu.trace_start"() <{level = 10 : i32, message = "bqd,bkd->bqk"}> : () -> ()
    %cst_169 = arith.constant dense<0.000000e+00> : vector<2x8x8xf32>
    %398 = tpu.matmul %396, %397, %cst_169 {dimension_numbers = #tpu.dot_dimension_numbers<[2], [2], [1], [1], [0, 0, 0, 1, 1, 1], [0], [0]>} : vector<2x8x8xf32>, vector<2x8x8xf32>, vector<2x8x8xf32> -> vector<2x8x8xf32>
    "tpu.trace_stop"() : () -> ()
    %399 = arith.addf %398, %1 : vector<2x8x8xf32>
    %cst_170 = arith.constant dense<0xFF800000> : vector<2x8xf32>
    %400 = vector.multi_reduction <maximumf>, %399, %cst_170 [2] : vector<2x8x8xf32> to vector<2x8xf32>
    %401 = vector.shape_cast %400 : vector<2x8xf32> to vector<2x8x1xf32>
    %402 = vector.broadcast %401 : vector<2x8x1xf32> to vector<2x8x8xf32>
    %403 = arith.subf %399, %402 : vector<2x8x8xf32>
    %404 = math.exp %403 : vector<2x8x8xf32>
    %cst_171 = arith.constant dense<0.000000e+00> : vector<2x8xf32>
    %405 = vector.multi_reduction <add>, %404, %cst_171 [2] : vector<2x8x8xf32> to vector<2x8xf32>
    %406 = vector.shape_cast %405 : vector<2x8xf32> to vector<2x8x1xf32>
    %407 = tpu.reciprocal %406 : vector<2x8x1xf32> -> vector<2x8x1xf32>
    %408 = vector.broadcast %407 : vector<2x8x1xf32> to vector<2x8x8xf32>
    %409 = arith.mulf %404, %408 : vector<2x8x8xf32>
    %410 = vector.extract_strided_slice %356 {offsets = [0, 0, 16], sizes = [2, 8, 8], strides = [1, 1, 1]} : vector<2x8x32xf32> to vector<2x8x8xf32>
    "tpu.trace_start"() <{level = 10 : i32, message = "bqk,bkd->bqd"}> : () -> ()
    %cst_172 = arith.constant dense<0.000000e+00> : vector<2x8x8xf32>
    %411 = tpu.matmul %409, %410, %cst_172 {dimension_numbers = #tpu.dot_dimension_numbers<[2], [1], [1], [2], [0, 0, 0, 1, 1, 2], [0], [0]>} : vector<2x8x8xf32>, vector<2x8x8xf32>, vector<2x8x8xf32> -> vector<2x8x8xf32>
    "tpu.trace_stop"() : () -> ()
    %412 = vector.shape_cast %411 : vector<2x8x8xf32> to vector<16x8xf32>
    %413 = vector.extract_strided_slice %345 {offsets = [16, 0], sizes = [8, 32], strides = [1, 1]} : vector<32x32xf32> to vector<8x32xf32>
    %cst_173 = arith.constant dense<0.000000e+00> : vector<16x32xf32>
    %414 = tpu.matmul %412, %413, %cst_173 {dimension_numbers = #tpu.dot_dimension_numbers<[1], [0], [0], [1], [0, 0, 1, 1], [], []>} : vector<16x8xf32>, vector<8x32xf32>, vector<16x32xf32> -> vector<16x32xf32>
    %415 = arith.addf %395, %414 : vector<16x32xf32>
    %416 = vector.extract_strided_slice %354 {offsets = [0, 0, 24], sizes = [2, 8, 8], strides = [1, 1, 1]} : vector<2x8x32xf32> to vector<2x8x8xf32>
    %417 = vector.extract_strided_slice %355 {offsets = [0, 0, 24], sizes = [2, 8, 8], strides = [1, 1, 1]} : vector<2x8x32xf32> to vector<2x8x8xf32>
    "tpu.trace_start"() <{level = 10 : i32, message = "bqd,bkd->bqk"}> : () -> ()
    %cst_174 = arith.constant dense<0.000000e+00> : vector<2x8x8xf32>
    %418 = tpu.matmul %416, %417, %cst_174 {dimension_numbers = #tpu.dot_dimension_numbers<[2], [2], [1], [1], [0, 0, 0, 1, 1, 1], [0], [0]>} : vector<2x8x8xf32>, vector<2x8x8xf32>, vector<2x8x8xf32> -> vector<2x8x8xf32>
    "tpu.trace_stop"() : () -> ()
    %419 = arith.addf %418, %1 : vector<2x8x8xf32>
    %cst_175 = arith.constant dense<0xFF800000> : vector<2x8xf32>
    %420 = vector.multi_reduction <maximumf>, %419, %cst_175 [2] : vector<2x8x8xf32> to vector<2x8xf32>
    %421 = vector.shape_cast %420 : vector<2x8xf32> to vector<2x8x1xf32>
    %422 = vector.broadcast %421 : vector<2x8x1xf32> to vector<2x8x8xf32>
    %423 = arith.subf %419, %422 : vector<2x8x8xf32>
    %424 = math.exp %423 : vector<2x8x8xf32>
    %cst_176 = arith.constant dense<0.000000e+00> : vector<2x8xf32>
    %425 = vector.multi_reduction <add>, %424, %cst_176 [2] : vector<2x8x8xf32> to vector<2x8xf32>
    %426 = vector.shape_cast %425 : vector<2x8xf32> to vector<2x8x1xf32>
    %427 = tpu.reciprocal %426 : vector<2x8x1xf32> -> vector<2x8x1xf32>
    %428 = vector.broadcast %427 : vector<2x8x1xf32> to vector<2x8x8xf32>
    %429 = arith.mulf %424, %428 : vector<2x8x8xf32>
    %430 = vector.extract_strided_slice %356 {offsets = [0, 0, 24], sizes = [2, 8, 8], strides = [1, 1, 1]} : vector<2x8x32xf32> to vector<2x8x8xf32>
    "tpu.trace_start"() <{level = 10 : i32, message = "bqk,bkd->bqd"}> : () -> ()
    %cst_177 = arith.constant dense<0.000000e+00> : vector<2x8x8xf32>
    %431 = tpu.matmul %429, %430, %cst_177 {dimension_numbers = #tpu.dot_dimension_numbers<[2], [1], [1], [2], [0, 0, 0, 1, 1, 2], [0], [0]>} : vector<2x8x8xf32>, vector<2x8x8xf32>, vector<2x8x8xf32> -> vector<2x8x8xf32>
    "tpu.trace_stop"() : () -> ()
    %432 = vector.shape_cast %431 : vector<2x8x8xf32> to vector<16x8xf32>
    %433 = vector.extract_strided_slice %345 {offsets = [24, 0], sizes = [8, 32], strides = [1, 1]} : vector<32x32xf32> to vector<8x32xf32>
    %cst_178 = arith.constant dense<0.000000e+00> : vector<16x32xf32>
    %434 = tpu.matmul %432, %433, %cst_178 {dimension_numbers = #tpu.dot_dimension_numbers<[1], [0], [0], [1], [0, 0, 1, 1], [], []>} : vector<16x8xf32>, vector<8x32xf32>, vector<16x32xf32> -> vector<16x32xf32>
    %435 = arith.addf %415, %434 : vector<16x32xf32>
    %436 = vector.broadcast %347 : vector<1x32xf32> to vector<16x32xf32>
    %437 = arith.addf %435, %436 : vector<16x32xf32>
    %c2_179 = arith.constant 2 : index
    %c0_180 = arith.constant 0 : index
    %c0_181 = arith.constant 0 : index
    %438 = vector.load %arg8[%c2_179, %c0_180, %c0_181] : memref<8x1x32xf32, #tpu.memory_space<vmem>>, vector<1x1x32xf32>
    %439 = vector.shape_cast %438 : vector<1x1x32xf32> to vector<1x32xf32>
    %c2_182 = arith.constant 2 : index
    %c0_183 = arith.constant 0 : index
    %c0_184 = arith.constant 0 : index
    %440 = vector.load %arg9[%c2_182, %c0_183, %c0_184] : memref<8x1x32xf32, #tpu.memory_space<vmem>>, vector<1x1x32xf32>
    %441 = vector.shape_cast %440 : vector<1x1x32xf32> to vector<1x32xf32>
    %442 = arith.addf %339, %437 : vector<16x32xf32>
    %cst_185 = arith.constant dense<0.000000e+00> : vector<16xf32>
    %443 = vector.multi_reduction <add>, %442, %cst_185 [1] : vector<16x32xf32> to vector<16xf32>
    %444 = vector.shape_cast %443 : vector<16xf32> to vector<16x1xf32>
    %cst_186 = arith.constant 3.200000e+01 : f32
    %445 = vector.broadcast %cst_186 : f32 to vector<16x1xf32>
    %446 = arith.divf %444, %445 : vector<16x1xf32>
    %447 = vector.broadcast %446 : vector<16x1xf32> to vector<16x32xf32>
    %448 = arith.subf %442, %447 : vector<16x32xf32>
    %449 = arith.mulf %448, %448 : vector<16x32xf32>
    %cst_187 = arith.constant dense<0.000000e+00> : vector<16xf32>
    %450 = vector.multi_reduction <add>, %449, %cst_187 [1] : vector<16x32xf32> to vector<16xf32>
    %451 = vector.shape_cast %450 : vector<16xf32> to vector<16x1xf32>
    %cst_188 = arith.constant 3.200000e+01 : f32
    %452 = vector.broadcast %cst_188 : f32 to vector<16x1xf32>
    %453 = arith.divf %451, %452 : vector<16x1xf32>
    %454 = vector.broadcast %446 : vector<16x1xf32> to vector<16x32xf32>
    %455 = arith.subf %442, %454 : vector<16x32xf32>
    %cst_189 = arith.constant 9.99999974E-6 : f32
    %456 = vector.broadcast %cst_189 : f32 to vector<16x1xf32>
    %457 = arith.addf %453, %456 : vector<16x1xf32>
    %458 = math.rsqrt %457 : vector<16x1xf32>
    %459 = vector.broadcast %458 : vector<16x1xf32> to vector<16x32xf32>
    %460 = arith.mulf %455, %459 : vector<16x32xf32>
    %461 = vector.broadcast %439 : vector<1x32xf32> to vector<16x32xf32>
    %462 = arith.mulf %460, %461 : vector<16x32xf32>
    %463 = vector.broadcast %441 : vector<1x32xf32> to vector<16x32xf32>
    %464 = arith.addf %462, %463 : vector<16x32xf32>
    %c4 = arith.constant 4 : index
    %c0_190 = arith.constant 0 : index
    %c0_191 = arith.constant 0 : index
    %465 = vector.load %arg4[%c4, %c0_190, %c0_191] : memref<6x32x96xf32, #tpu.memory_space<vmem>>, vector<1x32x96xf32>
    %466 = vector.shape_cast %465 : vector<1x32x96xf32> to vector<32x96xf32>
    %c4_192 = arith.constant 4 : index
    %c0_193 = arith.constant 0 : index
    %c0_194 = arith.constant 0 : index
    %467 = vector.load %arg5[%c4_192, %c0_193, %c0_194] : memref<6x1x96xf32, #tpu.memory_space<vmem>>, vector<1x1x96xf32>
    %468 = vector.shape_cast %467 : vector<1x1x96xf32> to vector<1x96xf32>
    %c4_195 = arith.constant 4 : index
    %c0_196 = arith.constant 0 : index
    %c0_197 = arith.constant 0 : index
    %469 = vector.load %arg6[%c4_195, %c0_196, %c0_197] : memref<6x32x32xf32, #tpu.memory_space<vmem>>, vector<1x32x32xf32>
    %470 = vector.shape_cast %469 : vector<1x32x32xf32> to vector<32x32xf32>
    %c4_198 = arith.constant 4 : index
    %c0_199 = arith.constant 0 : index
    %c0_200 = arith.constant 0 : index
    %471 = vector.load %arg7[%c4_198, %c0_199, %c0_200] : memref<6x1x32xf32, #tpu.memory_space<vmem>>, vector<1x1x32xf32>
    %472 = vector.shape_cast %471 : vector<1x1x32xf32> to vector<1x32xf32>
    %473 = vector.extract_strided_slice %466 {offsets = [0, 0], sizes = [32, 32], strides = [1, 1]} : vector<32x96xf32> to vector<32x32xf32>
    %cst_201 = arith.constant dense<0.000000e+00> : vector<16x32xf32>
    %474 = tpu.matmul %464, %473, %cst_201 {dimension_numbers = #tpu.dot_dimension_numbers<[1], [0], [0], [1], [0, 0, 1, 1], [], []>} : vector<16x32xf32>, vector<32x32xf32>, vector<16x32xf32> -> vector<16x32xf32>
    %475 = vector.extract_strided_slice %468 {offsets = [0, 0], sizes = [1, 32], strides = [1, 1]} : vector<1x96xf32> to vector<1x32xf32>
    %476 = vector.broadcast %475 : vector<1x32xf32> to vector<16x32xf32>
    %477 = arith.addf %474, %476 : vector<16x32xf32>
    %478 = vector.extract_strided_slice %466 {offsets = [0, 32], sizes = [32, 64], strides = [1, 1]} : vector<32x96xf32> to vector<32x64xf32>
    %cst_202 = arith.constant dense<0.000000e+00> : vector<16x64xf32>
    %479 = tpu.matmul %338, %478, %cst_202 {dimension_numbers = #tpu.dot_dimension_numbers<[1], [0], [0], [1], [0, 0, 1, 1], [], []>} : vector<16x32xf32>, vector<32x64xf32>, vector<16x64xf32> -> vector<16x64xf32>
    %480 = vector.extract_strided_slice %468 {offsets = [0, 32], sizes = [1, 64], strides = [1, 1]} : vector<1x96xf32> to vector<1x64xf32>
    %481 = vector.broadcast %480 : vector<1x64xf32> to vector<16x64xf32>
    %482 = arith.addf %479, %481 : vector<16x64xf32>
    %483 = vector.extract_strided_slice %482 {offsets = [0, 0], sizes = [16, 32], strides = [1, 1]} : vector<16x64xf32> to vector<16x32xf32>
    %484 = vector.extract_strided_slice %482 {offsets = [0, 32], sizes = [16, 32], strides = [1, 1]} : vector<16x64xf32> to vector<16x32xf32>
    %485 = vector.shape_cast %477 : vector<16x32xf32> to vector<2x8x32xf32>
    %486 = vector.shape_cast %483 : vector<16x32xf32> to vector<2x8x32xf32>
    %487 = vector.shape_cast %484 : vector<16x32xf32> to vector<2x8x32xf32>
    %488 = vector.extract_strided_slice %485 {offsets = [0, 0, 0], sizes = [2, 8, 8], strides = [1, 1, 1]} : vector<2x8x32xf32> to vector<2x8x8xf32>
    %489 = vector.extract_strided_slice %486 {offsets = [0, 0, 0], sizes = [2, 8, 8], strides = [1, 1, 1]} : vector<2x8x32xf32> to vector<2x8x8xf32>
    "tpu.trace_start"() <{level = 10 : i32, message = "bqd,bkd->bqk"}> : () -> ()
    %cst_203 = arith.constant dense<0.000000e+00> : vector<2x8x8xf32>
    %490 = tpu.matmul %488, %489, %cst_203 {dimension_numbers = #tpu.dot_dimension_numbers<[2], [2], [1], [1], [0, 0, 0, 1, 1, 1], [0], [0]>} : vector<2x8x8xf32>, vector<2x8x8xf32>, vector<2x8x8xf32> -> vector<2x8x8xf32>
    "tpu.trace_stop"() : () -> ()
    %491 = arith.addf %490, %0 : vector<2x8x8xf32>
    %cst_204 = arith.constant dense<0xFF800000> : vector<2x8xf32>
    %492 = vector.multi_reduction <maximumf>, %491, %cst_204 [2] : vector<2x8x8xf32> to vector<2x8xf32>
    %493 = vector.shape_cast %492 : vector<2x8xf32> to vector<2x8x1xf32>
    %494 = vector.broadcast %493 : vector<2x8x1xf32> to vector<2x8x8xf32>
    %495 = arith.subf %491, %494 : vector<2x8x8xf32>
    %496 = math.exp %495 : vector<2x8x8xf32>
    %cst_205 = arith.constant dense<0.000000e+00> : vector<2x8xf32>
    %497 = vector.multi_reduction <add>, %496, %cst_205 [2] : vector<2x8x8xf32> to vector<2x8xf32>
    %498 = vector.shape_cast %497 : vector<2x8xf32> to vector<2x8x1xf32>
    %499 = tpu.reciprocal %498 : vector<2x8x1xf32> -> vector<2x8x1xf32>
    %500 = vector.broadcast %499 : vector<2x8x1xf32> to vector<2x8x8xf32>
    %501 = arith.mulf %496, %500 : vector<2x8x8xf32>
    %502 = vector.extract_strided_slice %487 {offsets = [0, 0, 0], sizes = [2, 8, 8], strides = [1, 1, 1]} : vector<2x8x32xf32> to vector<2x8x8xf32>
    "tpu.trace_start"() <{level = 10 : i32, message = "bqk,bkd->bqd"}> : () -> ()
    %cst_206 = arith.constant dense<0.000000e+00> : vector<2x8x8xf32>
    %503 = tpu.matmul %501, %502, %cst_206 {dimension_numbers = #tpu.dot_dimension_numbers<[2], [1], [1], [2], [0, 0, 0, 1, 1, 2], [0], [0]>} : vector<2x8x8xf32>, vector<2x8x8xf32>, vector<2x8x8xf32> -> vector<2x8x8xf32>
    "tpu.trace_stop"() : () -> ()
    %504 = vector.shape_cast %503 : vector<2x8x8xf32> to vector<16x8xf32>
    %505 = vector.extract_strided_slice %470 {offsets = [0, 0], sizes = [8, 32], strides = [1, 1]} : vector<32x32xf32> to vector<8x32xf32>
    %cst_207 = arith.constant dense<0.000000e+00> : vector<16x32xf32>
    %506 = tpu.matmul %504, %505, %cst_207 {dimension_numbers = #tpu.dot_dimension_numbers<[1], [0], [0], [1], [0, 0, 1, 1], [], []>} : vector<16x8xf32>, vector<8x32xf32>, vector<16x32xf32> -> vector<16x32xf32>
    %507 = vector.extract_strided_slice %485 {offsets = [0, 0, 8], sizes = [2, 8, 8], strides = [1, 1, 1]} : vector<2x8x32xf32> to vector<2x8x8xf32>
    %508 = vector.extract_strided_slice %486 {offsets = [0, 0, 8], sizes = [2, 8, 8], strides = [1, 1, 1]} : vector<2x8x32xf32> to vector<2x8x8xf32>
    "tpu.trace_start"() <{level = 10 : i32, message = "bqd,bkd->bqk"}> : () -> ()
    %cst_208 = arith.constant dense<0.000000e+00> : vector<2x8x8xf32>
    %509 = tpu.matmul %507, %508, %cst_208 {dimension_numbers = #tpu.dot_dimension_numbers<[2], [2], [1], [1], [0, 0, 0, 1, 1, 1], [0], [0]>} : vector<2x8x8xf32>, vector<2x8x8xf32>, vector<2x8x8xf32> -> vector<2x8x8xf32>
    "tpu.trace_stop"() : () -> ()
    %510 = arith.addf %509, %0 : vector<2x8x8xf32>
    %cst_209 = arith.constant dense<0xFF800000> : vector<2x8xf32>
    %511 = vector.multi_reduction <maximumf>, %510, %cst_209 [2] : vector<2x8x8xf32> to vector<2x8xf32>
    %512 = vector.shape_cast %511 : vector<2x8xf32> to vector<2x8x1xf32>
    %513 = vector.broadcast %512 : vector<2x8x1xf32> to vector<2x8x8xf32>
    %514 = arith.subf %510, %513 : vector<2x8x8xf32>
    %515 = math.exp %514 : vector<2x8x8xf32>
    %cst_210 = arith.constant dense<0.000000e+00> : vector<2x8xf32>
    %516 = vector.multi_reduction <add>, %515, %cst_210 [2] : vector<2x8x8xf32> to vector<2x8xf32>
    %517 = vector.shape_cast %516 : vector<2x8xf32> to vector<2x8x1xf32>
    %518 = tpu.reciprocal %517 : vector<2x8x1xf32> -> vector<2x8x1xf32>
    %519 = vector.broadcast %518 : vector<2x8x1xf32> to vector<2x8x8xf32>
    %520 = arith.mulf %515, %519 : vector<2x8x8xf32>
    %521 = vector.extract_strided_slice %487 {offsets = [0, 0, 8], sizes = [2, 8, 8], strides = [1, 1, 1]} : vector<2x8x32xf32> to vector<2x8x8xf32>
    "tpu.trace_start"() <{level = 10 : i32, message = "bqk,bkd->bqd"}> : () -> ()
    %cst_211 = arith.constant dense<0.000000e+00> : vector<2x8x8xf32>
    %522 = tpu.matmul %520, %521, %cst_211 {dimension_numbers = #tpu.dot_dimension_numbers<[2], [1], [1], [2], [0, 0, 0, 1, 1, 2], [0], [0]>} : vector<2x8x8xf32>, vector<2x8x8xf32>, vector<2x8x8xf32> -> vector<2x8x8xf32>
    "tpu.trace_stop"() : () -> ()
    %523 = vector.shape_cast %522 : vector<2x8x8xf32> to vector<16x8xf32>
    %524 = vector.extract_strided_slice %470 {offsets = [8, 0], sizes = [8, 32], strides = [1, 1]} : vector<32x32xf32> to vector<8x32xf32>
    %cst_212 = arith.constant dense<0.000000e+00> : vector<16x32xf32>
    %525 = tpu.matmul %523, %524, %cst_212 {dimension_numbers = #tpu.dot_dimension_numbers<[1], [0], [0], [1], [0, 0, 1, 1], [], []>} : vector<16x8xf32>, vector<8x32xf32>, vector<16x32xf32> -> vector<16x32xf32>
    %526 = arith.addf %506, %525 : vector<16x32xf32>
    %527 = vector.extract_strided_slice %485 {offsets = [0, 0, 16], sizes = [2, 8, 8], strides = [1, 1, 1]} : vector<2x8x32xf32> to vector<2x8x8xf32>
    %528 = vector.extract_strided_slice %486 {offsets = [0, 0, 16], sizes = [2, 8, 8], strides = [1, 1, 1]} : vector<2x8x32xf32> to vector<2x8x8xf32>
    "tpu.trace_start"() <{level = 10 : i32, message = "bqd,bkd->bqk"}> : () -> ()
    %cst_213 = arith.constant dense<0.000000e+00> : vector<2x8x8xf32>
    %529 = tpu.matmul %527, %528, %cst_213 {dimension_numbers = #tpu.dot_dimension_numbers<[2], [2], [1], [1], [0, 0, 0, 1, 1, 1], [0], [0]>} : vector<2x8x8xf32>, vector<2x8x8xf32>, vector<2x8x8xf32> -> vector<2x8x8xf32>
    "tpu.trace_stop"() : () -> ()
    %530 = arith.addf %529, %0 : vector<2x8x8xf32>
    %cst_214 = arith.constant dense<0xFF800000> : vector<2x8xf32>
    %531 = vector.multi_reduction <maximumf>, %530, %cst_214 [2] : vector<2x8x8xf32> to vector<2x8xf32>
    %532 = vector.shape_cast %531 : vector<2x8xf32> to vector<2x8x1xf32>
    %533 = vector.broadcast %532 : vector<2x8x1xf32> to vector<2x8x8xf32>
    %534 = arith.subf %530, %533 : vector<2x8x8xf32>
    %535 = math.exp %534 : vector<2x8x8xf32>
    %cst_215 = arith.constant dense<0.000000e+00> : vector<2x8xf32>
    %536 = vector.multi_reduction <add>, %535, %cst_215 [2] : vector<2x8x8xf32> to vector<2x8xf32>
    %537 = vector.shape_cast %536 : vector<2x8xf32> to vector<2x8x1xf32>
    %538 = tpu.reciprocal %537 : vector<2x8x1xf32> -> vector<2x8x1xf32>
    %539 = vector.broadcast %538 : vector<2x8x1xf32> to vector<2x8x8xf32>
    %540 = arith.mulf %535, %539 : vector<2x8x8xf32>
    %541 = vector.extract_strided_slice %487 {offsets = [0, 0, 16], sizes = [2, 8, 8], strides = [1, 1, 1]} : vector<2x8x32xf32> to vector<2x8x8xf32>
    "tpu.trace_start"() <{level = 10 : i32, message = "bqk,bkd->bqd"}> : () -> ()
    %cst_216 = arith.constant dense<0.000000e+00> : vector<2x8x8xf32>
    %542 = tpu.matmul %540, %541, %cst_216 {dimension_numbers = #tpu.dot_dimension_numbers<[2], [1], [1], [2], [0, 0, 0, 1, 1, 2], [0], [0]>} : vector<2x8x8xf32>, vector<2x8x8xf32>, vector<2x8x8xf32> -> vector<2x8x8xf32>
    "tpu.trace_stop"() : () -> ()
    %543 = vector.shape_cast %542 : vector<2x8x8xf32> to vector<16x8xf32>
    %544 = vector.extract_strided_slice %470 {offsets = [16, 0], sizes = [8, 32], strides = [1, 1]} : vector<32x32xf32> to vector<8x32xf32>
    %cst_217 = arith.constant dense<0.000000e+00> : vector<16x32xf32>
    %545 = tpu.matmul %543, %544, %cst_217 {dimension_numbers = #tpu.dot_dimension_numbers<[1], [0], [0], [1], [0, 0, 1, 1], [], []>} : vector<16x8xf32>, vector<8x32xf32>, vector<16x32xf32> -> vector<16x32xf32>
    %546 = arith.addf %526, %545 : vector<16x32xf32>
    %547 = vector.extract_strided_slice %485 {offsets = [0, 0, 24], sizes = [2, 8, 8], strides = [1, 1, 1]} : vector<2x8x32xf32> to vector<2x8x8xf32>
    %548 = vector.extract_strided_slice %486 {offsets = [0, 0, 24], sizes = [2, 8, 8], strides = [1, 1, 1]} : vector<2x8x32xf32> to vector<2x8x8xf32>
    "tpu.trace_start"() <{level = 10 : i32, message = "bqd,bkd->bqk"}> : () -> ()
    %cst_218 = arith.constant dense<0.000000e+00> : vector<2x8x8xf32>
    %549 = tpu.matmul %547, %548, %cst_218 {dimension_numbers = #tpu.dot_dimension_numbers<[2], [2], [1], [1], [0, 0, 0, 1, 1, 1], [0], [0]>} : vector<2x8x8xf32>, vector<2x8x8xf32>, vector<2x8x8xf32> -> vector<2x8x8xf32>
    "tpu.trace_stop"() : () -> ()
    %550 = arith.addf %549, %0 : vector<2x8x8xf32>
    %cst_219 = arith.constant dense<0xFF800000> : vector<2x8xf32>
    %551 = vector.multi_reduction <maximumf>, %550, %cst_219 [2] : vector<2x8x8xf32> to vector<2x8xf32>
    %552 = vector.shape_cast %551 : vector<2x8xf32> to vector<2x8x1xf32>
    %553 = vector.broadcast %552 : vector<2x8x1xf32> to vector<2x8x8xf32>
    %554 = arith.subf %550, %553 : vector<2x8x8xf32>
    %555 = math.exp %554 : vector<2x8x8xf32>
    %cst_220 = arith.constant dense<0.000000e+00> : vector<2x8xf32>
    %556 = vector.multi_reduction <add>, %555, %cst_220 [2] : vector<2x8x8xf32> to vector<2x8xf32>
    %557 = vector.shape_cast %556 : vector<2x8xf32> to vector<2x8x1xf32>
    %558 = tpu.reciprocal %557 : vector<2x8x1xf32> -> vector<2x8x1xf32>
    %559 = vector.broadcast %558 : vector<2x8x1xf32> to vector<2x8x8xf32>
    %560 = arith.mulf %555, %559 : vector<2x8x8xf32>
    %561 = vector.extract_strided_slice %487 {offsets = [0, 0, 24], sizes = [2, 8, 8], strides = [1, 1, 1]} : vector<2x8x32xf32> to vector<2x8x8xf32>
    "tpu.trace_start"() <{level = 10 : i32, message = "bqk,bkd->bqd"}> : () -> ()
    %cst_221 = arith.constant dense<0.000000e+00> : vector<2x8x8xf32>
    %562 = tpu.matmul %560, %561, %cst_221 {dimension_numbers = #tpu.dot_dimension_numbers<[2], [1], [1], [2], [0, 0, 0, 1, 1, 2], [0], [0]>} : vector<2x8x8xf32>, vector<2x8x8xf32>, vector<2x8x8xf32> -> vector<2x8x8xf32>
    "tpu.trace_stop"() : () -> ()
    %563 = vector.shape_cast %562 : vector<2x8x8xf32> to vector<16x8xf32>
    %564 = vector.extract_strided_slice %470 {offsets = [24, 0], sizes = [8, 32], strides = [1, 1]} : vector<32x32xf32> to vector<8x32xf32>
    %cst_222 = arith.constant dense<0.000000e+00> : vector<16x32xf32>
    %565 = tpu.matmul %563, %564, %cst_222 {dimension_numbers = #tpu.dot_dimension_numbers<[1], [0], [0], [1], [0, 0, 1, 1], [], []>} : vector<16x8xf32>, vector<8x32xf32>, vector<16x32xf32> -> vector<16x32xf32>
    %566 = arith.addf %546, %565 : vector<16x32xf32>
    %567 = vector.broadcast %472 : vector<1x32xf32> to vector<16x32xf32>
    %568 = arith.addf %566, %567 : vector<16x32xf32>
    %c4_223 = arith.constant 4 : index
    %c0_224 = arith.constant 0 : index
    %c0_225 = arith.constant 0 : index
    %569 = vector.load %arg8[%c4_223, %c0_224, %c0_225] : memref<8x1x32xf32, #tpu.memory_space<vmem>>, vector<1x1x32xf32>
    %570 = vector.shape_cast %569 : vector<1x1x32xf32> to vector<1x32xf32>
    %c4_226 = arith.constant 4 : index
    %c0_227 = arith.constant 0 : index
    %c0_228 = arith.constant 0 : index
    %571 = vector.load %arg9[%c4_226, %c0_227, %c0_228] : memref<8x1x32xf32, #tpu.memory_space<vmem>>, vector<1x1x32xf32>
    %572 = vector.shape_cast %571 : vector<1x1x32xf32> to vector<1x32xf32>
    %573 = arith.addf %464, %568 : vector<16x32xf32>
    %cst_229 = arith.constant dense<0.000000e+00> : vector<16xf32>
    %574 = vector.multi_reduction <add>, %573, %cst_229 [1] : vector<16x32xf32> to vector<16xf32>
    %575 = vector.shape_cast %574 : vector<16xf32> to vector<16x1xf32>
    %cst_230 = arith.constant 3.200000e+01 : f32
    %576 = vector.broadcast %cst_230 : f32 to vector<16x1xf32>
    %577 = arith.divf %575, %576 : vector<16x1xf32>
    %578 = vector.broadcast %577 : vector<16x1xf32> to vector<16x32xf32>
    %579 = arith.subf %573, %578 : vector<16x32xf32>
    %580 = arith.mulf %579, %579 : vector<16x32xf32>
    %cst_231 = arith.constant dense<0.000000e+00> : vector<16xf32>
    %581 = vector.multi_reduction <add>, %580, %cst_231 [1] : vector<16x32xf32> to vector<16xf32>
    %582 = vector.shape_cast %581 : vector<16xf32> to vector<16x1xf32>
    %cst_232 = arith.constant 3.200000e+01 : f32
    %583 = vector.broadcast %cst_232 : f32 to vector<16x1xf32>
    %584 = arith.divf %582, %583 : vector<16x1xf32>
    %585 = vector.broadcast %577 : vector<16x1xf32> to vector<16x32xf32>
    %586 = arith.subf %573, %585 : vector<16x32xf32>
    %cst_233 = arith.constant 9.99999974E-6 : f32
    %587 = vector.broadcast %cst_233 : f32 to vector<16x1xf32>
    %588 = arith.addf %584, %587 : vector<16x1xf32>
    %589 = math.rsqrt %588 : vector<16x1xf32>
    %590 = vector.broadcast %589 : vector<16x1xf32> to vector<16x32xf32>
    %591 = arith.mulf %586, %590 : vector<16x32xf32>
    %592 = vector.broadcast %570 : vector<1x32xf32> to vector<16x32xf32>
    %593 = arith.mulf %591, %592 : vector<16x32xf32>
    %594 = vector.broadcast %572 : vector<1x32xf32> to vector<16x32xf32>
    %595 = arith.addf %593, %594 : vector<16x32xf32>
    %c2_234 = arith.constant 2 : index
    %c0_235 = arith.constant 0 : index
    %c0_236 = arith.constant 0 : index
    %596 = vector.load %arg10[%c2_234, %c0_235, %c0_236] : memref<4x32x64xf32, #tpu.memory_space<vmem>>, vector<1x32x64xf32>
    %597 = vector.shape_cast %596 : vector<1x32x64xf32> to vector<32x64xf32>
    %c2_237 = arith.constant 2 : index
    %c0_238 = arith.constant 0 : index
    %c0_239 = arith.constant 0 : index
    %598 = vector.load %arg11[%c2_237, %c0_238, %c0_239] : memref<4x1x64xf32, #tpu.memory_space<vmem>>, vector<1x1x64xf32>
    %599 = vector.shape_cast %598 : vector<1x1x64xf32> to vector<1x64xf32>
    %c2_240 = arith.constant 2 : index
    %c0_241 = arith.constant 0 : index
    %c0_242 = arith.constant 0 : index
    %600 = vector.load %arg12[%c2_240, %c0_241, %c0_242] : memref<4x64x32xf32, #tpu.memory_space<vmem>>, vector<1x64x32xf32>
    %601 = vector.shape_cast %600 : vector<1x64x32xf32> to vector<64x32xf32>
    %c2_243 = arith.constant 2 : index
    %c0_244 = arith.constant 0 : index
    %c0_245 = arith.constant 0 : index
    %602 = vector.load %arg13[%c2_243, %c0_244, %c0_245] : memref<4x1x32xf32, #tpu.memory_space<vmem>>, vector<1x1x32xf32>
    %603 = vector.shape_cast %602 : vector<1x1x32xf32> to vector<1x32xf32>
    %cst_246 = arith.constant dense<0.000000e+00> : vector<16x64xf32>
    %604 = tpu.matmul %595, %597, %cst_246 {dimension_numbers = #tpu.dot_dimension_numbers<[1], [0], [0], [1], [0, 0, 1, 1], [], []>} : vector<16x32xf32>, vector<32x64xf32>, vector<16x64xf32> -> vector<16x64xf32>
    %605 = vector.broadcast %599 : vector<1x64xf32> to vector<16x64xf32>
    %606 = arith.addf %604, %605 : vector<16x64xf32>
    %cst_247 = arith.constant 0.000000e+00 : f32
    %607 = vector.broadcast %cst_247 : f32 to vector<16x64xf32>
    %608 = arith.maximumf %606, %607 : vector<16x64xf32>
    %cst_248 = arith.constant dense<0.000000e+00> : vector<16x32xf32>
    %609 = tpu.matmul %608, %601, %cst_248 {dimension_numbers = #tpu.dot_dimension_numbers<[1], [0], [0], [1], [0, 0, 1, 1], [], []>} : vector<16x64xf32>, vector<64x32xf32>, vector<16x32xf32> -> vector<16x32xf32>
    %610 = vector.broadcast %603 : vector<1x32xf32> to vector<16x32xf32>
    %611 = arith.addf %609, %610 : vector<16x32xf32>
    %c6 = arith.constant 6 : index
    %c0_249 = arith.constant 0 : index
    %c0_250 = arith.constant 0 : index
    %612 = vector.load %arg8[%c6, %c0_249, %c0_250] : memref<8x1x32xf32, #tpu.memory_space<vmem>>, vector<1x1x32xf32>
    %613 = vector.shape_cast %612 : vector<1x1x32xf32> to vector<1x32xf32>
    %c6_251 = arith.constant 6 : index
    %c0_252 = arith.constant 0 : index
    %c0_253 = arith.constant 0 : index
    %614 = vector.load %arg9[%c6_251, %c0_252, %c0_253] : memref<8x1x32xf32, #tpu.memory_space<vmem>>, vector<1x1x32xf32>
    %615 = vector.shape_cast %614 : vector<1x1x32xf32> to vector<1x32xf32>
    %616 = arith.addf %595, %611 : vector<16x32xf32>
    %cst_254 = arith.constant dense<0.000000e+00> : vector<16xf32>
    %617 = vector.multi_reduction <add>, %616, %cst_254 [1] : vector<16x32xf32> to vector<16xf32>
    %618 = vector.shape_cast %617 : vector<16xf32> to vector<16x1xf32>
    %cst_255 = arith.constant 3.200000e+01 : f32
    %619 = vector.broadcast %cst_255 : f32 to vector<16x1xf32>
    %620 = arith.divf %618, %619 : vector<16x1xf32>
    %621 = vector.broadcast %620 : vector<16x1xf32> to vector<16x32xf32>
    %622 = arith.subf %616, %621 : vector<16x32xf32>
    %623 = arith.mulf %622, %622 : vector<16x32xf32>
    %cst_256 = arith.constant dense<0.000000e+00> : vector<16xf32>
    %624 = vector.multi_reduction <add>, %623, %cst_256 [1] : vector<16x32xf32> to vector<16xf32>
    %625 = vector.shape_cast %624 : vector<16xf32> to vector<16x1xf32>
    %cst_257 = arith.constant 3.200000e+01 : f32
    %626 = vector.broadcast %cst_257 : f32 to vector<16x1xf32>
    %627 = arith.divf %625, %626 : vector<16x1xf32>
    %628 = vector.broadcast %620 : vector<16x1xf32> to vector<16x32xf32>
    %629 = arith.subf %616, %628 : vector<16x32xf32>
    %cst_258 = arith.constant 9.99999974E-6 : f32
    %630 = vector.broadcast %cst_258 : f32 to vector<16x1xf32>
    %631 = arith.addf %627, %630 : vector<16x1xf32>
    %632 = math.rsqrt %631 : vector<16x1xf32>
    %633 = vector.broadcast %632 : vector<16x1xf32> to vector<16x32xf32>
    %634 = arith.mulf %629, %633 : vector<16x32xf32>
    %635 = vector.broadcast %613 : vector<1x32xf32> to vector<16x32xf32>
    %636 = arith.mulf %634, %635 : vector<16x32xf32>
    %637 = vector.broadcast %615 : vector<1x32xf32> to vector<16x32xf32>
    %638 = arith.addf %636, %637 : vector<16x32xf32>
    %c3 = arith.constant 3 : index
    %c0_259 = arith.constant 0 : index
    %c0_260 = arith.constant 0 : index
    %639 = vector.load %arg4[%c3, %c0_259, %c0_260] : memref<6x32x96xf32, #tpu.memory_space<vmem>>, vector<1x32x96xf32>
    %640 = vector.shape_cast %639 : vector<1x32x96xf32> to vector<32x96xf32>
    %c3_261 = arith.constant 3 : index
    %c0_262 = arith.constant 0 : index
    %c0_263 = arith.constant 0 : index
    %641 = vector.load %arg5[%c3_261, %c0_262, %c0_263] : memref<6x1x96xf32, #tpu.memory_space<vmem>>, vector<1x1x96xf32>
    %642 = vector.shape_cast %641 : vector<1x1x96xf32> to vector<1x96xf32>
    %c3_264 = arith.constant 3 : index
    %c0_265 = arith.constant 0 : index
    %c0_266 = arith.constant 0 : index
    %643 = vector.load %arg6[%c3_264, %c0_265, %c0_266] : memref<6x32x32xf32, #tpu.memory_space<vmem>>, vector<1x32x32xf32>
    %644 = vector.shape_cast %643 : vector<1x32x32xf32> to vector<32x32xf32>
    %c3_267 = arith.constant 3 : index
    %c0_268 = arith.constant 0 : index
    %c0_269 = arith.constant 0 : index
    %645 = vector.load %arg7[%c3_267, %c0_268, %c0_269] : memref<6x1x32xf32, #tpu.memory_space<vmem>>, vector<1x1x32xf32>
    %646 = vector.shape_cast %645 : vector<1x1x32xf32> to vector<1x32xf32>
    %cst_270 = arith.constant dense<0.000000e+00> : vector<16x96xf32>
    %647 = tpu.matmul %638, %640, %cst_270 {dimension_numbers = #tpu.dot_dimension_numbers<[1], [0], [0], [1], [0, 0, 1, 1], [], []>} : vector<16x32xf32>, vector<32x96xf32>, vector<16x96xf32> -> vector<16x96xf32>
    %648 = vector.broadcast %642 : vector<1x96xf32> to vector<16x96xf32>
    %649 = arith.addf %647, %648 : vector<16x96xf32>
    %650 = vector.extract_strided_slice %649 {offsets = [0, 0], sizes = [16, 32], strides = [1, 1]} : vector<16x96xf32> to vector<16x32xf32>
    %651 = vector.extract_strided_slice %649 {offsets = [0, 32], sizes = [16, 32], strides = [1, 1]} : vector<16x96xf32> to vector<16x32xf32>
    %652 = vector.extract_strided_slice %649 {offsets = [0, 64], sizes = [16, 32], strides = [1, 1]} : vector<16x96xf32> to vector<16x32xf32>
    %653 = vector.shape_cast %650 : vector<16x32xf32> to vector<2x8x32xf32>
    %654 = vector.shape_cast %651 : vector<16x32xf32> to vector<2x8x32xf32>
    %655 = vector.shape_cast %652 : vector<16x32xf32> to vector<2x8x32xf32>
    %656 = vector.extract_strided_slice %653 {offsets = [0, 0, 0], sizes = [2, 8, 8], strides = [1, 1, 1]} : vector<2x8x32xf32> to vector<2x8x8xf32>
    %657 = vector.extract_strided_slice %654 {offsets = [0, 0, 0], sizes = [2, 8, 8], strides = [1, 1, 1]} : vector<2x8x32xf32> to vector<2x8x8xf32>
    "tpu.trace_start"() <{level = 10 : i32, message = "bqd,bkd->bqk"}> : () -> ()
    %cst_271 = arith.constant dense<0.000000e+00> : vector<2x8x8xf32>
    %658 = tpu.matmul %656, %657, %cst_271 {dimension_numbers = #tpu.dot_dimension_numbers<[2], [2], [1], [1], [0, 0, 0, 1, 1, 1], [0], [0]>} : vector<2x8x8xf32>, vector<2x8x8xf32>, vector<2x8x8xf32> -> vector<2x8x8xf32>
    "tpu.trace_stop"() : () -> ()
    %659 = arith.addf %658, %1 : vector<2x8x8xf32>
    %cst_272 = arith.constant dense<0xFF800000> : vector<2x8xf32>
    %660 = vector.multi_reduction <maximumf>, %659, %cst_272 [2] : vector<2x8x8xf32> to vector<2x8xf32>
    %661 = vector.shape_cast %660 : vector<2x8xf32> to vector<2x8x1xf32>
    %662 = vector.broadcast %661 : vector<2x8x1xf32> to vector<2x8x8xf32>
    %663 = arith.subf %659, %662 : vector<2x8x8xf32>
    %664 = math.exp %663 : vector<2x8x8xf32>
    %cst_273 = arith.constant dense<0.000000e+00> : vector<2x8xf32>
    %665 = vector.multi_reduction <add>, %664, %cst_273 [2] : vector<2x8x8xf32> to vector<2x8xf32>
    %666 = vector.shape_cast %665 : vector<2x8xf32> to vector<2x8x1xf32>
    %667 = tpu.reciprocal %666 : vector<2x8x1xf32> -> vector<2x8x1xf32>
    %668 = vector.broadcast %667 : vector<2x8x1xf32> to vector<2x8x8xf32>
    %669 = arith.mulf %664, %668 : vector<2x8x8xf32>
    %670 = vector.extract_strided_slice %655 {offsets = [0, 0, 0], sizes = [2, 8, 8], strides = [1, 1, 1]} : vector<2x8x32xf32> to vector<2x8x8xf32>
    "tpu.trace_start"() <{level = 10 : i32, message = "bqk,bkd->bqd"}> : () -> ()
    %cst_274 = arith.constant dense<0.000000e+00> : vector<2x8x8xf32>
    %671 = tpu.matmul %669, %670, %cst_274 {dimension_numbers = #tpu.dot_dimension_numbers<[2], [1], [1], [2], [0, 0, 0, 1, 1, 2], [0], [0]>} : vector<2x8x8xf32>, vector<2x8x8xf32>, vector<2x8x8xf32> -> vector<2x8x8xf32>
    "tpu.trace_stop"() : () -> ()
    %672 = vector.shape_cast %671 : vector<2x8x8xf32> to vector<16x8xf32>
    %673 = vector.extract_strided_slice %644 {offsets = [0, 0], sizes = [8, 32], strides = [1, 1]} : vector<32x32xf32> to vector<8x32xf32>
    %cst_275 = arith.constant dense<0.000000e+00> : vector<16x32xf32>
    %674 = tpu.matmul %672, %673, %cst_275 {dimension_numbers = #tpu.dot_dimension_numbers<[1], [0], [0], [1], [0, 0, 1, 1], [], []>} : vector<16x8xf32>, vector<8x32xf32>, vector<16x32xf32> -> vector<16x32xf32>
    %675 = vector.extract_strided_slice %653 {offsets = [0, 0, 8], sizes = [2, 8, 8], strides = [1, 1, 1]} : vector<2x8x32xf32> to vector<2x8x8xf32>
    %676 = vector.extract_strided_slice %654 {offsets = [0, 0, 8], sizes = [2, 8, 8], strides = [1, 1, 1]} : vector<2x8x32xf32> to vector<2x8x8xf32>
    "tpu.trace_start"() <{level = 10 : i32, message = "bqd,bkd->bqk"}> : () -> ()
    %cst_276 = arith.constant dense<0.000000e+00> : vector<2x8x8xf32>
    %677 = tpu.matmul %675, %676, %cst_276 {dimension_numbers = #tpu.dot_dimension_numbers<[2], [2], [1], [1], [0, 0, 0, 1, 1, 1], [0], [0]>} : vector<2x8x8xf32>, vector<2x8x8xf32>, vector<2x8x8xf32> -> vector<2x8x8xf32>
    "tpu.trace_stop"() : () -> ()
    %678 = arith.addf %677, %1 : vector<2x8x8xf32>
    %cst_277 = arith.constant dense<0xFF800000> : vector<2x8xf32>
    %679 = vector.multi_reduction <maximumf>, %678, %cst_277 [2] : vector<2x8x8xf32> to vector<2x8xf32>
    %680 = vector.shape_cast %679 : vector<2x8xf32> to vector<2x8x1xf32>
    %681 = vector.broadcast %680 : vector<2x8x1xf32> to vector<2x8x8xf32>
    %682 = arith.subf %678, %681 : vector<2x8x8xf32>
    %683 = math.exp %682 : vector<2x8x8xf32>
    %cst_278 = arith.constant dense<0.000000e+00> : vector<2x8xf32>
    %684 = vector.multi_reduction <add>, %683, %cst_278 [2] : vector<2x8x8xf32> to vector<2x8xf32>
    %685 = vector.shape_cast %684 : vector<2x8xf32> to vector<2x8x1xf32>
    %686 = tpu.reciprocal %685 : vector<2x8x1xf32> -> vector<2x8x1xf32>
    %687 = vector.broadcast %686 : vector<2x8x1xf32> to vector<2x8x8xf32>
    %688 = arith.mulf %683, %687 : vector<2x8x8xf32>
    %689 = vector.extract_strided_slice %655 {offsets = [0, 0, 8], sizes = [2, 8, 8], strides = [1, 1, 1]} : vector<2x8x32xf32> to vector<2x8x8xf32>
    "tpu.trace_start"() <{level = 10 : i32, message = "bqk,bkd->bqd"}> : () -> ()
    %cst_279 = arith.constant dense<0.000000e+00> : vector<2x8x8xf32>
    %690 = tpu.matmul %688, %689, %cst_279 {dimension_numbers = #tpu.dot_dimension_numbers<[2], [1], [1], [2], [0, 0, 0, 1, 1, 2], [0], [0]>} : vector<2x8x8xf32>, vector<2x8x8xf32>, vector<2x8x8xf32> -> vector<2x8x8xf32>
    "tpu.trace_stop"() : () -> ()
    %691 = vector.shape_cast %690 : vector<2x8x8xf32> to vector<16x8xf32>
    %692 = vector.extract_strided_slice %644 {offsets = [8, 0], sizes = [8, 32], strides = [1, 1]} : vector<32x32xf32> to vector<8x32xf32>
    %cst_280 = arith.constant dense<0.000000e+00> : vector<16x32xf32>
    %693 = tpu.matmul %691, %692, %cst_280 {dimension_numbers = #tpu.dot_dimension_numbers<[1], [0], [0], [1], [0, 0, 1, 1], [], []>} : vector<16x8xf32>, vector<8x32xf32>, vector<16x32xf32> -> vector<16x32xf32>
    %694 = arith.addf %674, %693 : vector<16x32xf32>
    %695 = vector.extract_strided_slice %653 {offsets = [0, 0, 16], sizes = [2, 8, 8], strides = [1, 1, 1]} : vector<2x8x32xf32> to vector<2x8x8xf32>
    %696 = vector.extract_strided_slice %654 {offsets = [0, 0, 16], sizes = [2, 8, 8], strides = [1, 1, 1]} : vector<2x8x32xf32> to vector<2x8x8xf32>
    "tpu.trace_start"() <{level = 10 : i32, message = "bqd,bkd->bqk"}> : () -> ()
    %cst_281 = arith.constant dense<0.000000e+00> : vector<2x8x8xf32>
    %697 = tpu.matmul %695, %696, %cst_281 {dimension_numbers = #tpu.dot_dimension_numbers<[2], [2], [1], [1], [0, 0, 0, 1, 1, 1], [0], [0]>} : vector<2x8x8xf32>, vector<2x8x8xf32>, vector<2x8x8xf32> -> vector<2x8x8xf32>
    "tpu.trace_stop"() : () -> ()
    %698 = arith.addf %697, %1 : vector<2x8x8xf32>
    %cst_282 = arith.constant dense<0xFF800000> : vector<2x8xf32>
    %699 = vector.multi_reduction <maximumf>, %698, %cst_282 [2] : vector<2x8x8xf32> to vector<2x8xf32>
    %700 = vector.shape_cast %699 : vector<2x8xf32> to vector<2x8x1xf32>
    %701 = vector.broadcast %700 : vector<2x8x1xf32> to vector<2x8x8xf32>
    %702 = arith.subf %698, %701 : vector<2x8x8xf32>
    %703 = math.exp %702 : vector<2x8x8xf32>
    %cst_283 = arith.constant dense<0.000000e+00> : vector<2x8xf32>
    %704 = vector.multi_reduction <add>, %703, %cst_283 [2] : vector<2x8x8xf32> to vector<2x8xf32>
    %705 = vector.shape_cast %704 : vector<2x8xf32> to vector<2x8x1xf32>
    %706 = tpu.reciprocal %705 : vector<2x8x1xf32> -> vector<2x8x1xf32>
    %707 = vector.broadcast %706 : vector<2x8x1xf32> to vector<2x8x8xf32>
    %708 = arith.mulf %703, %707 : vector<2x8x8xf32>
    %709 = vector.extract_strided_slice %655 {offsets = [0, 0, 16], sizes = [2, 8, 8], strides = [1, 1, 1]} : vector<2x8x32xf32> to vector<2x8x8xf32>
    "tpu.trace_start"() <{level = 10 : i32, message = "bqk,bkd->bqd"}> : () -> ()
    %cst_284 = arith.constant dense<0.000000e+00> : vector<2x8x8xf32>
    %710 = tpu.matmul %708, %709, %cst_284 {dimension_numbers = #tpu.dot_dimension_numbers<[2], [1], [1], [2], [0, 0, 0, 1, 1, 2], [0], [0]>} : vector<2x8x8xf32>, vector<2x8x8xf32>, vector<2x8x8xf32> -> vector<2x8x8xf32>
    "tpu.trace_stop"() : () -> ()
    %711 = vector.shape_cast %710 : vector<2x8x8xf32> to vector<16x8xf32>
    %712 = vector.extract_strided_slice %644 {offsets = [16, 0], sizes = [8, 32], strides = [1, 1]} : vector<32x32xf32> to vector<8x32xf32>
    %cst_285 = arith.constant dense<0.000000e+00> : vector<16x32xf32>
    %713 = tpu.matmul %711, %712, %cst_285 {dimension_numbers = #tpu.dot_dimension_numbers<[1], [0], [0], [1], [0, 0, 1, 1], [], []>} : vector<16x8xf32>, vector<8x32xf32>, vector<16x32xf32> -> vector<16x32xf32>
    %714 = arith.addf %694, %713 : vector<16x32xf32>
    %715 = vector.extract_strided_slice %653 {offsets = [0, 0, 24], sizes = [2, 8, 8], strides = [1, 1, 1]} : vector<2x8x32xf32> to vector<2x8x8xf32>
    %716 = vector.extract_strided_slice %654 {offsets = [0, 0, 24], sizes = [2, 8, 8], strides = [1, 1, 1]} : vector<2x8x32xf32> to vector<2x8x8xf32>
    "tpu.trace_start"() <{level = 10 : i32, message = "bqd,bkd->bqk"}> : () -> ()
    %cst_286 = arith.constant dense<0.000000e+00> : vector<2x8x8xf32>
    %717 = tpu.matmul %715, %716, %cst_286 {dimension_numbers = #tpu.dot_dimension_numbers<[2], [2], [1], [1], [0, 0, 0, 1, 1, 1], [0], [0]>} : vector<2x8x8xf32>, vector<2x8x8xf32>, vector<2x8x8xf32> -> vector<2x8x8xf32>
    "tpu.trace_stop"() : () -> ()
    %718 = arith.addf %717, %1 : vector<2x8x8xf32>
    %cst_287 = arith.constant dense<0xFF800000> : vector<2x8xf32>
    %719 = vector.multi_reduction <maximumf>, %718, %cst_287 [2] : vector<2x8x8xf32> to vector<2x8xf32>
    %720 = vector.shape_cast %719 : vector<2x8xf32> to vector<2x8x1xf32>
    %721 = vector.broadcast %720 : vector<2x8x1xf32> to vector<2x8x8xf32>
    %722 = arith.subf %718, %721 : vector<2x8x8xf32>
    %723 = math.exp %722 : vector<2x8x8xf32>
    %cst_288 = arith.constant dense<0.000000e+00> : vector<2x8xf32>
    %724 = vector.multi_reduction <add>, %723, %cst_288 [2] : vector<2x8x8xf32> to vector<2x8xf32>
    %725 = vector.shape_cast %724 : vector<2x8xf32> to vector<2x8x1xf32>
    %726 = tpu.reciprocal %725 : vector<2x8x1xf32> -> vector<2x8x1xf32>
    %727 = vector.broadcast %726 : vector<2x8x1xf32> to vector<2x8x8xf32>
    %728 = arith.mulf %723, %727 : vector<2x8x8xf32>
    %729 = vector.extract_strided_slice %655 {offsets = [0, 0, 24], sizes = [2, 8, 8], strides = [1, 1, 1]} : vector<2x8x32xf32> to vector<2x8x8xf32>
    "tpu.trace_start"() <{level = 10 : i32, message = "bqk,bkd->bqd"}> : () -> ()
    %cst_289 = arith.constant dense<0.000000e+00> : vector<2x8x8xf32>
    %730 = tpu.matmul %728, %729, %cst_289 {dimension_numbers = #tpu.dot_dimension_numbers<[2], [1], [1], [2], [0, 0, 0, 1, 1, 2], [0], [0]>} : vector<2x8x8xf32>, vector<2x8x8xf32>, vector<2x8x8xf32> -> vector<2x8x8xf32>
    "tpu.trace_stop"() : () -> ()
    %731 = vector.shape_cast %730 : vector<2x8x8xf32> to vector<16x8xf32>
    %732 = vector.extract_strided_slice %644 {offsets = [24, 0], sizes = [8, 32], strides = [1, 1]} : vector<32x32xf32> to vector<8x32xf32>
    %cst_290 = arith.constant dense<0.000000e+00> : vector<16x32xf32>
    %733 = tpu.matmul %731, %732, %cst_290 {dimension_numbers = #tpu.dot_dimension_numbers<[1], [0], [0], [1], [0, 0, 1, 1], [], []>} : vector<16x8xf32>, vector<8x32xf32>, vector<16x32xf32> -> vector<16x32xf32>
    %734 = arith.addf %714, %733 : vector<16x32xf32>
    %735 = vector.broadcast %646 : vector<1x32xf32> to vector<16x32xf32>
    %736 = arith.addf %734, %735 : vector<16x32xf32>
    %c3_291 = arith.constant 3 : index
    %c0_292 = arith.constant 0 : index
    %c0_293 = arith.constant 0 : index
    %737 = vector.load %arg8[%c3_291, %c0_292, %c0_293] : memref<8x1x32xf32, #tpu.memory_space<vmem>>, vector<1x1x32xf32>
    %738 = vector.shape_cast %737 : vector<1x1x32xf32> to vector<1x32xf32>
    %c3_294 = arith.constant 3 : index
    %c0_295 = arith.constant 0 : index
    %c0_296 = arith.constant 0 : index
    %739 = vector.load %arg9[%c3_294, %c0_295, %c0_296] : memref<8x1x32xf32, #tpu.memory_space<vmem>>, vector<1x1x32xf32>
    %740 = vector.shape_cast %739 : vector<1x1x32xf32> to vector<1x32xf32>
    %741 = arith.addf %638, %736 : vector<16x32xf32>
    %cst_297 = arith.constant dense<0.000000e+00> : vector<16xf32>
    %742 = vector.multi_reduction <add>, %741, %cst_297 [1] : vector<16x32xf32> to vector<16xf32>
    %743 = vector.shape_cast %742 : vector<16xf32> to vector<16x1xf32>
    %cst_298 = arith.constant 3.200000e+01 : f32
    %744 = vector.broadcast %cst_298 : f32 to vector<16x1xf32>
    %745 = arith.divf %743, %744 : vector<16x1xf32>
    %746 = vector.broadcast %745 : vector<16x1xf32> to vector<16x32xf32>
    %747 = arith.subf %741, %746 : vector<16x32xf32>
    %748 = arith.mulf %747, %747 : vector<16x32xf32>
    %cst_299 = arith.constant dense<0.000000e+00> : vector<16xf32>
    %749 = vector.multi_reduction <add>, %748, %cst_299 [1] : vector<16x32xf32> to vector<16xf32>
    %750 = vector.shape_cast %749 : vector<16xf32> to vector<16x1xf32>
    %cst_300 = arith.constant 3.200000e+01 : f32
    %751 = vector.broadcast %cst_300 : f32 to vector<16x1xf32>
    %752 = arith.divf %750, %751 : vector<16x1xf32>
    %753 = vector.broadcast %745 : vector<16x1xf32> to vector<16x32xf32>
    %754 = arith.subf %741, %753 : vector<16x32xf32>
    %cst_301 = arith.constant 9.99999974E-6 : f32
    %755 = vector.broadcast %cst_301 : f32 to vector<16x1xf32>
    %756 = arith.addf %752, %755 : vector<16x1xf32>
    %757 = math.rsqrt %756 : vector<16x1xf32>
    %758 = vector.broadcast %757 : vector<16x1xf32> to vector<16x32xf32>
    %759 = arith.mulf %754, %758 : vector<16x32xf32>
    %760 = vector.broadcast %738 : vector<1x32xf32> to vector<16x32xf32>
    %761 = arith.mulf %759, %760 : vector<16x32xf32>
    %762 = vector.broadcast %740 : vector<1x32xf32> to vector<16x32xf32>
    %763 = arith.addf %761, %762 : vector<16x32xf32>
    %c5 = arith.constant 5 : index
    %c0_302 = arith.constant 0 : index
    %c0_303 = arith.constant 0 : index
    %764 = vector.load %arg4[%c5, %c0_302, %c0_303] : memref<6x32x96xf32, #tpu.memory_space<vmem>>, vector<1x32x96xf32>
    %765 = vector.shape_cast %764 : vector<1x32x96xf32> to vector<32x96xf32>
    %c5_304 = arith.constant 5 : index
    %c0_305 = arith.constant 0 : index
    %c0_306 = arith.constant 0 : index
    %766 = vector.load %arg5[%c5_304, %c0_305, %c0_306] : memref<6x1x96xf32, #tpu.memory_space<vmem>>, vector<1x1x96xf32>
    %767 = vector.shape_cast %766 : vector<1x1x96xf32> to vector<1x96xf32>
    %c5_307 = arith.constant 5 : index
    %c0_308 = arith.constant 0 : index
    %c0_309 = arith.constant 0 : index
    %768 = vector.load %arg6[%c5_307, %c0_308, %c0_309] : memref<6x32x32xf32, #tpu.memory_space<vmem>>, vector<1x32x32xf32>
    %769 = vector.shape_cast %768 : vector<1x32x32xf32> to vector<32x32xf32>
    %c5_310 = arith.constant 5 : index
    %c0_311 = arith.constant 0 : index
    %c0_312 = arith.constant 0 : index
    %770 = vector.load %arg7[%c5_310, %c0_311, %c0_312] : memref<6x1x32xf32, #tpu.memory_space<vmem>>, vector<1x1x32xf32>
    %771 = vector.shape_cast %770 : vector<1x1x32xf32> to vector<1x32xf32>
    %772 = vector.extract_strided_slice %765 {offsets = [0, 0], sizes = [32, 32], strides = [1, 1]} : vector<32x96xf32> to vector<32x32xf32>
    %cst_313 = arith.constant dense<0.000000e+00> : vector<16x32xf32>
    %773 = tpu.matmul %763, %772, %cst_313 {dimension_numbers = #tpu.dot_dimension_numbers<[1], [0], [0], [1], [0, 0, 1, 1], [], []>} : vector<16x32xf32>, vector<32x32xf32>, vector<16x32xf32> -> vector<16x32xf32>
    %774 = vector.extract_strided_slice %767 {offsets = [0, 0], sizes = [1, 32], strides = [1, 1]} : vector<1x96xf32> to vector<1x32xf32>
    %775 = vector.broadcast %774 : vector<1x32xf32> to vector<16x32xf32>
    %776 = arith.addf %773, %775 : vector<16x32xf32>
    %777 = vector.extract_strided_slice %765 {offsets = [0, 32], sizes = [32, 64], strides = [1, 1]} : vector<32x96xf32> to vector<32x64xf32>
    %cst_314 = arith.constant dense<0.000000e+00> : vector<16x64xf32>
    %778 = tpu.matmul %338, %777, %cst_314 {dimension_numbers = #tpu.dot_dimension_numbers<[1], [0], [0], [1], [0, 0, 1, 1], [], []>} : vector<16x32xf32>, vector<32x64xf32>, vector<16x64xf32> -> vector<16x64xf32>
    %779 = vector.extract_strided_slice %767 {offsets = [0, 32], sizes = [1, 64], strides = [1, 1]} : vector<1x96xf32> to vector<1x64xf32>
    %780 = vector.broadcast %779 : vector<1x64xf32> to vector<16x64xf32>
    %781 = arith.addf %778, %780 : vector<16x64xf32>
    %782 = vector.extract_strided_slice %781 {offsets = [0, 0], sizes = [16, 32], strides = [1, 1]} : vector<16x64xf32> to vector<16x32xf32>
    %783 = vector.extract_strided_slice %781 {offsets = [0, 32], sizes = [16, 32], strides = [1, 1]} : vector<16x64xf32> to vector<16x32xf32>
    %784 = vector.shape_cast %776 : vector<16x32xf32> to vector<2x8x32xf32>
    %785 = vector.shape_cast %782 : vector<16x32xf32> to vector<2x8x32xf32>
    %786 = vector.shape_cast %783 : vector<16x32xf32> to vector<2x8x32xf32>
    %787 = vector.extract_strided_slice %784 {offsets = [0, 0, 0], sizes = [2, 8, 8], strides = [1, 1, 1]} : vector<2x8x32xf32> to vector<2x8x8xf32>
    %788 = vector.extract_strided_slice %785 {offsets = [0, 0, 0], sizes = [2, 8, 8], strides = [1, 1, 1]} : vector<2x8x32xf32> to vector<2x8x8xf32>
    "tpu.trace_start"() <{level = 10 : i32, message = "bqd,bkd->bqk"}> : () -> ()
    %cst_315 = arith.constant dense<0.000000e+00> : vector<2x8x8xf32>
    %789 = tpu.matmul %787, %788, %cst_315 {dimension_numbers = #tpu.dot_dimension_numbers<[2], [2], [1], [1], [0, 0, 0, 1, 1, 1], [0], [0]>} : vector<2x8x8xf32>, vector<2x8x8xf32>, vector<2x8x8xf32> -> vector<2x8x8xf32>
    "tpu.trace_stop"() : () -> ()
    %790 = arith.addf %789, %0 : vector<2x8x8xf32>
    %cst_316 = arith.constant dense<0xFF800000> : vector<2x8xf32>
    %791 = vector.multi_reduction <maximumf>, %790, %cst_316 [2] : vector<2x8x8xf32> to vector<2x8xf32>
    %792 = vector.shape_cast %791 : vector<2x8xf32> to vector<2x8x1xf32>
    %793 = vector.broadcast %792 : vector<2x8x1xf32> to vector<2x8x8xf32>
    %794 = arith.subf %790, %793 : vector<2x8x8xf32>
    %795 = math.exp %794 : vector<2x8x8xf32>
    %cst_317 = arith.constant dense<0.000000e+00> : vector<2x8xf32>
    %796 = vector.multi_reduction <add>, %795, %cst_317 [2] : vector<2x8x8xf32> to vector<2x8xf32>
    %797 = vector.shape_cast %796 : vector<2x8xf32> to vector<2x8x1xf32>
    %798 = tpu.reciprocal %797 : vector<2x8x1xf32> -> vector<2x8x1xf32>
    %799 = vector.broadcast %798 : vector<2x8x1xf32> to vector<2x8x8xf32>
    %800 = arith.mulf %795, %799 : vector<2x8x8xf32>
    %801 = vector.extract_strided_slice %786 {offsets = [0, 0, 0], sizes = [2, 8, 8], strides = [1, 1, 1]} : vector<2x8x32xf32> to vector<2x8x8xf32>
    "tpu.trace_start"() <{level = 10 : i32, message = "bqk,bkd->bqd"}> : () -> ()
    %cst_318 = arith.constant dense<0.000000e+00> : vector<2x8x8xf32>
    %802 = tpu.matmul %800, %801, %cst_318 {dimension_numbers = #tpu.dot_dimension_numbers<[2], [1], [1], [2], [0, 0, 0, 1, 1, 2], [0], [0]>} : vector<2x8x8xf32>, vector<2x8x8xf32>, vector<2x8x8xf32> -> vector<2x8x8xf32>
    "tpu.trace_stop"() : () -> ()
    %803 = vector.shape_cast %802 : vector<2x8x8xf32> to vector<16x8xf32>
    %804 = vector.extract_strided_slice %769 {offsets = [0, 0], sizes = [8, 32], strides = [1, 1]} : vector<32x32xf32> to vector<8x32xf32>
    %cst_319 = arith.constant dense<0.000000e+00> : vector<16x32xf32>
    %805 = tpu.matmul %803, %804, %cst_319 {dimension_numbers = #tpu.dot_dimension_numbers<[1], [0], [0], [1], [0, 0, 1, 1], [], []>} : vector<16x8xf32>, vector<8x32xf32>, vector<16x32xf32> -> vector<16x32xf32>
    %806 = vector.extract_strided_slice %784 {offsets = [0, 0, 8], sizes = [2, 8, 8], strides = [1, 1, 1]} : vector<2x8x32xf32> to vector<2x8x8xf32>
    %807 = vector.extract_strided_slice %785 {offsets = [0, 0, 8], sizes = [2, 8, 8], strides = [1, 1, 1]} : vector<2x8x32xf32> to vector<2x8x8xf32>
    "tpu.trace_start"() <{level = 10 : i32, message = "bqd,bkd->bqk"}> : () -> ()
    %cst_320 = arith.constant dense<0.000000e+00> : vector<2x8x8xf32>
    %808 = tpu.matmul %806, %807, %cst_320 {dimension_numbers = #tpu.dot_dimension_numbers<[2], [2], [1], [1], [0, 0, 0, 1, 1, 1], [0], [0]>} : vector<2x8x8xf32>, vector<2x8x8xf32>, vector<2x8x8xf32> -> vector<2x8x8xf32>
    "tpu.trace_stop"() : () -> ()
    %809 = arith.addf %808, %0 : vector<2x8x8xf32>
    %cst_321 = arith.constant dense<0xFF800000> : vector<2x8xf32>
    %810 = vector.multi_reduction <maximumf>, %809, %cst_321 [2] : vector<2x8x8xf32> to vector<2x8xf32>
    %811 = vector.shape_cast %810 : vector<2x8xf32> to vector<2x8x1xf32>
    %812 = vector.broadcast %811 : vector<2x8x1xf32> to vector<2x8x8xf32>
    %813 = arith.subf %809, %812 : vector<2x8x8xf32>
    %814 = math.exp %813 : vector<2x8x8xf32>
    %cst_322 = arith.constant dense<0.000000e+00> : vector<2x8xf32>
    %815 = vector.multi_reduction <add>, %814, %cst_322 [2] : vector<2x8x8xf32> to vector<2x8xf32>
    %816 = vector.shape_cast %815 : vector<2x8xf32> to vector<2x8x1xf32>
    %817 = tpu.reciprocal %816 : vector<2x8x1xf32> -> vector<2x8x1xf32>
    %818 = vector.broadcast %817 : vector<2x8x1xf32> to vector<2x8x8xf32>
    %819 = arith.mulf %814, %818 : vector<2x8x8xf32>
    %820 = vector.extract_strided_slice %786 {offsets = [0, 0, 8], sizes = [2, 8, 8], strides = [1, 1, 1]} : vector<2x8x32xf32> to vector<2x8x8xf32>
    "tpu.trace_start"() <{level = 10 : i32, message = "bqk,bkd->bqd"}> : () -> ()
    %cst_323 = arith.constant dense<0.000000e+00> : vector<2x8x8xf32>
    %821 = tpu.matmul %819, %820, %cst_323 {dimension_numbers = #tpu.dot_dimension_numbers<[2], [1], [1], [2], [0, 0, 0, 1, 1, 2], [0], [0]>} : vector<2x8x8xf32>, vector<2x8x8xf32>, vector<2x8x8xf32> -> vector<2x8x8xf32>
    "tpu.trace_stop"() : () -> ()
    %822 = vector.shape_cast %821 : vector<2x8x8xf32> to vector<16x8xf32>
    %823 = vector.extract_strided_slice %769 {offsets = [8, 0], sizes = [8, 32], strides = [1, 1]} : vector<32x32xf32> to vector<8x32xf32>
    %cst_324 = arith.constant dense<0.000000e+00> : vector<16x32xf32>
    %824 = tpu.matmul %822, %823, %cst_324 {dimension_numbers = #tpu.dot_dimension_numbers<[1], [0], [0], [1], [0, 0, 1, 1], [], []>} : vector<16x8xf32>, vector<8x32xf32>, vector<16x32xf32> -> vector<16x32xf32>
    %825 = arith.addf %805, %824 : vector<16x32xf32>
    %826 = vector.extract_strided_slice %784 {offsets = [0, 0, 16], sizes = [2, 8, 8], strides = [1, 1, 1]} : vector<2x8x32xf32> to vector<2x8x8xf32>
    %827 = vector.extract_strided_slice %785 {offsets = [0, 0, 16], sizes = [2, 8, 8], strides = [1, 1, 1]} : vector<2x8x32xf32> to vector<2x8x8xf32>
    "tpu.trace_start"() <{level = 10 : i32, message = "bqd,bkd->bqk"}> : () -> ()
    %cst_325 = arith.constant dense<0.000000e+00> : vector<2x8x8xf32>
    %828 = tpu.matmul %826, %827, %cst_325 {dimension_numbers = #tpu.dot_dimension_numbers<[2], [2], [1], [1], [0, 0, 0, 1, 1, 1], [0], [0]>} : vector<2x8x8xf32>, vector<2x8x8xf32>, vector<2x8x8xf32> -> vector<2x8x8xf32>
    "tpu.trace_stop"() : () -> ()
    %829 = arith.addf %828, %0 : vector<2x8x8xf32>
    %cst_326 = arith.constant dense<0xFF800000> : vector<2x8xf32>
    %830 = vector.multi_reduction <maximumf>, %829, %cst_326 [2] : vector<2x8x8xf32> to vector<2x8xf32>
    %831 = vector.shape_cast %830 : vector<2x8xf32> to vector<2x8x1xf32>
    %832 = vector.broadcast %831 : vector<2x8x1xf32> to vector<2x8x8xf32>
    %833 = arith.subf %829, %832 : vector<2x8x8xf32>
    %834 = math.exp %833 : vector<2x8x8xf32>
    %cst_327 = arith.constant dense<0.000000e+00> : vector<2x8xf32>
    %835 = vector.multi_reduction <add>, %834, %cst_327 [2] : vector<2x8x8xf32> to vector<2x8xf32>
    %836 = vector.shape_cast %835 : vector<2x8xf32> to vector<2x8x1xf32>
    %837 = tpu.reciprocal %836 : vector<2x8x1xf32> -> vector<2x8x1xf32>
    %838 = vector.broadcast %837 : vector<2x8x1xf32> to vector<2x8x8xf32>
    %839 = arith.mulf %834, %838 : vector<2x8x8xf32>
    %840 = vector.extract_strided_slice %786 {offsets = [0, 0, 16], sizes = [2, 8, 8], strides = [1, 1, 1]} : vector<2x8x32xf32> to vector<2x8x8xf32>
    "tpu.trace_start"() <{level = 10 : i32, message = "bqk,bkd->bqd"}> : () -> ()
    %cst_328 = arith.constant dense<0.000000e+00> : vector<2x8x8xf32>
    %841 = tpu.matmul %839, %840, %cst_328 {dimension_numbers = #tpu.dot_dimension_numbers<[2], [1], [1], [2], [0, 0, 0, 1, 1, 2], [0], [0]>} : vector<2x8x8xf32>, vector<2x8x8xf32>, vector<2x8x8xf32> -> vector<2x8x8xf32>
    "tpu.trace_stop"() : () -> ()
    %842 = vector.shape_cast %841 : vector<2x8x8xf32> to vector<16x8xf32>
    %843 = vector.extract_strided_slice %769 {offsets = [16, 0], sizes = [8, 32], strides = [1, 1]} : vector<32x32xf32> to vector<8x32xf32>
    %cst_329 = arith.constant dense<0.000000e+00> : vector<16x32xf32>
    %844 = tpu.matmul %842, %843, %cst_329 {dimension_numbers = #tpu.dot_dimension_numbers<[1], [0], [0], [1], [0, 0, 1, 1], [], []>} : vector<16x8xf32>, vector<8x32xf32>, vector<16x32xf32> -> vector<16x32xf32>
    %845 = arith.addf %825, %844 : vector<16x32xf32>
    %846 = vector.extract_strided_slice %784 {offsets = [0, 0, 24], sizes = [2, 8, 8], strides = [1, 1, 1]} : vector<2x8x32xf32> to vector<2x8x8xf32>
    %847 = vector.extract_strided_slice %785 {offsets = [0, 0, 24], sizes = [2, 8, 8], strides = [1, 1, 1]} : vector<2x8x32xf32> to vector<2x8x8xf32>
    "tpu.trace_start"() <{level = 10 : i32, message = "bqd,bkd->bqk"}> : () -> ()
    %cst_330 = arith.constant dense<0.000000e+00> : vector<2x8x8xf32>
    %848 = tpu.matmul %846, %847, %cst_330 {dimension_numbers = #tpu.dot_dimension_numbers<[2], [2], [1], [1], [0, 0, 0, 1, 1, 1], [0], [0]>} : vector<2x8x8xf32>, vector<2x8x8xf32>, vector<2x8x8xf32> -> vector<2x8x8xf32>
    "tpu.trace_stop"() : () -> ()
    %849 = arith.addf %848, %0 : vector<2x8x8xf32>
    %cst_331 = arith.constant dense<0xFF800000> : vector<2x8xf32>
    %850 = vector.multi_reduction <maximumf>, %849, %cst_331 [2] : vector<2x8x8xf32> to vector<2x8xf32>
    %851 = vector.shape_cast %850 : vector<2x8xf32> to vector<2x8x1xf32>
    %852 = vector.broadcast %851 : vector<2x8x1xf32> to vector<2x8x8xf32>
    %853 = arith.subf %849, %852 : vector<2x8x8xf32>
    %854 = math.exp %853 : vector<2x8x8xf32>
    %cst_332 = arith.constant dense<0.000000e+00> : vector<2x8xf32>
    %855 = vector.multi_reduction <add>, %854, %cst_332 [2] : vector<2x8x8xf32> to vector<2x8xf32>
    %856 = vector.shape_cast %855 : vector<2x8xf32> to vector<2x8x1xf32>
    %857 = tpu.reciprocal %856 : vector<2x8x1xf32> -> vector<2x8x1xf32>
    %858 = vector.broadcast %857 : vector<2x8x1xf32> to vector<2x8x8xf32>
    %859 = arith.mulf %854, %858 : vector<2x8x8xf32>
    %860 = vector.extract_strided_slice %786 {offsets = [0, 0, 24], sizes = [2, 8, 8], strides = [1, 1, 1]} : vector<2x8x32xf32> to vector<2x8x8xf32>
    "tpu.trace_start"() <{level = 10 : i32, message = "bqk,bkd->bqd"}> : () -> ()
    %cst_333 = arith.constant dense<0.000000e+00> : vector<2x8x8xf32>
    %861 = tpu.matmul %859, %860, %cst_333 {dimension_numbers = #tpu.dot_dimension_numbers<[2], [1], [1], [2], [0, 0, 0, 1, 1, 2], [0], [0]>} : vector<2x8x8xf32>, vector<2x8x8xf32>, vector<2x8x8xf32> -> vector<2x8x8xf32>
    "tpu.trace_stop"() : () -> ()
    %862 = vector.shape_cast %861 : vector<2x8x8xf32> to vector<16x8xf32>
    %863 = vector.extract_strided_slice %769 {offsets = [24, 0], sizes = [8, 32], strides = [1, 1]} : vector<32x32xf32> to vector<8x32xf32>
    %cst_334 = arith.constant dense<0.000000e+00> : vector<16x32xf32>
    %864 = tpu.matmul %862, %863, %cst_334 {dimension_numbers = #tpu.dot_dimension_numbers<[1], [0], [0], [1], [0, 0, 1, 1], [], []>} : vector<16x8xf32>, vector<8x32xf32>, vector<16x32xf32> -> vector<16x32xf32>
    %865 = arith.addf %845, %864 : vector<16x32xf32>
    %866 = vector.broadcast %771 : vector<1x32xf32> to vector<16x32xf32>
    %867 = arith.addf %865, %866 : vector<16x32xf32>
    %c5_335 = arith.constant 5 : index
    %c0_336 = arith.constant 0 : index
    %c0_337 = arith.constant 0 : index
    %868 = vector.load %arg8[%c5_335, %c0_336, %c0_337] : memref<8x1x32xf32, #tpu.memory_space<vmem>>, vector<1x1x32xf32>
    %869 = vector.shape_cast %868 : vector<1x1x32xf32> to vector<1x32xf32>
    %c5_338 = arith.constant 5 : index
    %c0_339 = arith.constant 0 : index
    %c0_340 = arith.constant 0 : index
    %870 = vector.load %arg9[%c5_338, %c0_339, %c0_340] : memref<8x1x32xf32, #tpu.memory_space<vmem>>, vector<1x1x32xf32>
    %871 = vector.shape_cast %870 : vector<1x1x32xf32> to vector<1x32xf32>
    %872 = arith.addf %763, %867 : vector<16x32xf32>
    %cst_341 = arith.constant dense<0.000000e+00> : vector<16xf32>
    %873 = vector.multi_reduction <add>, %872, %cst_341 [1] : vector<16x32xf32> to vector<16xf32>
    %874 = vector.shape_cast %873 : vector<16xf32> to vector<16x1xf32>
    %cst_342 = arith.constant 3.200000e+01 : f32
    %875 = vector.broadcast %cst_342 : f32 to vector<16x1xf32>
    %876 = arith.divf %874, %875 : vector<16x1xf32>
    %877 = vector.broadcast %876 : vector<16x1xf32> to vector<16x32xf32>
    %878 = arith.subf %872, %877 : vector<16x32xf32>
    %879 = arith.mulf %878, %878 : vector<16x32xf32>
    %cst_343 = arith.constant dense<0.000000e+00> : vector<16xf32>
    %880 = vector.multi_reduction <add>, %879, %cst_343 [1] : vector<16x32xf32> to vector<16xf32>
    %881 = vector.shape_cast %880 : vector<16xf32> to vector<16x1xf32>
    %cst_344 = arith.constant 3.200000e+01 : f32
    %882 = vector.broadcast %cst_344 : f32 to vector<16x1xf32>
    %883 = arith.divf %881, %882 : vector<16x1xf32>
    %884 = vector.broadcast %876 : vector<16x1xf32> to vector<16x32xf32>
    %885 = arith.subf %872, %884 : vector<16x32xf32>
    %cst_345 = arith.constant 9.99999974E-6 : f32
    %886 = vector.broadcast %cst_345 : f32 to vector<16x1xf32>
    %887 = arith.addf %883, %886 : vector<16x1xf32>
    %888 = math.rsqrt %887 : vector<16x1xf32>
    %889 = vector.broadcast %888 : vector<16x1xf32> to vector<16x32xf32>
    %890 = arith.mulf %885, %889 : vector<16x32xf32>
    %891 = vector.broadcast %869 : vector<1x32xf32> to vector<16x32xf32>
    %892 = arith.mulf %890, %891 : vector<16x32xf32>
    %893 = vector.broadcast %871 : vector<1x32xf32> to vector<16x32xf32>
    %894 = arith.addf %892, %893 : vector<16x32xf32>
    %c3_346 = arith.constant 3 : index
    %c0_347 = arith.constant 0 : index
    %c0_348 = arith.constant 0 : index
    %895 = vector.load %arg10[%c3_346, %c0_347, %c0_348] : memref<4x32x64xf32, #tpu.memory_space<vmem>>, vector<1x32x64xf32>
    %896 = vector.shape_cast %895 : vector<1x32x64xf32> to vector<32x64xf32>
    %c3_349 = arith.constant 3 : index
    %c0_350 = arith.constant 0 : index
    %c0_351 = arith.constant 0 : index
    %897 = vector.load %arg11[%c3_349, %c0_350, %c0_351] : memref<4x1x64xf32, #tpu.memory_space<vmem>>, vector<1x1x64xf32>
    %898 = vector.shape_cast %897 : vector<1x1x64xf32> to vector<1x64xf32>
    %c3_352 = arith.constant 3 : index
    %c0_353 = arith.constant 0 : index
    %c0_354 = arith.constant 0 : index
    %899 = vector.load %arg12[%c3_352, %c0_353, %c0_354] : memref<4x64x32xf32, #tpu.memory_space<vmem>>, vector<1x64x32xf32>
    %900 = vector.shape_cast %899 : vector<1x64x32xf32> to vector<64x32xf32>
    %c3_355 = arith.constant 3 : index
    %c0_356 = arith.constant 0 : index
    %c0_357 = arith.constant 0 : index
    %901 = vector.load %arg13[%c3_355, %c0_356, %c0_357] : memref<4x1x32xf32, #tpu.memory_space<vmem>>, vector<1x1x32xf32>
    %902 = vector.shape_cast %901 : vector<1x1x32xf32> to vector<1x32xf32>
    %cst_358 = arith.constant dense<0.000000e+00> : vector<16x64xf32>
    %903 = tpu.matmul %894, %896, %cst_358 {dimension_numbers = #tpu.dot_dimension_numbers<[1], [0], [0], [1], [0, 0, 1, 1], [], []>} : vector<16x32xf32>, vector<32x64xf32>, vector<16x64xf32> -> vector<16x64xf32>
    %904 = vector.broadcast %898 : vector<1x64xf32> to vector<16x64xf32>
    %905 = arith.addf %903, %904 : vector<16x64xf32>
    %cst_359 = arith.constant 0.000000e+00 : f32
    %906 = vector.broadcast %cst_359 : f32 to vector<16x64xf32>
    %907 = arith.maximumf %905, %906 : vector<16x64xf32>
    %cst_360 = arith.constant dense<0.000000e+00> : vector<16x32xf32>
    %908 = tpu.matmul %907, %900, %cst_360 {dimension_numbers = #tpu.dot_dimension_numbers<[1], [0], [0], [1], [0, 0, 1, 1], [], []>} : vector<16x64xf32>, vector<64x32xf32>, vector<16x32xf32> -> vector<16x32xf32>
    %909 = vector.broadcast %902 : vector<1x32xf32> to vector<16x32xf32>
    %910 = arith.addf %908, %909 : vector<16x32xf32>
    %c7 = arith.constant 7 : index
    %c0_361 = arith.constant 0 : index
    %c0_362 = arith.constant 0 : index
    %911 = vector.load %arg8[%c7, %c0_361, %c0_362] : memref<8x1x32xf32, #tpu.memory_space<vmem>>, vector<1x1x32xf32>
    %912 = vector.shape_cast %911 : vector<1x1x32xf32> to vector<1x32xf32>
    %c7_363 = arith.constant 7 : index
    %c0_364 = arith.constant 0 : index
    %c0_365 = arith.constant 0 : index
    %913 = vector.load %arg9[%c7_363, %c0_364, %c0_365] : memref<8x1x32xf32, #tpu.memory_space<vmem>>, vector<1x1x32xf32>
    %914 = vector.shape_cast %913 : vector<1x1x32xf32> to vector<1x32xf32>
    %915 = arith.addf %894, %910 : vector<16x32xf32>
    %cst_366 = arith.constant dense<0.000000e+00> : vector<16xf32>
    %916 = vector.multi_reduction <add>, %915, %cst_366 [1] : vector<16x32xf32> to vector<16xf32>
    %917 = vector.shape_cast %916 : vector<16xf32> to vector<16x1xf32>
    %cst_367 = arith.constant 3.200000e+01 : f32
    %918 = vector.broadcast %cst_367 : f32 to vector<16x1xf32>
    %919 = arith.divf %917, %918 : vector<16x1xf32>
    %920 = vector.broadcast %919 : vector<16x1xf32> to vector<16x32xf32>
    %921 = arith.subf %915, %920 : vector<16x32xf32>
    %922 = arith.mulf %921, %921 : vector<16x32xf32>
    %cst_368 = arith.constant dense<0.000000e+00> : vector<16xf32>
    %923 = vector.multi_reduction <add>, %922, %cst_368 [1] : vector<16x32xf32> to vector<16xf32>
    %924 = vector.shape_cast %923 : vector<16xf32> to vector<16x1xf32>
    %cst_369 = arith.constant 3.200000e+01 : f32
    %925 = vector.broadcast %cst_369 : f32 to vector<16x1xf32>
    %926 = arith.divf %924, %925 : vector<16x1xf32>
    %927 = vector.broadcast %919 : vector<16x1xf32> to vector<16x32xf32>
    %928 = arith.subf %915, %927 : vector<16x32xf32>
    %cst_370 = arith.constant 9.99999974E-6 : f32
    %929 = vector.broadcast %cst_370 : f32 to vector<16x1xf32>
    %930 = arith.addf %926, %929 : vector<16x1xf32>
    %931 = math.rsqrt %930 : vector<16x1xf32>
    %932 = vector.broadcast %931 : vector<16x1xf32> to vector<16x32xf32>
    %933 = arith.mulf %928, %932 : vector<16x32xf32>
    %934 = vector.broadcast %912 : vector<1x32xf32> to vector<16x32xf32>
    %935 = arith.mulf %933, %934 : vector<16x32xf32>
    %936 = vector.broadcast %914 : vector<1x32xf32> to vector<16x32xf32>
    %937 = arith.addf %935, %936 : vector<16x32xf32>
    %c0_371 = arith.constant 0 : index
    %c0_372 = arith.constant 0 : index
    %938 = vector.load %arg14[%c0_371, %c0_372] : memref<16x32xf32, #tpu.memory_space<vmem>>, vector<16x32xf32>
    tpu.vector_store %arg14[%c0_371, %c0_372], %937 {strides = array<i32>} : memref<16x32xf32, #tpu.memory_space<vmem>>, vector<16x32xf32>,
    return
  }
}

</mosaic_0001>

<bundles_post_ra>
// kernel: tpu_custom_call.1
= control target key start
LH: loop header
LB: loop body
LE: loop exit
PB: predicated region body
PF: predicated region fallthrough
CT: control target
= control target key end

     0   :  { %19 = vsyncpa [#allocation3], 0  ;;  %s16001_s0 = inlined_call_operand.hbm [shape: f32[16,32], index: 0, kind: input, shape index: {}]   ;;  %s16002_s1 = inlined_call_operand.hbm [shape: f32[16,32], index: 1, kind: input, shape index: {}]   ;;  %s16003_s2 = inlined_call_operand.hbm [shape: f32[2,8,8], index: 2, kind: input, shape index: {}]   ;;  %s16004_s3 = inlined_call_operand.hbm [shape: f32[2,8,8], index: 3, kind: input, shape index: {}]   ;;  %s16005_s4 = inlined_call_operand.vmem [shape: f32[6,32,96], index: 4, kind: input, shape index: {}]   ;;  %s16006_s5 = inlined_call_operand.vmem [shape: f32[6,1,96], index: 5, kind: input, shape index: {}]   ;;  %s16007_s6 = inlined_call_operand.vmem [shape: f32[6,32,32], index: 6, kind: input, shape index: {}]   ;;  %s16008_s7 = inlined_call_operand.hbm [shape: f32[6,1,32], index: 7, kind: input, shape index: {}]   ;;  %s16009_s8 = inlined_call_operand.vmem [shape: f32[8,1,32], index: 8, kind: input, shape index: {}]   ;;  %s16010_s9 = inlined_call_operand.vmem [shape: f32[8,1,32], index: 9, kind: input, shape index: {}]   ;;  %s16011_s10 = inlined_call_operand.hbm [shape: f32[4,32,64], index: 10, kind: input, shape index: {}]   ;;  %s16012_s11 = inlined_call_operand.vmem [shape: f32[4,1,64], index: 11, kind: input, shape index: {}]   ;;  %s16013_s12 = inlined_call_operand.vmem [shape: f32[4,64,32], index: 12, kind: input, shape index: {}]   ;;  %s16014_s13 = inlined_call_operand.vmem [shape: f32[4,1,32], index: 13, kind: input, shape index: {}]   ;;  %s16015_s14 = inlined_call_operand.hbm [shape: f32[16,32], index: 14, kind: output, shape index: {}]  }
   0x1   :  { %20 = vsyncpa [#allocation6], 0 }
   0x2   :  { %21 = vsyncpa [#allocation9], 0 }
   0x3   :  { %22 = vsyncpa [#allocation12], 0 }
   0x4   :  { %23 = vsyncpa [#allocation4], 0  ;;  %s14275_s29 = smov [#allocation5]   ;;  %s14276_s15 = smov [#allocation8]  }
   0x5   :  { %s41_s30 = sshll.u32 %s14275_s29, 4  ;;  %s65_s16 = sshll.u32 %s14276_s15, 4  ;;  %s42_s30 = int_to_ptr.vmem [resolvable:$true] %s41_s30  ;;  %s14374_s16 = int_to_ptr.vmem [resolvable:$true] %s65_s16 }
   0x6   :  { %s14111_s19 = scalar_lea.hbm %s16002_s1, 256 }
   0x7   :  { %p14112_p0 = scmp.ne.s32.totalorder %s16002_s1, %s14111_s19  ;;  %p14115_p1 = scmp.lt.u32.totalorder %s14111_s19, %s16002_s1 }
   0x9   :  { %p14117_p2 = pnand %p14115_p1, %p14112_p0 }
   0xb   :  { %14120 = shalt.err (!%p14117_p2)
}
   0xc   :  { %s14121_s24 = scalar_lea.vmem %s42_s30, 256  ;;  %p14126_p4 = scmp.lt.s32.totalorder %s42_s30, %s42_s30 }
   0xd   :  { %p14122_p3 = scmp.ne.s32.totalorder %s42_s30, %s14121_s24  ;;  %p14127_p5 = scmp.lt.s32.totalorder %s14121_s24, %s14121_s24 }
   0xf   :  { %p14128_p6 = por %p14127_p5, %p14126_p4 }
  0x11   :  { %p14129_p7 = pnand %p14128_p6, %p14122_p3 }
  0x13   :  { %14132 = shalt.err (!%p14129_p7)
}
  0x14   :  { %s16016_s25 = smov 128   ;;  %s14278_s26 = smov 8  }
  0x15   :  { %47 = dma.hbm_to_vmem [thread:$0]  %s16002_s1, 256, %s42_s30, [#allocation6], %s16016_s25, %s16016_s25, %s14278_s26  }
  0x16   :  { %s14133_s17 = scalar_lea.hbm %s16004_s3, 256 }
  0x17   :  { %p14134_p8 = scmp.ne.s32.totalorder %s16004_s3, %s14133_s17  ;;  %p14137_p9 = scmp.lt.u32.totalorder %s14133_s17, %s16004_s3 }
  0x19   :  { %p14139_p10 = pnand %p14137_p9, %p14134_p8 }
  0x1b   :  { %14142 = shalt.err (!%p14139_p10)
}
  0x1c   :  { %s14143_s22 = scalar_lea.vmem %s14374_s16, 256  ;;  %p14148_p12 = scmp.lt.s32.totalorder %s14374_s16, %s14374_s16 }
  0x1d   :  { %p14144_p11 = scmp.ne.s32.totalorder %s14374_s16, %s14143_s22  ;;  %p14149_p13 = scmp.lt.s32.totalorder %s14143_s22, %s14143_s22 }
  0x1f   :  { %p14150_p0 = por %p14149_p13, %p14148_p12 }
  0x21   :  { %p14151_p1 = pnand %p14150_p0, %p14144_p11 }
  0x23   :  { %14154 = shalt.err (!%p14151_p1)
}
  0x24   :  { %71 = dma.hbm_to_vmem [thread:$0]  %s16004_s3, 256, %s14374_s16, [#allocation9], %s16016_s25, %s16016_s25, %s14278_s26  }
  0x25   :  { %s14279_s23 = smov [#allocation2]   ;;  %s14280_s27 = smov [#allocation7]  }
  0x26   :  { %s29_s24 = sshll.u32 %s14279_s23, 4  ;;  %s53_s28 = sshll.u32 %s14280_s27, 4  ;;  %s30_s24 = int_to_ptr.vmem [resolvable:$true] %s29_s24  ;;  %s14411_s28 = int_to_ptr.vmem [resolvable:$true] %s53_s28 }
  0x27   :  { %s14155_s17 = scalar_lea.hbm %s16001_s0, 256 }
  0x28   :  { %p14156_p2 = scmp.ne.s32.totalorder %s16001_s0, %s14155_s17  ;;  %p14159_p3 = scmp.lt.u32.totalorder %s14155_s17, %s16001_s0 }
  0x2a   :  { %p14161_p4 = pnand %p14159_p3, %p14156_p2 }
  0x2c   :  { %14164 = shalt.err (!%p14161_p4)
}
  0x2d   :  { %s14165_s3 = scalar_lea.vmem %s30_s24, 256  ;;  %p14170_p6 = scmp.lt.s32.totalorder %s30_s24, %s30_s24 }
  0x2e   :  { %p14166_p5 = scmp.ne.s32.totalorder %s30_s24, %s14165_s3  ;;  %p14171_p7 = scmp.lt.s32.totalorder %s14165_s3, %s14165_s3 }
  0x30   :  { %p14172_p8 = por %p14171_p7, %p14170_p6 }
  0x32   :  { %p14173_p9 = pnand %p14172_p8, %p14166_p5 }
  0x34   :  { %14176 = shalt.err (!%p14173_p9)
}
  0x35   :  { %35 = dma.hbm_to_vmem [thread:$0]  %s16001_s0, 256, %s30_s24, [#allocation3], %s16016_s25, %s16016_s25, %s14278_s26  }
  0x36   :  { %s14177_s23 = scalar_lea.hbm %s16003_s2, 256 }
  0x37   :  { %p14178_p10 = scmp.ne.s32.totalorder %s16003_s2, %s14177_s23  ;;  %p14181_p11 = scmp.lt.u32.totalorder %s14177_s23, %s16003_s2 }
  0x39   :  { %p14183_p12 = pnand %p14181_p11, %p14178_p10 }
  0x3b   :  { %14186 = shalt.err (!%p14183_p12)
}
  0x3c   :  { %s14187_s18 = scalar_lea.vmem %s14411_s28, 256  ;;  %p14192_p0 = scmp.lt.s32.totalorder %s14411_s28, %s14411_s28 }
  0x3d   :  { %p14188_p13 = scmp.ne.s32.totalorder %s14411_s28, %s14187_s18  ;;  %p14193_p1 = scmp.lt.s32.totalorder %s14187_s18, %s14187_s18 }
  0x3f   :  { %p14194_p2 = por %p14193_p1, %p14192_p0 }
  0x41   :  { %p14195_p3 = pnand %p14194_p2, %p14188_p13 }
  0x43   :  { %14198 = shalt.err (!%p14195_p3)
}
  0x44   :  { %59 = dma.hbm_to_vmem [thread:$0]  %s16003_s2, 256, %s14411_s28, [#allocation6], %s16016_s25, %s16016_s25, %s14278_s26  }
  0x45   :  { %s14281_s19 = smov [#allocation10]   ;;  %s14199_s16 = scalar_lea.hbm %s16008_s7, 96 }
  0x46   :  { %s83_s20 = sshll.u32 %s14281_s19, 4  ;;  %p14200_p4 = scmp.ne.s32.totalorder %s16008_s7, %s14199_s16  ;;  %s84_s20 = int_to_ptr.vmem [resolvable:$true] %s83_s20 }
  0x47   :  { %p14203_p5 = scmp.lt.u32.totalorder %s14199_s16, %s16008_s7 }
  0x49   :  { %p14205_p6 = pnand %p14203_p5, %p14200_p4 }
  0x4b   :  { %14208 = shalt.err (!%p14205_p6)
}
  0x4c   :  { %s14209_s27 = scalar_lea.vmem %s84_s20, 96  ;;  %p14214_p8 = scmp.lt.s32.totalorder %s84_s20, %s84_s20 }
  0x4d   :  { %p14210_p7 = scmp.ne.s32.totalorder %s84_s20, %s14209_s27  ;;  %p14215_p9 = scmp.lt.s32.totalorder %s14209_s27, %s14209_s27 }
  0x4f   :  { %p14216_p10 = por %p14215_p9, %p14214_p8 }
  0x51   :  { %p14217_p11 = pnand %p14216_p10, %p14210_p7 }
  0x53   :  { %14220 = shalt.err (!%p14217_p11)
}
  0x54   :  { %s14282_s2 = smov 16   ;;  %s14283_s28 = smov 1  }
  0x55   :  { %89 = dma.hbm_to_vmem [thread:$0]  %s16008_s7, 96, %s84_s20, [#allocation9], %s14282_s2, %s14282_s2, %s14283_s28  }
  0x56   :  { %s14284_s17 = smov [#allocation11]   ;;  %s14221_s19 = scalar_lea.hbm %s16011_s10, 2048 }
  0x57   :  { %s99_s18 = sshll.u32 %s14284_s17, 4  ;;  %p14222_p12 = scmp.ne.s32.totalorder %s16011_s10, %s14221_s19  ;;  %s100_s18 = int_to_ptr.vmem [resolvable:$true] %s99_s18 }
  0x58   :  { %p14225_p13 = scmp.lt.u32.totalorder %s14221_s19, %s16011_s10 }
  0x5a   :  { %p14227_p0 = pnand %p14225_p13, %p14222_p12 }
  0x5c   :  { %14230 = shalt.err (!%p14227_p0)
}
  0x5d   :  { %s14231_s1 = scalar_lea.vmem %s100_s18, 2048  ;;  %p14236_p2 = scmp.lt.s32.totalorder %s100_s18, %s100_s18 }
  0x5e   :  { %p14232_p1 = scmp.ne.s32.totalorder %s100_s18, %s14231_s1  ;;  %p14237_p3 = scmp.lt.s32.totalorder %s14231_s1, %s14231_s1 }
  0x60   :  { %p14238_p4 = por %p14237_p3, %p14236_p2 }
  0x62   :  { %p14239_p5 = pnand %p14238_p4, %p14232_p1 }
  0x64   :  { %14242 = shalt.err (!%p14239_p5)
}
  0x65   :  { %105 = dma.hbm_to_vmem [thread:$0]  %s16011_s10, 2048, %s100_s18, [#allocation12], %s16016_s25, %s16016_s25, %s14278_s26  }
  0x66   :  { %14265 = dma.done.wait [#allocation3], 256  }
  0x67   :  { %14266 = vsyncadd [#allocation3], 4294967040 }
  0x68   :  { %14267 = dma.done.wait [#allocation6], 512  }
  0x69   :  { %14268 = vsyncadd [#allocation6], 4294966784 }
  0x6a   :  { %14269 = dma.done.wait [#allocation9], 352  }
  0x6b   :  { %14270 = vsyncadd [#allocation9], 4294966944 }
  0x6c   :  { %14271 = dma.done.wait [#allocation12], 2048  }
  0x6d   :  { %14272 = vsyncadd [#allocation12], 4294965248  ;;  %vm152_vm0 = vcmask 261120   ;;  %v136_v0 = vld [vmem:[%s16005_s4] sm:$0xff]  ;;  %v137_v1 = vld [vmem:[%s16005_s4 + $0x8] sm:$0xff]  ;;  %v14285_v8 = vmov 0.0  }
  0x6e   :  { %v138_v2 = vld [vmem:[%s16005_s4 + $0x10] sm:$0xff]  ;;  %v13631_v3 = vpack.c.bf16 %v137_v1, %v136_v0  ;;  %v139_v4 = vld [vmem:[%s16005_s4 + $0x18] sm:$0xff]  ;;  %v14487_v5 = vld [vmem:[#allocation2] sm:$0xff]  ;;  %12844 = vmatprep.subr.mxu0 %v14285_v8  ;;  %vm14286_vm1 = vmmov 0   ;;  %s14287_s0 = smov 96   ;;  %s14288_s24 = smov 64  }
  0x6f   :  { %v13635_v6 = vpack.c.bf16 %v139_v4, %v138_v2  ;;  %12831 = vmatprep.mubr.msk.f32.mxu1 %vm152_vm0, %v14487_v5  ;;  %v14491_v7 = vld [vmem:[#allocation2 + $0x8] sm:$0xff]  ;;  %12846 = vmatprep.mubr.msk.f32.mxu0 %vm14286_vm1, %v14285_v8  ;;  %v12098_v9 = vld [vmem:[%s16006_s5] ss:$0 sm:$0xff]  ;;  %s14289_s19 = smov 120   ;;  %vm237_vm2 = vcmask 64512   ;;  %s14290_s21 = smov 88  }
  0x70   :  { %13632 = vmatprep.subr.bf16.mxu1 %v13631_v3  ;;  %v14529_v17 = vld [vmem:[#allocation7] sm:$0xff]  ;;  %v14532_v21 = vld [vmem:[#allocation7 + $0x8] sm:$0xff]  ;;  %s14291_s3 = smov 80   ;;  %s14292_s16 = smov 56   ;;  %vm2045_vm3 = vcmask 523264  }
  0x71   :  { %13634 = vmatpush3.bf16.msra.mxu1 %v13631_v3  ;;  %s14293_s22 = smov 112   ;;  %s14294_s1 = smov 48  }
  0x72   :  { %13636 = vmatprep.subr.bf16.mxu1 %v13635_v6  ;;  %s14295_s7 = smov 72   ;;  %s14296_s20 = smov 104  }
  0x73   :  { %s14297_s10 = smov 40  }
  0x75   :  { %13638 = vmatpush3.bf16.msra.mxu1 %v13635_v6 }
  0x76   :  { %12834 = vmatprep.subr.mxu1 %v14285_v8 }
  0x78   :  { %12832 = vmatmul.mubr.msk.f32.vlgmr.msra.gmra.mrb[0].mxu1 %vm152_vm0, %v14491_v7 }
  0x79   :  { %12836 = vmatprep.mubr.msk.f32.mxu1 %vm14286_vm1, %v14285_v8 }
 0x14b   :  { %v12833_v10 = vpop.f32.mrb[0].mxu1 }
 0x14c   :  { %v225_v11 = vpop.f32.mrb[1].mxu1  ;;  %v14508_v13 = vadd.f32 %v12833_v10, %v12098_v9 }
 0x14d   :  { %v14504_v12 = vadd.f32 %v12098_v9, %v225_v11 }
 0x14f   :  { %235 = vrot.lane.b32.xlu0 %v14504_v12, %s14287_s0 }
 0x153   :  { %313 = vrot.lane.b32.xlu0 %v14508_v13, %s14287_s0 }
 0x157   :  { %487 = vrot.lane.b32.xlu0 %v14508_v13, %s14288_s24 }
 0x15b   :  { %641 = vrot.lane.b32.xlu0 %v14508_v13, %s14289_s19 }
 0x1c1   :  { %v236_v14 = vpop.permute.xlu0 %235 }
 0x1c2   :  { %12835 = vmatpush3.xpose.msk.msra.mxu1 %vm237_vm2, %v236_v14 }
 0x1c3   :  { %12839 = vmatprep.subr.mxu1 %v14285_v8 }
 0x1c5   :  { %12837 = vmatmul.mubr.msk.f32.vlgmr.msra.gmra.mrb[2].mxu1 %vm237_vm2, %v14504_v12  ;;  %v314_v15 = vpop.permute.xlu0 %313 }
 0x1c6   :  { %12840 = vmatpush3.xpose.msk.msra.mxu1 %vm237_vm2, %v314_v15  ;;  %12841 = vmatprep.mubr.msk.f32.mxu1 %vm14286_vm1, %v14285_v8 }
 0x1c7   :  { %12849 = vmatprep.subr.mxu1 %v14285_v8 }
 0x1c9   :  { %12842 = vmatmul.mubr.msk.f32.vlgmr.msra.gmra.mrb[4].mxu1 %vm237_vm2, %v14508_v13  ;;  %v488_v16 = vpop.permute.xlu0 %487 }
 0x1ca   :  { %12850 = vmatpush3.msra.mxu1 %v488_v16  ;;  %12851 = vmatprep.mubr.msk.f32.mxu1 %vm14286_vm1, %v14285_v8 }
 0x1cb   :  { %12859 = vmatprep.subr.mxu1 %v14285_v8 }
 0x1cd   :  { %v642_v27 = vpop.permute.xlu0 %641 }
 0x298   :  { %v308_v18 = vpop.f32.mrb[2].mxu1 }
 0x299   :  { %v309_v19 = vadd.f32 %v308_v18, %v14529_v17  ;;  %v12838_v20 = vpop.f32.mrb[3].mxu1 }
 0x29b   :  { %v389_v22 = vsel %vm237_vm2, %v309_v19, -inf }
 0x29c   :  { %v385_v23 = vpop.f32.mrb[4].mxu1  ;;  %390 = vmax.xlane.f32.xlu0 %v389_v22 }
 0x29d   :  { %v386_v24 = vadd.f32 %v385_v23, %v14532_v21  ;;  %v12843_v25 = vpop.f32.mrb[5].mxu1 }
 0x29e   :  { %v142_v25 = vld [vmem:[%s16007_s6 + $0x8] sm:$0xff] }
 0x29f   :  { %v392_v26 = vsel %vm237_vm2, %v386_v24, -inf }
 0x2a0   :  { %393 = vmax.xlane.f32.xlu1 %v392_v26  ;;  %v141_v26 = vld [vmem:[%s16007_s6] sm:$0xff] }
 0x2b2   :  { %411 = vrot.lane.b32.xlu0 %v14504_v12, %s14288_s24 }
 0x2b6   :  { %563 = vrot.lane.b32.xlu0 %v14504_v12, %s14289_s19 }
 0x329   :  { %v391_v28 = vpop.xlane.xlu0 %390 }
 0x32a   :  { %v395_v35 = vsub.f32 %v309_v19, %v391_v28 }
 0x32c   :  { %v397_v36 = vmul.f32 1.442695, %v395_v35 }
 0x32d   :  { %v394_v29 = vpop.xlane.xlu1 %393  ;;  %v412_v30 = vpop.permute.xlu0 %411 }
 0x32e   :  { %v396_v31 = vsub.f32 %v386_v24, %v394_v29  ;;  %12845 = vmatpush3.msra.mxu0 %v412_v30 }
 0x32f   :  { %12854 = vmatprep.subr.mxu0 %v14285_v8 }
 0x330   :  { %v399_v32 = vmul.f32 1.442695, %v396_v31 }
 0x331   :  { %v564_v47 = vpop.permute.xlu0 %563 }
 0x332   :  { %13871 = vpow2.f32 %v399_v32 }
 0x333   :  { %13873 = vpow2.f32 %v397_v36 }
 0x33c   :  { %v13872_v33 = vpop.eup %13871 }
 0x33d   :  { %v404_v34 = vsel %vm237_vm2, %v13872_v33, 0.0  ;;  %v13874_v37 = vpop.eup %13873 }
 0x33e   :  { %405 = vadd.xlane.f32.xlu1 %v404_v34  ;;  %v401_v38 = vsel %vm237_vm2, %v13874_v37, 0.0 }
 0x34f   :  { %643 = vrot.lane.b32.xlu1 %v14508_v13, %s14290_s21 }
 0x373   :  { %402 = vadd.xlane.f32.xlu1 %v401_v38 }
 0x384   :  { %565 = vrot.lane.b32.xlu1 %v14504_v12, %s14290_s21 }
 0x388   :  { %1057 = vrot.lane.b32.xlu1 %v14504_v12, %s14291_s3 }
 0x3cb   :  { %v406_v39 = vpop.xlane.xlu1 %405 }
 0x3cc   :  { %13875 = vrcp.f32 %v406_v39 }
 0x3cf   :  { %v644_v42 = vpop.permute.xlu1 %643 }
 0x3d6   :  { %v13876_v40 = vpop.eup %13875 }
 0x3d7   :  { %v410_v41 = vmul.f32 %v13876_v40, %v13872_v33 }
 0x3d9   :  { %12852 = vmatmul.mubr.msk.f32.vlgmr.msra.gmra.mrb[6].mxu1 %vm237_vm2, %v410_v41 }
 0x3da   :  { %12860 = vmatpush3.xpose.msk.msra.mxu1 %vm237_vm2, %v644_v42  ;;  %12861 = vmatprep.mubr.msk.f32.mxu1 %vm14286_vm1, %v14285_v8 }
 0x3db   :  { %12869 = vmatprep.subr.mxu1 %v14285_v8 }
 0x3dd   :  { %12862 = vmatmul.mubr.msk.f32.vlgmr.msra.gmra.mrb[8].mxu1 %vm237_vm2, %v642_v27 }
 0x3de   :  { %12871 = vmatprep.mubr.msk.f32.mxu1 %vm14286_vm1, %v14285_v8 }
 0x400   :  { %v403_v43 = vpop.xlane.xlu1 %402 }
 0x401   :  { %13877 = vrcp.f32 %v403_v43 }
 0x404   :  { %v566_v46 = vpop.permute.xlu1 %565 }
 0x408   :  { %v1058_v15 = vpop.permute.xlu1 %1057 }
 0x40b   :  { %v13878_v44 = vpop.eup %13877 }
 0x40c   :  { %v409_v45 = vmul.f32 %v13878_v44, %v13874_v37 }
 0x40e   :  { %12847 = vmatmul.mubr.msk.f32.vlgmr.msra.gmra.mrb[0].mxu0 %vm237_vm2, %v409_v45 }
 0x40f   :  { %12855 = vmatpush3.xpose.msk.msra.mxu0 %vm237_vm2, %v566_v46  ;;  %12856 = vmatprep.mubr.msk.f32.mxu0 %vm14286_vm1, %v14285_v8 }
 0x410   :  { %12864 = vmatprep.subr.mxu0 %v14285_v8 }
 0x412   :  { %12857 = vmatmul.mubr.msk.f32.vlgmr.msra.gmra.mrb[2].mxu0 %vm237_vm2, %v564_v47 }
 0x413   :  { %12866 = vmatprep.mubr.msk.f32.mxu0 %vm14286_vm1, %v14285_v8 }
 0x4ac   :  { %v14566_v48 = vpop.f32.mrb[6].mxu1 }
 0x4ad   :  { %v12853_v49 = vpop.f32.mrb[7].mxu1 }
 0x4b0   :  { %v715_v50 = vpop.f32.mrb[8].mxu1 }
 0x4b1   :  { %v716_v51 = vadd.f32 %v715_v50, %v14532_v21  ;;  %v12863_v52 = vpop.f32.mrb[9].mxu1 }
 0x4b3   :  { %v722_v53 = vsel %vm237_vm2, %v716_v51, -inf }
 0x4b4   :  { %723 = vmax.xlane.f32.xlu0 %v722_v53 }
 0x4ca   :  { %817 = vrot.lane.b32.xlu0 %v14508_v13, %s14292_s16 }
 0x4ce   :  { %1055 = vrot.lane.b32.xlu0 %v14504_v12, %s14293_s22 }
 0x4d2   :  { %1135 = vrot.lane.b32.xlu0 %v14508_v13, %s14291_s3 }
 0x4e1   :  { %v14576_v54 = vpop.f32.mrb[0].mxu0 }
 0x4e2   :  { %v12848_v55 = vpop.f32.mrb[1].mxu0 }
 0x4e5   :  { %v637_v56 = vpop.f32.mrb[2].mxu0 }
 0x4e6   :  { %v12858_v57 = vpop.f32.mrb[3].mxu0  ;;  %v638_v58 = vadd.f32 %v637_v56, %v14529_v17 }
 0x4e8   :  { %v719_v59 = vsel %vm237_vm2, %v638_v58, -inf }
 0x4f1   :  { %720 = vmax.xlane.f32.xlu0 %v719_v59 }
 0x507   :  { %741 = vrot.lane.b32.xlu0 %v14504_v12, %s14292_s16 }
 0x50b   :  { %1233 = vrot.lane.b32.xlu0 %v14504_v12, %s14294_s1 }
 0x50f   :  { %1470 = vrot.lane.b32.xlu0 %v14504_v12, %s14295_s7 }
 0x513   :  { %1548 = vrot.lane.b32.xlu0 %v14508_v13, %s14295_s7 }
 0x517   :  { %1468 = vrot.lane.b32.xlu0 %v14504_v12, %s14296_s20 }
 0x51b   :  { %1546 = vrot.lane.b32.xlu0 %v14508_v13, %s14296_s20 }
 0x541   :  { %v724_v60 = vpop.xlane.xlu0 %723 }
 0x542   :  { %v726_v61 = vsub.f32 %v716_v51, %v724_v60 }
 0x544   :  { %v729_v62 = vmul.f32 1.442695, %v726_v61 }
 0x545   :  { %v818_v63 = vpop.permute.xlu0 %817 }
 0x546   :  { %13879 = vpow2.f32 %v729_v62  ;;  %12870 = vmatpush3.msra.mxu1 %v818_v63 }
 0x547   :  { %12884 = vmatprep.subr.mxu1 %v14285_v8 }
 0x549   :  { %v1056_v2 = vpop.permute.xlu0 %1055 }
 0x54d   :  { %v1136_v3 = vpop.permute.xlu0 %1135 }
 0x550   :  { %v13880_v0 = vpop.eup %13879 }
 0x551   :  { %v734_v1 = vsel %vm237_vm2, %v13880_v0, 0.0 }
 0x552   :  { %735 = vadd.xlane.f32.xlu1 %v734_v1 }
 0x563   :  { %1133 = vrot.lane.b32.xlu1 %v14508_v13, %s14293_s22 }
 0x57e   :  { %v721_v4 = vpop.xlane.xlu0 %720 }
 0x57f   :  { %v725_v6 = vsub.f32 %v638_v58, %v721_v4 }
 0x581   :  { %v727_v9 = vmul.f32 1.442695, %v725_v6 }
 0x582   :  { %v742_v10 = vpop.permute.xlu0 %741 }
 0x583   :  { %13881 = vpow2.f32 %v727_v9  ;;  %12865 = vmatpush3.msra.mxu0 %v742_v10 }
 0x584   :  { %12874 = vmatprep.subr.mxu0 %v142_v25 }
 0x586   :  { %v1234_v39 = vpop.permute.xlu0 %1233 }
 0x58d   :  { %v13882_v11 = vpop.eup %13881 }
 0x58e   :  { %v731_v14 = vsel %vm237_vm2, %v13882_v11, 0.0 }
 0x58f   :  { %732 = vadd.xlane.f32.xlu1 %v731_v14 }
 0x5df   :  { %v736_v16 = vpop.xlane.xlu1 %735 }
 0x5e0   :  { %13883 = vrcp.f32 %v736_v16 }
 0x5e3   :  { %v1134_v20 = vpop.permute.xlu1 %1133 }
 0x5ea   :  { %v13884_v18 = vpop.eup %13883 }
 0x5eb   :  { %v740_v19 = vmul.f32 %v13884_v18, %v13880_v0 }
 0x5ed   :  { %12872 = vmatmul.mubr.msk.f32.vlgmr.msra.gmra.mrb[10].mxu1 %vm237_vm2, %v740_v19 }
 0x5ee   :  { %12885 = vmatpush3.xpose.msk.msra.mxu1 %vm237_vm2, %v1058_v15  ;;  %12886 = vmatprep.mubr.msk.f32.mxu1 %vm14286_vm1, %v14285_v8 }
 0x5ef   :  { %12889 = vmatprep.subr.mxu1 %v14285_v8 }
 0x5f1   :  { %12887 = vmatmul.mubr.msk.f32.vlgmr.msra.gmra.mrb[12].mxu1 %vm237_vm2, %v1056_v2 }
 0x5f2   :  { %12890 = vmatpush3.xpose.msk.msra.mxu1 %vm237_vm2, %v1136_v3  ;;  %12891 = vmatprep.mubr.msk.f32.mxu1 %vm14286_vm1, %v14285_v8 }
 0x5f3   :  { %12899 = vmatprep.subr.mxu1 %v14285_v8 }
 0x5f5   :  { %12892 = vmatmul.mubr.msk.f32.vlgmr.msra.gmra.mrb[14].mxu1 %vm237_vm2, %v1134_v20 }
 0x5f6   :  { %12901 = vmatprep.mubr.msk.f32.mxu1 %vm14286_vm1, %v14285_v8 }
 0x61c   :  { %v733_v22 = vpop.xlane.xlu1 %732 }
 0x61d   :  { %13885 = vrcp.f32 %v733_v22 }
 0x627   :  { %v13886_v23 = vpop.eup %13885 }
 0x628   :  { %v739_v24 = vmul.f32 %v13886_v23, %v13882_v11 }
 0x62a   :  { %12867 = vmatmul.mubr.msk.f32.vlgmr.msra.gmra.mrb[4].mxu0 %vm237_vm2, %v739_v24 }
 0x62b   :  { %12875 = vmatpush3.msra.mxu0 %v142_v25 }
 0x62c   :  { %12879 = vmatprep.subr.mxu0 %v141_v26 }
 0x6c0   :  { %v889_v27 = vpop.f32.mrb[10].mxu1 }
 0x6c1   :  { %v12873_v28 = vpop.f32.mrb[11].mxu1 }
 0x6c4   :  { %v1129_v29 = vpop.f32.mrb[12].mxu1 }
 0x6c5   :  { %v1130_v30 = vadd.f32 %v1129_v29, %v14529_v17  ;;  %v12888_v31 = vpop.f32.mrb[13].mxu1 }
 0x6c6   :  { %v144_v31 = vld [vmem:[%s16007_s6 + $0x18] sm:$0xff] }
 0x6c7   :  { %v1211_v32 = vsel %vm237_vm2, %v1130_v30, -inf }
 0x6c8   :  { %v1207_v33 = vpop.f32.mrb[14].mxu1  ;;  %1212 = vmax.xlane.f32.xlu1 %v1211_v32 }
 0x6c9   :  { %v1208_v34 = vadd.f32 %v1207_v33, %v14532_v21  ;;  %v12893_v35 = vpop.f32.mrb[15].mxu1 }
 0x6cb   :  { %v1214_v36 = vsel %vm237_vm2, %v1208_v34, -inf }
 0x6cc   :  { %1215 = vmax.xlane.f32.xlu1 %v1214_v36 }
 0x6fd   :  { %v813_v37 = vpop.f32.mrb[4].mxu0 }
 0x6fe   :  { %v12868_v38 = vpop.f32.mrb[5].mxu0  ;;  %12876 = vmatprep.mubr.msk.f32.mxu0 %vm237_vm2, %v813_v37 }
 0x6ff   :  { %12877 = vmatmul.mubr.msk.f32.vlgmr.msra.gmra.mrb[6].mxu0 %vm237_vm2, %v889_v27  ;;  %v12133_v38 = vld [vmem:[#allocation10] ss:$0 sm:$0xff] }
 0x700   :  { %12881 = vmatprep.mubr.msk.f32.mxu0 %vm237_vm2, %v14576_v54  ;;  %12880 = vmatpush3.msra.mxu0 %v141_v26  ;;  %v1471_v54 = vpop.permute.xlu0 %1470 }
 0x701   :  { %12894 = vmatprep.subr.mxu0 %v14285_v8 }
 0x704   :  { %v1549_v58 = vpop.permute.xlu0 %1548 }
 0x707   :  { %12882 = vmatmul.mubr.msk.f32.vlgmr.msra.gmra.mrb[6].mxu0 %vm237_vm2, %v14566_v48  ;;  %v143_v48 = vld [vmem:[%s16007_s6 + $0x10] sm:$0xff] }
 0x708   :  { %12895 = vmatpush3.msra.mxu0 %v1234_v39  ;;  %12896 = vmatprep.mubr.msk.f32.mxu0 %vm14286_vm1, %v14285_v8  ;;  %v1469_v60 = vpop.permute.xlu0 %1468 }
 0x709   :  { %12904 = vmatprep.subr.mxu0 %v143_v48 }
 0x70c   :  { %v1547_v1 = vpop.permute.xlu0 %1546 }
 0x755   :  { %v1213_v40 = vpop.xlane.xlu1 %1212 }
 0x756   :  { %v1217_v41 = vsub.f32 %v1130_v30, %v1213_v40 }
 0x758   :  { %v1219_v42 = vmul.f32 1.442695, %v1217_v41 }
 0x759   :  { %v1216_v43 = vpop.xlane.xlu1 %1215 }
 0x75a   :  { %13887 = vpow2.f32 %v1219_v42  ;;  %v1218_v44 = vsub.f32 %v1208_v34, %v1216_v43 }
 0x75c   :  { %v1221_v45 = vmul.f32 1.442695, %v1218_v44 }
 0x75e   :  { %13889 = vpow2.f32 %v1221_v45 }
 0x764   :  { %v13888_v46 = vpop.eup %13887 }
 0x765   :  { %v1223_v47 = vsel %vm237_vm2, %v13888_v46, 0.0 }
 0x766   :  { %1224 = vadd.xlane.f32.xlu1 %v1223_v47 }
 0x768   :  { %v13890_v49 = vpop.eup %13889 }
 0x769   :  { %v1226_v50 = vsel %vm237_vm2, %v13890_v49, 0.0 }
 0x76a   :  { %1227 = vadd.xlane.f32.xlu1 %v1226_v50 }
 0x77b   :  { %1309 = vrot.lane.b32.xlu1 %v14508_v13, %s14294_s1 }
 0x7f3   :  { %v1225_v51 = vpop.xlane.xlu1 %1224 }
 0x7f4   :  { %13891 = vrcp.f32 %v1225_v51 }
 0x7f7   :  { %v1228_v52 = vpop.xlane.xlu1 %1227 }
 0x7f8   :  { %13893 = vrcp.f32 %v1228_v52 }
 0x7fb   :  { %v1310_v53 = vpop.permute.xlu1 %1309 }
 0x7fc   :  { %12900 = vmatpush3.msra.mxu1 %v1310_v53 }
 0x7fd   :  { %12909 = vmatprep.subr.mxu1 %v14285_v8 }
 0x7fe   :  { %v13892_v55 = vpop.eup %13891 }
 0x7ff   :  { %v1231_v56 = vmul.f32 %v13892_v55, %v13888_v46 }
 0x801   :  { %12897 = vmatmul.mubr.msk.f32.vlgmr.msra.gmra.mrb[8].mxu0 %vm237_vm2, %v1231_v56  ;;  %v1937_v56 = vld [vmem:[#allocation11 + $0x8] sm:$0xff] }
 0x802   :  { %v13894_v57 = vpop.eup %13893  ;;  %12905 = vmatpush3.msra.mxu0 %v143_v48 }
 0x803   :  { %v1232_v59 = vmul.f32 %v13894_v57, %v13890_v49  ;;  %12914 = vmatprep.subr.mxu0 %v14285_v8 }
 0x805   :  { %12902 = vmatmul.mubr.msk.f32.vlgmr.msra.gmra.mrb[16].mxu1 %vm237_vm2, %v1232_v59  ;;  %v1939_v59 = vld [vmem:[#allocation11 + $0x18] sm:$0xff] }
 0x806   :  { %12910 = vmatpush3.xpose.msk.msra.mxu1 %vm237_vm2, %v1471_v54  ;;  %12911 = vmatprep.mubr.msk.f32.mxu1 %vm14286_vm1, %v14285_v8 }
 0x807   :  { %12919 = vmatprep.subr.mxu1 %v14285_v8 }
 0x809   :  { %12912 = vmatmul.mubr.msk.f32.vlgmr.msra.gmra.mrb[18].mxu1 %vm237_vm2, %v1469_v60 }
 0x80a   :  { %12921 = vmatprep.mubr.msk.f32.mxu1 %vm14286_vm1, %v14285_v8 }
 0x8d4   :  { %v1305_v61 = vpop.f32.mrb[8].mxu0 }
 0x8d5   :  { %v12898_v62 = vpop.f32.mrb[9].mxu0  ;;  %12906 = vmatprep.mubr.msk.f32.mxu0 %vm237_vm2, %v1305_v61  ;;  %v1941_v61 = vld [vmem:[%s16013_s12] sm:$0xff] }
 0x8d6   :  { %v1942_v62 = vld [vmem:[%s16013_s12 + $0x8] sm:$0xff] }
 0x8d8   :  { %v1381_v63 = vpop.f32.mrb[16].mxu1 }
 0x8d9   :  { %v12903_v0 = vpop.f32.mrb[17].mxu1  ;;  %12907 = vmatmul.mubr.msk.f32.vlgmr.msra.gmra.mrb[6].mxu0 %vm237_vm2, %v1381_v63  ;;  %v1943_v63 = vld [vmem:[%s16013_s12 + $0x10] sm:$0xff] }
 0x8da   :  { %12915 = vmatpush3.xpose.msk.msra.mxu0 %vm237_vm2, %v1549_v58  ;;  %12916 = vmatprep.mubr.msk.f32.mxu0 %vm14286_vm1, %v14285_v8  ;;  %v1938_v58 = vld [vmem:[#allocation11 + $0x10] sm:$0xff]  ;;  %v13647_v0 = vpack.c.bf16 %v1942_v62, %v1941_v61 }
 0x8db   :  { %12924 = vmatprep.subr.mxu0 %v14285_v8  ;;  %v13643_v60 = vpack.c.bf16 %v1939_v59, %v1938_v58  ;;  %v12145_v58 = vld [vmem:[%s16005_s4 + $0x38] sm:$0xff] }
 0x8dc   :  { %v1542_v2 = vpop.f32.mrb[18].mxu1 }
 0x8dd   :  { %v1543_v3 = vadd.f32 %v1542_v2, %v14529_v17  ;;  %v12913_v4 = vpop.f32.mrb[19].mxu1  ;;  %12917 = vmatmul.mubr.msk.f32.vlgmr.msra.gmra.mrb[10].mxu0 %vm237_vm2, %v1547_v1  ;;  %v1944_v1 = vld [vmem:[%s16013_s12 + $0x18] sm:$0xff] }
 0x8de   :  { %12926 = vmatprep.mubr.msk.f32.mxu0 %vm14286_vm1, %v14285_v8  ;;  %v13651_v2 = vpack.c.bf16 %v1944_v1, %v1943_v63  ;;  %v1946_v4 = vld [vmem:[%s16013_s12 + $0x28] sm:$0xff] }
 0x8df   :  { %v1624_v6 = vsel %vm237_vm2, %v1543_v3, -inf }
 0x8e0   :  { %1625 = vmax.xlane.f32.xlu1 %v1624_v6 }
 0x96d   :  { %v1626_v9 = vpop.xlane.xlu1 %1625 }
 0x96e   :  { %v1630_v10 = vsub.f32 %v1543_v3, %v1626_v9  ;;  %v1945_v3 = vld [vmem:[%s16013_s12 + $0x20] sm:$0xff] }
 0x96f   :  { %v13655_v6 = vpack.c.bf16 %v1946_v4, %v1945_v3 }
 0x970   :  { %v1632_v11 = vmul.f32 1.442695, %v1630_v10 }
 0x972   :  { %13895 = vpow2.f32 %v1632_v11 }
 0x97c   :  { %v13896_v19 = vpop.eup %13895 }
 0x97d   :  { %v1636_v20 = vsel %vm237_vm2, %v13896_v19, 0.0 }
 0x9b0   :  { %v1620_v14 = vpop.f32.mrb[10].mxu0 }
 0x9b1   :  { %v1621_v15 = vadd.f32 %v1620_v14, %v14532_v21  ;;  %v12918_v16 = vpop.f32.mrb[11].mxu0 }
 0x9b3   :  { %v1627_v18 = vsel %vm237_vm2, %v1621_v15, -inf }
 0x9b4   :  { %1628 = vmax.xlane.f32.xlu0 %v1627_v18 }
 0x9b8   :  { %1637 = vadd.xlane.f32.xlu0 %v1636_v20 }
 0x9ce   :  { %1646 = vrot.lane.b32.xlu0 %v14504_v12, %s14297_s10 }
 0xa41   :  { %v1629_v22 = vpop.xlane.xlu0 %1628 }
 0xa42   :  { %v1631_v23 = vsub.f32 %v1621_v15, %v1629_v22 }
 0xa44   :  { %v1634_v24 = vmul.f32 1.442695, %v1631_v23 }
 0xa45   :  { %v1638_v25 = vpop.xlane.xlu0 %1637 }
 0xa46   :  { %13897 = vpow2.f32 %v1634_v24  ;;  %v14706_v24 = vld [vmem:[%s16010_s9] ss:$0 sm:$0xff] }
 0xa47   :  { %13899 = vrcp.f32 %v1638_v25 }
 0xa49   :  { %v1647_v26 = vpop.permute.xlu0 %1646 }
 0xa4a   :  { %12920 = vmatpush3.msra.mxu1 %v1647_v26 }
 0xa50   :  { %v13898_v27 = vpop.eup %13897 }
 0xa51   :  { %v13900_v28 = vpop.eup %13899  ;;  %v1639_v29 = vsel %vm237_vm2, %v13898_v27, 0.0 }
 0xa52   :  { %1640 = vadd.xlane.f32.xlu1 %v1639_v29  ;;  %v1644_v30 = vmul.f32 %v13900_v28, %v13896_v19  ;;  %v14701_v19 = vld [vmem:[%s16009_s8] ss:$0 sm:$0xff]  ;;  %v1947_v29 = vld [vmem:[%s16013_s12 + $0x30] sm:$0xff] }
 0xa54   :  { %12922 = vmatmul.mubr.msk.f32.vlgmr.msra.gmra.mrb[20].mxu1 %vm237_vm2, %v1644_v30  ;;  %v1948_v30 = vld [vmem:[%s16013_s12 + $0x38] sm:$0xff] }
 0xa63   :  { %1722 = vrot.lane.b32.xlu1 %v14508_v13, %s14297_s10 }
 0xadf   :  { %v1641_v12 = vpop.xlane.xlu1 %1640 }
 0xae0   :  { %13901 = vrcp.f32 %v1641_v12  ;;  %v13659_v12 = vpack.c.bf16 %v1948_v30, %v1947_v29 }
 0xae3   :  { %v1723_v32 = vpop.permute.xlu1 %1722 }
 0xae4   :  { %12925 = vmatpush3.msra.mxu0 %v1723_v32 }
 0xae5   :  { %12929 = vmatprep.subr.mxu0 %v144_v31 }
 0xaea   :  { %v13902_v33 = vpop.eup %13901 }
 0xaeb   :  { %v1645_v34 = vmul.f32 %v13902_v33, %v13898_v27 }
 0xaed   :  { %12927 = vmatmul.mubr.msk.f32.vlgmr.msra.gmra.mrb[12].mxu0 %vm237_vm2, %v1645_v34 }
 0xaee   :  { %12930 = vmatpush3.msra.mxu0 %v144_v31  ;;  %v12136_v31 = vld [vmem:[%s16012_s11] ss:$0 sm:$0xff] }
 0xaef   :  { %13648 = vmatprep.subr.bf16.mxu0 %v13647_v0 }
 0xb27   :  { %v1718_v35 = vpop.f32.mrb[20].mxu1 }
 0xb28   :  { %v12923_v36 = vpop.f32.mrb[21].mxu1  ;;  %12931 = vmatprep.mubr.msk.f32.mxu0 %vm237_vm2, %v1718_v35 }
 0xbc0   :  { %v1794_v37 = vpop.f32.mrb[12].mxu0 }
 0xbc1   :  { %v12928_v13 = vpop.f32.mrb[13].mxu0  ;;  %12932 = vmatmul.mubr.msk.f32.vlgmr.msra.gmra.mrb[6].mxu0 %vm237_vm2, %v1794_v37 }
 0xbc2   :  { %13650 = vmatpush3.bf16.msra.mxu0 %v13647_v0  ;;  %v12139_v13 = vld [vmem:[%s16014_s13] ss:$0 sm:$0xff] }
 0xbc3   :  { %13652 = vmatprep.subr.bf16.mxu0 %v13651_v2 }
 0xbc6   :  { %13654 = vmatpush3.bf16.msra.mxu0 %v13651_v2 }
 0xbc7   :  { %13656 = vmatprep.subr.bf16.mxu0 %v13655_v6 }
 0xbca   :  { %13658 = vmatpush3.bf16.msra.mxu0 %v13655_v6 }
 0xbcb   :  { %13660 = vmatprep.subr.bf16.mxu0 %v13659_v12 }
 0xbce   :  { %13662 = vmatpush3.bf16.msra.mxu0 %v13659_v12 }
 0xbcf   :  { %12985 = vmatprep.subr.mxu0 %v14285_v8 }
 0xc94   :  { %v12933_v39 = vpop.f32.mrb[6].mxu0 }
 0xc95   :  { %v1888_v40 = vadd.f32 %v12933_v39, %v12133_v38  ;;  %v1870_v41 = vpop.f32.mrb[7].mxu0 }
 0xc96   :  { %v1887_v42 = vadd.f32 %v12133_v38, %v1870_v41 }
 0xc97   :  { %v1892_v43 = vadd.f32 %v1888_v40, %v14491_v7 }
 0xc98   :  { %v1891_v44 = vadd.f32 %v1887_v42, %v14487_v5  ;;  %v1936_v5 = vld [vmem:[#allocation11] sm:$0xff] }
 0xc99   :  { %v1896_v45 = vsel %vm152_vm0, %v1892_v43, 0.0  ;;  %v13639_v57 = vpack.c.bf16 %v1937_v56, %v1936_v5  ;;  %v12143_v5 = vld [vmem:[%s16005_s4 + $0x28] sm:$0xff] }
 0xc9a   :  { %1897 = vadd.xlane.f32.xlu0 %v1896_v45  ;;  %v1893_v46 = vsel %vm152_vm0, %v1891_v44, 0.0 }
 0xc9b   :  { %1894 = vadd.xlane.f32.xlu1 %v1893_v46  ;;  %13640 = vmatprep.subr.bf16.mxu1 %v13639_v57 }
 0xc9c   :  { %13642 = vmatpush3.bf16.msra.mxu1 %v13639_v57  ;;  %v12144_v57 = vld [vmem:[%s16005_s4 + $0x30] sm:$0xff] }
 0xc9d   :  { %13644 = vmatprep.subr.bf16.mxu1 %v13643_v60  ;;  %v13667_v59 = vpack.c.bf16 %v12145_v58, %v12144_v57 }
 0xca0   :  { %13646 = vmatpush3.bf16.msra.mxu1 %v13643_v60 }
 0xd27   :  { %v1898_v47 = vpop.xlane.xlu0 %1897 }
 0xd28   :  { %v1901_v49 = vmul.f32 0.03125, %v1898_v47  ;;  %v1895_v50 = vpop.xlane.xlu1 %1894 }
 0xd29   :  { %v1900_v48 = vmul.f32 0.03125, %v1895_v50 }
 0xd2a   :  { %v1903_v51 = vsub.f32 %v1892_v43, %v1901_v49 }
 0xd2b   :  { %v1902_v52 = vsub.f32 %v1891_v44, %v1900_v48 }
 0xd2c   :  { %v1905_v53 = vmul.f32 %v1903_v51, %v1903_v51 }
 0xd2d   :  { %v1904_v54 = vmul.f32 %v1902_v52, %v1902_v52 }
 0xd2e   :  { %v1909_v55 = vsel %vm152_vm0, %v1905_v53, 0.0 }
 0xd2f   :  { %1910 = vadd.xlane.f32.xlu1 %v1909_v55  ;;  %v1906_v7 = vsel %vm152_vm0, %v1904_v54, 0.0 }
 0xd30   :  { %1907 = vadd.xlane.f32.xlu0 %v1906_v7  ;;  %v12142_v7 = vld [vmem:[%s16005_s4 + $0x20] sm:$0xff] }
 0xd31   :  { %v13663_v56 = vpack.c.bf16 %v12143_v5, %v12142_v7 }
 0xd33   :  { %13664 = vmatprep.subr.bf16.mxu1 %v13663_v56 }
 0xdbc   :  { %v1911_v9 = vpop.xlane.xlu1 %1910 }
 0xdbd   :  { %v1913_v10 = vmul.f32 0.03125, %v1911_v9  ;;  %v1908_v11 = vpop.xlane.xlu0 %1907 }
 0xdbe   :  { %v1912_v14 = vmul.f32 0.03125, %v1908_v11 }
 0xdbf   :  { %v1915_v15 = vadd.f32 1e-05, %v1913_v10 }
 0xdc0   :  { %v1914_v16 = vadd.f32 1e-05, %v1912_v14 }
 0xdc1   :  { %13903 = vrsqrt.f32 %v1915_v15  ;;  %v12151_v15 = vld [vmem:[%s16006_s5 + $0x1] ss:$0 sm:$0xff] }
 0xdc2   :  { %13905 = vrsqrt.f32 %v1914_v16 }
 0xdcb   :  { %v13904_v18 = vpop.eup %13903 }
 0xdcc   :  { %v13906_v20 = vpop.eup %13905  ;;  %v1919_v22 = vmul.f32 %v13904_v18, %v1903_v51 }
 0xdcd   :  { %v1918_v23 = vmul.f32 %v13906_v20, %v1902_v52 }
 0xdce   :  { %v1927_v25 = vmul.f32 %v14701_v19, %v1919_v22 }
 0xdcf   :  { %v1926_v26 = vmul.f32 %v14701_v19, %v1918_v23 }
 0xdd0   :  { %v1935_v28 = vadd.f32 %v14706_v24, %v1927_v25 }
 0xdd1   :  { %v1934_v27 = vadd.f32 %v14706_v24, %v1926_v26 }
 0xdd3   :  { %12942 = vmatprep.mubr.msk.f32.mxu1 %vm152_vm0, %v1934_v27 }
 0xdd4   :  { %12943 = vmatmul.mubr.msk.f32.vlgmr.msra.gmra.mrb[22].mxu1 %vm152_vm0, %v1935_v28 }
 0xdd5   :  { %13666 = vmatpush3.bf16.msra.mxu1 %v13663_v56 }
 0xdd6   :  { %13668 = vmatprep.subr.bf16.mxu1 %v13667_v59 }
 0xdd9   :  { %13670 = vmatpush3.bf16.msra.mxu1 %v13667_v59 }
 0xdda   :  { %12975 = vmatprep.subr.mxu1 %v14285_v8 }
 0xea7   :  { %v12944_v32 = vpop.f32.mrb[22].mxu1 }
 0xea8   :  { %v2034_v33 = vadd.f32 %v12944_v32, %v12136_v31  ;;  %v2028_v34 = vpop.f32.mrb[23].mxu1 }
 0xea9   :  { %v2029_v35 = vadd.f32 %v12136_v31, %v2028_v34 }
 0xeaa   :  { %v2038_v37 = vmax.f32 %v2034_v33, 0.0 }
 0xeab   :  { %v2037_v36 = vmax.f32 %v2029_v35, 0.0 }
 0xead   :  { %12961 = vmatprep.mubr.msk.f32.mxu0 %vm2045_vm3, %v2037_v36 }
 0xeae   :  { %12962 = vmatmul.mubr.msk.f32.vlgmr.msra.gmra.mrb[14].mxu0 %vm2045_vm3, %v2038_v37 }
 0xeaf   :  { %12987 = vmatprep.mubr.msk.f32.mxu0 %vm14286_vm1, %v14285_v8 }
 0xf81   :  { %v12963_v38 = vpop.f32.mrb[14].mxu0 }
 0xf82   :  { %v2124_v39 = vadd.f32 %v12963_v38, %v12139_v13  ;;  %v2118_v40 = vpop.f32.mrb[15].mxu0 }
 0xf83   :  { %v2119_v41 = vadd.f32 %v12139_v13, %v2118_v40 }
 0xf84   :  { %v2128_v42 = vadd.f32 %v2124_v39, %v1935_v28 }
 0xf85   :  { %v2127_v43 = vadd.f32 %v2119_v41, %v1934_v27 }
 0xf86   :  { %v2132_v44 = vsel %vm152_vm0, %v2128_v42, 0.0 }
 0xf87   :  { %2133 = vadd.xlane.f32.xlu1 %v2132_v44  ;;  %v2129_v45 = vsel %vm152_vm0, %v2127_v43, 0.0 }
 0xf88   :  { %2130 = vadd.xlane.f32.xlu0 %v2129_v45 }
0x1014   :  { %v2134_v46 = vpop.xlane.xlu1 %2133 }
0x1015   :  { %v2136_v47 = vmul.f32 0.03125, %v2134_v46  ;;  %v2131_v49 = vpop.xlane.xlu0 %2130 }
0x1016   :  { %v2135_v50 = vmul.f32 0.03125, %v2131_v49 }
0x1017   :  { %v2138_v48 = vsub.f32 %v2128_v42, %v2136_v47 }
0x1018   :  { %v2137_v51 = vsub.f32 %v2127_v43, %v2135_v50 }
0x1019   :  { %v2140_v52 = vmul.f32 %v2138_v48, %v2138_v48 }
0x101a   :  { %v2139_v53 = vmul.f32 %v2137_v51, %v2137_v51 }
0x101b   :  { %v2144_v54 = vsel %vm152_vm0, %v2140_v52, 0.0 }
0x101c   :  { %2145 = vadd.xlane.f32.xlu1 %v2144_v54  ;;  %v2141_v55 = vsel %vm152_vm0, %v2139_v53, 0.0 }
0x101d   :  { %2142 = vadd.xlane.f32.xlu0 %v2141_v55 }
0x10a9   :  { %v2146_v60 = vpop.xlane.xlu1 %2145 }
0x10aa   :  { %v2148_v61 = vmul.f32 0.03125, %v2146_v60  ;;  %v2143_v62 = vpop.xlane.xlu0 %2142 }
0x10ab   :  { %v2147_v63 = vmul.f32 0.03125, %v2143_v62 }
0x10ac   :  { %v2150_v0 = vadd.f32 1e-05, %v2148_v61 }
0x10ad   :  { %v2149_v1 = vadd.f32 1e-05, %v2147_v63 }
0x10ae   :  { %13907 = vrsqrt.f32 %v2150_v0 }
0x10af   :  { %13909 = vrsqrt.f32 %v2149_v1 }
0x10b8   :  { %v13908_v2 = vpop.eup %13907 }
0x10b9   :  { %v13910_v3 = vpop.eup %13909  ;;  %v2154_v4 = vmul.f32 %v13908_v2, %v2138_v48 }
0x10ba   :  { %v2153_v6 = vmul.f32 %v13910_v3, %v2137_v51 }
0x10bb   :  { %v2156_v9 = vmul.f32 %v14701_v19, %v2154_v4 }
0x10bc   :  { %v2155_v10 = vmul.f32 %v14701_v19, %v2153_v6 }
0x10bd   :  { %v14754_v14 = vadd.f32 %v14706_v24, %v2156_v9 }
0x10be   :  { %v14751_v11 = vadd.f32 %v14706_v24, %v2155_v10 }
0x10c0   :  { %12972 = vmatprep.mubr.msk.f32.mxu1 %vm152_vm0, %v14751_v11 }
0x10c1   :  { %12973 = vmatmul.mubr.msk.f32.vlgmr.msra.gmra.mrb[24].mxu1 %vm152_vm0, %v14754_v14 }
0x10c2   :  { %12977 = vmatprep.mubr.msk.f32.mxu1 %vm14286_vm1, %v14285_v8 }
0x1194   :  { %v12974_v16 = vpop.f32.mrb[24].mxu1 }
0x1195   :  { %v14765_v18 = vadd.f32 %v12974_v16, %v12151_v15  ;;  %v2251_v19 = vpop.f32.mrb[25].mxu1 }
0x1196   :  { %v14767_v20 = vadd.f32 %v12151_v15, %v2251_v19 }
0x1197   :  { %2338 = vrot.lane.b32.xlu1 %v14765_v18, %s14287_s0 }
0x1198   :  { %2261 = vrot.lane.b32.xlu0 %v14767_v20, %s14287_s0 }
0x1209   :  { %v2339_v23 = vpop.permute.xlu1 %2338 }
0x120a   :  { %v2262_v22 = vpop.permute.xlu0 %2261 }
0x120b   :  { %12976 = vmatpush3.xpose.msk.msra.mxu1 %vm237_vm2, %v2262_v22 }
0x120c   :  { %12980 = vmatprep.subr.mxu1 %v14285_v8 }
0x120e   :  { %12978 = vmatmul.mubr.msk.f32.vlgmr.msra.gmra.mrb[26].mxu1 %vm237_vm2, %v14767_v20 }
0x120f   :  { %12981 = vmatpush3.xpose.msk.msra.mxu1 %vm237_vm2, %v2339_v23  ;;  %12982 = vmatprep.mubr.msk.f32.mxu1 %vm14286_vm1, %v14285_v8 }
0x1210   :  { %12990 = vmatprep.subr.mxu1 %v14285_v8 }
0x1212   :  { %12983 = vmatmul.mubr.msk.f32.vlgmr.msra.gmra.mrb[28].mxu1 %vm237_vm2, %v14765_v18 }
0x1213   :  { %12992 = vmatprep.mubr.msk.f32.mxu1 %vm14286_vm1, %v14285_v8 }
0x12e1   :  { %v2333_v24 = vpop.f32.mrb[26].mxu1 }
0x12e2   :  { %v12979_v25 = vpop.f32.mrb[27].mxu1  ;;  %v2334_v34 = vadd.f32 %v2333_v24, %v14529_v17 }
0x12e4   :  { %v2414_v35 = vsel %vm237_vm2, %v2334_v34, -inf }
0x12e5   :  { %v2410_v26 = vpop.f32.mrb[28].mxu1 }
0x12e6   :  { %v2411_v27 = vadd.f32 %v2410_v26, %v14532_v21  ;;  %v12984_v28 = vpop.f32.mrb[29].mxu1 }
0x12e8   :  { %v2417_v29 = vsel %vm237_vm2, %v2411_v27, -inf }
0x12e9   :  { %2418 = vmax.xlane.f32.xlu1 %v2417_v29 }
0x12fa   :  { %2668 = vrot.lane.b32.xlu1 %v14765_v18, %s14290_s21 }
0x12fe   :  { %2666 = vrot.lane.b32.xlu1 %v14765_v18, %s14289_s19 }
0x1376   :  { %v2419_v30 = vpop.xlane.xlu1 %2418 }
0x1377   :  { %v2421_v12 = vsub.f32 %v2411_v27, %v2419_v30 }
0x1379   :  { %v2424_v31 = vmul.f32 1.442695, %v2421_v12 }
0x137a   :  { %v2669_v38 = vpop.permute.xlu1 %2668 }
0x137b   :  { %13911 = vpow2.f32 %v2424_v31  ;;  %v14868_v31 = vld [vmem:[#allocation7] sm:$0xff] }
0x137e   :  { %v2667_v40 = vpop.permute.xlu1 %2666 }
0x1385   :  { %v13912_v32 = vpop.eup %13911 }
0x1386   :  { %v2429_v33 = vsel %vm237_vm2, %v13912_v32, 0.0 }
0x1387   :  { %2430 = vadd.xlane.f32.xlu0 %v2429_v33 }
0x139d   :  { %2512 = vrot.lane.b32.xlu0 %v14765_v18, %s14288_s24 }
0x13bc   :  { %2415 = vmax.xlane.f32.xlu0 %v2414_v35 }
0x13d2   :  { %2436 = vrot.lane.b32.xlu0 %v14767_v20, %s14288_s24 }
0x13d6   :  { %2588 = vrot.lane.b32.xlu0 %v14767_v20, %s14289_s19 }
0x1414   :  { %v2431_v36 = vpop.xlane.xlu0 %2430 }
0x1415   :  { %13913 = vrcp.f32 %v2431_v36  ;;  %v14872_v36 = vld [vmem:[#allocation7 + $0x8] sm:$0xff] }
0x1418   :  { %v2513_v37 = vpop.permute.xlu0 %2512 }
0x1419   :  { %12991 = vmatpush3.msra.mxu1 %v2513_v37 }
0x141a   :  { %13000 = vmatprep.subr.mxu1 %v14285_v8 }
0x141f   :  { %v13914_v13 = vpop.eup %13913 }
0x1420   :  { %v2435_v39 = vmul.f32 %v13914_v13, %v13912_v32 }
0x1422   :  { %12993 = vmatmul.mubr.msk.f32.vlgmr.msra.gmra.mrb[30].mxu1 %vm237_vm2, %v2435_v39  ;;  %v12148_v39 = vld [vmem:[%s16007_s6 + $0x28] sm:$0xff] }
0x1423   :  { %13001 = vmatpush3.xpose.msk.msra.mxu1 %vm237_vm2, %v2669_v38  ;;  %13002 = vmatprep.mubr.msk.f32.mxu1 %vm14286_vm1, %v14285_v8 }
0x1424   :  { %13010 = vmatprep.subr.mxu1 %v14285_v8 }
0x1426   :  { %13003 = vmatmul.mubr.msk.f32.vlgmr.msra.gmra.mrb[32].mxu1 %vm237_vm2, %v2667_v40  ;;  %v12147_v40 = vld [vmem:[%s16007_s6 + $0x20] sm:$0xff] }
0x1427   :  { %13012 = vmatprep.mubr.msk.f32.mxu1 %vm14286_vm1, %v14285_v8 }
0x1449   :  { %v2416_v41 = vpop.xlane.xlu0 %2415 }
0x144a   :  { %v2420_v42 = vsub.f32 %v2334_v34, %v2416_v41 }
0x144c   :  { %v2422_v43 = vmul.f32 1.442695, %v2420_v42 }
0x144d   :  { %v2437_v44 = vpop.permute.xlu0 %2436 }
0x144e   :  { %13915 = vpow2.f32 %v2422_v43  ;;  %12986 = vmatpush3.msra.mxu0 %v2437_v44 }
0x144f   :  { %12995 = vmatprep.subr.mxu0 %v14285_v8 }
0x1451   :  { %v2589_v53 = vpop.permute.xlu0 %2588 }
0x1458   :  { %v13916_v45 = vpop.eup %13915 }
0x1459   :  { %v2426_v46 = vsel %vm237_vm2, %v13916_v45, 0.0 }
0x145a   :  { %2427 = vadd.xlane.f32.xlu1 %v2426_v46 }
0x146b   :  { %2590 = vrot.lane.b32.xlu1 %v14767_v20, %s14290_s21 }
0x14e7   :  { %v2428_v47 = vpop.xlane.xlu1 %2427 }
0x14e8   :  { %13917 = vrcp.f32 %v2428_v47 }
0x14eb   :  { %v2591_v48 = vpop.permute.xlu1 %2590 }
0x14f2   :  { %v13918_v49 = vpop.eup %13917 }
0x14f3   :  { %v2434_v50 = vmul.f32 %v13918_v49, %v13916_v45 }
0x14f5   :  { %12988 = vmatmul.mubr.msk.f32.vlgmr.msra.gmra.mrb[16].mxu0 %vm237_vm2, %v2434_v50  ;;  %v14814_v51 = vpop.f32.mrb[30].mxu1 }
0x14f6   :  { %12996 = vmatpush3.xpose.msk.msra.mxu0 %vm237_vm2, %v2591_v48  ;;  %v12994_v52 = vpop.f32.mrb[31].mxu1  ;;  %12997 = vmatprep.mubr.msk.f32.mxu0 %vm14286_vm1, %v14285_v8 }
0x14f7   :  { %13005 = vmatprep.subr.mxu0 %v14285_v8 }
0x14f9   :  { %12998 = vmatmul.mubr.msk.f32.vlgmr.msra.gmra.mrb[18].mxu0 %vm237_vm2, %v2589_v53  ;;  %v2740_v54 = vpop.f32.mrb[32].mxu1 }
0x14fa   :  { %v2741_v55 = vadd.f32 %v2740_v54, %v14532_v21  ;;  %v13004_v7 = vpop.f32.mrb[33].mxu1  ;;  %13007 = vmatprep.mubr.msk.f32.mxu0 %vm14286_vm1, %v14285_v8  ;;  %v12149_v54 = vld [vmem:[%s16007_s6 + $0x30] sm:$0xff] }
0x14fc   :  { %v2747_v5 = vsel %vm237_vm2, %v2741_v55, -inf }
0x14fd   :  { %2748 = vmax.xlane.f32.xlu1 %v2747_v5 }
0x150e   :  { %3082 = vrot.lane.b32.xlu1 %v14767_v20, %s14291_s3 }
0x1512   :  { %3080 = vrot.lane.b32.xlu1 %v14767_v20, %s14293_s22 }
0x1516   :  { %3158 = vrot.lane.b32.xlu1 %v14765_v18, %s14293_s22 }
0x158a   :  { %v2749_v56 = vpop.xlane.xlu1 %2748 }
0x158b   :  { %v2751_v57 = vsub.f32 %v2741_v55, %v2749_v56 }
0x158d   :  { %v2754_v58 = vmul.f32 1.442695, %v2751_v57 }
0x158e   :  { %v3083_v3 = vpop.permute.xlu1 %3082 }
0x158f   :  { %13919 = vpow2.f32 %v2754_v58 }
0x1592   :  { %v3081_v9 = vpop.permute.xlu1 %3080 }
0x1596   :  { %v3159_v15 = vpop.permute.xlu1 %3158 }
0x1599   :  { %v13920_v21 = vpop.eup %13919 }
0x159a   :  { %v2759_v59 = vsel %vm237_vm2, %v13920_v21, 0.0 }
0x159b   :  { %2760 = vadd.xlane.f32.xlu0 %v2759_v59 }
0x15b1   :  { %2842 = vrot.lane.b32.xlu0 %v14765_v18, %s14292_s16 }
0x15b5   :  { %3160 = vrot.lane.b32.xlu0 %v14765_v18, %s14291_s3 }
0x15c8   :  { %v14836_v60 = vpop.f32.mrb[16].mxu0 }
0x15c9   :  { %v12989_v61 = vpop.f32.mrb[17].mxu0 }
0x15cc   :  { %v2662_v62 = vpop.f32.mrb[18].mxu0 }
0x15cd   :  { %v12999_v63 = vpop.f32.mrb[19].mxu0  ;;  %v2663_v0 = vadd.f32 %v2662_v62, %v14529_v17 }
0x15cf   :  { %v2744_v1 = vsel %vm237_vm2, %v2663_v0, -inf }
0x15d4   :  { %2745 = vmax.xlane.f32.xlu0 %v2744_v1 }
0x15ea   :  { %2766 = vrot.lane.b32.xlu0 %v14767_v20, %s14292_s16 }
0x15ee   :  { %3258 = vrot.lane.b32.xlu0 %v14767_v20, %s14294_s1 }
0x15f2   :  { %3495 = vrot.lane.b32.xlu0 %v14767_v20, %s14295_s7 }
0x15f6   :  { %3573 = vrot.lane.b32.xlu0 %v14765_v18, %s14295_s7 }
0x15fa   :  { %3493 = vrot.lane.b32.xlu0 %v14767_v20, %s14296_s20 }
0x15fe   :  { %3571 = vrot.lane.b32.xlu0 %v14765_v18, %s14296_s20 }
0x1628   :  { %v2761_v17 = vpop.xlane.xlu0 %2760 }
0x1629   :  { %13921 = vrcp.f32 %v2761_v17 }
0x162c   :  { %v2843_v2 = vpop.permute.xlu0 %2842 }
0x162d   :  { %13011 = vmatpush3.msra.mxu1 %v2843_v2 }
0x162e   :  { %13025 = vmatprep.subr.mxu1 %v14285_v8 }
0x1630   :  { %v3161_v10 = vpop.permute.xlu0 %3160 }
0x1633   :  { %v13922_v4 = vpop.eup %13921 }
0x1634   :  { %v2765_v6 = vmul.f32 %v13922_v4, %v13920_v21 }
0x1636   :  { %13013 = vmatmul.mubr.msk.f32.vlgmr.msra.gmra.mrb[34].mxu1 %vm237_vm2, %v2765_v6 }
0x1637   :  { %13026 = vmatpush3.xpose.msk.msra.mxu1 %vm237_vm2, %v3083_v3  ;;  %13027 = vmatprep.mubr.msk.f32.mxu1 %vm14286_vm1, %v14285_v8 }
0x1638   :  { %13030 = vmatprep.subr.mxu1 %v14285_v8 }
0x163a   :  { %13028 = vmatmul.mubr.msk.f32.vlgmr.msra.gmra.mrb[36].mxu1 %vm237_vm2, %v3081_v9 }
0x163b   :  { %13031 = vmatpush3.xpose.msk.msra.mxu1 %vm237_vm2, %v3161_v10  ;;  %13032 = vmatprep.mubr.msk.f32.mxu1 %vm14286_vm1, %v14285_v8 }
0x163c   :  { %13040 = vmatprep.subr.mxu1 %v14285_v8 }
0x163e   :  { %13033 = vmatmul.mubr.msk.f32.vlgmr.msra.gmra.mrb[38].mxu1 %vm237_vm2, %v3159_v15 }
0x163f   :  { %13042 = vmatprep.mubr.msk.f32.mxu1 %vm14286_vm1, %v14285_v8 }
0x1661   :  { %v2746_v16 = vpop.xlane.xlu0 %2745 }
0x1662   :  { %v2750_v19 = vsub.f32 %v2663_v0, %v2746_v16 }
0x1664   :  { %v2752_v22 = vmul.f32 1.442695, %v2750_v19 }
0x1665   :  { %v2767_v23 = vpop.permute.xlu0 %2766 }
0x1666   :  { %13923 = vpow2.f32 %v2752_v22  ;;  %13006 = vmatpush3.msra.mxu0 %v2767_v23 }
0x1667   :  { %13015 = vmatprep.subr.mxu0 %v12148_v39 }
0x1669   :  { %v3259_v55 = vpop.permute.xlu0 %3258 }
0x166d   :  { %v3496_v57 = vpop.permute.xlu0 %3495 }
0x1670   :  { %v13924_v24 = vpop.eup %13923 }
0x1671   :  { %v2756_v25 = vsel %vm237_vm2, %v13924_v24, 0.0 }
0x1672   :  { %2757 = vadd.xlane.f32.xlu1 %v2756_v25 }
0x16ff   :  { %v2758_v26 = vpop.xlane.xlu1 %2757 }
0x1700   :  { %13925 = vrcp.f32 %v2758_v26 }
0x1709   :  { %v2914_v27 = vpop.f32.mrb[34].mxu1 }
0x170a   :  { %v13926_v28 = vpop.eup %13925  ;;  %v13014_v29 = vpop.f32.mrb[35].mxu1 }
0x170b   :  { %v2764_v30 = vmul.f32 %v13926_v28, %v13924_v24 }
0x170d   :  { %13008 = vmatmul.mubr.msk.f32.vlgmr.msra.gmra.mrb[20].mxu0 %vm237_vm2, %v2764_v30  ;;  %v3154_v12 = vpop.f32.mrb[36].mxu1 }
0x170e   :  { %v3155_v32 = vadd.f32 %v14868_v31, %v3154_v12  ;;  %v13029_v33 = vpop.f32.mrb[37].mxu1  ;;  %13016 = vmatpush3.msra.mxu0 %v12148_v39 }
0x170f   :  { %13020 = vmatprep.subr.mxu0 %v12147_v40 }
0x1710   :  { %v3236_v34 = vsel %vm237_vm2, %v3155_v32, -inf }
0x1711   :  { %3237 = vmax.xlane.f32.xlu1 %v3236_v34  ;;  %v3232_v35 = vpop.f32.mrb[38].mxu1  ;;  %v12150_v34 = vld [vmem:[%s16007_s6 + $0x38] sm:$0xff] }
0x1712   :  { %v3233_v37 = vadd.f32 %v14872_v36, %v3232_v35  ;;  %v13034_v13 = vpop.f32.mrb[39].mxu1 }
0x1714   :  { %v3239_v38 = vsel %vm237_vm2, %v3233_v37, -inf }
0x1715   :  { %3240 = vmax.xlane.f32.xlu1 %v3239_v38 }
0x179e   :  { %v3238_v41 = vpop.xlane.xlu1 %3237 }
0x179f   :  { %v3242_v42 = vsub.f32 %v3155_v32, %v3238_v41 }
0x17a1   :  { %v3244_v43 = vmul.f32 1.442695, %v3242_v42 }
0x17a2   :  { %v3241_v44 = vpop.xlane.xlu1 %3240 }
0x17a3   :  { %13927 = vpow2.f32 %v3244_v43  ;;  %v3243_v45 = vsub.f32 %v3233_v37, %v3241_v44 }
0x17a5   :  { %v3246_v46 = vmul.f32 1.442695, %v3243_v45 }
0x17a7   :  { %13929 = vpow2.f32 %v3246_v46 }
0x17ad   :  { %v13928_v47 = vpop.eup %13927 }
0x17ae   :  { %v3248_v49 = vsel %vm237_vm2, %v13928_v47, 0.0 }
0x17af   :  { %3249 = vadd.xlane.f32.xlu1 %v3248_v49 }
0x17b1   :  { %v13930_v50 = vpop.eup %13929 }
0x17b2   :  { %v3251_v48 = vsel %vm237_vm2, %v13930_v50, 0.0 }
0x17b3   :  { %3252 = vadd.xlane.f32.xlu1 %v3251_v48 }
0x17c4   :  { %3334 = vrot.lane.b32.xlu1 %v14765_v18, %s14294_s1 }
0x17e0   :  { %v2838_v52 = vpop.f32.mrb[20].mxu0 }
0x17e1   :  { %v13009_v53 = vpop.f32.mrb[21].mxu0  ;;  %13017 = vmatprep.mubr.msk.f32.mxu0 %vm237_vm2, %v2838_v52 }
0x17e2   :  { %13018 = vmatmul.mubr.msk.f32.vlgmr.msra.gmra.mrb[22].mxu0 %vm237_vm2, %v2914_v27 }
0x17e3   :  { %13022 = vmatprep.mubr.msk.f32.mxu0 %vm237_vm2, %v14836_v60  ;;  %13021 = vmatpush3.msra.mxu0 %v12147_v40  ;;  %v12186_v40 = vld [vmem:[#allocation10 + $0x1] ss:$0 sm:$0xff] }
0x17e4   :  { %13035 = vmatprep.subr.mxu0 %v14285_v8 }
0x17ea   :  { %13023 = vmatmul.mubr.msk.f32.vlgmr.msra.gmra.mrb[22].mxu0 %vm237_vm2, %v14814_v51  ;;  %v3574_v51 = vpop.permute.xlu0 %3573 }
0x17eb   :  { %13036 = vmatpush3.msra.mxu0 %v3259_v55  ;;  %13037 = vmatprep.mubr.msk.f32.mxu0 %vm14286_vm1, %v14285_v8 }
0x17ec   :  { %13045 = vmatprep.subr.mxu0 %v12149_v54 }
0x17ee   :  { %v3494_v61 = vpop.permute.xlu0 %3493 }
0x17f2   :  { %v3572_v17 = vpop.permute.xlu0 %3571 }
0x183c   :  { %v3250_v7 = vpop.xlane.xlu1 %3249 }
0x183d   :  { %13931 = vrcp.f32 %v3250_v7 }
0x1840   :  { %v3253_v5 = vpop.xlane.xlu1 %3252 }
0x1841   :  { %13933 = vrcp.f32 %v3253_v5 }
0x1844   :  { %v3335_v56 = vpop.permute.xlu1 %3334 }
0x1845   :  { %13041 = vmatpush3.msra.mxu1 %v3335_v56 }
0x1846   :  { %13050 = vmatprep.subr.mxu1 %v14285_v8 }
0x1847   :  { %v13932_v58 = vpop.eup %13931 }
0x1848   :  { %v3256_v21 = vmul.f32 %v13932_v58, %v13928_v47 }
0x184a   :  { %13038 = vmatmul.mubr.msk.f32.vlgmr.msra.gmra.mrb[24].mxu0 %vm237_vm2, %v3256_v21  ;;  %v3965_v21 = vld [vmem:[#allocation11 + $0x30] sm:$0xff] }
0x184b   :  { %v13934_v59 = vpop.eup %13933  ;;  %13046 = vmatpush3.msra.mxu0 %v12149_v54 }
0x184c   :  { %v3257_v60 = vmul.f32 %v13934_v59, %v13930_v50  ;;  %13055 = vmatprep.subr.mxu0 %v14285_v8  ;;  %v3966_v59 = vld [vmem:[#allocation11 + $0x38] sm:$0xff] }
0x184e   :  { %13043 = vmatmul.mubr.msk.f32.vlgmr.msra.gmra.mrb[40].mxu1 %vm237_vm2, %v3257_v60  ;;  %v12207_v60 = vld [vmem:[%s16005_s4 + $0x40] sm:$0xff] }
0x184f   :  { %13051 = vmatpush3.xpose.msk.msra.mxu1 %vm237_vm2, %v3496_v57  ;;  %13052 = vmatprep.mubr.msk.f32.mxu1 %vm14286_vm1, %v14285_v8  ;;  %v3964_v57 = vld [vmem:[#allocation11 + $0x28] sm:$0xff] }
0x1850   :  { %13060 = vmatprep.subr.mxu1 %v14285_v8 }
0x1852   :  { %13053 = vmatmul.mubr.msk.f32.vlgmr.msra.gmra.mrb[42].mxu1 %vm237_vm2, %v3494_v61  ;;  %v12208_v61 = vld [vmem:[%s16005_s4 + $0x48] sm:$0xff] }
0x1853   :  { %13062 = vmatprep.mubr.msk.f32.mxu1 %vm14286_vm1, %v14285_v8 }
0x191d   :  { %v3330_v62 = vpop.f32.mrb[24].mxu0 }
0x191e   :  { %v13039_v63 = vpop.f32.mrb[25].mxu0  ;;  %13047 = vmatprep.mubr.msk.f32.mxu0 %vm237_vm2, %v3330_v62  ;;  %v13695_v62 = vpack.c.bf16 %v12208_v61, %v12207_v60 }
0x191f   :  { %v12192_v63 = vld [vmem:[%s16013_s12 + $0x40] sm:$0xff] }
0x1921   :  { %v3406_v0 = vpop.f32.mrb[40].mxu1 }
0x1922   :  { %v13044_v1 = vpop.f32.mrb[41].mxu1  ;;  %13048 = vmatmul.mubr.msk.f32.vlgmr.msra.gmra.mrb[22].mxu0 %vm237_vm2, %v3406_v0  ;;  %v12193_v0 = vld [vmem:[%s16013_s12 + $0x48] sm:$0xff] }
0x1923   :  { %13056 = vmatpush3.xpose.msk.msra.mxu0 %vm237_vm2, %v3574_v51  ;;  %13057 = vmatprep.mubr.msk.f32.mxu0 %vm14286_vm1, %v14285_v8  ;;  %v13675_v51 = vpack.c.bf16 %v3966_v59, %v3965_v21  ;;  %v12194_v1 = vld [vmem:[%s16013_s12 + $0x50] sm:$0xff] }
0x1924   :  { %13065 = vmatprep.subr.mxu0 %v14285_v8 }
0x1925   :  { %v3567_v2 = vpop.f32.mrb[42].mxu1 }
0x1926   :  { %v3568_v3 = vadd.f32 %v14868_v31, %v3567_v2  ;;  %v13054_v4 = vpop.f32.mrb[43].mxu1  ;;  %13058 = vmatmul.mubr.msk.f32.vlgmr.msra.gmra.mrb[26].mxu0 %vm237_vm2, %v3572_v17  ;;  %v13679_v17 = vpack.c.bf16 %v12193_v0, %v12192_v63  ;;  %v12195_v2 = vld [vmem:[%s16013_s12 + $0x58] sm:$0xff]  ;;  %v15062_v63 = vld [vmem:[#allocation8] sm:$0xff] }
0x1927   :  { %13067 = vmatprep.mubr.msk.f32.mxu0 %vm14286_vm1, %v14285_v8  ;;  %v12196_v4 = vld [vmem:[%s16013_s12 + $0x60] sm:$0xff] }
0x1928   :  { %v3649_v6 = vsel %vm237_vm2, %v3568_v3, -inf }
0x1929   :  { %3650 = vmax.xlane.f32.xlu1 %v3649_v6  ;;  %v12197_v6 = vld [vmem:[%s16013_s12 + $0x68] sm:$0xff] }
0x19b6   :  { %v3651_v9 = vpop.xlane.xlu1 %3650 }
0x19b7   :  { %v3655_v10 = vsub.f32 %v3568_v3, %v3651_v9  ;;  %v13683_v3 = vpack.c.bf16 %v12195_v2, %v12194_v1  ;;  %v13687_v9 = vpack.c.bf16 %v12197_v6, %v12196_v4 }
0x19b9   :  { %v3657_v15 = vmul.f32 1.442695, %v3655_v10 }
0x19bb   :  { %13935 = vpow2.f32 %v3657_v15 }
0x19c5   :  { %v13936_v24 = vpop.eup %13935 }
0x19c6   :  { %v3661_v25 = vsel %vm237_vm2, %v13936_v24, 0.0 }
0x19f9   :  { %v3645_v16 = vpop.f32.mrb[26].mxu0 }
0x19fa   :  { %v3646_v19 = vadd.f32 %v14872_v36, %v3645_v16  ;;  %v13059_v22 = vpop.f32.mrb[27].mxu0 }
0x19fc   :  { %v3652_v23 = vsel %vm237_vm2, %v3646_v19, -inf }
0x19fd   :  { %3653 = vmax.xlane.f32.xlu0 %v3652_v23 }
0x1a01   :  { %3662 = vadd.xlane.f32.xlu0 %v3661_v25  ;;  %v14968_v25 = vld [vmem:[%s16009_s8 + $0x1] ss:$0 sm:$0xff] }
0x1a17   :  { %3671 = vrot.lane.b32.xlu0 %v14767_v20, %s14297_s10 }
0x1a8a   :  { %v3654_v26 = vpop.xlane.xlu0 %3653 }
0x1a8b   :  { %v3656_v27 = vsub.f32 %v3646_v19, %v3654_v26 }
0x1a8d   :  { %v3659_v28 = vmul.f32 1.442695, %v3656_v27 }
0x1a8e   :  { %v3663_v29 = vpop.xlane.xlu0 %3662 }
0x1a8f   :  { %13937 = vpow2.f32 %v3659_v28 }
0x1a90   :  { %13939 = vrcp.f32 %v3663_v29  ;;  %v14973_v29 = vld [vmem:[%s16010_s9 + $0x1] ss:$0 sm:$0xff] }
0x1a92   :  { %v3672_v30 = vpop.permute.xlu0 %3671 }
0x1a93   :  { %13061 = vmatpush3.msra.mxu1 %v3672_v30 }
0x1a99   :  { %v13938_v12 = vpop.eup %13937 }
0x1a9a   :  { %v13940_v31 = vpop.eup %13939  ;;  %v3664_v32 = vsel %vm237_vm2, %v13938_v12, 0.0 }
0x1a9b   :  { %3665 = vadd.xlane.f32.xlu1 %v3664_v32  ;;  %v3669_v33 = vmul.f32 %v13940_v31, %v13936_v24  ;;  %v12209_v31 = vld [vmem:[%s16005_s4 + $0x50] sm:$0xff]  ;;  %v12210_v32 = vld [vmem:[%s16005_s4 + $0x58] sm:$0xff] }
0x1a9d   :  { %13063 = vmatmul.mubr.msk.f32.vlgmr.msra.gmra.mrb[44].mxu1 %vm237_vm2, %v3669_v33 }
0x1aac   :  { %3747 = vrot.lane.b32.xlu1 %v14765_v18, %s14297_s10 }
0x1b28   :  { %v3666_v20 = vpop.xlane.xlu1 %3665 }
0x1b29   :  { %13941 = vrcp.f32 %v3666_v20 }
0x1b2c   :  { %v3748_v35 = vpop.permute.xlu1 %3747 }
0x1b2d   :  { %13066 = vmatpush3.msra.mxu0 %v3748_v35  ;;  %v14989_v35 = vld [vmem:[#allocation5] sm:$0xff] }
0x1b2e   :  { %13070 = vmatprep.subr.mxu0 %v12150_v34 }
0x1b33   :  { %v13942_v36 = vpop.eup %13941 }
0x1b34   :  { %v3670_v37 = vmul.f32 %v13942_v36, %v13938_v12  ;;  %v14997_v36 = vld [vmem:[#allocation5 + $0x8] sm:$0xff] }
0x1b36   :  { %13068 = vmatmul.mubr.msk.f32.vlgmr.msra.gmra.mrb[28].mxu0 %vm237_vm2, %v3670_v37  ;;  %v12198_v37 = vld [vmem:[%s16013_s12 + $0x70] sm:$0xff] }
0x1b37   :  { %13071 = vmatpush3.msra.mxu0 %v12150_v34  ;;  %v13699_v34 = vpack.c.bf16 %v12210_v32, %v12209_v31 }
0x1b38   :  { %13680 = vmatprep.subr.bf16.mxu0 %v13679_v17 }
0x1b70   :  { %v3743_v13 = vpop.f32.mrb[44].mxu1 }
0x1b71   :  { %v13064_v38 = vpop.f32.mrb[45].mxu1  ;;  %13072 = vmatprep.mubr.msk.f32.mxu0 %vm237_vm2, %v3743_v13  ;;  %v12199_v13 = vld [vmem:[%s16013_s12 + $0x78] sm:$0xff] }
0x1b72   :  { %v13691_v38 = vpack.c.bf16 %v12199_v13, %v12198_v37 }
0x1c09   :  { %v3819_v39 = vpop.f32.mrb[28].mxu0 }
0x1c0a   :  { %v13069_v18 = vpop.f32.mrb[29].mxu0  ;;  %13073 = vmatmul.mubr.msk.f32.vlgmr.msra.gmra.mrb[22].mxu0 %vm237_vm2, %v3819_v39  ;;  %v12201_v39 = vld [vmem:[%s16012_s11 + $0x1] ss:$0 sm:$0xff] }
0x1c0b   :  { %13682 = vmatpush3.bf16.msra.mxu0 %v13679_v17 }
0x1c0c   :  { %13684 = vmatprep.subr.bf16.mxu0 %v13683_v3 }
0x1c0f   :  { %13686 = vmatpush3.bf16.msra.mxu0 %v13683_v3 }
0x1c10   :  { %13688 = vmatprep.subr.bf16.mxu0 %v13687_v9 }
0x1c13   :  { %13690 = vmatpush3.bf16.msra.mxu0 %v13687_v9 }
0x1c14   :  { %13692 = vmatprep.subr.bf16.mxu0 %v13691_v38 }
0x1c17   :  { %13694 = vmatpush3.bf16.msra.mxu0 %v13691_v38 }
0x1c18   :  { %13126 = vmatprep.subr.mxu0 %v14285_v8 }
0x1cdd   :  { %v13074_v41 = vpop.f32.mrb[22].mxu0 }
0x1cde   :  { %v3913_v42 = vadd.f32 %v13074_v41, %v12186_v40  ;;  %v3895_v43 = vpop.f32.mrb[23].mxu0 }
0x1cdf   :  { %v3912_v44 = vadd.f32 %v12186_v40, %v3895_v43 }
0x1ce0   :  { %v3919_v45 = vadd.f32 %v3913_v42, %v14754_v14 }
0x1ce1   :  { %v3918_v46 = vadd.f32 %v3912_v44, %v14751_v11  ;;  %v3963_v11 = vld [vmem:[#allocation11 + $0x20] sm:$0xff] }
0x1ce2   :  { %v3923_v47 = vsel %vm152_vm0, %v3919_v45, 0.0  ;;  %v13671_v58 = vpack.c.bf16 %v3964_v57, %v3963_v11 }
0x1ce3   :  { %3924 = vadd.xlane.f32.xlu0 %v3923_v47  ;;  %v3920_v49 = vsel %vm152_vm0, %v3918_v46, 0.0 }
0x1ce4   :  { %3921 = vadd.xlane.f32.xlu1 %v3920_v49  ;;  %13672 = vmatprep.subr.bf16.mxu1 %v13671_v58 }
0x1ce5   :  { %13674 = vmatpush3.bf16.msra.mxu1 %v13671_v58 }
0x1ce6   :  { %13676 = vmatprep.subr.bf16.mxu1 %v13675_v51 }
0x1ce9   :  { %13678 = vmatpush3.bf16.msra.mxu1 %v13675_v51 }
0x1cea   :  { %13696 = vmatprep.subr.bf16.mxu1 %v13695_v62 }
0x1d70   :  { %v3925_v50 = vpop.xlane.xlu0 %3924 }
0x1d71   :  { %v3927_v48 = vmul.f32 0.03125, %v3925_v50  ;;  %v3922_v52 = vpop.xlane.xlu1 %3921 }
0x1d72   :  { %v3926_v53 = vmul.f32 0.03125, %v3922_v52 }
0x1d73   :  { %v3929_v54 = vsub.f32 %v3919_v45, %v3927_v48  ;;  %v12216_v45 = vld [vmem:[%s16006_s5 + $0x2] ss:$0 sm:$0xff] }
0x1d74   :  { %v3928_v55 = vsub.f32 %v3918_v46, %v3926_v53  ;;  %v15044_v53 = vld [vmem:[%s16014_s13 + $0x1] ss:$0 sm:$0xff] }
0x1d75   :  { %v3931_v7 = vmul.f32 %v3929_v54, %v3929_v54 }
0x1d76   :  { %v3930_v5 = vmul.f32 %v3928_v55, %v3928_v55 }
0x1d77   :  { %v3935_v56 = vsel %vm152_vm0, %v3931_v7, 0.0 }
0x1d78   :  { %3936 = vadd.xlane.f32.xlu1 %v3935_v56  ;;  %v3932_v14 = vsel %vm152_vm0, %v3930_v5, 0.0 }
0x1d79   :  { %3933 = vadd.xlane.f32.xlu0 %v3932_v14  ;;  %v15051_v14 = vld [vmem:[#allocation8 + $0x8] sm:$0xff] }
0x1e05   :  { %v3937_v10 = vpop.xlane.xlu1 %3936 }
0x1e06   :  { %v3939_v15 = vmul.f32 0.03125, %v3937_v10  ;;  %v3934_v16 = vpop.xlane.xlu0 %3933 }
0x1e07   :  { %v3938_v19 = vmul.f32 0.03125, %v3934_v16 }
0x1e08   :  { %v3941_v22 = vadd.f32 1e-05, %v3939_v15 }
0x1e09   :  { %v3940_v23 = vadd.f32 1e-05, %v3938_v19 }
0x1e0a   :  { %13943 = vrsqrt.f32 %v3941_v22 }
0x1e0b   :  { %13945 = vrsqrt.f32 %v3940_v23 }
0x1e14   :  { %v13944_v24 = vpop.eup %13943 }
0x1e15   :  { %v13946_v26 = vpop.eup %13945  ;;  %v3945_v27 = vmul.f32 %v13944_v24, %v3929_v54 }
0x1e16   :  { %v3944_v28 = vmul.f32 %v13946_v26, %v3928_v55 }
0x1e17   :  { %v3953_v30 = vmul.f32 %v14968_v25, %v3945_v27 }
0x1e18   :  { %v3952_v12 = vmul.f32 %v14968_v25, %v3944_v28 }
0x1e19   :  { %v14987_v20 = vadd.f32 %v14973_v29, %v3953_v30 }
0x1e1a   :  { %v14984_v33 = vadd.f32 %v14973_v29, %v3952_v12 }
0x1e1c   :  { %13083 = vmatprep.mubr.msk.f32.mxu1 %vm152_vm0, %v14984_v33 }
0x1e1d   :  { %13084 = vmatmul.mubr.msk.f32.vlgmr.msra.gmra.mrb[46].mxu1 %vm152_vm0, %v14987_v20 }
0x1e1e   :  { %13698 = vmatpush3.bf16.msra.mxu1 %v13695_v62  ;;  %13113 = vmatprep.mubr.msk.f32.mxu1 %vm152_vm0, %v14989_v35 }
0x1e1f   :  { %13700 = vmatprep.subr.bf16.mxu1 %v13699_v34 }
0x1e22   :  { %13702 = vmatpush3.bf16.msra.mxu1 %v13699_v34 }
0x1e23   :  { %13116 = vmatprep.subr.mxu1 %v14285_v8 }
0x1e25   :  { %13114 = vmatmul.mubr.msk.f32.vlgmr.msra.gmra.mrb[48].mxu1 %vm152_vm0, %v14997_v36 }
0x1e26   :  { %13118 = vmatprep.mubr.msk.f32.mxu1 %vm14286_vm1, %v14285_v8 }
0x1ef0   :  { %v13085_v18 = vpop.f32.mrb[46].mxu1 }
0x1ef1   :  { %v4064_v40 = vadd.f32 %v13085_v18, %v12201_v39  ;;  %v4058_v41 = vpop.f32.mrb[47].mxu1 }
0x1ef2   :  { %v4059_v42 = vadd.f32 %v12201_v39, %v4058_v41 }
0x1ef3   :  { %v4068_v44 = vmax.f32 %v4064_v40, 0.0 }
0x1ef4   :  { %v4067_v43 = vmax.f32 %v4059_v42, 0.0 }
0x1ef6   :  { %13102 = vmatprep.mubr.msk.f32.mxu0 %vm2045_vm3, %v4067_v43 }
0x1ef7   :  { %13103 = vmatmul.mubr.msk.f32.vlgmr.msra.gmra.mrb[30].mxu0 %vm2045_vm3, %v4068_v44 }
0x1ef8   :  { %v13115_v46 = vpop.f32.mrb[48].mxu1  ;;  %13128 = vmatprep.mubr.msk.f32.mxu0 %vm14286_vm1, %v14285_v8 }
0x1ef9   :  { %v15021_v47 = vadd.f32 %v13115_v46, %v12216_v45  ;;  %v4282_v49 = vpop.f32.mrb[49].mxu1 }
0x1efa   :  { %v15023_v50 = vadd.f32 %v12216_v45, %v4282_v49 }
0x1efb   :  { %4369 = vrot.lane.b32.xlu1 %v15021_v47, %s14287_s0 }
0x1efc   :  { %4292 = vrot.lane.b32.xlu0 %v15023_v50, %s14287_s0 }
0x1f6d   :  { %v4370_v52 = vpop.permute.xlu1 %4369 }
0x1f6e   :  { %v4293_v48 = vpop.permute.xlu0 %4292 }
0x1f6f   :  { %13117 = vmatpush3.xpose.msk.msra.mxu1 %vm237_vm2, %v4293_v48 }
0x1f70   :  { %13121 = vmatprep.subr.mxu1 %v14285_v8 }
0x1f72   :  { %13119 = vmatmul.mubr.msk.f32.vlgmr.msra.gmra.mrb[50].mxu1 %vm237_vm2, %v15023_v50 }
0x1f73   :  { %13122 = vmatpush3.xpose.msk.msra.mxu1 %vm237_vm2, %v4370_v52  ;;  %13123 = vmatprep.mubr.msk.f32.mxu1 %vm14286_vm1, %v14285_v8 }
0x1f74   :  { %13131 = vmatprep.subr.mxu1 %v14285_v8 }
0x1f76   :  { %13124 = vmatmul.mubr.msk.f32.vlgmr.msra.gmra.mrb[52].mxu1 %vm237_vm2, %v15021_v47 }
0x1f77   :  { %13133 = vmatprep.mubr.msk.f32.mxu1 %vm14286_vm1, %v14285_v8 }
0x1fca   :  { %v15046_v54 = vpop.f32.mrb[30].mxu0 }
0x1fcb   :  { %v4147_v55 = vpop.f32.mrb[31].mxu0 }
0x1fcc   :  { %v15049_v7 = vadd.f32 %v15044_v53, %v4147_v55 }
0x2045   :  { %v4364_v5 = vpop.f32.mrb[50].mxu1 }
0x2046   :  { %v13120_v56 = vpop.f32.mrb[51].mxu1  ;;  %v4365_v0 = vadd.f32 %v4364_v5, %v15062_v63 }
0x2048   :  { %v4445_v1 = vsel %vm237_vm2, %v4365_v0, -inf }
0x2049   :  { %v4441_v11 = vpop.f32.mrb[52].mxu1 }
0x204a   :  { %v4442_v57 = vadd.f32 %v4441_v11, %v15051_v14  ;;  %v13125_v58 = vpop.f32.mrb[53].mxu1 }
0x204c   :  { %v4448_v21 = vsel %vm237_vm2, %v4442_v57, -inf }
0x204d   :  { %4449 = vmax.xlane.f32.xlu1 %v4448_v21 }
0x205e   :  { %4699 = vrot.lane.b32.xlu1 %v15021_v47, %s14290_s21 }
0x2062   :  { %4697 = vrot.lane.b32.xlu1 %v15021_v47, %s14289_s19 }
0x20da   :  { %v4450_v59 = vpop.xlane.xlu1 %4449 }
0x20db   :  { %v4452_v51 = vsub.f32 %v4442_v57, %v4450_v59 }
0x20dd   :  { %v4455_v60 = vmul.f32 1.442695, %v4452_v51 }
0x20de   :  { %v4700_v4 = vpop.permute.xlu1 %4699 }
0x20df   :  { %13947 = vpow2.f32 %v4455_v60 }
0x20e2   :  { %v4698_v9 = vpop.permute.xlu1 %4697 }
0x20e9   :  { %v13948_v61 = vpop.eup %13947 }
0x20ea   :  { %v4460_v62 = vsel %vm237_vm2, %v13948_v61, 0.0 }
0x20eb   :  { %4461 = vadd.xlane.f32.xlu0 %v4460_v62 }
0x2101   :  { %4543 = vrot.lane.b32.xlu0 %v15021_v47, %s14288_s24 }
0x2120   :  { %4446 = vmax.xlane.f32.xlu0 %v4445_v1 }
0x2136   :  { %4467 = vrot.lane.b32.xlu0 %v15023_v50, %s14288_s24 }
0x213a   :  { %4619 = vrot.lane.b32.xlu0 %v15023_v50, %s14289_s19 }
0x2178   :  { %v4462_v17 = vpop.xlane.xlu0 %4461 }
0x2179   :  { %13949 = vrcp.f32 %v4462_v17 }
0x217c   :  { %v4544_v2 = vpop.permute.xlu0 %4543 }
0x217d   :  { %13132 = vmatpush3.msra.mxu1 %v4544_v2 }
0x217e   :  { %13141 = vmatprep.subr.mxu1 %v14285_v8 }
0x2183   :  { %v13950_v3 = vpop.eup %13949 }
0x2184   :  { %v4466_v6 = vmul.f32 %v13950_v3, %v13948_v61 }
0x2186   :  { %13134 = vmatmul.mubr.msk.f32.vlgmr.msra.gmra.mrb[54].mxu1 %vm237_vm2, %v4466_v6 }
0x2187   :  { %13142 = vmatpush3.xpose.msk.msra.mxu1 %vm237_vm2, %v4700_v4  ;;  %13143 = vmatprep.mubr.msk.f32.mxu1 %vm14286_vm1, %v14285_v8 }
0x2188   :  { %13151 = vmatprep.subr.mxu1 %v14285_v8 }
0x218a   :  { %13144 = vmatmul.mubr.msk.f32.vlgmr.msra.gmra.mrb[56].mxu1 %vm237_vm2, %v4698_v9 }
0x218b   :  { %13153 = vmatprep.mubr.msk.f32.mxu1 %vm14286_vm1, %v14285_v8 }
0x21ad   :  { %v4447_v10 = vpop.xlane.xlu0 %4446 }
0x21ae   :  { %v4451_v15 = vsub.f32 %v4365_v0, %v4447_v10 }
0x21b0   :  { %v4453_v16 = vmul.f32 1.442695, %v4451_v15 }
0x21b1   :  { %v4468_v19 = vpop.permute.xlu0 %4467 }
0x21b2   :  { %13951 = vpow2.f32 %v4453_v16  ;;  %13127 = vmatpush3.msra.mxu0 %v4468_v19 }
0x21b3   :  { %13136 = vmatprep.subr.mxu0 %v14285_v8 }
0x21b5   :  { %v4620_v31 = vpop.permute.xlu0 %4619 }
0x21bc   :  { %v13952_v22 = vpop.eup %13951 }
0x21bd   :  { %v4457_v23 = vsel %vm237_vm2, %v13952_v22, 0.0 }
0x21be   :  { %4458 = vadd.xlane.f32.xlu1 %v4457_v23  ;;  %v12213_v23 = vld [vmem:[%s16007_s6 + $0x48] sm:$0xff] }
0x21cf   :  { %4621 = vrot.lane.b32.xlu1 %v15023_v50, %s14290_s21 }
0x224b   :  { %v4459_v24 = vpop.xlane.xlu1 %4458 }
0x224c   :  { %13953 = vrcp.f32 %v4459_v24  ;;  %v12212_v24 = vld [vmem:[%s16007_s6 + $0x40] sm:$0xff] }
0x224f   :  { %v4622_v28 = vpop.permute.xlu1 %4621 }
0x2256   :  { %v13954_v26 = vpop.eup %13953 }
0x2257   :  { %v4465_v27 = vmul.f32 %v13954_v26, %v13952_v22 }
0x2259   :  { %13129 = vmatmul.mubr.msk.f32.vlgmr.msra.gmra.mrb[32].mxu0 %vm237_vm2, %v4465_v27  ;;  %v15084_v30 = vpop.f32.mrb[54].mxu1 }
0x225a   :  { %13137 = vmatpush3.xpose.msk.msra.mxu0 %vm237_vm2, %v4622_v28  ;;  %v13135_v12 = vpop.f32.mrb[55].mxu1  ;;  %13138 = vmatprep.mubr.msk.f32.mxu0 %vm14286_vm1, %v14285_v8 }
0x225b   :  { %13146 = vmatprep.subr.mxu0 %v14285_v8 }
0x225d   :  { %13139 = vmatmul.mubr.msk.f32.vlgmr.msra.gmra.mrb[34].mxu0 %vm237_vm2, %v4620_v31  ;;  %v4771_v32 = vpop.f32.mrb[56].mxu1 }
0x225e   :  { %v4772_v34 = vadd.f32 %v4771_v32, %v15051_v14  ;;  %v13145_v37 = vpop.f32.mrb[57].mxu1  ;;  %13148 = vmatprep.mubr.msk.f32.mxu0 %vm14286_vm1, %v14285_v8 }
0x2260   :  { %v4778_v13 = vsel %vm237_vm2, %v4772_v34, -inf }
0x2261   :  { %4779 = vmax.xlane.f32.xlu1 %v4778_v13 }
0x2272   :  { %5113 = vrot.lane.b32.xlu1 %v15023_v50, %s14291_s3 }
0x2276   :  { %5111 = vrot.lane.b32.xlu1 %v15023_v50, %s14293_s22 }
0x227a   :  { %5189 = vrot.lane.b32.xlu1 %v15021_v47, %s14293_s22 }
0x22ee   :  { %v4780_v38 = vpop.xlane.xlu1 %4779 }
0x22ef   :  { %v4782_v39 = vsub.f32 %v4772_v34, %v4780_v38 }
0x22f1   :  { %v4785_v18 = vmul.f32 1.442695, %v4782_v39 }
0x22f2   :  { %v5114_v55 = vpop.permute.xlu1 %5113 }
0x22f3   :  { %13955 = vpow2.f32 %v4785_v18 }
0x22f6   :  { %v5112_v11 = vpop.permute.xlu1 %5111 }
0x22fa   :  { %v5190_v58 = vpop.permute.xlu1 %5189 }
0x22fd   :  { %v13956_v40 = vpop.eup %13955 }
0x22fe   :  { %v4790_v41 = vsel %vm237_vm2, %v13956_v40, 0.0 }
0x22ff   :  { %4791 = vadd.xlane.f32.xlu0 %v4790_v41 }
0x2315   :  { %4873 = vrot.lane.b32.xlu0 %v15021_v47, %s14292_s16 }
0x2319   :  { %5191 = vrot.lane.b32.xlu0 %v15021_v47, %s14291_s3 }
0x232c   :  { %v15106_v42 = vpop.f32.mrb[32].mxu0 }
0x232d   :  { %v13130_v43 = vpop.f32.mrb[33].mxu0 }
0x2330   :  { %v4693_v44 = vpop.f32.mrb[34].mxu0 }
0x2331   :  { %v13140_v45 = vpop.f32.mrb[35].mxu0  ;;  %v4694_v46 = vadd.f32 %v4693_v44, %v15062_v63 }
0x2333   :  { %v4775_v49 = vsel %vm237_vm2, %v4694_v46, -inf }
0x2338   :  { %4776 = vmax.xlane.f32.xlu0 %v4775_v49 }
0x234e   :  { %4797 = vrot.lane.b32.xlu0 %v15023_v50, %s14292_s16 }
0x2352   :  { %5289 = vrot.lane.b32.xlu0 %v15023_v50, %s14294_s1 }
0x2356   :  { %5526 = vrot.lane.b32.xlu0 %v15023_v50, %s14295_s7 }
0x235a   :  { %5604 = vrot.lane.b32.xlu0 %v15021_v47, %s14295_s7 }
0x235e   :  { %5524 = vrot.lane.b32.xlu0 %v15023_v50, %s14296_s20 }
0x2362   :  { %5602 = vrot.lane.b32.xlu0 %v15021_v47, %s14296_s20 }
0x238c   :  { %v4792_v48 = vpop.xlane.xlu0 %4791 }
0x238d   :  { %13957 = vrcp.f32 %v4792_v48 }
0x2390   :  { %v4874_v52 = vpop.permute.xlu0 %4873 }
0x2391   :  { %13152 = vmatpush3.msra.mxu1 %v4874_v52 }
0x2392   :  { %13166 = vmatprep.subr.mxu1 %v14285_v8 }
0x2394   :  { %v5192_v57 = vpop.permute.xlu0 %5191 }
0x2397   :  { %v13958_v5 = vpop.eup %13957 }
0x2398   :  { %v4796_v56 = vmul.f32 %v13958_v5, %v13956_v40  ;;  %v12214_v40 = vld [vmem:[%s16007_s6 + $0x50] sm:$0xff] }
0x239a   :  { %13154 = vmatmul.mubr.msk.f32.vlgmr.msra.gmra.mrb[58].mxu1 %vm237_vm2, %v4796_v56 }
0x239b   :  { %13167 = vmatpush3.xpose.msk.msra.mxu1 %vm237_vm2, %v5114_v55  ;;  %13168 = vmatprep.mubr.msk.f32.mxu1 %vm14286_vm1, %v14285_v8 }
0x239c   :  { %13171 = vmatprep.subr.mxu1 %v14285_v8 }
0x239e   :  { %13169 = vmatmul.mubr.msk.f32.vlgmr.msra.gmra.mrb[60].mxu1 %vm237_vm2, %v5112_v11 }
0x239f   :  { %13172 = vmatpush3.xpose.msk.msra.mxu1 %vm237_vm2, %v5192_v57  ;;  %13173 = vmatprep.mubr.msk.f32.mxu1 %vm14286_vm1, %v14285_v8 }
0x23a0   :  { %13181 = vmatprep.subr.mxu1 %v14285_v8 }
0x23a2   :  { %13174 = vmatmul.mubr.msk.f32.vlgmr.msra.gmra.mrb[62].mxu1 %vm237_vm2, %v5190_v58 }
0x23a3   :  { %13183 = vmatprep.mubr.msk.f32.mxu1 %vm14286_vm1, %v14285_v8 }
0x23c5   :  { %v4777_v21 = vpop.xlane.xlu0 %4776 }
0x23c6   :  { %v4781_v59 = vsub.f32 %v4694_v46, %v4777_v21 }
0x23c8   :  { %v4783_v51 = vmul.f32 1.442695, %v4781_v59 }
0x23c9   :  { %v4798_v60 = vpop.permute.xlu0 %4797 }
0x23ca   :  { %13959 = vpow2.f32 %v4783_v51  ;;  %13147 = vmatpush3.msra.mxu0 %v4798_v60 }
0x23cb   :  { %13156 = vmatprep.subr.mxu0 %v12213_v23 }
0x23cd   :  { %v5290_v41 = vpop.permute.xlu0 %5289 }
0x23d1   :  { %v5527_v45 = vpop.permute.xlu0 %5526 }
0x23d4   :  { %v13960_v61 = vpop.eup %13959 }
0x23d5   :  { %v4787_v62 = vsel %vm237_vm2, %v13960_v61, 0.0 }
0x23d6   :  { %4788 = vadd.xlane.f32.xlu1 %v4787_v62 }
0x2463   :  { %v4789_v0 = vpop.xlane.xlu1 %4788 }
0x2464   :  { %13961 = vrcp.f32 %v4789_v0 }
0x246d   :  { %v4945_v1 = vpop.f32.mrb[58].mxu1 }
0x246e   :  { %v13962_v17 = vpop.eup %13961  ;;  %v13155_v2 = vpop.f32.mrb[59].mxu1 }
0x246f   :  { %v4795_v3 = vmul.f32 %v13962_v17, %v13960_v61 }
0x2471   :  { %13149 = vmatmul.mubr.msk.f32.vlgmr.msra.gmra.mrb[36].mxu0 %vm237_vm2, %v4795_v3  ;;  %v5185_v4 = vpop.f32.mrb[60].mxu1 }
0x2472   :  { %v5186_v6 = vadd.f32 %v5185_v4, %v15062_v63  ;;  %v13170_v9 = vpop.f32.mrb[61].mxu1  ;;  %13157 = vmatpush3.msra.mxu0 %v12213_v23 }
0x2473   :  { %13161 = vmatprep.subr.mxu0 %v12212_v24 }
0x2474   :  { %v5267_v10 = vsel %vm237_vm2, %v5186_v6, -inf }
0x2475   :  { %v5263_v15 = vpop.f32.mrb[62].mxu1  ;;  %5268 = vmax.xlane.f32.xlu1 %v5267_v10 }
0x2476   :  { %v5264_v16 = vadd.f32 %v5263_v15, %v15051_v14  ;;  %v13175_v19 = vpop.f32.mrb[63].mxu1 }
0x2478   :  { %v5270_v22 = vsel %vm237_vm2, %v5264_v16, -inf }
0x2479   :  { %5271 = vmax.xlane.f32.xlu1 %v5270_v22 }
0x2502   :  { %v5269_v26 = vpop.xlane.xlu1 %5268 }
0x2503   :  { %v5273_v27 = vsub.f32 %v5186_v6, %v5269_v26  ;;  %v4153_v6 = vadd.f32 %v15046_v54, %v15044_v53 }
0x2505   :  { %v5275_v28 = vmul.f32 1.442695, %v5273_v27  ;;  %v4157_v9 = vadd.f32 %v4153_v6, %v14987_v20  ;;  %v4156_v20 = vadd.f32 %v15049_v7, %v14984_v33  ;;  %v12215_v27 = vld [vmem:[%s16007_s6 + $0x58] sm:$0xff]  ;;  %v12256_v6 = vld [vmem:[%s16005_s4 + $0x80] sm:$0xff] }
0x2506   :  { %v5272_v12 = vpop.xlane.xlu1 %5271 }
0x2507   :  { %13963 = vpow2.f32 %v5275_v28  ;;  %v5274_v31 = vsub.f32 %v5264_v16, %v5272_v12  ;;  %v4161_v10 = vsel %vm152_vm0, %v4157_v9, 0.0  ;;  %v4158_v53 = vsel %vm152_vm0, %v4156_v20, 0.0 }
0x2509   :  { %v5277_v32 = vmul.f32 1.442695, %v5274_v31 }
0x250b   :  { %13965 = vpow2.f32 %v5277_v32 }
0x2511   :  { %v13964_v34 = vpop.eup %13963 }
0x2512   :  { %v5279_v37 = vsel %vm237_vm2, %v13964_v34, 0.0 }
0x2513   :  { %5280 = vadd.xlane.f32.xlu1 %v5279_v37 }
0x2515   :  { %v13966_v13 = vpop.eup %13965 }
0x2516   :  { %v5282_v38 = vsel %vm237_vm2, %v13966_v13, 0.0 }
0x2517   :  { %5283 = vadd.xlane.f32.xlu1 %v5282_v38 }
0x2528   :  { %5365 = vrot.lane.b32.xlu1 %v15021_v47, %s14294_s1 }
0x2544   :  { %v4869_v39 = vpop.f32.mrb[36].mxu0 }
0x2545   :  { %v13150_v18 = vpop.f32.mrb[37].mxu0  ;;  %13158 = vmatprep.mubr.msk.f32.mxu0 %vm237_vm2, %v4869_v39  ;;  %v12251_v39 = vld [vmem:[#allocation10 + $0x2] ss:$0 sm:$0xff] }
0x2546   :  { %13159 = vmatmul.mubr.msk.f32.vlgmr.msra.gmra.mrb[38].mxu0 %vm237_vm2, %v4945_v1 }
0x2547   :  { %13163 = vmatprep.mubr.msk.f32.mxu0 %vm237_vm2, %v15106_v42  ;;  %13162 = vmatpush3.msra.mxu0 %v12212_v24 }
0x2548   :  { %13176 = vmatprep.subr.mxu0 %v14285_v8 }
0x254e   :  { %13164 = vmatmul.mubr.msk.f32.vlgmr.msra.gmra.mrb[38].mxu0 %vm237_vm2, %v15084_v30  ;;  %v5605_v30 = vpop.permute.xlu0 %5604 }
0x254f   :  { %13177 = vmatpush3.msra.mxu0 %v5290_v41  ;;  %13178 = vmatprep.mubr.msk.f32.mxu0 %vm14286_vm1, %v14285_v8 }
0x2550   :  { %13186 = vmatprep.subr.mxu0 %v12214_v40 }
0x2552   :  { %v5525_v55 = vpop.permute.xlu0 %5524 }
0x2556   :  { %v5603_v58 = vpop.permute.xlu0 %5602 }
0x25a0   :  { %v5281_v43 = vpop.xlane.xlu1 %5280 }
0x25a1   :  { %13967 = vrcp.f32 %v5281_v43 }
0x25a4   :  { %v5284_v44 = vpop.xlane.xlu1 %5283 }
0x25a5   :  { %13969 = vrcp.f32 %v5284_v44 }
0x25a8   :  { %v5366_v42 = vpop.permute.xlu1 %5365 }
0x25a9   :  { %13182 = vmatpush3.msra.mxu1 %v5366_v42 }
0x25aa   :  { %13191 = vmatprep.subr.mxu1 %v14285_v8 }
0x25ab   :  { %v13968_v46 = vpop.eup %13967 }
0x25ac   :  { %v5287_v49 = vmul.f32 %v13968_v46, %v13964_v34 }
0x25ae   :  { %13179 = vmatmul.mubr.msk.f32.vlgmr.msra.gmra.mrb[40].mxu0 %vm237_vm2, %v5287_v49 }
0x25af   :  { %v13970_v48 = vpop.eup %13969  ;;  %13187 = vmatpush3.msra.mxu0 %v12214_v40 }
0x25b0   :  { %v5288_v52 = vmul.f32 %v13970_v48, %v13966_v13  ;;  %13196 = vmatprep.subr.mxu0 %v14285_v8 }
0x25b2   :  { %13184 = vmatmul.mubr.msk.f32.vlgmr.msra.gmra.mrb[64].mxu1 %vm237_vm2, %v5288_v52 }
0x25b3   :  { %13192 = vmatpush3.xpose.msk.msra.mxu1 %vm237_vm2, %v5527_v45  ;;  %13193 = vmatprep.mubr.msk.f32.mxu1 %vm14286_vm1, %v14285_v8 }
0x25b4   :  { %13201 = vmatprep.subr.mxu1 %v14285_v8 }
0x25b6   :  { %13194 = vmatmul.mubr.msk.f32.vlgmr.msra.gmra.mrb[66].mxu1 %vm237_vm2, %v5525_v55 }
0x25b7   :  { %13203 = vmatprep.mubr.msk.f32.mxu1 %vm14286_vm1, %v14285_v8 }
0x2681   :  { %v5361_v5 = vpop.f32.mrb[40].mxu0 }
0x2682   :  { %v13180_v56 = vpop.f32.mrb[41].mxu0  ;;  %13188 = vmatprep.mubr.msk.f32.mxu0 %vm237_vm2, %v5361_v5 }
0x2685   :  { %v5437_v11 = vpop.f32.mrb[64].mxu1 }
0x2686   :  { %v13185_v57 = vpop.f32.mrb[65].mxu1  ;;  %13189 = vmatmul.mubr.msk.f32.vlgmr.msra.gmra.mrb[38].mxu0 %vm237_vm2, %v5437_v11 }
0x2687   :  { %13197 = vmatpush3.xpose.msk.msra.mxu0 %vm237_vm2, %v5605_v30  ;;  %13198 = vmatprep.mubr.msk.f32.mxu0 %vm14286_vm1, %v14285_v8 }
0x2688   :  { %13206 = vmatprep.subr.mxu0 %v14285_v8 }
0x2689   :  { %v5598_v21 = vpop.f32.mrb[66].mxu1 }
0x268a   :  { %v5599_v59 = vadd.f32 %v5598_v21, %v15062_v63  ;;  %v13195_v51 = vpop.f32.mrb[67].mxu1  ;;  %13199 = vmatmul.mubr.msk.f32.vlgmr.msra.gmra.mrb[42].mxu0 %vm237_vm2, %v5603_v58 }
0x268b   :  { %13208 = vmatprep.mubr.msk.f32.mxu0 %vm14286_vm1, %v14285_v8 }
0x268c   :  { %v5680_v60 = vsel %vm237_vm2, %v5599_v59, -inf }
0x268d   :  { %5681 = vmax.xlane.f32.xlu1 %v5680_v60 }
0x271a   :  { %v5682_v61 = vpop.xlane.xlu1 %5681 }
0x271b   :  { %v5686_v62 = vsub.f32 %v5599_v59, %v5682_v61 }
0x271d   :  { %v5688_v0 = vmul.f32 1.442695, %v5686_v62 }
0x271f   :  { %13971 = vpow2.f32 %v5688_v0 }
0x2729   :  { %v13972_v63 = vpop.eup %13971 }
0x272a   :  { %v5692_v4 = vsel %vm237_vm2, %v13972_v63, 0.0 }
0x275d   :  { %v5676_v1 = vpop.f32.mrb[42].mxu0 }
0x275e   :  { %v5677_v17 = vadd.f32 %v5676_v1, %v15051_v14  ;;  %v13200_v2 = vpop.f32.mrb[43].mxu0  ;;  %v12258_v1 = vld [vmem:[%s16005_s4 + $0x90] sm:$0xff] }
0x2760   :  { %v5683_v3 = vsel %vm237_vm2, %v5677_v17, -inf }
0x2761   :  { %5684 = vmax.xlane.f32.xlu0 %v5683_v3 }
0x2765   :  { %5693 = vadd.xlane.f32.xlu0 %v5692_v4 }
0x277b   :  { %5702 = vrot.lane.b32.xlu0 %v15023_v50, %s14297_s10 }
0x279a   :  { %4162 = vadd.xlane.f32.xlu0 %v4161_v10 }
0x27ee   :  { %v5685_v14 = vpop.xlane.xlu0 %5684 }
0x27ef   :  { %v5687_v15 = vsub.f32 %v5677_v17, %v5685_v14  ;;  %v12259_v17 = vld [vmem:[%s16005_s4 + $0x98] sm:$0xff] }
0x27f1   :  { %v5690_v16 = vmul.f32 1.442695, %v5687_v15 }
0x27f2   :  { %v5694_v19 = vpop.xlane.xlu0 %5693 }
0x27f3   :  { %13973 = vpow2.f32 %v5690_v16  ;;  %v13707_v16 = vpack.c.bf16 %v12259_v17, %v12258_v1 }
0x27f4   :  { %13975 = vrcp.f32 %v5694_v19  ;;  %v12265_v19 = vld [vmem:[%s16006_s5 + $0x4] ss:$0 sm:$0xff] }
0x27f6   :  { %v5703_v22 = vpop.permute.xlu0 %5702 }
0x27f7   :  { %13202 = vmatpush3.msra.mxu1 %v5703_v22 }
0x27fd   :  { %v13974_v23 = vpop.eup %13973 }
0x27fe   :  { %v13976_v24 = vpop.eup %13975  ;;  %v5695_v50 = vsel %vm237_vm2, %v13974_v23, 0.0 }
0x27ff   :  { %5696 = vadd.xlane.f32.xlu1 %v5695_v50  ;;  %v5700_v26 = vmul.f32 %v13976_v24, %v13972_v63  ;;  %v13856_v63 = vpack.i.bf16 %v12259_v17, %v12258_v1 }
0x2801   :  { %13204 = vmatmul.mubr.msk.f32.vlgmr.msra.gmra.mrb[68].mxu1 %vm237_vm2, %v5700_v26 }
0x2810   :  { %5778 = vrot.lane.b32.xlu1 %v15021_v47, %s14297_s10 }
0x2827   :  { %v4163_v34 = vpop.xlane.xlu0 %4162 }
0x2828   :  { %v4165_v13 = vmul.f32 0.03125, %v4163_v34 }
0x282a   :  { %v15208_v40 = vsub.f32 %v4157_v9, %v4165_v13  ;;  %v12257_v9 = vld [vmem:[%s16005_s4 + $0x88] sm:$0xff] }
0x282b   :  { %v13851_v14 = vpack.i.bf16 %v12257_v9, %v12256_v6  ;;  %v13703_v15 = vpack.c.bf16 %v12257_v9, %v12256_v6 }
0x282c   :  { %v4169_v48 = vmul.f32 %v15208_v40, %v15208_v40 }
0x282d   :  { %13704 = vmatprep.subr.bf16.mxu1 %v13703_v15 }
0x282e   :  { %v4173_v55 = vsel %vm152_vm0, %v4169_v48, 0.0  ;;  %13706 = vmatpush3.bf16.msra.mxu1 %v13703_v15 }
0x282f   :  { %13708 = vmatprep.subr.bf16.mxu1 %v13707_v16 }
0x2832   :  { %13710 = vmatpush3.bf16.msra.mxu1 %v13707_v16 }
0x2833   :  { %13238 = vmatprep.subr.mxu1 %v14285_v8 }
0x2834   :  { %4159 = vadd.xlane.f32.xlu1 %v4158_v53 }
0x288c   :  { %v5697_v54 = vpop.xlane.xlu1 %5696 }
0x288d   :  { %13977 = vrcp.f32 %v5697_v54 }
0x2890   :  { %v5779_v28 = vpop.permute.xlu1 %5778 }
0x2891   :  { %13207 = vmatpush3.msra.mxu0 %v5779_v28 }
0x2892   :  { %13211 = vmatprep.subr.mxu0 %v12215_v27 }
0x2897   :  { %v13978_v12 = vpop.eup %13977 }
0x2898   :  { %v5701_v31 = vmul.f32 %v13978_v12, %v13974_v23 }
0x289a   :  { %13209 = vmatmul.mubr.msk.f32.vlgmr.msra.gmra.mrb[44].mxu0 %vm237_vm2, %v5701_v31 }
0x289b   :  { %13212 = vmatpush3.msra.mxu0 %v12215_v27 }
0x28c1   :  { %v4160_v37 = vpop.xlane.xlu1 %4159 }
0x28c2   :  { %v4164_v38 = vmul.f32 0.03125, %v4160_v37 }
0x28c4   :  { %v4166_v44 = vsub.f32 %v4156_v20, %v4164_v38 }
0x28c6   :  { %v4168_v52 = vmul.f32 %v4166_v44, %v4166_v44 }
0x28c8   :  { %v4170_v5 = vsel %vm152_vm0, %v4168_v52, 0.0 }
0x28d4   :  { %v5774_v47 = vpop.f32.mrb[68].mxu1 }
0x28d5   :  { %v13205_v32 = vpop.f32.mrb[69].mxu1  ;;  %13213 = vmatprep.mubr.msk.f32.mxu0 %vm237_vm2, %v5774_v47 }
0x296d   :  { %v5850_v33 = vpop.f32.mrb[44].mxu0 }
0x296e   :  { %v13210_v7 = vpop.f32.mrb[45].mxu0  ;;  %13214 = vmatmul.mubr.msk.f32.vlgmr.msra.gmra.mrb[38].mxu0 %vm237_vm2, %v5850_v33 }
0x2a41   :  { %v13215_v18 = vpop.f32.mrb[38].mxu0 }
0x2a42   :  { %v5944_v41 = vadd.f32 %v13215_v18, %v12251_v39  ;;  %v5926_v43 = vpop.f32.mrb[39].mxu0  ;;  %v12254_v18 = vld [vmem:[%s16009_s8 + $0x2] ss:$0 sm:$0xff] }
0x2a43   :  { %v5943_v42 = vadd.f32 %v12251_v39, %v5926_v43 }
0x2a44   :  { %v5950_v45 = vadd.f32 %v5944_v41, %v14997_v36 }
0x2a45   :  { %v5949_v46 = vadd.f32 %v5943_v42, %v14989_v35 }
0x2a46   :  { %v5954_v49 = vsel %vm152_vm0, %v5950_v45, 0.0 }
0x2a47   :  { %5955 = vadd.xlane.f32.xlu1 %v5954_v49  ;;  %v5951_v30 = vsel %vm152_vm0, %v5949_v46, 0.0 }
0x2a48   :  { %5952 = vadd.xlane.f32.xlu0 %v5951_v30 }
0x2a4b   :  { %4174 = vadd.xlane.f32.xlu1 %v4173_v55 }
0x2a4c   :  { %4171 = vadd.xlane.f32.xlu0 %v4170_v5 }
0x2ad4   :  { %v5956_v56 = vpop.xlane.xlu1 %5955 }
0x2ad5   :  { %v5958_v36 = vmul.f32 0.03125, %v5956_v56  ;;  %v5953_v11 = vpop.xlane.xlu0 %5952 }
0x2ad6   :  { %v5957_v35 = vmul.f32 0.03125, %v5953_v11 }
0x2ad7   :  { %v15218_v57 = vsub.f32 %v5950_v45, %v5958_v36 }
0x2ad8   :  { %v15220_v58 = vsub.f32 %v5949_v46, %v5957_v35  ;;  %v4175_v22 = vpop.xlane.xlu1 %4174 }
0x2ad9   :  { %v4172_v21 = vpop.xlane.xlu0 %4171  ;;  %v5962_v59 = vmul.f32 %v15218_v57, %v15218_v57  ;;  %v4177_v23 = vmul.f32 0.03125, %v4175_v22 }
0x2ada   :  { %v4176_v51 = vmul.f32 0.03125, %v4172_v21  ;;  %v5961_v60 = vmul.f32 %v15220_v58, %v15220_v58  ;;  %v15303_v21 = vld [vmem:[#allocation7 + $0x8] sm:$0xff] }
0x2adb   :  { %v5966_v61 = vsel %vm152_vm0, %v5962_v59, 0.0  ;;  %v4179_v24 = vadd.f32 1e-05, %v4177_v23 }
0x2adc   :  { %v4178_v62 = vadd.f32 1e-05, %v4176_v51  ;;  %5967 = vadd.xlane.f32.xlu1 %v5966_v61  ;;  %v5963_v0 = vsel %vm152_vm0, %v5961_v60, 0.0 }
0x2add   :  { %5964 = vadd.xlane.f32.xlu0 %v5963_v0 }
0x2ade   :  { %13979 = vrsqrt.f32 %v4178_v62 }
0x2adf   :  { %13981 = vrsqrt.f32 %v4179_v24 }
0x2ae8   :  { %v13980_v2 = vpop.eup %13979 }
0x2ae9   :  { %v4182_v3 = vmul.f32 %v13980_v2, %v4166_v44  ;;  %v13982_v12 = vpop.eup %13981 }
0x2aea   :  { %v4183_v34 = vmul.f32 %v13982_v12, %v15208_v40 }
0x2aeb   :  { %v4184_v4 = vmul.f32 %v14968_v25, %v4182_v3  ;;  %v15315_v3 = vld [vmem:[#allocation7] sm:$0xff] }
0x2aec   :  { %v4185_v38 = vmul.f32 %v14968_v25, %v4183_v34  ;;  %v12255_v25 = vld [vmem:[%s16010_s9 + $0x2] ss:$0 sm:$0xff] }
0x2aed   :  { %v15242_v10 = vadd.f32 %v14973_v29, %v4184_v4  ;;  %13857 = vrot.lane.b32.xlu1 %v13856_v63, %s14287_s0 }
0x2aee   :  { %v15259_v43 = vadd.f32 %v14973_v29, %v4185_v38 }
0x2aef   :  { %13235 = vmatprep.mubr.msk.f32.mxu0 %vm152_vm0, %v15242_v10 }
0x2af1   :  { %6110 = vrot.lane.b32.xlu1 %v12265_v19, %s14287_s0 }
0x2af3   :  { %13852 = vrot.lane.b32.xlu0 %v13851_v14, %s14287_s0 }
0x2b69   :  { %v5968_v50 = vpop.xlane.xlu1 %5967 }
0x2b6a   :  { %v5970_v26 = vmul.f32 0.03125, %v5968_v50  ;;  %v5965_v20 = vpop.xlane.xlu0 %5964 }
0x2b6b   :  { %v5969_v53 = vmul.f32 0.03125, %v5965_v20 }
0x2b6c   :  { %v5972_v54 = vadd.f32 1e-05, %v5970_v26 }
0x2b6d   :  { %v5971_v27 = vadd.f32 1e-05, %v5969_v53  ;;  %v13858_v28 = vpop.permute.xlu1 %13857 }
0x2b6e   :  { %13983 = vrsqrt.f32 %v5972_v54  ;;  %v13853_v31 = vpop.permute.xlu0 %13852  ;;  %v13860_v47 = vunpack.i.h.bf16 %v13858_v28  ;;  %v13859_v32 = vunpack.i.l.bf16 %v13858_v28 }
0x2b6f   :  { %13985 = vrsqrt.f32 %v5971_v27  ;;  %v13855_v33 = vunpack.i.h.bf16 %v13853_v31  ;;  %v13854_v7 = vunpack.i.l.bf16 %v13853_v31 }
0x2b70   :  { %v13715_v13 = vpack.c.bf16 %v13860_v47, %v13859_v32 }
0x2b71   :  { %v13711_v37 = vpack.c.bf16 %v13855_v33, %v13854_v7  ;;  %v6111_v49 = vpop.permute.xlu1 %6110 }
0x2b73   :  { %13712 = vmatprep.subr.bf16.mxu0 %v13711_v37 }
0x2b74   :  { %13714 = vmatpush3.bf16.msra.mxu0 %v13711_v37 }
0x2b75   :  { %13716 = vmatprep.subr.bf16.mxu0 %v13715_v13 }
0x2b78   :  { %v13984_v39 = vpop.eup %13983  ;;  %13718 = vmatpush3.bf16.msra.mxu0 %v13715_v13 }
0x2b79   :  { %v13986_v41 = vpop.eup %13985  ;;  %v5976_v44 = vmul.f32 %v13984_v39, %v15218_v57  ;;  %13248 = vmatprep.subr.mxu0 %v14285_v8 }
0x2b7a   :  { %v5975_v40 = vmul.f32 %v13986_v41, %v15220_v58 }
0x2b7b   :  { %13236 = vmatmul.mubr.msk.f32.vlgmr.msra.gmra.mrb[46].mxu0 %vm152_vm0, %v15259_v43  ;;  %v5984_v42 = vmul.f32 %v12254_v18, %v5976_v44 }
0x2b7c   :  { %v5983_v45 = vmul.f32 %v12254_v18, %v5975_v40  ;;  %13250 = vmatprep.mubr.msk.f32.mxu0 %vm14286_vm1, %v14285_v8 }
0x2b7d   :  { %v15273_v46 = vadd.f32 %v12255_v25, %v5984_v42 }
0x2b7e   :  { %v15271_v29 = vadd.f32 %v12255_v25, %v5983_v45 }
0x2b80   :  { %13224 = vmatprep.mubr.msk.f32.mxu1 %vm152_vm0, %v15271_v29 }
0x2b81   :  { %13225 = vmatmul.mubr.msk.f32.vlgmr.msra.gmra.mrb[70].mxu1 %vm152_vm0, %v15273_v46 }
0x2b82   :  { %13240 = vmatprep.mubr.msk.f32.mxu1 %vm14286_vm1, %v14285_v8 }
0x2c4e   :  { %v13237_v48 = vpop.f32.mrb[46].mxu0 }
0x2c4f   :  { %v6185_v30 = vpop.f32.mrb[47].mxu0  ;;  %v15288_v36 = vadd.f32 %v13237_v48, %v6111_v49 }
0x2c50   :  { %v15281_v52 = vadd.f32 %v6185_v30, %v6111_v49 }
0x2c52   :  { %13239 = vmatpush3.xpose.msk.msra.mxu1 %vm237_vm2, %v15281_v52 }
0x2c53   :  { %13243 = vmatprep.subr.mxu1 %v14285_v8 }
0x2c54   :  { %v13226_v55 = vpop.f32.mrb[70].mxu1 }
0x2c55   :  { %v6085_v5 = vpop.f32.mrb[71].mxu1  ;;  %v15296_v11 = vadd.f32 %v13226_v55, %v12265_v19 }
0x2c56   :  { %v15286_v56 = vadd.f32 %v12265_v19, %v6085_v5 }
0x2c58   :  { %13241 = vmatmul.mubr.msk.f32.vlgmr.msra.gmra.mrb[72].mxu1 %vm237_vm2, %v15286_v56 }
0x2c59   :  { %13244 = vmatpush3.xpose.msk.msra.mxu1 %vm237_vm2, %v15288_v36  ;;  %13245 = vmatprep.mubr.msk.f32.mxu1 %vm14286_vm1, %v14285_v8 }
0x2c5a   :  { %13253 = vmatprep.subr.mxu1 %v14285_v8 }
0x2c5c   :  { %13246 = vmatmul.mubr.msk.f32.vlgmr.msra.gmra.mrb[74].mxu1 %vm237_vm2, %v15296_v11 }
0x2c5d   :  { %13255 = vmatprep.mubr.msk.f32.mxu1 %vm14286_vm1, %v14285_v8 }
0x2d2b   :  { %v6266_v35 = vpop.f32.mrb[72].mxu1 }
0x2d2c   :  { %v13242_v57 = vpop.f32.mrb[73].mxu1  ;;  %v6267_v63 = vadd.f32 %v15315_v3, %v6266_v35 }
0x2d2e   :  { %v6346_v4 = vsel %vm237_vm2, %v6267_v63, -inf }
0x2d2f   :  { %v6342_v58 = vpop.f32.mrb[74].mxu1 }
0x2d30   :  { %v6343_v59 = vadd.f32 %v15303_v21, %v6342_v58  ;;  %v13247_v51 = vpop.f32.mrb[75].mxu1 }
0x2d32   :  { %v6349_v60 = vsel %vm237_vm2, %v6343_v59, -inf }
0x2d33   :  { %6350 = vmax.xlane.f32.xlu0 %v6349_v60 }
0x2d49   :  { %6444 = vrot.lane.b32.xlu0 %v15288_v36, %s14287_s0 }
0x2d4d   :  { %6598 = vrot.lane.b32.xlu0 %v15296_v11, %s14289_s19 }
0x2dc0   :  { %v6351_v61 = vpop.xlane.xlu0 %6350 }
0x2dc1   :  { %v6353_v62 = vsub.f32 %v6343_v59, %v6351_v61 }
0x2dc3   :  { %v6356_v0 = vmul.f32 1.442695, %v6353_v62 }
0x2dc4   :  { %v6445_v1 = vpop.permute.xlu0 %6444 }
0x2dc5   :  { %13987 = vpow2.f32 %v6356_v0  ;;  %13254 = vmatpush3.msra.mxu1 %v6445_v1 }
0x2dc6   :  { %13263 = vmatprep.subr.mxu1 %v14285_v8 }
0x2dc8   :  { %v6599_v16 = vpop.permute.xlu0 %6598 }
0x2dcf   :  { %v13988_v17 = vpop.eup %13987 }
0x2dd0   :  { %v6361_v2 = vsel %vm237_vm2, %v13988_v17, 0.0 }
0x2dd1   :  { %6362 = vadd.xlane.f32.xlu1 %v6361_v2 }
0x2de2   :  { %6600 = vrot.lane.b32.xlu1 %v15288_v36, %s14289_s19 }
0x2e06   :  { %6347 = vmax.xlane.f32.xlu1 %v6346_v4 }
0x2e17   :  { %6522 = vrot.lane.b32.xlu1 %v15281_v52, %s14289_s19 }
0x2e1b   :  { %6520 = vrot.lane.b32.xlu1 %v15286_v56, %s14289_s19 }
0x2e1f   :  { %7014 = vrot.lane.b32.xlu1 %v15281_v52, %s14293_s22 }
0x2e5e   :  { %v6363_v6 = vpop.xlane.xlu1 %6362 }
0x2e5f   :  { %13989 = vrcp.f32 %v6363_v6 }
0x2e62   :  { %v6601_v15 = vpop.permute.xlu1 %6600 }
0x2e69   :  { %v13990_v9 = vpop.eup %13989 }
0x2e6a   :  { %v6367_v14 = vmul.f32 %v13990_v9, %v13988_v17 }
0x2e6c   :  { %13256 = vmatmul.mubr.msk.f32.vlgmr.msra.gmra.mrb[76].mxu1 %vm237_vm2, %v6367_v14 }
0x2e6d   :  { %13264 = vmatpush3.xpose.msk.msra.mxu1 %vm237_vm2, %v6601_v15  ;;  %13265 = vmatprep.mubr.msk.f32.mxu1 %vm14286_vm1, %v14285_v8 }
0x2e6e   :  { %13273 = vmatprep.subr.mxu1 %v14285_v8 }
0x2e70   :  { %13266 = vmatmul.mubr.msk.f32.vlgmr.msra.gmra.mrb[78].mxu1 %vm237_vm2, %v6599_v16 }
0x2e71   :  { %13275 = vmatprep.mubr.msk.f32.mxu1 %vm14286_vm1, %v14285_v8 }
0x2e93   :  { %v6348_v19 = vpop.xlane.xlu1 %6347 }
0x2e94   :  { %v6352_v22 = vsub.f32 %v6267_v63, %v6348_v19 }
0x2e96   :  { %v6354_v23 = vmul.f32 1.442695, %v6352_v22 }
0x2e97   :  { %v6523_v54 = vpop.permute.xlu1 %6522 }
0x2e98   :  { %13991 = vpow2.f32 %v6354_v23  ;;  %v12262_v23 = vld [vmem:[%s16007_s6 + $0x88] sm:$0xff] }
0x2e9b   :  { %v6521_v31 = vpop.permute.xlu1 %6520 }
0x2e9f   :  { %v7015_v49 = vpop.permute.xlu1 %7014 }
0x2ea2   :  { %v13992_v24 = vpop.eup %13991 }
0x2ea3   :  { %v6358_v50 = vsel %vm237_vm2, %v13992_v24, 0.0 }
0x2ea4   :  { %6359 = vadd.xlane.f32.xlu0 %v6358_v50 }
0x2eba   :  { %6368 = vrot.lane.b32.xlu0 %v15281_v52, %s14287_s0 }
0x2f31   :  { %v6360_v26 = vpop.xlane.xlu0 %6359 }
0x2f32   :  { %13993 = vrcp.f32 %v6360_v26 }
0x2f35   :  { %v6369_v20 = vpop.permute.xlu0 %6368 }
0x2f36   :  { %13249 = vmatpush3.msra.mxu0 %v6369_v20 }
0x2f37   :  { %13258 = vmatprep.subr.mxu0 %v14285_v8 }
0x2f3c   :  { %v13994_v53 = vpop.eup %13993 }
0x2f3d   :  { %v6366_v27 = vmul.f32 %v13994_v53, %v13992_v24  ;;  %v12261_v24 = vld [vmem:[%s16007_s6 + $0x80] sm:$0xff] }
0x2f3f   :  { %13251 = vmatmul.mubr.msk.f32.vlgmr.msra.gmra.mrb[48].mxu0 %vm237_vm2, %v6366_v27  ;;  %v15338_v28 = vpop.f32.mrb[76].mxu1 }
0x2f40   :  { %13259 = vmatpush3.xpose.msk.msra.mxu0 %vm237_vm2, %v6523_v54  ;;  %v13257_v12 = vpop.f32.mrb[77].mxu1  ;;  %13260 = vmatprep.mubr.msk.f32.mxu0 %vm14286_vm1, %v14285_v8 }
0x2f41   :  { %13268 = vmatprep.subr.mxu0 %v14285_v8 }
0x2f43   :  { %13261 = vmatmul.mubr.msk.f32.vlgmr.msra.gmra.mrb[50].mxu0 %vm237_vm2, %v6521_v31  ;;  %v6672_v47 = vpop.f32.mrb[78].mxu1 }
0x2f44   :  { %v6673_v32 = vadd.f32 %v15303_v21, %v6672_v47  ;;  %v13267_v33 = vpop.f32.mrb[79].mxu1  ;;  %13270 = vmatprep.mubr.msk.f32.mxu0 %vm14286_vm1, %v14285_v8 }
0x2f46   :  { %v6679_v7 = vsel %vm237_vm2, %v6673_v32, -inf }
0x2f47   :  { %6680 = vmax.xlane.f32.xlu0 %v6679_v7 }
0x2f5d   :  { %6774 = vrot.lane.b32.xlu0 %v15288_v36, %s14290_s21 }
0x2f61   :  { %7012 = vrot.lane.b32.xlu0 %v15286_v56, %s14293_s22 }
0x2f65   :  { %7090 = vrot.lane.b32.xlu0 %v15296_v11, %s14293_s22 }
0x2fd4   :  { %v6681_v34 = vpop.xlane.xlu0 %6680 }
0x2fd5   :  { %v6683_v37 = vsub.f32 %v6673_v32, %v6681_v34 }
0x2fd7   :  { %v6686_v13 = vmul.f32 1.442695, %v6683_v37  ;;  %v12263_v37 = vld [vmem:[%s16007_s6 + $0x90] sm:$0xff] }
0x2fd8   :  { %v6775_v38 = vpop.permute.xlu0 %6774 }
0x2fd9   :  { %13995 = vpow2.f32 %v6686_v13  ;;  %13274 = vmatpush3.msra.mxu1 %v6775_v38 }
0x2fda   :  { %13288 = vmatprep.subr.mxu1 %v14285_v8 }
0x2fdc   :  { %v7013_v5 = vpop.permute.xlu0 %7012 }
0x2fe0   :  { %v7091_v57 = vpop.permute.xlu0 %7090 }
0x2fe3   :  { %v13996_v39 = vpop.eup %13995 }
0x2fe4   :  { %v6691_v18 = vsel %vm237_vm2, %v13996_v39, 0.0 }
0x2fe5   :  { %6692 = vadd.xlane.f32.xlu1 %v6691_v18 }
0x2ff6   :  { %7092 = vrot.lane.b32.xlu1 %v15288_v36, %s14293_s22 }
0x3012   :  { %v15359_v41 = vpop.f32.mrb[48].mxu0 }
0x3013   :  { %v13252_v44 = vpop.f32.mrb[49].mxu0 }
0x3016   :  { %v6594_v40 = vpop.f32.mrb[50].mxu0 }
0x3017   :  { %v6595_v25 = vadd.f32 %v15315_v3, %v6594_v40  ;;  %v13262_v42 = vpop.f32.mrb[51].mxu0 }
0x3019   :  { %v6676_v45 = vsel %vm237_vm2, %v6595_v25, -inf }
0x301a   :  { %6677 = vmax.xlane.f32.xlu1 %v6676_v45 }
0x3072   :  { %v6693_v48 = vpop.xlane.xlu1 %6692 }
0x3073   :  { %13997 = vrcp.f32 %v6693_v48 }
0x3076   :  { %v7093_v35 = vpop.permute.xlu1 %7092 }
0x307d   :  { %v13998_v30 = vpop.eup %13997 }
0x307e   :  { %v6697_v55 = vmul.f32 %v13998_v30, %v13996_v39 }
0x3080   :  { %13276 = vmatmul.mubr.msk.f32.vlgmr.msra.gmra.mrb[80].mxu1 %vm237_vm2, %v6697_v55 }
0x3081   :  { %13289 = vmatpush3.xpose.msk.msra.mxu1 %vm237_vm2, %v7015_v49  ;;  %13290 = vmatprep.mubr.msk.f32.mxu1 %vm14286_vm1, %v14285_v8 }
0x3082   :  { %13293 = vmatprep.subr.mxu1 %v14285_v8 }
0x3084   :  { %13291 = vmatmul.mubr.msk.f32.vlgmr.msra.gmra.mrb[82].mxu1 %vm237_vm2, %v7013_v5 }
0x3085   :  { %13294 = vmatpush3.xpose.msk.msra.mxu1 %vm237_vm2, %v7093_v35  ;;  %13295 = vmatprep.mubr.msk.f32.mxu1 %vm14286_vm1, %v14285_v8 }
0x3086   :  { %13303 = vmatprep.subr.mxu1 %v14285_v8 }
0x3088   :  { %13296 = vmatmul.mubr.msk.f32.vlgmr.msra.gmra.mrb[84].mxu1 %vm237_vm2, %v7091_v57 }
0x3089   :  { %13305 = vmatprep.mubr.msk.f32.mxu1 %vm14286_vm1, %v14285_v8 }
0x30a7   :  { %v6678_v58 = vpop.xlane.xlu1 %6677 }
0x30a8   :  { %v6682_v59 = vsub.f32 %v6595_v25, %v6678_v58 }
0x30aa   :  { %v6684_v51 = vmul.f32 1.442695, %v6682_v59 }
0x30ac   :  { %13999 = vpow2.f32 %v6684_v51 }
0x30b6   :  { %v14000_v60 = vpop.eup %13999 }
0x30b7   :  { %v6688_v61 = vsel %vm237_vm2, %v14000_v60, 0.0 }
0x30b8   :  { %6689 = vadd.xlane.f32.xlu0 %v6688_v61 }
0x30ce   :  { %6698 = vrot.lane.b32.xlu0 %v15281_v52, %s14290_s21 }
0x30d2   :  { %7266 = vrot.lane.b32.xlu0 %v15288_v36, %s14291_s3 }
0x30d6   :  { %7427 = vrot.lane.b32.xlu0 %v15281_v52, %s14296_s20 }
0x30da   :  { %7505 = vrot.lane.b32.xlu0 %v15288_v36, %s14296_s20 }
0x30de   :  { %7425 = vrot.lane.b32.xlu0 %v15286_v56, %s14296_s20 }
0x3145   :  { %v6690_v62 = vpop.xlane.xlu0 %6689 }
0x3146   :  { %14001 = vrcp.f32 %v6690_v62 }
0x3149   :  { %v6699_v0 = vpop.permute.xlu0 %6698 }
0x314a   :  { %13269 = vmatpush3.msra.mxu0 %v6699_v0 }
0x314b   :  { %13278 = vmatprep.subr.mxu0 %v12262_v23 }
0x314d   :  { %v7267_v1 = vpop.permute.xlu0 %7266 }
0x314e   :  { %13304 = vmatpush3.msra.mxu1 %v7267_v1 }
0x314f   :  { %13313 = vmatprep.subr.mxu1 %v14285_v8 }
0x3150   :  { %v14002_v17 = vpop.eup %14001 }
0x3151   :  { %v6696_v2 = vmul.f32 %v14002_v17, %v14000_v60  ;;  %v7428_v38 = vpop.permute.xlu0 %7427 }
0x3153   :  { %13271 = vmatmul.mubr.msk.f32.vlgmr.msra.gmra.mrb[52].mxu0 %vm237_vm2, %v6696_v2  ;;  %v6846_v63 = vpop.f32.mrb[80].mxu1 }
0x3154   :  { %v13277_v4 = vpop.f32.mrb[81].mxu1  ;;  %13279 = vmatpush3.msra.mxu0 %v12262_v23 }
0x3155   :  { %13283 = vmatprep.subr.mxu0 %v12261_v24 }
0x3157   :  { %v7086_v6 = vpop.f32.mrb[82].mxu1 }
0x3158   :  { %v7087_v9 = vadd.f32 %v15315_v3, %v7086_v6  ;;  %v13292_v14 = vpop.f32.mrb[83].mxu1 }
0x315a   :  { %v7168_v56 = vsel %vm237_vm2, %v7087_v9, -inf }
0x315b   :  { %7169 = vmax.xlane.f32.xlu1 %v7168_v56  ;;  %v7164_v15 = vpop.f32.mrb[84].mxu1  ;;  %v12264_v56 = vld [vmem:[%s16007_s6 + $0x98] sm:$0xff] }
0x315c   :  { %v7165_v16 = vadd.f32 %v15303_v21, %v7164_v15  ;;  %v13297_v19 = vpop.f32.mrb[85].mxu1 }
0x315e   :  { %v7171_v22 = vsel %vm237_vm2, %v7165_v16, -inf }
0x315f   :  { %7172 = vmax.xlane.f32.xlu1 %v7171_v22 }
0x31e8   :  { %v7170_v50 = vpop.xlane.xlu1 %7169 }
0x31e9   :  { %v7174_v26 = vsub.f32 %v7087_v9, %v7170_v50  ;;  %v12302_v50 = vld [vmem:[#allocation10 + $0x4] ss:$0 sm:$0xff] }
0x31eb   :  { %v7176_v20 = vmul.f32 1.442695, %v7174_v26 }
0x31ec   :  { %v7173_v53 = vpop.xlane.xlu1 %7172 }
0x31ed   :  { %14003 = vpow2.f32 %v7176_v20  ;;  %v7175_v54 = vsub.f32 %v7165_v16, %v7173_v53 }
0x31ef   :  { %v7178_v27 = vmul.f32 1.442695, %v7175_v54 }
0x31f1   :  { %14005 = vpow2.f32 %v7178_v27 }
0x31f7   :  { %v14004_v12 = vpop.eup %14003 }
0x31f8   :  { %v7180_v31 = vsel %vm237_vm2, %v14004_v12, 0.0 }
0x31f9   :  { %7181 = vadd.xlane.f32.xlu1 %v7180_v31 }
0x31fb   :  { %v14006_v47 = vpop.eup %14005 }
0x31fc   :  { %v7183_v32 = vsel %vm237_vm2, %v14006_v47, 0.0 }
0x31fd   :  { %7184 = vadd.xlane.f32.xlu1 %v7183_v32 }
0x320e   :  { %7190 = vrot.lane.b32.xlu1 %v15281_v52, %s14291_s3 }
0x3212   :  { %7503 = vrot.lane.b32.xlu1 %v15296_v11, %s14296_s20 }
0x3226   :  { %v6770_v33 = vpop.f32.mrb[52].mxu0 }
0x3227   :  { %v13272_v7 = vpop.f32.mrb[53].mxu0  ;;  %13280 = vmatprep.mubr.msk.f32.mxu0 %vm237_vm2, %v6770_v33 }
0x3228   :  { %13281 = vmatmul.mubr.msk.f32.vlgmr.msra.gmra.mrb[54].mxu0 %vm237_vm2, %v6846_v63 }
0x3229   :  { %13285 = vmatprep.mubr.msk.f32.mxu0 %vm237_vm2, %v15359_v41  ;;  %13284 = vmatpush3.msra.mxu0 %v12261_v24  ;;  %v7506_v41 = vpop.permute.xlu0 %7505 }
0x322a   :  { %13298 = vmatprep.subr.mxu0 %v14285_v8 }
0x322d   :  { %v7426_v40 = vpop.permute.xlu0 %7425 }
0x3230   :  { %13286 = vmatmul.mubr.msk.f32.vlgmr.msra.gmra.mrb[54].mxu0 %vm237_vm2, %v15338_v28 }
0x3231   :  { %13300 = vmatprep.mubr.msk.f32.mxu0 %vm14286_vm1, %v14285_v8 }
0x3286   :  { %v7182_v34 = vpop.xlane.xlu1 %7181 }
0x3287   :  { %14007 = vrcp.f32 %v7182_v34 }
0x328a   :  { %v7185_v11 = vpop.xlane.xlu1 %7184 }
0x328b   :  { %14009 = vrcp.f32 %v7185_v11 }
0x328e   :  { %v7191_v13 = vpop.permute.xlu1 %7190 }
0x328f   :  { %13299 = vmatpush3.msra.mxu0 %v7191_v13 }
0x3290   :  { %13308 = vmatprep.subr.mxu0 %v12263_v37 }
0x3291   :  { %v14008_v39 = vpop.eup %14007 }
0x3292   :  { %v7188_v18 = vmul.f32 %v14008_v39, %v14004_v12  ;;  %v7504_v48 = vpop.permute.xlu1 %7503 }
0x3294   :  { %13301 = vmatmul.mubr.msk.f32.vlgmr.msra.gmra.mrb[56].mxu0 %vm237_vm2, %v7188_v18  ;;  %v7896_v18 = vld [vmem:[#allocation11 + $0x48] sm:$0xff] }
0x3295   :  { %v14010_v28 = vpop.eup %14009  ;;  %13309 = vmatpush3.msra.mxu0 %v12263_v37 }
0x3296   :  { %v7189_v44 = vmul.f32 %v14010_v28, %v14006_v47  ;;  %13318 = vmatprep.subr.mxu0 %v14285_v8 }
0x3298   :  { %13306 = vmatmul.mubr.msk.f32.vlgmr.msra.gmra.mrb[86].mxu1 %vm237_vm2, %v7189_v44  ;;  %v7898_v44 = vld [vmem:[#allocation11 + $0x58] sm:$0xff] }
0x3299   :  { %13314 = vmatpush3.xpose.msk.msra.mxu1 %vm237_vm2, %v7428_v38  ;;  %13315 = vmatprep.mubr.msk.f32.mxu1 %vm14286_vm1, %v14285_v8 }
0x329a   :  { %13323 = vmatprep.subr.mxu1 %v14285_v8 }
0x329c   :  { %13316 = vmatmul.mubr.msk.f32.vlgmr.msra.gmra.mrb[88].mxu1 %vm237_vm2, %v7426_v40 }
0x329d   :  { %13325 = vmatprep.mubr.msk.f32.mxu1 %vm14286_vm1, %v14285_v8 }
0x3367   :  { %v7262_v25 = vpop.f32.mrb[56].mxu0 }
0x3368   :  { %v13302_v42 = vpop.f32.mrb[57].mxu0  ;;  %13310 = vmatprep.mubr.msk.f32.mxu0 %vm237_vm2, %v7262_v25  ;;  %v12308_v25 = vld [vmem:[%s16013_s12 + $0x80] sm:$0xff] }
0x3369   :  { %v12309_v42 = vld [vmem:[%s16013_s12 + $0x88] sm:$0xff] }
0x336b   :  { %v7338_v45 = vpop.f32.mrb[86].mxu1 }
0x336c   :  { %v13307_v49 = vpop.f32.mrb[87].mxu1  ;;  %13311 = vmatmul.mubr.msk.f32.vlgmr.msra.gmra.mrb[54].mxu0 %vm237_vm2, %v7338_v45  ;;  %v12310_v45 = vld [vmem:[%s16013_s12 + $0x90] sm:$0xff] }
0x336d   :  { %13319 = vmatpush3.xpose.msk.msra.mxu0 %vm237_vm2, %v7506_v41  ;;  %13320 = vmatprep.mubr.msk.f32.mxu0 %vm14286_vm1, %v14285_v8  ;;  %v7897_v41 = vld [vmem:[#allocation11 + $0x50] sm:$0xff]  ;;  %v13727_v49 = vpack.c.bf16 %v12309_v42, %v12308_v25 }
0x336e   :  { %13328 = vmatprep.subr.mxu0 %v14285_v8  ;;  %v13723_v40 = vpack.c.bf16 %v7898_v44, %v7897_v41  ;;  %v12330_v41 = vld [vmem:[%s16005_s4 + $0x78] sm:$0xff] }
0x336f   :  { %v7499_v30 = vpop.f32.mrb[88].mxu1 }
0x3370   :  { %v7500_v55 = vadd.f32 %v15315_v3, %v7499_v30  ;;  %v13317_v5 = vpop.f32.mrb[89].mxu1  ;;  %13321 = vmatmul.mubr.msk.f32.vlgmr.msra.gmra.mrb[58].mxu0 %vm237_vm2, %v7504_v48  ;;  %v12311_v48 = vld [vmem:[%s16013_s12 + $0x98] sm:$0xff] }
0x3371   :  { %13330 = vmatprep.mubr.msk.f32.mxu0 %vm14286_vm1, %v14285_v8  ;;  %v13731_v30 = vpack.c.bf16 %v12311_v48, %v12310_v45  ;;  %v12313_v5 = vld [vmem:[%s16013_s12 + $0xa8] sm:$0xff] }
0x3372   :  { %v7581_v35 = vsel %vm237_vm2, %v7500_v55, -inf }
0x3373   :  { %7582 = vmax.xlane.f32.xlu0 %v7581_v35 }
0x3400   :  { %v7583_v57 = vpop.xlane.xlu0 %7582 }
0x3401   :  { %v7587_v58 = vsub.f32 %v7500_v55, %v7583_v57  ;;  %v12312_v55 = vld [vmem:[%s16013_s12 + $0xa0] sm:$0xff] }
0x3402   :  { %v13735_v35 = vpack.c.bf16 %v12313_v5, %v12312_v55  ;;  %v12325_v55 = vld [vmem:[%s16009_s8 + $0x6] ss:$0 sm:$0xff] }
0x3403   :  { %v7589_v59 = vmul.f32 1.442695, %v7587_v58 }
0x3405   :  { %14011 = vpow2.f32 %v7589_v59 }
0x340f   :  { %v14012_v51 = vpop.eup %14011 }
0x3410   :  { %v7593_v60 = vsel %vm237_vm2, %v14012_v51, 0.0 }
0x3411   :  { %7594 = vadd.xlane.f32.xlu0 %v7593_v60 }
0x3443   :  { %v7577_v61 = vpop.f32.mrb[58].mxu0 }
0x3444   :  { %v7578_v3 = vadd.f32 %v15303_v21, %v7577_v61  ;;  %v13322_v62 = vpop.f32.mrb[59].mxu0 }
0x3445   :  { %v12305_v62 = vld [vmem:[%s16009_s8 + $0x4] ss:$0 sm:$0xff] }
0x3446   :  { %v7584_v0 = vsel %vm237_vm2, %v7578_v3, -inf }
0x3447   :  { %7585 = vmax.xlane.f32.xlu1 %v7584_v0 }
0x3458   :  { %7603 = vrot.lane.b32.xlu1 %v15281_v52, %s14295_s7 }
0x349e   :  { %v7595_v1 = vpop.xlane.xlu0 %7594 }
0x349f   :  { %14013 = vrcp.f32 %v7595_v1 }
0x34a9   :  { %v14014_v2 = vpop.eup %14013 }
0x34aa   :  { %v7601_v9 = vmul.f32 %v14014_v2, %v14012_v51  ;;  %v12306_v2 = vld [vmem:[%s16010_s9 + $0x4] ss:$0 sm:$0xff] }
0x34d4   :  { %v7586_v17 = vpop.xlane.xlu1 %7585 }
0x34d5   :  { %v7588_v63 = vsub.f32 %v7578_v3, %v7586_v17 }
0x34d7   :  { %v7591_v4 = vmul.f32 1.442695, %v7588_v63 }
0x34d8   :  { %v7604_v6 = vpop.permute.xlu1 %7603 }
0x34d9   :  { %14015 = vpow2.f32 %v7591_v4  ;;  %13324 = vmatpush3.msra.mxu1 %v7604_v6 }
0x34da   :  { %13326 = vmatmul.mubr.msk.f32.vlgmr.msra.gmra.mrb[90].mxu1 %vm237_vm2, %v7601_v9 }
0x34e3   :  { %v14016_v21 = vpop.eup %14015 }
0x34e4   :  { %v7596_v14 = vsel %vm237_vm2, %v14016_v21, 0.0 }
0x34e5   :  { %7597 = vadd.xlane.f32.xlu0 %v7596_v14  ;;  %v12315_v14 = vld [vmem:[%s16013_s12 + $0xb8] sm:$0xff] }
0x34fb   :  { %7679 = vrot.lane.b32.xlu0 %v15288_v36, %s14295_s7 }
0x3572   :  { %v7598_v52 = vpop.xlane.xlu0 %7597 }
0x3573   :  { %14017 = vrcp.f32 %v7598_v52 }
0x3576   :  { %v7680_v15 = vpop.permute.xlu0 %7679 }
0x3577   :  { %13329 = vmatpush3.msra.mxu0 %v7680_v15 }
0x3578   :  { %13333 = vmatprep.subr.mxu0 %v12264_v56 }
0x357d   :  { %v14018_v16 = vpop.eup %14017 }
0x357e   :  { %v7602_v19 = vmul.f32 %v14018_v16, %v14016_v21  ;;  %v12314_v21 = vld [vmem:[%s16013_s12 + $0xb0] sm:$0xff] }
0x357f   :  { %v13739_v52 = vpack.c.bf16 %v12315_v14, %v12314_v21  ;;  %v15558_v21 = vld [vmem:[#allocation8 + $0x8] sm:$0xff] }
0x3580   :  { %13331 = vmatmul.mubr.msk.f32.vlgmr.msra.gmra.mrb[60].mxu0 %vm237_vm2, %v7602_v19 }
0x3581   :  { %13334 = vmatpush3.msra.mxu0 %v12264_v56  ;;  %v12317_v56 = vld [vmem:[%s16012_s11 + $0x2] ss:$0 sm:$0xff] }
0x3582   :  { %13728 = vmatprep.subr.bf16.mxu0 %v13727_v49 }
0x35ad   :  { %v7675_v22 = vpop.f32.mrb[90].mxu1 }
0x35ae   :  { %v13327_v23 = vpop.f32.mrb[91].mxu1  ;;  %13335 = vmatprep.mubr.msk.f32.mxu0 %vm237_vm2, %v7675_v22 }
0x3653   :  { %v7751_v24 = vpop.f32.mrb[60].mxu0 }
0x3654   :  { %v13332_v36 = vpop.f32.mrb[61].mxu0  ;;  %13336 = vmatmul.mubr.msk.f32.vlgmr.msra.gmra.mrb[54].mxu0 %vm237_vm2, %v7751_v24 }
0x3655   :  { %13730 = vmatpush3.bf16.msra.mxu0 %v13727_v49  ;;  %v12320_v36 = vld [vmem:[%s16014_s13 + $0x2] ss:$0 sm:$0xff] }
0x3656   :  { %13732 = vmatprep.subr.bf16.mxu0 %v13731_v30 }
0x3659   :  { %13734 = vmatpush3.bf16.msra.mxu0 %v13731_v30 }
0x365a   :  { %13736 = vmatprep.subr.bf16.mxu0 %v13735_v35 }
0x365d   :  { %13738 = vmatpush3.bf16.msra.mxu0 %v13735_v35 }
0x365e   :  { %13740 = vmatprep.subr.bf16.mxu0 %v13739_v52 }
0x3661   :  { %13742 = vmatpush3.bf16.msra.mxu0 %v13739_v52 }
0x3662   :  { %13389 = vmatprep.subr.mxu0 %v14285_v8 }
0x3727   :  { %v13337_v26 = vpop.f32.mrb[54].mxu0 }
0x3728   :  { %v7845_v20 = vadd.f32 %v13337_v26, %v12302_v50  ;;  %v7827_v53 = vpop.f32.mrb[55].mxu0 }
0x3729   :  { %v7844_v54 = vadd.f32 %v12302_v50, %v7827_v53 }
0x372a   :  { %v7851_v27 = vadd.f32 %v7845_v20, %v15273_v46 }
0x372b   :  { %v7850_v12 = vadd.f32 %v7844_v54, %v15271_v29  ;;  %v7895_v29 = vld [vmem:[#allocation11 + $0x40] sm:$0xff] }
0x372c   :  { %v7855_v31 = vsel %vm152_vm0, %v7851_v27, 0.0  ;;  %v13719_v28 = vpack.c.bf16 %v7896_v18, %v7895_v29  ;;  %v12328_v29 = vld [vmem:[%s16005_s4 + $0x68] sm:$0xff] }
0x372d   :  { %7856 = vadd.xlane.f32.xlu0 %v7855_v31  ;;  %v7852_v47 = vsel %vm152_vm0, %v7850_v12, 0.0 }
0x372e   :  { %7853 = vadd.xlane.f32.xlu1 %v7852_v47  ;;  %13720 = vmatprep.subr.bf16.mxu1 %v13719_v28 }
0x372f   :  { %13722 = vmatpush3.bf16.msra.mxu1 %v13719_v28  ;;  %v12329_v28 = vld [vmem:[%s16005_s4 + $0x70] sm:$0xff] }
0x3730   :  { %13724 = vmatprep.subr.bf16.mxu1 %v13723_v40  ;;  %v13747_v44 = vpack.c.bf16 %v12330_v41, %v12329_v28 }
0x3733   :  { %13726 = vmatpush3.bf16.msra.mxu1 %v13723_v40 }
0x37ba   :  { %v7857_v32 = vpop.xlane.xlu0 %7856 }
0x37bb   :  { %v7859_v33 = vmul.f32 0.03125, %v7857_v32  ;;  %v7854_v7 = vpop.xlane.xlu1 %7853 }
0x37bc   :  { %v7858_v34 = vmul.f32 0.03125, %v7854_v7 }
0x37bd   :  { %v7861_v11 = vsub.f32 %v7851_v27, %v7859_v33 }
0x37be   :  { %v7860_v37 = vsub.f32 %v7850_v12, %v7858_v34 }
0x37bf   :  { %v7863_v13 = vmul.f32 %v7861_v11, %v7861_v11 }
0x37c0   :  { %v7862_v38 = vmul.f32 %v7860_v37, %v7860_v37 }
0x37c1   :  { %v7867_v39 = vsel %vm152_vm0, %v7863_v13, 0.0 }
0x37c2   :  { %7868 = vadd.xlane.f32.xlu0 %v7867_v39  ;;  %v7864_v46 = vsel %vm152_vm0, %v7862_v38, 0.0 }
0x37c3   :  { %7865 = vadd.xlane.f32.xlu1 %v7864_v46  ;;  %v12327_v46 = vld [vmem:[%s16005_s4 + $0x60] sm:$0xff] }
0x37c4   :  { %v13743_v18 = vpack.c.bf16 %v12328_v29, %v12327_v46 }
0x37c6   :  { %13744 = vmatprep.subr.bf16.mxu1 %v13743_v18 }
0x384f   :  { %v7869_v57 = vpop.xlane.xlu0 %7868 }
0x3850   :  { %v7871_v58 = vmul.f32 0.03125, %v7869_v57  ;;  %v7866_v59 = vpop.xlane.xlu1 %7865 }
0x3851   :  { %v7870_v51 = vmul.f32 0.03125, %v7866_v59 }
0x3852   :  { %v7873_v60 = vadd.f32 1e-05, %v7871_v58  ;;  %v12326_v58 = vld [vmem:[%s16010_s9 + $0x6] ss:$0 sm:$0xff] }
0x3853   :  { %v7872_v61 = vadd.f32 1e-05, %v7870_v51 }
0x3854   :  { %14019 = vrsqrt.f32 %v7873_v60 }
0x3855   :  { %14021 = vrsqrt.f32 %v7872_v61 }
0x385e   :  { %v14020_v3 = vpop.eup %14019 }
0x385f   :  { %v14022_v0 = vpop.eup %14021  ;;  %v7877_v1 = vmul.f32 %v14020_v3, %v7861_v11  ;;  %v12336_v3 = vld [vmem:[%s16006_s5 + $0x3] ss:$0 sm:$0xff] }
0x3860   :  { %v7876_v17 = vmul.f32 %v14022_v0, %v7860_v37 }
0x3861   :  { %v7885_v63 = vmul.f32 %v12305_v62, %v7877_v1 }
0x3862   :  { %v7884_v4 = vmul.f32 %v12305_v62, %v7876_v17 }
0x3863   :  { %v7893_v9 = vadd.f32 %v12306_v2, %v7885_v63 }
0x3864   :  { %v7892_v6 = vadd.f32 %v12306_v2, %v7884_v4 }
0x3866   :  { %13346 = vmatprep.mubr.msk.f32.mxu1 %vm152_vm0, %v7892_v6 }
0x3867   :  { %13347 = vmatmul.mubr.msk.f32.vlgmr.msra.gmra.mrb[92].mxu1 %vm152_vm0, %v7893_v9 }
0x3868   :  { %13746 = vmatpush3.bf16.msra.mxu1 %v13743_v18 }
0x3869   :  { %13748 = vmatprep.subr.bf16.mxu1 %v13747_v44 }
0x386c   :  { %13750 = vmatpush3.bf16.msra.mxu1 %v13747_v44 }
0x386d   :  { %13379 = vmatprep.subr.mxu1 %v14285_v8 }
0x393a   :  { %v13348_v15 = vpop.f32.mrb[92].mxu1 }
0x393b   :  { %v7996_v16 = vadd.f32 %v13348_v15, %v12317_v56  ;;  %v7990_v19 = vpop.f32.mrb[93].mxu1  ;;  %v15566_v15 = vld [vmem:[#allocation8] sm:$0xff] }
0x393c   :  { %v7991_v22 = vadd.f32 %v12317_v56, %v7990_v19 }
0x393d   :  { %v8000_v24 = vmax.f32 %v7996_v16, 0.0 }
0x393e   :  { %v7999_v23 = vmax.f32 %v7991_v22, 0.0 }
0x3940   :  { %13365 = vmatprep.mubr.msk.f32.mxu0 %vm2045_vm3, %v7999_v23 }
0x3941   :  { %13366 = vmatmul.mubr.msk.f32.vlgmr.msra.gmra.mrb[62].mxu0 %vm2045_vm3, %v8000_v24 }
0x3942   :  { %13391 = vmatprep.mubr.msk.f32.mxu0 %vm14286_vm1, %v14285_v8 }
0x3a14   :  { %v13367_v50 = vpop.f32.mrb[62].mxu0 }
0x3a15   :  { %v8085_v26 = vadd.f32 %v13367_v50, %v12320_v36  ;;  %v8079_v20 = vpop.f32.mrb[63].mxu0 }
0x3a16   :  { %v8080_v53 = vadd.f32 %v12320_v36, %v8079_v20 }
0x3a17   :  { %v8093_v54 = vadd.f32 %v8085_v26, %v7893_v9 }
0x3a18   :  { %v8092_v27 = vadd.f32 %v8080_v53, %v7892_v6 }
0x3a19   :  { %v8097_v12 = vsel %vm152_vm0, %v8093_v54, 0.0 }
0x3a1a   :  { %8098 = vadd.xlane.f32.xlu0 %v8097_v12  ;;  %v8094_v31 = vsel %vm152_vm0, %v8092_v27, 0.0 }
0x3a1b   :  { %8095 = vadd.xlane.f32.xlu1 %v8094_v31 }
0x3aa7   :  { %v8099_v47 = vpop.xlane.xlu0 %8098 }
0x3aa8   :  { %v8101_v32 = vmul.f32 0.03125, %v8099_v47  ;;  %v8096_v33 = vpop.xlane.xlu1 %8095 }
0x3aa9   :  { %v8100_v7 = vmul.f32 0.03125, %v8096_v33 }
0x3aaa   :  { %v8103_v34 = vsub.f32 %v8093_v54, %v8101_v32 }
0x3aab   :  { %v8102_v11 = vsub.f32 %v8092_v27, %v8100_v7 }
0x3aac   :  { %v8105_v37 = vmul.f32 %v8103_v34, %v8103_v34 }
0x3aad   :  { %v8104_v13 = vmul.f32 %v8102_v11, %v8102_v11 }
0x3aae   :  { %v8109_v38 = vsel %vm152_vm0, %v8105_v37, 0.0 }
0x3aaf   :  { %8110 = vadd.xlane.f32.xlu0 %v8109_v38  ;;  %v8106_v39 = vsel %vm152_vm0, %v8104_v13, 0.0 }
0x3ab0   :  { %8107 = vadd.xlane.f32.xlu1 %v8106_v39 }
0x3b3c   :  { %v8111_v40 = vpop.xlane.xlu0 %8110 }
0x3b3d   :  { %v8113_v25 = vmul.f32 0.03125, %v8111_v40  ;;  %v8108_v42 = vpop.xlane.xlu1 %8107 }
0x3b3e   :  { %v8112_v45 = vmul.f32 0.03125, %v8108_v42 }
0x3b3f   :  { %v8115_v49 = vadd.f32 1e-05, %v8113_v25 }
0x3b40   :  { %v8114_v48 = vadd.f32 1e-05, %v8112_v45 }
0x3b41   :  { %14023 = vrsqrt.f32 %v8115_v49 }
0x3b42   :  { %14025 = vrsqrt.f32 %v8114_v48 }
0x3b4b   :  { %v14024_v30 = vpop.eup %14023 }
0x3b4c   :  { %v14026_v5 = vpop.eup %14025  ;;  %v8119_v35 = vmul.f32 %v14024_v30, %v8103_v34 }
0x3b4d   :  { %v8118_v57 = vmul.f32 %v14026_v5, %v8102_v11 }
0x3b4e   :  { %v8127_v59 = vmul.f32 %v12325_v55, %v8119_v35 }
0x3b4f   :  { %v8126_v51 = vmul.f32 %v12325_v55, %v8118_v57 }
0x3b50   :  { %v15527_v61 = vadd.f32 %v12326_v58, %v8127_v59 }
0x3b51   :  { %v15525_v60 = vadd.f32 %v12326_v58, %v8126_v51 }
0x3b53   :  { %13376 = vmatprep.mubr.msk.f32.mxu1 %vm152_vm0, %v15525_v60 }
0x3b54   :  { %13377 = vmatmul.mubr.msk.f32.vlgmr.msra.gmra.mrb[94].mxu1 %vm152_vm0, %v15527_v61 }
0x3b55   :  { %13381 = vmatprep.mubr.msk.f32.mxu1 %vm14286_vm1, %v14285_v8 }
0x3c27   :  { %v13378_v62 = vpop.f32.mrb[94].mxu1 }
0x3c28   :  { %v15538_v0 = vadd.f32 %v13378_v62, %v12336_v3  ;;  %v8228_v1 = vpop.f32.mrb[95].mxu1 }
0x3c29   :  { %v15540_v17 = vadd.f32 %v12336_v3, %v8228_v1 }
0x3c2a   :  { %8315 = vrot.lane.b32.xlu0 %v15538_v0, %s14287_s0 }
0x3c2b   :  { %8238 = vrot.lane.b32.xlu1 %v15540_v17, %s14287_s0 }
0x3c9c   :  { %v8316_v63 = vpop.permute.xlu0 %8315 }
0x3c9d   :  { %v8239_v2 = vpop.permute.xlu1 %8238 }
0x3c9e   :  { %13380 = vmatpush3.xpose.msk.msra.mxu1 %vm237_vm2, %v8239_v2 }
0x3c9f   :  { %13384 = vmatprep.subr.mxu1 %v14285_v8 }
0x3ca1   :  { %13382 = vmatmul.mubr.msk.f32.vlgmr.msra.gmra.mrb[96].mxu1 %vm237_vm2, %v15540_v17 }
0x3ca2   :  { %13385 = vmatpush3.xpose.msk.msra.mxu1 %vm237_vm2, %v8316_v63  ;;  %13386 = vmatprep.mubr.msk.f32.mxu1 %vm14286_vm1, %v14285_v8 }
0x3ca3   :  { %13394 = vmatprep.subr.mxu1 %v14285_v8 }
0x3ca5   :  { %13387 = vmatmul.mubr.msk.f32.vlgmr.msra.gmra.mrb[98].mxu1 %vm237_vm2, %v15538_v0 }
0x3ca6   :  { %13396 = vmatprep.mubr.msk.f32.mxu1 %vm14286_vm1, %v14285_v8 }
0x3d74   :  { %v8310_v4 = vpop.f32.mrb[96].mxu1 }
0x3d75   :  { %v13383_v6 = vpop.f32.mrb[97].mxu1  ;;  %v8311_v16 = vadd.f32 %v15566_v15, %v8310_v4 }
0x3d77   :  { %v8391_v19 = vsel %vm237_vm2, %v8311_v16, -inf }
0x3d78   :  { %v8387_v9 = vpop.f32.mrb[98].mxu1 }
0x3d79   :  { %v8388_v14 = vadd.f32 %v15558_v21, %v8387_v9  ;;  %v13388_v52 = vpop.f32.mrb[99].mxu1 }
0x3d7b   :  { %v8394_v56 = vsel %vm237_vm2, %v8388_v14, -inf }
0x3d7c   :  { %8395 = vmax.xlane.f32.xlu1 %v8394_v56 }
0x3d8d   :  { %8489 = vrot.lane.b32.xlu1 %v15538_v0, %s14288_s24 }
0x3d91   :  { %8643 = vrot.lane.b32.xlu1 %v15538_v0, %s14289_s19 }
0x3db5   :  { %8392 = vmax.xlane.f32.xlu1 %v8391_v19 }
0x3dc6   :  { %8567 = vrot.lane.b32.xlu1 %v15540_v17, %s14290_s21 }
0x3dca   :  { %8565 = vrot.lane.b32.xlu1 %v15540_v17, %s14289_s19 }
0x3dce   :  { %9059 = vrot.lane.b32.xlu1 %v15540_v17, %s14291_s3 }
0x3e09   :  { %v8396_v22 = vpop.xlane.xlu1 %8395 }
0x3e0a   :  { %v8398_v23 = vsub.f32 %v8388_v14, %v8396_v22 }
0x3e0c   :  { %v8401_v24 = vmul.f32 1.442695, %v8398_v23 }
0x3e0d   :  { %v8490_v36 = vpop.permute.xlu1 %8489 }
0x3e0e   :  { %14027 = vpow2.f32 %v8401_v24  ;;  %13395 = vmatpush3.msra.mxu1 %v8490_v36 }
0x3e0f   :  { %13404 = vmatprep.subr.mxu1 %v14285_v8 }
0x3e11   :  { %v8644_v20 = vpop.permute.xlu1 %8643 }
0x3e18   :  { %v14028_v50 = vpop.eup %14027 }
0x3e19   :  { %v8406_v26 = vsel %vm237_vm2, %v14028_v50, 0.0 }
0x3e1a   :  { %8407 = vadd.xlane.f32.xlu0 %v8406_v26 }
0x3e30   :  { %8645 = vrot.lane.b32.xlu0 %v15538_v0, %s14290_s21 }
0x3e42   :  { %v8393_v53 = vpop.xlane.xlu1 %8392 }
0x3e43   :  { %v8397_v54 = vsub.f32 %v8311_v16, %v8393_v53 }
0x3e45   :  { %v8399_v27 = vmul.f32 1.442695, %v8397_v54 }
0x3e46   :  { %v8568_v13 = vpop.permute.xlu1 %8567 }
0x3e47   :  { %14029 = vpow2.f32 %v8399_v27 }
0x3e4a   :  { %v8566_v39 = vpop.permute.xlu1 %8565 }
0x3e4e   :  { %v9060_v59 = vpop.permute.xlu1 %9059 }
0x3e51   :  { %v14030_v12 = vpop.eup %14029 }
0x3e52   :  { %v8403_v31 = vsel %vm237_vm2, %v14030_v12, 0.0 }
0x3e53   :  { %8404 = vadd.xlane.f32.xlu0 %v8403_v31 }
0x3e69   :  { %8413 = vrot.lane.b32.xlu0 %v15540_v17, %s14288_s24 }
0x3ea7   :  { %v8408_v47 = vpop.xlane.xlu0 %8407 }
0x3ea8   :  { %14031 = vrcp.f32 %v8408_v47  ;;  %v12333_v47 = vld [vmem:[%s16007_s6 + $0x68] sm:$0xff] }
0x3eab   :  { %v8646_v7 = vpop.permute.xlu0 %8645 }
0x3eb2   :  { %v14032_v32 = vpop.eup %14031 }
0x3eb3   :  { %v8412_v33 = vmul.f32 %v14032_v32, %v14028_v50  ;;  %v12332_v32 = vld [vmem:[%s16007_s6 + $0x60] sm:$0xff] }
0x3eb5   :  { %13397 = vmatmul.mubr.msk.f32.vlgmr.msra.gmra.mrb[100].mxu1 %vm237_vm2, %v8412_v33 }
0x3eb6   :  { %13405 = vmatpush3.xpose.msk.msra.mxu1 %vm237_vm2, %v8646_v7  ;;  %13406 = vmatprep.mubr.msk.f32.mxu1 %vm14286_vm1, %v14285_v8 }
0x3eb7   :  { %13414 = vmatprep.subr.mxu1 %v14285_v8 }
0x3eb9   :  { %13407 = vmatmul.mubr.msk.f32.vlgmr.msra.gmra.mrb[102].mxu1 %vm237_vm2, %v8644_v20 }
0x3eba   :  { %13416 = vmatprep.mubr.msk.f32.mxu1 %vm14286_vm1, %v14285_v8 }
0x3ee0   :  { %v8405_v34 = vpop.xlane.xlu0 %8404 }
0x3ee1   :  { %14033 = vrcp.f32 %v8405_v34 }
0x3ee4   :  { %v8414_v11 = vpop.permute.xlu0 %8413 }
0x3ee5   :  { %13390 = vmatpush3.msra.mxu0 %v8414_v11 }
0x3ee6   :  { %13399 = vmatprep.subr.mxu0 %v14285_v8 }
0x3eeb   :  { %v14034_v37 = vpop.eup %14033 }
0x3eec   :  { %v8411_v38 = vmul.f32 %v14034_v37, %v14030_v12 }
0x3eee   :  { %13392 = vmatmul.mubr.msk.f32.vlgmr.msra.gmra.mrb[64].mxu0 %vm237_vm2, %v8411_v38 }
0x3eef   :  { %13400 = vmatpush3.xpose.msk.msra.mxu0 %vm237_vm2, %v8568_v13  ;;  %13401 = vmatprep.mubr.msk.f32.mxu0 %vm14286_vm1, %v14285_v8 }
0x3ef0   :  { %13409 = vmatprep.subr.mxu0 %v14285_v8 }
0x3ef2   :  { %13402 = vmatmul.mubr.msk.f32.vlgmr.msra.gmra.mrb[66].mxu0 %vm237_vm2, %v8566_v39 }
0x3ef3   :  { %13411 = vmatprep.mubr.msk.f32.mxu0 %vm14286_vm1, %v14285_v8 }
0x3f88   :  { %v15600_v46 = vpop.f32.mrb[100].mxu1 }
0x3f89   :  { %v13398_v29 = vpop.f32.mrb[101].mxu1 }
0x3f8c   :  { %v8717_v18 = vpop.f32.mrb[102].mxu1 }
0x3f8d   :  { %v8718_v28 = vadd.f32 %v15558_v21, %v8717_v18  ;;  %v13408_v41 = vpop.f32.mrb[103].mxu1 }
0x3f8f   :  { %v8724_v44 = vsel %vm237_vm2, %v8718_v28, -inf }
0x3f90   :  { %8725 = vmax.xlane.f32.xlu0 %v8724_v44 }
0x3fa6   :  { %8819 = vrot.lane.b32.xlu0 %v15538_v0, %s14292_s16 }
0x3faa   :  { %9057 = vrot.lane.b32.xlu0 %v15540_v17, %s14293_s22 }
0x3fae   :  { %9135 = vrot.lane.b32.xlu0 %v15538_v0, %s14293_s22 }
0x3fc1   :  { %v15610_v40 = vpop.f32.mrb[64].mxu0 }
0x3fc2   :  { %v13393_v25 = vpop.f32.mrb[65].mxu0 }
0x3fc5   :  { %v8639_v42 = vpop.f32.mrb[66].mxu0 }
0x3fc6   :  { %v13403_v45 = vpop.f32.mrb[67].mxu0  ;;  %v8640_v57 = vadd.f32 %v15566_v15, %v8639_v42  ;;  %v12334_v42 = vld [vmem:[%s16007_s6 + $0x70] sm:$0xff] }
0x3fc8   :  { %v8721_v58 = vsel %vm237_vm2, %v8640_v57, -inf }
0x401d   :  { %v8726_v49 = vpop.xlane.xlu0 %8725 }
0x401e   :  { %v8728_v48 = vsub.f32 %v8718_v28, %v8726_v49 }
0x4020   :  { %v8731_v30 = vmul.f32 1.442695, %v8728_v48 }
0x4021   :  { %v8820_v55 = vpop.permute.xlu0 %8819 }
0x4022   :  { %14035 = vpow2.f32 %v8731_v30  ;;  %13415 = vmatpush3.msra.mxu1 %v8820_v55 }
0x4023   :  { %13429 = vmatprep.subr.mxu1 %v14285_v8 }
0x4025   :  { %v9058_v1 = vpop.permute.xlu0 %9057 }
0x4029   :  { %v9136_v63 = vpop.permute.xlu0 %9135 }
0x402c   :  { %v14036_v5 = vpop.eup %14035 }
0x402d   :  { %v8736_v35 = vsel %vm237_vm2, %v14036_v5, 0.0 }
0x402e   :  { %8737 = vadd.xlane.f32.xlu1 %v8736_v35 }
0x403f   :  { %9137 = vrot.lane.b32.xlu1 %v15538_v0, %s14291_s3 }
0x4063   :  { %8722 = vmax.xlane.f32.xlu1 %v8721_v58 }
0x40bb   :  { %v8738_v51 = vpop.xlane.xlu1 %8737 }
0x40bc   :  { %14037 = vrcp.f32 %v8738_v51 }
0x40bf   :  { %v9138_v2 = vpop.permute.xlu1 %9137 }
0x40c6   :  { %v14038_v3 = vpop.eup %14037 }
0x40c7   :  { %v8742_v62 = vmul.f32 %v14038_v3, %v14036_v5 }
0x40c9   :  { %13417 = vmatmul.mubr.msk.f32.vlgmr.msra.gmra.mrb[104].mxu1 %vm237_vm2, %v8742_v62 }
0x40ca   :  { %13430 = vmatpush3.xpose.msk.msra.mxu1 %vm237_vm2, %v9060_v59  ;;  %13431 = vmatprep.mubr.msk.f32.mxu1 %vm14286_vm1, %v14285_v8 }
0x40cb   :  { %13434 = vmatprep.subr.mxu1 %v14285_v8 }
0x40cd   :  { %13432 = vmatmul.mubr.msk.f32.vlgmr.msra.gmra.mrb[106].mxu1 %vm237_vm2, %v9058_v1 }
0x40ce   :  { %13435 = vmatpush3.xpose.msk.msra.mxu1 %vm237_vm2, %v9138_v2  ;;  %13436 = vmatprep.mubr.msk.f32.mxu1 %vm14286_vm1, %v14285_v8 }
0x40cf   :  { %13444 = vmatprep.subr.mxu1 %v14285_v8 }
0x40d1   :  { %13437 = vmatmul.mubr.msk.f32.vlgmr.msra.gmra.mrb[108].mxu1 %vm237_vm2, %v9136_v63 }
0x40d2   :  { %13446 = vmatprep.mubr.msk.f32.mxu1 %vm14286_vm1, %v14285_v8 }
0x40f0   :  { %v8723_v4 = vpop.xlane.xlu1 %8722 }
0x40f1   :  { %v8727_v6 = vsub.f32 %v8640_v57, %v8723_v4 }
0x40f3   :  { %v8729_v9 = vmul.f32 1.442695, %v8727_v6 }
0x40f5   :  { %14039 = vpow2.f32 %v8729_v9 }
0x40ff   :  { %v14040_v14 = vpop.eup %14039 }
0x4100   :  { %v8733_v52 = vsel %vm237_vm2, %v14040_v14, 0.0 }
0x4101   :  { %8734 = vadd.xlane.f32.xlu0 %v8733_v52 }
0x4117   :  { %8743 = vrot.lane.b32.xlu0 %v15540_v17, %s14292_s16 }
0x411b   :  { %9311 = vrot.lane.b32.xlu0 %v15538_v0, %s14294_s1 }
0x411f   :  { %9472 = vrot.lane.b32.xlu0 %v15540_v17, %s14295_s7 }
0x4123   :  { %9550 = vrot.lane.b32.xlu0 %v15538_v0, %s14295_s7 }
0x4127   :  { %9470 = vrot.lane.b32.xlu0 %v15540_v17, %s14296_s20 }
0x418e   :  { %v8735_v56 = vpop.xlane.xlu0 %8734 }
0x418f   :  { %14041 = vrcp.f32 %v8735_v56 }
0x4192   :  { %v8744_v16 = vpop.permute.xlu0 %8743 }
0x4193   :  { %13410 = vmatpush3.msra.mxu0 %v8744_v16 }
0x4194   :  { %13419 = vmatprep.subr.mxu0 %v12333_v47 }
0x4196   :  { %v9312_v19 = vpop.permute.xlu0 %9311 }
0x4197   :  { %13445 = vmatpush3.msra.mxu1 %v9312_v19 }
0x4198   :  { %13454 = vmatprep.subr.mxu1 %v14285_v8 }
0x4199   :  { %v14042_v22 = vpop.eup %14041 }
0x419a   :  { %v8741_v23 = vmul.f32 %v14042_v22, %v14040_v14  ;;  %v9473_v49 = vpop.permute.xlu0 %9472 }
0x419c   :  { %13412 = vmatmul.mubr.msk.f32.vlgmr.msra.gmra.mrb[68].mxu0 %vm237_vm2, %v8741_v23  ;;  %v8891_v24 = vpop.f32.mrb[104].mxu1 }
0x419d   :  { %v13418_v36 = vpop.f32.mrb[105].mxu1  ;;  %13420 = vmatpush3.msra.mxu0 %v12333_v47 }
0x419e   :  { %13424 = vmatprep.subr.mxu0 %v12332_v32  ;;  %v9551_v30 = vpop.permute.xlu0 %9550 }
0x41a0   :  { %v9131_v50 = vpop.f32.mrb[106].mxu1 }
0x41a1   :  { %v9132_v26 = vadd.f32 %v15566_v15, %v9131_v50  ;;  %v13433_v20 = vpop.f32.mrb[107].mxu1 }
0x41a2   :  { %v9471_v5 = vpop.permute.xlu0 %9470 }
0x41a3   :  { %v9213_v53 = vsel %vm237_vm2, %v9132_v26, -inf }
0x41a4   :  { %9214 = vmax.xlane.f32.xlu1 %v9213_v53  ;;  %v9209_v54 = vpop.f32.mrb[108].mxu1  ;;  %v12335_v53 = vld [vmem:[%s16007_s6 + $0x78] sm:$0xff] }
0x41a5   :  { %v9210_v27 = vadd.f32 %v15558_v21, %v9209_v54  ;;  %v13438_v12 = vpop.f32.mrb[109].mxu1 }
0x41a7   :  { %v9216_v31 = vsel %vm237_vm2, %v9210_v27, -inf }
0x41a8   :  { %9217 = vmax.xlane.f32.xlu1 %v9216_v31 }
0x4231   :  { %v9215_v33 = vpop.xlane.xlu1 %9214 }
0x4232   :  { %v9219_v7 = vsub.f32 %v9132_v26, %v9215_v33  ;;  %v12371_v33 = vld [vmem:[#allocation10 + $0x3] ss:$0 sm:$0xff] }
0x4234   :  { %v9221_v34 = vmul.f32 1.442695, %v9219_v7 }
0x4235   :  { %v9218_v11 = vpop.xlane.xlu1 %9217 }
0x4236   :  { %14043 = vpow2.f32 %v9221_v34  ;;  %v9220_v37 = vsub.f32 %v9210_v27, %v9218_v11 }
0x4238   :  { %v9223_v13 = vmul.f32 1.442695, %v9220_v37 }
0x423a   :  { %14045 = vpow2.f32 %v9223_v13 }
0x4240   :  { %v14044_v38 = vpop.eup %14043 }
0x4241   :  { %v9225_v39 = vsel %vm237_vm2, %v14044_v38, 0.0 }
0x4242   :  { %9226 = vadd.xlane.f32.xlu1 %v9225_v39 }
0x4244   :  { %v14046_v29 = vpop.eup %14045 }
0x4245   :  { %v9228_v18 = vsel %vm237_vm2, %v14046_v29, 0.0 }
0x4246   :  { %9229 = vadd.xlane.f32.xlu1 %v9228_v18 }
0x4257   :  { %9235 = vrot.lane.b32.xlu1 %v15540_v17, %s14294_s1 }
0x425b   :  { %9548 = vrot.lane.b32.xlu1 %v15538_v0, %s14296_s20 }
0x426f   :  { %v8815_v28 = vpop.f32.mrb[68].mxu0 }
0x4270   :  { %v13413_v41 = vpop.f32.mrb[69].mxu0  ;;  %13421 = vmatprep.mubr.msk.f32.mxu0 %vm237_vm2, %v8815_v28 }
0x4271   :  { %13422 = vmatmul.mubr.msk.f32.vlgmr.msra.gmra.mrb[70].mxu0 %vm237_vm2, %v8891_v24 }
0x4272   :  { %13426 = vmatprep.mubr.msk.f32.mxu0 %vm237_vm2, %v15610_v40  ;;  %13425 = vmatpush3.msra.mxu0 %v12332_v32 }
0x4273   :  { %13439 = vmatprep.subr.mxu0 %v14285_v8 }
0x4279   :  { %13427 = vmatmul.mubr.msk.f32.vlgmr.msra.gmra.mrb[70].mxu0 %vm237_vm2, %v15600_v46 }
0x427a   :  { %13441 = vmatprep.mubr.msk.f32.mxu0 %vm14286_vm1, %v14285_v8 }
0x42cf   :  { %v9227_v44 = vpop.xlane.xlu1 %9226 }
0x42d0   :  { %14047 = vrcp.f32 %v9227_v44 }
0x42d3   :  { %v9230_v25 = vpop.xlane.xlu1 %9229 }
0x42d4   :  { %14049 = vrcp.f32 %v9230_v25 }
0x42d7   :  { %v9236_v45 = vpop.permute.xlu1 %9235 }
0x42d8   :  { %13440 = vmatpush3.msra.mxu0 %v9236_v45 }
0x42d9   :  { %13449 = vmatprep.subr.mxu0 %v12334_v42 }
0x42da   :  { %v14048_v40 = vpop.eup %14047 }
0x42db   :  { %v9233_v48 = vmul.f32 %v14048_v40, %v14044_v38  ;;  %v9549_v51 = vpop.permute.xlu1 %9548  ;;  %v12377_v40 = vld [vmem:[%s16005_s4 + $0xa8] sm:$0xff] }
0x42dd   :  { %13442 = vmatmul.mubr.msk.f32.vlgmr.msra.gmra.mrb[72].mxu0 %vm237_vm2, %v9233_v48 }
0x42de   :  { %v14050_v46 = vpop.eup %14049  ;;  %13450 = vmatpush3.msra.mxu0 %v12334_v42 }
0x42df   :  { %v9234_v55 = vmul.f32 %v14050_v46, %v14046_v29  ;;  %13459 = vmatprep.subr.mxu0 %v14285_v8  ;;  %v12378_v46 = vld [vmem:[%s16005_s4 + $0xb0] sm:$0xff] }
0x42e1   :  { %13447 = vmatmul.mubr.msk.f32.vlgmr.msra.gmra.mrb[110].mxu1 %vm237_vm2, %v9234_v55 }
0x42e2   :  { %13455 = vmatpush3.xpose.msk.msra.mxu1 %vm237_vm2, %v9473_v49  ;;  %13456 = vmatprep.mubr.msk.f32.mxu1 %vm14286_vm1, %v14285_v8 }
0x42e3   :  { %13464 = vmatprep.subr.mxu1 %v14285_v8 }
0x42e5   :  { %13457 = vmatmul.mubr.msk.f32.vlgmr.msra.gmra.mrb[112].mxu1 %vm237_vm2, %v9471_v5 }
0x42e6   :  { %13466 = vmatprep.mubr.msk.f32.mxu1 %vm14286_vm1, %v14285_v8 }
0x43b0   :  { %v9307_v35 = vpop.f32.mrb[72].mxu0 }
0x43b1   :  { %v13443_v57 = vpop.f32.mrb[73].mxu0  ;;  %13451 = vmatprep.mubr.msk.f32.mxu0 %vm237_vm2, %v9307_v35 }
0x43b2   :  { %v12385_v57 = vld [vmem:[%s16006_s5 + $0x5] ss:$0 sm:$0xff] }
0x43b4   :  { %v9383_v58 = vpop.f32.mrb[110].mxu1 }
0x43b5   :  { %v13448_v59 = vpop.f32.mrb[111].mxu1  ;;  %13452 = vmatmul.mubr.msk.f32.vlgmr.msra.gmra.mrb[70].mxu0 %vm237_vm2, %v9383_v58 }
0x43b6   :  { %13460 = vmatpush3.xpose.msk.msra.mxu0 %vm237_vm2, %v9551_v30  ;;  %13461 = vmatprep.mubr.msk.f32.mxu0 %vm14286_vm1, %v14285_v8  ;;  %v12379_v30 = vld [vmem:[%s16005_s4 + $0xb8] sm:$0xff] }
0x43b7   :  { %13469 = vmatprep.subr.mxu0 %v14285_v8  ;;  %v13866_v55 = vpack.i.bf16 %v12379_v30, %v12378_v46  ;;  %v13755_v35 = vpack.c.bf16 %v12379_v30, %v12378_v46 }
0x43b8   :  { %v9544_v3 = vpop.f32.mrb[112].mxu1 }
0x43b9   :  { %v9545_v62 = vadd.f32 %v15566_v15, %v9544_v3  ;;  %v13458_v1 = vpop.f32.mrb[113].mxu1  ;;  %13462 = vmatmul.mubr.msk.f32.vlgmr.msra.gmra.mrb[74].mxu0 %vm237_vm2, %v9549_v51 }
0x43ba   :  { %13471 = vmatprep.mubr.msk.f32.mxu0 %vm14286_vm1, %v14285_v8 }
0x43bb   :  { %v9626_v2 = vsel %vm237_vm2, %v9545_v62, -inf }
0x43bc   :  { %9627 = vmax.xlane.f32.xlu0 %v9626_v2 }
0x4449   :  { %v9628_v63 = vpop.xlane.xlu0 %9627 }
0x444a   :  { %v9632_v4 = vsub.f32 %v9545_v62, %v9628_v63 }
0x444c   :  { %v9634_v6 = vmul.f32 1.442695, %v9632_v4 }
0x444e   :  { %14051 = vpow2.f32 %v9634_v6 }
0x4458   :  { %v14052_v9 = vpop.eup %14051 }
0x4459   :  { %v9638_v14 = vsel %vm237_vm2, %v14052_v9, 0.0 }
0x445a   :  { %9639 = vadd.xlane.f32.xlu0 %v9638_v14 }
0x448c   :  { %v9622_v52 = vpop.f32.mrb[74].mxu0 }
0x448d   :  { %v9623_v15 = vadd.f32 %v15558_v21, %v9622_v52  ;;  %v13463_v56 = vpop.f32.mrb[75].mxu0 }
0x448f   :  { %v9629_v16 = vsel %vm237_vm2, %v9623_v15, -inf }
0x4490   :  { %9630 = vmax.xlane.f32.xlu1 %v9629_v16  ;;  %v12374_v16 = vld [vmem:[%s16009_s8 + $0x3] ss:$0 sm:$0xff] }
0x44a1   :  { %9648 = vrot.lane.b32.xlu1 %v15540_v17, %s14297_s10 }
0x44e7   :  { %v9640_v19 = vpop.xlane.xlu0 %9639 }
0x44e8   :  { %14053 = vrcp.f32 %v9640_v19 }
0x44f2   :  { %v14054_v23 = vpop.eup %14053 }
0x44f3   :  { %v9646_v50 = vmul.f32 %v14054_v23, %v14052_v9 }
0x451d   :  { %v9631_v22 = vpop.xlane.xlu1 %9630 }
0x451e   :  { %v9633_v24 = vsub.f32 %v9623_v15, %v9631_v22 }
0x4520   :  { %v9636_v36 = vmul.f32 1.442695, %v9633_v24  ;;  %v12375_v24 = vld [vmem:[%s16010_s9 + $0x3] ss:$0 sm:$0xff] }
0x4521   :  { %v9649_v26 = vpop.permute.xlu1 %9648 }
0x4522   :  { %14055 = vpow2.f32 %v9636_v36  ;;  %13465 = vmatpush3.msra.mxu1 %v9649_v26 }
0x4523   :  { %13467 = vmatmul.mubr.msk.f32.vlgmr.msra.gmra.mrb[114].mxu1 %vm237_vm2, %v9646_v50 }
0x452c   :  { %v14056_v21 = vpop.eup %14055 }
0x452d   :  { %v9641_v20 = vsel %vm237_vm2, %v14056_v21, 0.0 }
0x452e   :  { %9642 = vadd.xlane.f32.xlu0 %v9641_v20 }
0x4544   :  { %9724 = vrot.lane.b32.xlu0 %v15538_v0, %s14297_s10 }
0x45bb   :  { %v9643_v17 = vpop.xlane.xlu0 %9642 }
0x45bc   :  { %14057 = vrcp.f32 %v9643_v17 }
0x45bf   :  { %v9725_v54 = vpop.permute.xlu0 %9724 }
0x45c0   :  { %13470 = vmatpush3.msra.mxu0 %v9725_v54 }
0x45c1   :  { %13474 = vmatprep.subr.mxu0 %v12335_v53 }
0x45c6   :  { %v14058_v27 = vpop.eup %14057 }
0x45c7   :  { %v9647_v12 = vmul.f32 %v14058_v27, %v14056_v21 }
0x45c9   :  { %13472 = vmatmul.mubr.msk.f32.vlgmr.msra.gmra.mrb[76].mxu0 %vm237_vm2, %v9647_v12 }
0x45ca   :  { %13475 = vmatpush3.msra.mxu0 %v12335_v53 }
0x45f6   :  { %v9720_v31 = vpop.f32.mrb[114].mxu1 }
0x45f7   :  { %v13468_v47 = vpop.f32.mrb[115].mxu1  ;;  %13476 = vmatprep.mubr.msk.f32.mxu0 %vm237_vm2, %v9720_v31 }
0x469c   :  { %v9796_v32 = vpop.f32.mrb[76].mxu0 }
0x469d   :  { %v13473_v0 = vpop.f32.mrb[77].mxu0  ;;  %13477 = vmatmul.mubr.msk.f32.vlgmr.msra.gmra.mrb[70].mxu0 %vm237_vm2, %v9796_v32 }
0x469e   :  { %13498 = vmatprep.mubr.msk.f32.mxu0 %vm152_vm0, %v15242_v10 }
0x4770   :  { %v13478_v7 = vpop.f32.mrb[70].mxu0 }
0x4771   :  { %v9890_v34 = vadd.f32 %v13478_v7, %v12371_v33  ;;  %v9872_v11 = vpop.f32.mrb[71].mxu0  ;;  %v15778_v7 = vld [vmem:[#allocation7 + $0x8] sm:$0xff] }
0x4772   :  { %v9889_v37 = vadd.f32 %v12371_v33, %v9872_v11 }
0x4773   :  { %v9896_v13 = vadd.f32 %v9890_v34, %v15527_v61 }
0x4774   :  { %v9895_v38 = vadd.f32 %v9889_v37, %v15525_v60  ;;  %v12376_v60 = vld [vmem:[%s16005_s4 + $0xa0] sm:$0xff] }
0x4775   :  { %v9900_v39 = vsel %vm152_vm0, %v9896_v13, 0.0  ;;  %v13861_v48 = vpack.i.bf16 %v12377_v40, %v12376_v60  ;;  %v13751_v5 = vpack.c.bf16 %v12377_v40, %v12376_v60 }
0x4776   :  { %9901 = vadd.xlane.f32.xlu0 %v9900_v39  ;;  %v9897_v29 = vsel %vm152_vm0, %v9895_v38, 0.0 }
0x4777   :  { %9898 = vadd.xlane.f32.xlu1 %v9897_v29  ;;  %13752 = vmatprep.subr.bf16.mxu1 %v13751_v5 }
0x4778   :  { %13754 = vmatpush3.bf16.msra.mxu1 %v13751_v5 }
0x4779   :  { %13756 = vmatprep.subr.bf16.mxu1 %v13755_v35 }
0x477c   :  { %13758 = vmatpush3.bf16.msra.mxu1 %v13755_v35 }
0x477d   :  { %13501 = vmatprep.subr.mxu1 %v14285_v8 }
0x4803   :  { %v9902_v18 = vpop.xlane.xlu0 %9901 }
0x4804   :  { %v9904_v28 = vmul.f32 0.03125, %v9902_v18  ;;  %v9899_v41 = vpop.xlane.xlu1 %9898 }
0x4805   :  { %v9903_v44 = vmul.f32 0.03125, %v9899_v41 }
0x4806   :  { %v9906_v10 = vsub.f32 %v9896_v13, %v9904_v28  ;;  %v15789_v28 = vld [vmem:[#allocation7] sm:$0xff] }
0x4807   :  { %v9905_v25 = vsub.f32 %v9895_v38, %v9903_v44 }
0x4808   :  { %v9908_v42 = vmul.f32 %v9906_v10, %v9906_v10 }
0x4809   :  { %v9907_v45 = vmul.f32 %v9905_v25, %v9905_v25 }
0x480a   :  { %v9912_v49 = vsel %vm152_vm0, %v9908_v42, 0.0 }
0x480b   :  { %9913 = vadd.xlane.f32.xlu0 %v9912_v49  ;;  %v9909_v61 = vsel %vm152_vm0, %v9907_v45, 0.0 }
0x480c   :  { %9910 = vadd.xlane.f32.xlu1 %v9909_v61 }
0x481d   :  { %13862 = vrot.lane.b32.xlu1 %v13861_v48, %s14287_s0 }
0x4821   :  { %13867 = vrot.lane.b32.xlu0 %v13866_v55, %s14287_s0  ;;  %10056 = vrot.lane.b32.xlu1 %v12385_v57, %s14287_s0 }
0x4898   :  { %v9914_v58 = vpop.xlane.xlu0 %9913 }
0x4899   :  { %v9916_v59 = vmul.f32 0.03125, %v9914_v58  ;;  %v9911_v51 = vpop.xlane.xlu1 %9910 }
0x489a   :  { %v9915_v3 = vmul.f32 0.03125, %v9911_v51 }
0x489b   :  { %v9918_v62 = vadd.f32 1e-05, %v9916_v59 }
0x489c   :  { %v9917_v1 = vadd.f32 1e-05, %v9915_v3  ;;  %v13868_v2 = vpop.permute.xlu0 %13867 }
0x489d   :  { %14059 = vrsqrt.f32 %v9918_v62  ;;  %v13863_v63 = vpop.permute.xlu1 %13862  ;;  %v13870_v4 = vunpack.i.h.bf16 %v13868_v2  ;;  %v13869_v6 = vunpack.i.l.bf16 %v13868_v2 }
0x489e   :  { %14061 = vrsqrt.f32 %v9917_v1  ;;  %v13865_v9 = vunpack.i.h.bf16 %v13863_v63  ;;  %v13864_v14 = vunpack.i.l.bf16 %v13863_v63 }
0x489f   :  { %v13763_v15 = vpack.c.bf16 %v13870_v4, %v13869_v6 }
0x48a0   :  { %v13759_v52 = vpack.c.bf16 %v13865_v9, %v13864_v14 }
0x48a2   :  { %13760 = vmatprep.subr.bf16.mxu0 %v13759_v52 }
0x48a3   :  { %13762 = vmatpush3.bf16.msra.mxu0 %v13759_v52 }
0x48a4   :  { %13764 = vmatprep.subr.bf16.mxu0 %v13763_v15 }
0x48a7   :  { %v14060_v56 = vpop.eup %14059  ;;  %13766 = vmatpush3.bf16.msra.mxu0 %v13763_v15 }
0x48a8   :  { %v14062_v19 = vpop.eup %14061  ;;  %v9922_v22 = vmul.f32 %v14060_v56, %v9906_v10  ;;  %13511 = vmatprep.subr.mxu0 %v14285_v8 }
0x48a9   :  { %v9921_v23 = vmul.f32 %v14062_v19, %v9905_v25 }
0x48aa   :  { %13499 = vmatmul.mubr.msk.f32.vlgmr.msra.gmra.mrb[78].mxu0 %vm152_vm0, %v15259_v43  ;;  %v9930_v36 = vmul.f32 %v12374_v16, %v9922_v22  ;;  %v10057_v43 = vpop.permute.xlu1 %10056 }
0x48ab   :  { %v9929_v50 = vmul.f32 %v12374_v16, %v9921_v23  ;;  %13513 = vmatprep.mubr.msk.f32.mxu0 %vm14286_vm1, %v14285_v8 }
0x48ac   :  { %v15748_v21 = vadd.f32 %v12375_v24, %v9930_v36 }
0x48ad   :  { %v15746_v26 = vadd.f32 %v12375_v24, %v9929_v50 }
0x48af   :  { %13487 = vmatprep.mubr.msk.f32.mxu1 %vm152_vm0, %v15746_v26 }
0x48b0   :  { %13488 = vmatmul.mubr.msk.f32.vlgmr.msra.gmra.mrb[116].mxu1 %vm152_vm0, %v15748_v21 }
0x48b1   :  { %13503 = vmatprep.mubr.msk.f32.mxu1 %vm14286_vm1, %v14285_v8 }
0x497d   :  { %v13500_v20 = vpop.f32.mrb[78].mxu0 }
0x497e   :  { %v10125_v17 = vpop.f32.mrb[79].mxu0  ;;  %v15763_v31 = vadd.f32 %v13500_v20, %v10057_v43 }
0x497f   :  { %v15756_v53 = vadd.f32 %v10125_v17, %v10057_v43 }
0x4981   :  { %13502 = vmatpush3.xpose.msk.msra.mxu1 %vm237_vm2, %v15756_v53 }
0x4982   :  { %13506 = vmatprep.subr.mxu1 %v14285_v8 }
0x4983   :  { %v13489_v54 = vpop.f32.mrb[116].mxu1 }
0x4984   :  { %v10031_v27 = vpop.f32.mrb[117].mxu1  ;;  %v15771_v47 = vadd.f32 %v13489_v54, %v12385_v57 }
0x4985   :  { %v15761_v12 = vadd.f32 %v12385_v57, %v10031_v27 }
0x4987   :  { %13504 = vmatmul.mubr.msk.f32.vlgmr.msra.gmra.mrb[118].mxu1 %vm237_vm2, %v15761_v12 }
0x4988   :  { %13507 = vmatpush3.xpose.msk.msra.mxu1 %vm237_vm2, %v15763_v31  ;;  %13508 = vmatprep.mubr.msk.f32.mxu1 %vm14286_vm1, %v14285_v8 }
0x4989   :  { %13516 = vmatprep.subr.mxu1 %v14285_v8 }
0x498b   :  { %13509 = vmatmul.mubr.msk.f32.vlgmr.msra.gmra.mrb[120].mxu1 %vm237_vm2, %v15771_v47 }
0x498c   :  { %13518 = vmatprep.mubr.msk.f32.mxu1 %vm14286_vm1, %v14285_v8 }
0x4a5a   :  { %v10206_v32 = vpop.f32.mrb[118].mxu1 }
0x4a5b   :  { %v13505_v0 = vpop.f32.mrb[119].mxu1  ;;  %v10207_v41 = vadd.f32 %v15789_v28, %v10206_v32 }
0x4a5d   :  { %v10286_v44 = vsel %vm237_vm2, %v10207_v41, -inf }
0x4a5e   :  { %v10282_v33 = vpop.f32.mrb[120].mxu1 }
0x4a5f   :  { %v10283_v34 = vadd.f32 %v15778_v7, %v10282_v33  ;;  %v13510_v11 = vpop.f32.mrb[121].mxu1 }
0x4a61   :  { %v10289_v37 = vsel %vm237_vm2, %v10283_v34, -inf }
0x4a62   :  { %10290 = vmax.xlane.f32.xlu1 %v10289_v37 }
0x4a73   :  { %10540 = vrot.lane.b32.xlu1 %v15763_v31, %s14289_s19 }
0x4a77   :  { %10538 = vrot.lane.b32.xlu1 %v15771_v47, %s14289_s19 }
0x4aef   :  { %v10291_v13 = vpop.xlane.xlu1 %10290 }
0x4af0   :  { %v10293_v38 = vsub.f32 %v10283_v34, %v10291_v13 }
0x4af2   :  { %v10296_v39 = vmul.f32 1.442695, %v10293_v38 }
0x4af3   :  { %v10541_v45 = vpop.permute.xlu1 %10540 }
0x4af4   :  { %14063 = vpow2.f32 %v10296_v39 }
0x4af7   :  { %v10539_v61 = vpop.permute.xlu1 %10538 }
0x4afe   :  { %v14064_v29 = vpop.eup %14063 }
0x4aff   :  { %v10301_v18 = vsel %vm237_vm2, %v14064_v29, 0.0 }
0x4b00   :  { %10302 = vadd.xlane.f32.xlu0 %v10301_v18 }
0x4b16   :  { %10384 = vrot.lane.b32.xlu0 %v15763_v31, %s14287_s0 }
0x4b35   :  { %10287 = vmax.xlane.f32.xlu0 %v10286_v44 }
0x4b4b   :  { %10308 = vrot.lane.b32.xlu0 %v15756_v53, %s14287_s0 }
0x4b4f   :  { %10460 = vrot.lane.b32.xlu0 %v15761_v12, %s14289_s19 }
0x4b8d   :  { %v10303_v10 = vpop.xlane.xlu0 %10302 }
0x4b8e   :  { %14065 = vrcp.f32 %v10303_v10 }
0x4b91   :  { %v10385_v25 = vpop.permute.xlu0 %10384 }
0x4b92   :  { %13517 = vmatpush3.msra.mxu1 %v10385_v25 }
0x4b93   :  { %13526 = vmatprep.subr.mxu1 %v14285_v8 }
0x4b98   :  { %v14066_v42 = vpop.eup %14065 }
0x4b99   :  { %v10307_v49 = vmul.f32 %v14066_v42, %v14064_v29 }
0x4b9b   :  { %13519 = vmatmul.mubr.msk.f32.vlgmr.msra.gmra.mrb[122].mxu1 %vm237_vm2, %v10307_v49  ;;  %v12382_v49 = vld [vmem:[%s16007_s6 + $0xa8] sm:$0xff] }
0x4b9c   :  { %13527 = vmatpush3.xpose.msk.msra.mxu1 %vm237_vm2, %v10541_v45  ;;  %13528 = vmatprep.mubr.msk.f32.mxu1 %vm14286_vm1, %v14285_v8 }
0x4b9d   :  { %13536 = vmatprep.subr.mxu1 %v14285_v8 }
0x4b9f   :  { %13529 = vmatmul.mubr.msk.f32.vlgmr.msra.gmra.mrb[124].mxu1 %vm237_vm2, %v10539_v61  ;;  %v12381_v61 = vld [vmem:[%s16007_s6 + $0xa0] sm:$0xff] }
0x4ba0   :  { %13538 = vmatprep.mubr.msk.f32.mxu1 %vm14286_vm1, %v14285_v8 }
0x4bc2   :  { %v10288_v60 = vpop.xlane.xlu0 %10287 }
0x4bc3   :  { %v10292_v40 = vsub.f32 %v10207_v41, %v10288_v60 }
0x4bc5   :  { %v10294_v48 = vmul.f32 1.442695, %v10292_v40 }
0x4bc6   :  { %v10309_v46 = vpop.permute.xlu0 %10308 }
0x4bc7   :  { %14067 = vpow2.f32 %v10294_v48  ;;  %13512 = vmatpush3.msra.mxu0 %v10309_v46 }
0x4bc8   :  { %13521 = vmatprep.subr.mxu0 %v14285_v8 }
0x4bca   :  { %v10461_v3 = vpop.permute.xlu0 %10460 }
0x4bd1   :  { %v14068_v30 = vpop.eup %14067 }
0x4bd2   :  { %v10298_v55 = vsel %vm237_vm2, %v14068_v30, 0.0 }
0x4bd3   :  { %10299 = vadd.xlane.f32.xlu1 %v10298_v55 }
0x4be4   :  { %10462 = vrot.lane.b32.xlu1 %v15756_v53, %s14289_s19 }
0x4c60   :  { %v10300_v5 = vpop.xlane.xlu1 %10299 }
0x4c61   :  { %14069 = vrcp.f32 %v10300_v5 }
0x4c64   :  { %v10463_v58 = vpop.permute.xlu1 %10462 }
0x4c6b   :  { %v14070_v35 = vpop.eup %14069 }
0x4c6c   :  { %v10306_v57 = vmul.f32 %v14070_v35, %v14068_v30 }
0x4c6e   :  { %13514 = vmatmul.mubr.msk.f32.vlgmr.msra.gmra.mrb[80].mxu0 %vm237_vm2, %v10306_v57  ;;  %v15811_v59 = vpop.f32.mrb[122].mxu1 }
0x4c6f   :  { %13522 = vmatpush3.xpose.msk.msra.mxu0 %vm237_vm2, %v10463_v58  ;;  %v13520_v51 = vpop.f32.mrb[123].mxu1  ;;  %13523 = vmatprep.mubr.msk.f32.mxu0 %vm14286_vm1, %v14285_v8 }
0x4c70   :  { %13531 = vmatprep.subr.mxu0 %v14285_v8 }
0x4c72   :  { %13524 = vmatmul.mubr.msk.f32.vlgmr.msra.gmra.mrb[82].mxu0 %vm237_vm2, %v10461_v3  ;;  %v10612_v62 = vpop.f32.mrb[124].mxu1 }
0x4c73   :  { %v10613_v1 = vadd.f32 %v15778_v7, %v10612_v62  ;;  %v13530_v2 = vpop.f32.mrb[125].mxu1  ;;  %13533 = vmatprep.mubr.msk.f32.mxu0 %vm14286_vm1, %v14285_v8  ;;  %v12383_v62 = vld [vmem:[%s16007_s6 + $0xb0] sm:$0xff] }
0x4c75   :  { %v10619_v63 = vsel %vm237_vm2, %v10613_v1, -inf }
0x4c76   :  { %10620 = vmax.xlane.f32.xlu1 %v10619_v63 }
0x4c87   :  { %10954 = vrot.lane.b32.xlu1 %v15756_v53, %s14293_s22 }
0x4c8b   :  { %10952 = vrot.lane.b32.xlu1 %v15761_v12, %s14293_s22 }
0x4c8f   :  { %11030 = vrot.lane.b32.xlu1 %v15771_v47, %s14293_s22 }
0x4d03   :  { %v10621_v4 = vpop.xlane.xlu1 %10620 }
0x4d04   :  { %v10623_v6 = vsub.f32 %v10613_v1, %v10621_v4 }
0x4d06   :  { %v10626_v9 = vmul.f32 1.442695, %v10623_v6 }
0x4d07   :  { %v10955_v50 = vpop.permute.xlu1 %10954 }
0x4d08   :  { %14071 = vpow2.f32 %v10626_v9 }
0x4d0b   :  { %v10953_v17 = vpop.permute.xlu1 %10952 }
0x4d0f   :  { %v11031_v27 = vpop.permute.xlu1 %11030 }
0x4d12   :  { %v14072_v14 = vpop.eup %14071 }
0x4d13   :  { %v10631_v52 = vsel %vm237_vm2, %v14072_v14, 0.0 }
0x4d14   :  { %10632 = vadd.xlane.f32.xlu0 %v10631_v52 }
0x4d2a   :  { %10714 = vrot.lane.b32.xlu0 %v15763_v31, %s14290_s21 }
0x4d2e   :  { %11032 = vrot.lane.b32.xlu0 %v15763_v31, %s14293_s22 }
0x4d41   :  { %v15833_v15 = vpop.f32.mrb[80].mxu0 }
0x4d42   :  { %v13515_v56 = vpop.f32.mrb[81].mxu0 }
0x4d45   :  { %v10534_v16 = vpop.f32.mrb[82].mxu0 }
0x4d46   :  { %v13525_v19 = vpop.f32.mrb[83].mxu0  ;;  %v10535_v22 = vadd.f32 %v15789_v28, %v10534_v16 }
0x4d48   :  { %v10616_v23 = vsel %vm237_vm2, %v10535_v22, -inf }
0x4d4d   :  { %10617 = vmax.xlane.f32.xlu0 %v10616_v23 }
0x4d63   :  { %10638 = vrot.lane.b32.xlu0 %v15756_v53, %s14290_s21 }
0x4d67   :  { %11130 = vrot.lane.b32.xlu0 %v15756_v53, %s14291_s3 }
0x4d6b   :  { %11367 = vrot.lane.b32.xlu0 %v15756_v53, %s14296_s20 }
0x4d6f   :  { %11445 = vrot.lane.b32.xlu0 %v15763_v31, %s14296_s20 }
0x4d73   :  { %11365 = vrot.lane.b32.xlu0 %v15761_v12, %s14296_s20 }
0x4d77   :  { %11443 = vrot.lane.b32.xlu0 %v15771_v47, %s14296_s20 }
0x4da1   :  { %v10633_v24 = vpop.xlane.xlu0 %10632 }
0x4da2   :  { %14073 = vrcp.f32 %v10633_v24 }
0x4da5   :  { %v10715_v36 = vpop.permute.xlu0 %10714 }
0x4da6   :  { %13537 = vmatpush3.msra.mxu1 %v10715_v36 }
0x4da7   :  { %13551 = vmatprep.subr.mxu1 %v14285_v8 }
0x4da9   :  { %v11033_v54 = vpop.permute.xlu0 %11032 }
0x4dac   :  { %v14074_v43 = vpop.eup %14073 }
0x4dad   :  { %v10637_v20 = vmul.f32 %v14074_v43, %v14072_v14 }
0x4daf   :  { %13539 = vmatmul.mubr.msk.f32.vlgmr.msra.gmra.mrb[126].mxu1 %vm237_vm2, %v10637_v20 }
0x4db0   :  { %13552 = vmatpush3.xpose.msk.msra.mxu1 %vm237_vm2, %v10955_v50  ;;  %13553 = vmatprep.mubr.msk.f32.mxu1 %vm14286_vm1, %v14285_v8 }
0x4db1   :  { %13556 = vmatprep.subr.mxu1 %v14285_v8 }
0x4db3   :  { %13554 = vmatmul.mubr.msk.f32.vlgmr.msra.gmra.mrb[128].mxu1 %vm237_vm2, %v10953_v17 }
0x4db4   :  { %13557 = vmatpush3.xpose.msk.msra.mxu1 %vm237_vm2, %v11033_v54  ;;  %13558 = vmatprep.mubr.msk.f32.mxu1 %vm14286_vm1, %v14285_v8 }
0x4db5   :  { %13566 = vmatprep.subr.mxu1 %v14285_v8 }
0x4db7   :  { %13559 = vmatmul.mubr.msk.f32.vlgmr.msra.gmra.mrb[130].mxu1 %vm237_vm2, %v11031_v27 }
0x4db8   :  { %13568 = vmatprep.mubr.msk.f32.mxu1 %vm14286_vm1, %v14285_v8 }
0x4dda   :  { %v10618_v12 = vpop.xlane.xlu0 %10617 }
0x4ddb   :  { %v10622_v47 = vsub.f32 %v10535_v22, %v10618_v12 }
0x4ddd   :  { %v10624_v32 = vmul.f32 1.442695, %v10622_v47 }
0x4dde   :  { %v10639_v0 = vpop.permute.xlu0 %10638 }
0x4ddf   :  { %14075 = vpow2.f32 %v10624_v32  ;;  %13532 = vmatpush3.msra.mxu0 %v10639_v0 }
0x4de0   :  { %13541 = vmatprep.subr.mxu0 %v12382_v49 }
0x4de2   :  { %v11131_v1 = vpop.permute.xlu0 %11130 }
0x4de6   :  { %v11368_v6 = vpop.permute.xlu0 %11367 }
0x4de9   :  { %v14076_v33 = vpop.eup %14075 }
0x4dea   :  { %v10628_v34 = vsel %vm237_vm2, %v14076_v33, 0.0 }
0x4deb   :  { %10629 = vadd.xlane.f32.xlu1 %v10628_v34 }
0x4e78   :  { %v10630_v11 = vpop.xlane.xlu1 %10629 }
0x4e79   :  { %14077 = vrcp.f32 %v10630_v11 }
0x4e82   :  { %v10786_v37 = vpop.f32.mrb[126].mxu1 }
0x4e83   :  { %v14078_v13 = vpop.eup %14077  ;;  %v13540_v38 = vpop.f32.mrb[127].mxu1 }
0x4e84   :  { %v10636_v39 = vmul.f32 %v14078_v13, %v14076_v33 }
0x4e86   :  { %13534 = vmatmul.mubr.msk.f32.vlgmr.msra.gmra.mrb[84].mxu0 %vm237_vm2, %v10636_v39  ;;  %v11026_v29 = vpop.f32.mrb[128].mxu1 }
0x4e87   :  { %v11027_v18 = vadd.f32 %v15789_v28, %v11026_v29  ;;  %v13555_v41 = vpop.f32.mrb[129].mxu1  ;;  %13542 = vmatpush3.msra.mxu0 %v12382_v49  ;;  %v12422_v49 = vld [vmem:[#allocation10 + $0x5] ss:$0 sm:$0xff] }
0x4e88   :  { %13546 = vmatprep.subr.mxu0 %v12381_v61 }
0x4e89   :  { %v11108_v44 = vsel %vm237_vm2, %v11027_v18, -inf }
0x4e8a   :  { %11109 = vmax.xlane.f32.xlu1 %v11108_v44  ;;  %v11104_v10 = vpop.f32.mrb[130].mxu1 }
0x4e8b   :  { %v11105_v25 = vadd.f32 %v15778_v7, %v11104_v10  ;;  %v13560_v42 = vpop.f32.mrb[131].mxu1 }
0x4e8d   :  { %v11111_v45 = vsel %vm237_vm2, %v11105_v25, -inf }
0x4e8e   :  { %11112 = vmax.xlane.f32.xlu1 %v11111_v45 }
0x4f17   :  { %v11110_v60 = vpop.xlane.xlu1 %11109 }
0x4f18   :  { %v11114_v40 = vsub.f32 %v11027_v18, %v11110_v60  ;;  %v12384_v18 = vld [vmem:[%s16007_s6 + $0xb8] sm:$0xff] }
0x4f1a   :  { %v11116_v48 = vmul.f32 1.442695, %v11114_v40 }
0x4f1b   :  { %v11113_v46 = vpop.xlane.xlu1 %11112 }
0x4f1c   :  { %14079 = vpow2.f32 %v11116_v48  ;;  %v11115_v30 = vsub.f32 %v11105_v25, %v11113_v46 }
0x4f1e   :  { %v11118_v55 = vmul.f32 1.442695, %v11115_v30 }
0x4f20   :  { %14081 = vpow2.f32 %v11118_v55 }
0x4f26   :  { %v14080_v5 = vpop.eup %14079 }
0x4f27   :  { %v11120_v35 = vsel %vm237_vm2, %v14080_v5, 0.0 }
0x4f28   :  { %11121 = vadd.xlane.f32.xlu1 %v11120_v35 }
0x4f2a   :  { %v14082_v57 = vpop.eup %14081 }
0x4f2b   :  { %v11123_v58 = vsel %vm237_vm2, %v14082_v57, 0.0 }
0x4f2c   :  { %11124 = vadd.xlane.f32.xlu1 %v11123_v58 }
0x4f3d   :  { %11206 = vrot.lane.b32.xlu1 %v15763_v31, %s14291_s3 }
0x4f59   :  { %v10710_v51 = vpop.f32.mrb[84].mxu0 }
0x4f5a   :  { %v13535_v3 = vpop.f32.mrb[85].mxu0  ;;  %13543 = vmatprep.mubr.msk.f32.mxu0 %vm237_vm2, %v10710_v51 }
0x4f5b   :  { %13544 = vmatmul.mubr.msk.f32.vlgmr.msra.gmra.mrb[86].mxu0 %vm237_vm2, %v10786_v37 }
0x4f5c   :  { %13548 = vmatprep.mubr.msk.f32.mxu0 %vm237_vm2, %v15833_v15  ;;  %13547 = vmatpush3.msra.mxu0 %v12381_v61 }
0x4f5d   :  { %13561 = vmatprep.subr.mxu0 %v14285_v8 }
0x4f63   :  { %13549 = vmatmul.mubr.msk.f32.vlgmr.msra.gmra.mrb[86].mxu0 %vm237_vm2, %v15811_v59  ;;  %v11446_v59 = vpop.permute.xlu0 %11445 }
0x4f64   :  { %13562 = vmatpush3.msra.mxu0 %v11131_v1  ;;  %13563 = vmatprep.mubr.msk.f32.mxu0 %vm14286_vm1, %v14285_v8 }
0x4f65   :  { %13571 = vmatprep.subr.mxu0 %v12383_v62 }
0x4f67   :  { %v11366_v56 = vpop.permute.xlu0 %11365 }
0x4f6b   :  { %v11444_v24 = vpop.permute.xlu0 %11443 }
0x4fb5   :  { %v11122_v2 = vpop.xlane.xlu1 %11121 }
0x4fb6   :  { %14083 = vrcp.f32 %v11122_v2 }
0x4fb9   :  { %v11125_v63 = vpop.xlane.xlu1 %11124 }
0x4fba   :  { %14085 = vrcp.f32 %v11125_v63 }
0x4fbd   :  { %v11207_v4 = vpop.permute.xlu1 %11206 }
0x4fbe   :  { %13567 = vmatpush3.msra.mxu1 %v11207_v4  ;;  %v11836_v4 = vld [vmem:[#allocation11 + $0x68] sm:$0xff] }
0x4fbf   :  { %13576 = vmatprep.subr.mxu1 %v14285_v8 }
0x4fc0   :  { %v14084_v9 = vpop.eup %14083 }
0x4fc1   :  { %v11128_v14 = vmul.f32 %v14084_v9, %v14080_v5  ;;  %v11837_v9 = vld [vmem:[#allocation11 + $0x70] sm:$0xff] }
0x4fc3   :  { %13564 = vmatmul.mubr.msk.f32.vlgmr.msra.gmra.mrb[88].mxu0 %vm237_vm2, %v11128_v14  ;;  %v11838_v14 = vld [vmem:[#allocation11 + $0x78] sm:$0xff] }
0x4fc4   :  { %v14086_v52 = vpop.eup %14085  ;;  %13572 = vmatpush3.msra.mxu0 %v12383_v62 }
0x4fc5   :  { %v11129_v15 = vmul.f32 %v14086_v52, %v14082_v57  ;;  %13581 = vmatprep.subr.mxu0 %v14285_v8  ;;  %v13771_v52 = vpack.c.bf16 %v11838_v14, %v11837_v9  ;;  %v12445_v9 = vld [vmem:[%s16009_s8 + $0x7] ss:$0 sm:$0xff] }
0x4fc7   :  { %13569 = vmatmul.mubr.msk.f32.vlgmr.msra.gmra.mrb[132].mxu1 %vm237_vm2, %v11129_v15  ;;  %v12429_v15 = vld [vmem:[%s16013_s12 + $0xc8] sm:$0xff] }
0x4fc8   :  { %13577 = vmatpush3.xpose.msk.msra.mxu1 %vm237_vm2, %v11368_v6  ;;  %13578 = vmatprep.mubr.msk.f32.mxu1 %vm14286_vm1, %v14285_v8 }
0x4fc9   :  { %13586 = vmatprep.subr.mxu1 %v14285_v8 }
0x4fcb   :  { %13579 = vmatmul.mubr.msk.f32.vlgmr.msra.gmra.mrb[134].mxu1 %vm237_vm2, %v11366_v56  ;;  %v12430_v56 = vld [vmem:[%s16013_s12 + $0xd0] sm:$0xff] }
0x4fcc   :  { %13588 = vmatprep.mubr.msk.f32.mxu1 %vm14286_vm1, %v14285_v8 }
0x5096   :  { %v11202_v16 = vpop.f32.mrb[88].mxu0 }
0x5097   :  { %v13565_v19 = vpop.f32.mrb[89].mxu0  ;;  %13573 = vmatprep.mubr.msk.f32.mxu0 %vm237_vm2, %v11202_v16 }
0x5098   :  { %v12431_v19 = vld [vmem:[%s16013_s12 + $0xd8] sm:$0xff] }
0x509a   :  { %v11278_v22 = vpop.f32.mrb[132].mxu1 }
0x509b   :  { %v13570_v23 = vpop.f32.mrb[133].mxu1  ;;  %13574 = vmatmul.mubr.msk.f32.vlgmr.msra.gmra.mrb[86].mxu0 %vm237_vm2, %v11278_v22  ;;  %v13779_v22 = vpack.c.bf16 %v12431_v19, %v12430_v56 }
0x509c   :  { %13582 = vmatpush3.xpose.msk.msra.mxu0 %vm237_vm2, %v11446_v59  ;;  %13583 = vmatprep.mubr.msk.f32.mxu0 %vm14286_vm1, %v14285_v8  ;;  %v12428_v59 = vld [vmem:[%s16013_s12 + $0xc0] sm:$0xff] }
0x509d   :  { %13591 = vmatprep.subr.mxu0 %v14285_v8  ;;  %v13775_v16 = vpack.c.bf16 %v12429_v15, %v12428_v59  ;;  %v12432_v23 = vld [vmem:[%s16013_s12 + $0xe0] sm:$0xff] }
0x509e   :  { %v11439_v36 = vpop.f32.mrb[134].mxu1  ;;  %v12446_v15 = vld [vmem:[%s16010_s9 + $0x7] ss:$0 sm:$0xff] }
0x509f   :  { %v11440_v50 = vadd.f32 %v15789_v28, %v11439_v36  ;;  %v13580_v43 = vpop.f32.mrb[135].mxu1  ;;  %13584 = vmatmul.mubr.msk.f32.vlgmr.msra.gmra.mrb[90].mxu0 %vm237_vm2, %v11444_v24  ;;  %v12433_v24 = vld [vmem:[%s16013_s12 + $0xe8] sm:$0xff] }
0x50a0   :  { %13593 = vmatprep.mubr.msk.f32.mxu0 %vm14286_vm1, %v14285_v8  ;;  %v13783_v36 = vpack.c.bf16 %v12433_v24, %v12432_v23 }
0x50a1   :  { %v11521_v20 = vsel %vm237_vm2, %v11440_v50, -inf }
0x50a2   :  { %11522 = vmax.xlane.f32.xlu1 %v11521_v20 }
0x512f   :  { %v11523_v17 = vpop.xlane.xlu1 %11522 }
0x5130   :  { %v11527_v54 = vsub.f32 %v11440_v50, %v11523_v17 }
0x5132   :  { %v11529_v27 = vmul.f32 1.442695, %v11527_v54 }
0x5134   :  { %14087 = vpow2.f32 %v11529_v27 }
0x513e   :  { %v14088_v28 = vpop.eup %14087 }
0x513f   :  { %v11533_v33 = vsel %vm237_vm2, %v14088_v28, 0.0 }
0x5172   :  { %v11517_v12 = vpop.f32.mrb[90].mxu0 }
0x5173   :  { %v11518_v47 = vadd.f32 %v15778_v7, %v11517_v12  ;;  %v13585_v32 = vpop.f32.mrb[91].mxu0 }
0x5175   :  { %v11524_v0 = vsel %vm237_vm2, %v11518_v47, -inf }
0x5176   :  { %11525 = vmax.xlane.f32.xlu0 %v11524_v0 }
0x517a   :  { %11534 = vadd.xlane.f32.xlu0 %v11533_v33  ;;  %v12426_v33 = vld [vmem:[%s16010_s9 + $0x5] ss:$0 sm:$0xff] }
0x5190   :  { %11543 = vrot.lane.b32.xlu0 %v15756_v53, %s14295_s7 }
0x5203   :  { %v11526_v8 = vpop.xlane.xlu0 %11525 }
0x5204   :  { %v11528_v34 = vsub.f32 %v11518_v47, %v11526_v8  ;;  %v12425_v47 = vld [vmem:[%s16009_s8 + $0x5] ss:$0 sm:$0xff] }
0x5206   :  { %v11531_v11 = vmul.f32 1.442695, %v11528_v34 }
0x5207   :  { %v11535_v37 = vpop.xlane.xlu0 %11534 }
0x5208   :  { %14089 = vpow2.f32 %v11531_v11 }
0x5209   :  { %14091 = vrcp.f32 %v11535_v37 }
0x520b   :  { %v11544_v13 = vpop.permute.xlu0 %11543 }
0x520c   :  { %13587 = vmatpush3.msra.mxu1 %v11544_v13  ;;  %v12434_v13 = vld [vmem:[%s16013_s12 + $0xf0] sm:$0xff] }
0x5212   :  { %v14090_v7 = vpop.eup %14089 }
0x5213   :  { %v14092_v38 = vpop.eup %14091  ;;  %v11536_v39 = vsel %vm237_vm2, %v14090_v7, 0.0 }
0x5214   :  { %v11541_v29 = vmul.f32 %v14092_v38, %v14088_v28  ;;  %11537 = vadd.xlane.f32.xlu1 %v11536_v39  ;;  %v12437_v39 = vld [vmem:[%s16012_s11 + $0x3] ss:$0 sm:$0xff] }
0x5216   :  { %13589 = vmatmul.mubr.msk.f32.vlgmr.msra.gmra.mrb[136].mxu1 %vm237_vm2, %v11541_v29 }
0x5225   :  { %11619 = vrot.lane.b32.xlu1 %v15763_v31, %s14295_s7  ;;  %s14298_s7 = smov [#allocation13]  }
0x5226   :  { %s12083_s10 = sshll.u32 %s14298_s7, 4  ;;  %s12084_s10 = int_to_ptr.vmem [resolvable:$true] %s12083_s10 }
0x5227   :  { %s14243_s17 = scalar_lea.vmem %s12084_s10, 256  ;;  %p14248_p7 = scmp.lt.s32.totalorder %s12084_s10, %s12084_s10 }
0x5228   :  { %p14244_p6 = scmp.ne.s32.totalorder %s12084_s10, %s14243_s17  ;;  %p14249_p8 = scmp.lt.s32.totalorder %s14243_s17, %s14243_s17 }
0x522a   :  { %p14250_p9 = por %p14249_p8, %p14248_p7 }
0x522c   :  { %p14251_p10 = pnand %p14250_p9, %p14244_p6 }
0x52a1   :  { %v11538_v53 = vpop.xlane.xlu1 %11537 }
0x52a2   :  { %14093 = vrcp.f32 %v11538_v53 }
0x52a5   :  { %v11620_v41 = vpop.permute.xlu1 %11619 }
0x52a6   :  { %13592 = vmatpush3.msra.mxu0 %v11620_v41 }
0x52a7   :  { %13596 = vmatprep.subr.mxu0 %v12384_v18 }
0x52ac   :  { %v14094_v44 = vpop.eup %14093 }
0x52ad   :  { %v11542_v10 = vmul.f32 %v14094_v44, %v14090_v7  ;;  %v12435_v7 = vld [vmem:[%s16013_s12 + $0xf8] sm:$0xff] }
0x52ae   :  { %v13787_v38 = vpack.c.bf16 %v12435_v7, %v12434_v13 }
0x52af   :  { %13594 = vmatmul.mubr.msk.f32.vlgmr.msra.gmra.mrb[92].mxu0 %vm237_vm2, %v11542_v10 }
0x52b0   :  { %13597 = vmatpush3.msra.mxu0 %v12384_v18 }
0x52b1   :  { %13776 = vmatprep.subr.bf16.mxu0 %v13775_v16 }
0x52e9   :  { %v11615_v25 = vpop.f32.mrb[136].mxu1 }
0x52ea   :  { %v13590_v42 = vpop.f32.mrb[137].mxu1  ;;  %13598 = vmatprep.mubr.msk.f32.mxu0 %vm237_vm2, %v11615_v25  ;;  %v12440_v25 = vld [vmem:[%s16014_s13 + $0x3] ss:$0 sm:$0xff] }
0x5382   :  { %v11691_v45 = vpop.f32.mrb[92].mxu0 }
0x5383   :  { %v13595_v31 = vpop.f32.mrb[93].mxu0  ;;  %13599 = vmatmul.mubr.msk.f32.vlgmr.msra.gmra.mrb[86].mxu0 %vm237_vm2, %v11691_v45 }
0x5384   :  { %13778 = vmatpush3.bf16.msra.mxu0 %v13775_v16 }
0x5385   :  { %13780 = vmatprep.subr.bf16.mxu0 %v13779_v22 }
0x5388   :  { %13782 = vmatpush3.bf16.msra.mxu0 %v13779_v22 }
0x5389   :  { %13784 = vmatprep.subr.bf16.mxu0 %v13783_v36 }
0x538c   :  { %13786 = vmatpush3.bf16.msra.mxu0 %v13783_v36 }
0x538d   :  { %13788 = vmatprep.subr.bf16.mxu0 %v13787_v38 }
0x5390   :  { %13790 = vmatpush3.bf16.msra.mxu0 %v13787_v38 }
0x5456   :  { %v13600_v61 = vpop.f32.mrb[86].mxu0 }
0x5457   :  { %v11785_v60 = vadd.f32 %v13600_v61, %v12422_v49  ;;  %v11767_v40 = vpop.f32.mrb[87].mxu0 }
0x5458   :  { %v11784_v48 = vadd.f32 %v12422_v49, %v11767_v40 }
0x5459   :  { %v11791_v46 = vadd.f32 %v11785_v60, %v15748_v21 }
0x545a   :  { %v11790_v30 = vadd.f32 %v11784_v48, %v15746_v26  ;;  %v11835_v26 = vld [vmem:[#allocation11 + $0x60] sm:$0xff] }
0x545b   :  { %v11795_v55 = vsel %vm152_vm0, %v11791_v46, 0.0  ;;  %v13767_v6 = vpack.c.bf16 %v11836_v4, %v11835_v26 }
0x545c   :  { %11796 = vadd.xlane.f32.xlu0 %v11795_v55  ;;  %v11792_v5 = vsel %vm152_vm0, %v11790_v30, 0.0 }
0x545d   :  { %11793 = vadd.xlane.f32.xlu1 %v11792_v5  ;;  %13768 = vmatprep.subr.bf16.mxu1 %v13767_v6 }
0x545e   :  { %13770 = vmatpush3.bf16.msra.mxu1 %v13767_v6 }
0x545f   :  { %13772 = vmatprep.subr.bf16.mxu1 %v13771_v52 }
0x5462   :  { %13774 = vmatpush3.bf16.msra.mxu1 %v13771_v52 }
0x54e9   :  { %v11797_v35 = vpop.xlane.xlu0 %11796 }
0x54ea   :  { %v11799_v57 = vmul.f32 0.03125, %v11797_v35  ;;  %v11794_v58 = vpop.xlane.xlu1 %11793 }
0x54eb   :  { %v11798_v51 = vmul.f32 0.03125, %v11794_v58 }
0x54ec   :  { %v11801_v3 = vsub.f32 %v11791_v46, %v11799_v57 }
0x54ed   :  { %v11800_v62 = vsub.f32 %v11790_v30, %v11798_v51 }
0x54ee   :  { %v11803_v1 = vmul.f32 %v11801_v3, %v11801_v3 }
0x54ef   :  { %v11802_v2 = vmul.f32 %v11800_v62, %v11800_v62 }
0x54f0   :  { %v11807_v63 = vsel %vm152_vm0, %v11803_v1, 0.0 }
0x54f1   :  { %11808 = vadd.xlane.f32.xlu1 %v11807_v63  ;;  %v11804_v21 = vsel %vm152_vm0, %v11802_v2, 0.0 }
0x54f2   :  { %11805 = vadd.xlane.f32.xlu0 %v11804_v21 }
0x557e   :  { %v11809_v50 = vpop.xlane.xlu1 %11808 }
0x557f   :  { %v11811_v43 = vmul.f32 0.03125, %v11809_v50  ;;  %v11806_v20 = vpop.xlane.xlu0 %11805 }
0x5580   :  { %v11810_v17 = vmul.f32 0.03125, %v11806_v20 }
0x5581   :  { %v11813_v54 = vadd.f32 1e-05, %v11811_v43 }
0x5582   :  { %v11812_v27 = vadd.f32 1e-05, %v11810_v17 }
0x5583   :  { %14095 = vrsqrt.f32 %v11813_v54 }
0x5584   :  { %14097 = vrsqrt.f32 %v11812_v27 }
0x558d   :  { %v14096_v12 = vpop.eup %14095 }
0x558e   :  { %v14098_v32 = vpop.eup %14097  ;;  %v11817_v0 = vmul.f32 %v14096_v12, %v11801_v3 }
0x558f   :  { %v11816_v28 = vmul.f32 %v14098_v32, %v11800_v62 }
0x5590   :  { %v11825_v8 = vmul.f32 %v12425_v47, %v11817_v0 }
0x5591   :  { %v11824_v34 = vmul.f32 %v12425_v47, %v11816_v28 }
0x5592   :  { %v11833_v37 = vadd.f32 %v12426_v33, %v11825_v8 }
0x5593   :  { %v11832_v11 = vadd.f32 %v12426_v33, %v11824_v34 }
0x5595   :  { %13609 = vmatprep.mubr.msk.f32.mxu1 %vm152_vm0, %v11832_v11 }
0x5596   :  { %13610 = vmatmul.mubr.msk.f32.vlgmr.msra.gmra.mrb[138].mxu1 %vm152_vm0, %v11833_v37 }
0x5669   :  { %v13611_v29 = vpop.f32.mrb[138].mxu1 }
0x566a   :  { %v11936_v53 = vadd.f32 %v13611_v29, %v12437_v39  ;;  %v11930_v18 = vpop.f32.mrb[139].mxu1 }
0x566b   :  { %v11931_v41 = vadd.f32 %v12437_v39, %v11930_v18 }
0x566c   :  { %v11940_v10 = vmax.f32 %v11936_v53, 0.0 }
0x566d   :  { %v11939_v44 = vmax.f32 %v11931_v41, 0.0 }
0x566f   :  { %13628 = vmatprep.mubr.msk.f32.mxu0 %vm2045_vm3, %v11939_v44 }
0x5670   :  { %13629 = vmatmul.mubr.msk.f32.vlgmr.msra.gmra.mrb[94].mxu0 %vm2045_vm3, %v11940_v10 }
0x5743   :  { %v13630_v42 = vpop.f32.mrb[94].mxu0 }
0x5744   :  { %v12025_v45 = vadd.f32 %v13630_v42, %v12440_v25  ;;  %v12019_v31 = vpop.f32.mrb[95].mxu0 }
0x5745   :  { %v12020_v49 = vadd.f32 %v12440_v25, %v12019_v31 }
0x5746   :  { %v12033_v61 = vadd.f32 %v12025_v45, %v11833_v37 }
0x5747   :  { %v12032_v60 = vadd.f32 %v12020_v49, %v11832_v11 }
0x5748   :  { %v12037_v40 = vsel %vm152_vm0, %v12033_v61, 0.0 }
0x5749   :  { %12038 = vadd.xlane.f32.xlu1 %v12037_v40  ;;  %v12034_v48 = vsel %vm152_vm0, %v12032_v60, 0.0 }
0x574a   :  { %12035 = vadd.xlane.f32.xlu0 %v12034_v48 }
0x57d6   :  { %v12039_v46 = vpop.xlane.xlu1 %12038 }
0x57d7   :  { %v12041_v30 = vmul.f32 0.03125, %v12039_v46  ;;  %v12036_v55 = vpop.xlane.xlu0 %12035 }
0x57d8   :  { %v12040_v5 = vmul.f32 0.03125, %v12036_v55 }
0x57d9   :  { %v12043_v35 = vsub.f32 %v12033_v61, %v12041_v30 }
0x57da   :  { %v12042_v57 = vsub.f32 %v12032_v60, %v12040_v5 }
0x57db   :  { %v12045_v58 = vmul.f32 %v12043_v35, %v12043_v35 }
0x57dc   :  { %v12044_v51 = vmul.f32 %v12042_v57, %v12042_v57 }
0x57dd   :  { %v12049_v3 = vsel %vm152_vm0, %v12045_v58, 0.0 }
0x57de   :  { %12050 = vadd.xlane.f32.xlu1 %v12049_v3  ;;  %v12046_v62 = vsel %vm152_vm0, %v12044_v51, 0.0 }
0x57df   :  { %12047 = vadd.xlane.f32.xlu0 %v12046_v62 }
0x586b   :  { %v12051_v1 = vpop.xlane.xlu1 %12050 }
0x586c   :  { %v12053_v2 = vmul.f32 0.03125, %v12051_v1  ;;  %v12048_v63 = vpop.xlane.xlu0 %12047 }
0x586d   :  { %v12052_v21 = vmul.f32 0.03125, %v12048_v63 }
0x586e   :  { %v12055_v26 = vadd.f32 1e-05, %v12053_v2 }
0x586f   :  { %v12054_v4 = vadd.f32 1e-05, %v12052_v21 }
0x5870   :  { %14099 = vrsqrt.f32 %v12055_v26 }
0x5871   :  { %14101 = vrsqrt.f32 %v12054_v4 }
0x587a   :  { %v14100_v6 = vpop.eup %14099 }
0x587b   :  { %v14102_v14 = vpop.eup %14101  ;;  %v12059_v52 = vmul.f32 %v14100_v6, %v12043_v35 }
0x587c   :  { %v12058_v59 = vmul.f32 %v14102_v14, %v12042_v57 }
0x587d   :  { %v12067_v56 = vmul.f32 %v12445_v9, %v12059_v52 }
0x587e   :  { %v12066_v16 = vmul.f32 %v12445_v9, %v12058_v59 }
0x587f   :  { %v12075_v19 = vadd.f32 %v12446_v15, %v12067_v56 }
0x5880   :  { %v12074_v22 = vadd.f32 %v12446_v15, %v12066_v16 }
0x5881   :  { %12077 = vst.msk [vmem:[#allocation13 + $0x8] sm:$0xff] %vm152_vm0, %v12075_v19 }
0x5882   :  { %12076 = vst.msk [vmem:[#allocation13] sm:$0xff] %vm152_vm0, %v12074_v22 }
0x5883   :  { %14254 = shalt.err (!%p14251_p10)
}
0x5884   :  { %s14255_s18 = scalar_lea.hbm %s16015_s14, 256 }
0x5885   :  { %p14256_p11 = scmp.ne.s32.totalorder %s16015_s14, %s14255_s18  ;;  %p14259_p12 = scmp.lt.u32.totalorder %s14255_s18, %s16015_s14 }
0x5887   :  { %p14261_p13 = pnand %p14259_p12, %p14256_p11 }
0x5889   :  { %14264 = shalt.err (!%p14261_p13)
}
0x588a   :  { %s16017_s16 = smov 128  }
0x588b   :  { %12089 = dma.vmem_to_hbm [thread:$0]  %s12084_s10, 256, %s16015_s14, [#allocation4], %s16017_s16, %s16017_s16, %s14278_s26  }
0x588c   :  { %14273 = dma.done.wait [#allocation4], 256  }
0x588d   :  { %14274 = vsyncadd [#allocation4], 4294967040 }
0x588e   :  { %12093 = vsyncpa [#allocation3], 1 }
0x588f   :  { %12094 = vsyncpa [#allocation6], 1 }
0x5890   :  { %12095 = vsyncpa [#allocation9], 1 }
0x5891   :  { %12096 = vsyncpa [#allocation12], 1 }
0x5892   :  { %12097 = vsyncpa [#allocation4], 1 }

</bundles_post_ra>
